<compile_context>
chip_gen: v7x
topology: tpu7x:2x2x1
jax: 0.10.0
libtpu: 0.0.40
codegen_flags: <defaults>
</compile_context>

<pallas_src>
import functools

import jax
import jax.numpy as jnp
from jax.experimental import pallas as pl
from jax.experimental.pallas import tpu as pltpu

VOCAB = 21128
D_EMB = 768
D_H1 = 256
D_H2 = 16
D_OUT = 1
LN_EPS = 1e-5   # PyTorch nn.LayerNorm default


def _layernorm(h, gamma, beta, eps=LN_EPS):
    mu = jnp.mean(h, axis=-1, keepdims=True)
    var = jnp.mean((h - mu) * (h - mu), axis=-1, keepdims=True)
    return (h - mu) * jax.lax.rsqrt(var + eps) * gamma + beta


def mlp_kernel(x_ref,
               w1_ref, b1_ref, g1_ref, be1_ref,
               w2_ref, b2_ref, g2_ref, be2_ref,
               w3_ref, b3_ref,
               o_ref):
    # x: (TM, 768) bf16, w1: (768, 256) bf16 -> f32 MXU accumulator.
    h = jnp.dot(x_ref[...], w1_ref[...], preferred_element_type=jnp.float32)
    h = h + b1_ref[...]
    h = _layernorm(h, g1_ref[...], be1_ref[...])
    h = jnp.maximum(h, 0.0)                                          # (TM, 256) f32

    h = jnp.dot(h, w2_ref[...], preferred_element_type=jnp.float32) + b2_ref[...]
    h = _layernorm(h, g2_ref[...], be2_ref[...])
    h = jnp.maximum(h, 0.0)                                          # (TM, 16) f32

    # Final 16 -> 1 projection on the VPU: (TM,16) * (1,16) summed over lanes.
    # Result is broadcast against the (1,1) bias into a (1, TM) lane vector so
    # the store below is a dense full-lane vst (no masked 1-lane stores).
    z = jnp.sum(h * w3_ref[...], axis=-1) + b3_ref[...]              # (1, TM)
    o_ref[...] = jax.nn.sigmoid(z)[None]                             # (1, 1, TM)


@functools.partial(jax.jit, static_argnames=("tm",))
def logistic_regressor_forward(ids, params, tm=512):
    """ids: (B, S) int token ids.  Returns (B, S, 1) float32 probabilities."""
    B, S = ids.shape
    N = B * S
    n_tiles = pl.cdiv(N, tm)
    n_pad = n_tiles * tm - N

    ids_flat = ids.reshape(-1).astype(jnp.int32)
    if n_pad:
        ids_flat = jnp.pad(ids_flat, (0, n_pad))     # pad rows are discarded below

    # Embedding gather (XLA glue); stream activations to the kernel in bf16.
    emb = jnp.take(params["emb"], ids_flat, axis=0).astype(jnp.bfloat16)   # (Np, 768)

    w1 = params["w1"].astype(jnp.bfloat16)           # (768, 256) bf16
    w3_row = params["w3"].reshape(1, D_H2)           # (1, 16)
    b3 = params["b3"].reshape(1, 1)                  # (1, 1)

    full = lambda i: (0, 0)
    w_spec = lambda shape: pl.BlockSpec(shape, full)

    out = pl.pallas_call(
        mlp_kernel,
        out_shape=jax.ShapeDtypeStruct((n_tiles, 1, tm), jnp.float32),
        grid_spec=pltpu.PrefetchScalarGridSpec(
            num_scalar_prefetch=0,
            grid=(n_tiles,),
            in_specs=[
                pl.BlockSpec((tm, D_EMB), lambda i: (i, 0)),   # activations (bf16)
                w_spec((D_EMB, D_H1)), w_spec((1, D_H1)),      # W1 (bf16), b1
                w_spec((1, D_H1)), w_spec((1, D_H1)),          # ln1 gamma, beta
                w_spec((D_H1, D_H2)), w_spec((1, D_H2)),       # W2, b2
                w_spec((1, D_H2)), w_spec((1, D_H2)),          # ln2 gamma, beta
                w_spec((1, D_H2)), w_spec((1, 1)),             # W3 (row), b3
            ],
            out_specs=pl.BlockSpec((1, 1, tm), lambda i: (i, 0, 0)),
        ),
        compiler_params=pltpu.CompilerParams(
            dimension_semantics=("parallel",)),
    )(
        emb,
        w1, params["b1"], params["g1"], params["be1"],
        params["w2"], params["b2"], params["g2"], params["be2"],
        w3_row, b3,
    )
    return out.reshape(-1)[:N].reshape(B, S, D_OUT)


def init_params(key):
    ks = jax.random.split(key, 4)
    scale = lambda fan_in: 1.0 / jnp.sqrt(fan_in)
    return {
        "emb": jax.random.normal(ks[0], (VOCAB, D_EMB), jnp.float32) * 0.02,
        "w1": jax.random.normal(ks[1], (D_EMB, D_H1), jnp.float32) * scale(D_EMB),
        "b1": jnp.zeros((1, D_H1), jnp.float32),
        "g1": jnp.ones((1, D_H1), jnp.float32),
        "be1": jnp.zeros((1, D_H1), jnp.float32),
        "w2": jax.random.normal(ks[2], (D_H1, D_H2), jnp.float32) * scale(D_H1),
        "b2": jnp.zeros((1, D_H2), jnp.float32),
        "g2": jnp.ones((1, D_H2), jnp.float32),
        "be2": jnp.zeros((1, D_H2), jnp.float32),
        "w3": jax.random.normal(ks[3], (D_H2, D_OUT), jnp.float32) * scale(D_H2),
        "b3": jnp.zeros((1, D_OUT), jnp.float32),
    }


def reference_forward(ids, params):
    # Same bf16 cast for the embedding/first matmul as the kernel; everything
    # else in f32 (matches PyTorch semantics modulo the bf16 activation stream).
    emb = jnp.take(params["emb"], ids.reshape(-1), axis=0).astype(jnp.bfloat16)
    h = jnp.dot(emb, params["w1"].astype(jnp.bfloat16),
                preferred_element_type=jnp.float32) + params["b1"]
    h = _layernorm(h, params["g1"], params["be1"])
    h = jnp.maximum(h, 0.0)
    h = h @ params["w2"] + params["b2"]
    h = _layernorm(h, params["g2"], params["be2"])
    h = jnp.maximum(h, 0.0)
    z = h @ params["w3"] + params["b3"]
    return jax.nn.sigmoid(z).reshape(ids.shape[0], ids.shape[1], 1)


if __name__ == "__main__":
    key = jax.random.PRNGKey(0)
    kp, ki = jax.random.split(key)
    params = init_params(kp)

    B, S = 2, 8                       # small batch of short token sequences
    ids = jax.random.randint(ki, (B, S), 0, VOCAB, dtype=jnp.int32)

    out = logistic_regressor_forward(ids, params)
    out = jax.block_until_ready(out)

    ref = reference_forward(ids, params)
    assert out.shape == (B, S, 1)
    err = jnp.max(jnp.abs(out - ref))
    assert err < 1e-2, f"max abs err {err}"

    print("KERNEL_OK")
</pallas_src>

<mosaic_0001>
module attributes {stable_mosaic.version = 11 : i64} {
  func.func @mlp_kernel(%arg0: i32, %arg1: memref<512x768xbf16, #tpu.memory_space<vmem>>, %arg2: memref<768x256xbf16, #tpu.memory_space<vmem>>, %arg3: memref<1x256xf32, #tpu.memory_space<vmem>>, %arg4: memref<1x256xf32, #tpu.memory_space<vmem>>, %arg5: memref<1x256xf32, #tpu.memory_space<vmem>>, %arg6: memref<256x16xf32, #tpu.memory_space<vmem>>, %arg7: memref<1x16xf32, #tpu.memory_space<vmem>>, %arg8: memref<1x16xf32, #tpu.memory_space<vmem>>, %arg9: memref<1x16xf32, #tpu.memory_space<vmem>>, %arg10: memref<1x16xf32, #tpu.memory_space<vmem>>, %arg11: memref<1x1xf32, #tpu.memory_space<vmem>>, %arg12: memref<1x1x512xf32, #tpu.memory_space<vmem>>) attributes {dimension_semantics = [#tpu.dimension_semantics<parallel>], iteration_bounds = array<i64: 1>, scalar_prefetch = 0 : i64, scratch_operands = 0 : i64, tpu.core_type = #tpu.core_type<tc>, window_params = [{transform_indices = @transform_0, window_bounds = array<i64: 512, 768>}, {pipeline_mode = #tpu.pipeline_mode<synchronous>, transform_indices = @transform_1, window_bounds = array<i64: 768, 256>}, {pipeline_mode = #tpu.pipeline_mode<synchronous>, transform_indices = @transform_2, window_bounds = array<i64: 1, 256>}, {pipeline_mode = #tpu.pipeline_mode<synchronous>, transform_indices = @transform_3, window_bounds = array<i64: 1, 256>}, {pipeline_mode = #tpu.pipeline_mode<synchronous>, transform_indices = @transform_4, window_bounds = array<i64: 1, 256>}, {pipeline_mode = #tpu.pipeline_mode<synchronous>, transform_indices = @transform_5, window_bounds = array<i64: 256, 16>}, {pipeline_mode = #tpu.pipeline_mode<synchronous>, transform_indices = @transform_6, window_bounds = array<i64: 1, 16>}, {pipeline_mode = #tpu.pipeline_mode<synchronous>, transform_indices = @transform_7, window_bounds = array<i64: 1, 16>}, {pipeline_mode = #tpu.pipeline_mode<synchronous>, transform_indices = @transform_8, window_bounds = array<i64: 1, 16>}, {pipeline_mode = #tpu.pipeline_mode<synchronous>, transform_indices = @transform_9, window_bounds = array<i64: 1, 16>}, {pipeline_mode = #tpu.pipeline_mode<synchronous>, transform_indices = @transform_10, window_bounds = array<i64: 1, 1>}, {transform_indices = @transform_11, window_bounds = array<i64: 1, 1, 512>}]} {
    %c0 = arith.constant 0 : index
    %c0_0 = arith.constant 0 : index
    %0 = vector.load %arg1[%c0, %c0_0] : memref<512x768xbf16, #tpu.memory_space<vmem>>, vector<512x768xbf16>
    %c0_1 = arith.constant 0 : index
    %c0_2 = arith.constant 0 : index
    %1 = vector.load %arg2[%c0_1, %c0_2] : memref<768x256xbf16, #tpu.memory_space<vmem>>, vector<768x256xbf16>
    %cst = arith.constant dense<0.000000e+00> : vector<512x256xf32>
    %2 = tpu.matmul %0, %1, %cst {dimension_numbers = #tpu.dot_dimension_numbers<[1], [0], [0], [1], [0, 0, 1, 1], [], []>} : vector<512x768xbf16>, vector<768x256xbf16>, vector<512x256xf32> -> vector<512x256xf32>
    %c0_3 = arith.constant 0 : index
    %c0_4 = arith.constant 0 : index
    %3 = vector.load %arg3[%c0_3, %c0_4] : memref<1x256xf32, #tpu.memory_space<vmem>>, vector<1x256xf32>
    %4 = vector.broadcast %3 : vector<1x256xf32> to vector<512x256xf32>
    %5 = arith.addf %2, %4 : vector<512x256xf32>
    %c0_5 = arith.constant 0 : index
    %c0_6 = arith.constant 0 : index
    %6 = vector.load %arg4[%c0_5, %c0_6] : memref<1x256xf32, #tpu.memory_space<vmem>>, vector<1x256xf32>
    %c0_7 = arith.constant 0 : index
    %c0_8 = arith.constant 0 : index
    %7 = vector.load %arg5[%c0_7, %c0_8] : memref<1x256xf32, #tpu.memory_space<vmem>>, vector<1x256xf32>
    %cst_9 = arith.constant dense<0.000000e+00> : vector<512xf32>
    %8 = vector.multi_reduction <add>, %5, %cst_9 [1] : vector<512x256xf32> to vector<512xf32>
    %9 = vector.shape_cast %8 : vector<512xf32> to vector<512x1xf32>
    %cst_10 = arith.constant 2.560000e+02 : f32
    %10 = vector.broadcast %cst_10 : f32 to vector<512x1xf32>
    %11 = arith.divf %9, %10 : vector<512x1xf32>
    %12 = vector.broadcast %11 : vector<512x1xf32> to vector<512x256xf32>
    %13 = arith.subf %5, %12 : vector<512x256xf32>
    %14 = vector.broadcast %11 : vector<512x1xf32> to vector<512x256xf32>
    %15 = arith.subf %5, %14 : vector<512x256xf32>
    %16 = arith.mulf %13, %15 : vector<512x256xf32>
    %cst_11 = arith.constant dense<0.000000e+00> : vector<512xf32>
    %17 = vector.multi_reduction <add>, %16, %cst_11 [1] : vector<512x256xf32> to vector<512xf32>
    %18 = vector.shape_cast %17 : vector<512xf32> to vector<512x1xf32>
    %cst_12 = arith.constant 2.560000e+02 : f32
    %19 = vector.broadcast %cst_12 : f32 to vector<512x1xf32>
    %20 = arith.divf %18, %19 : vector<512x1xf32>
    %21 = vector.broadcast %11 : vector<512x1xf32> to vector<512x256xf32>
    %22 = arith.subf %5, %21 : vector<512x256xf32>
    %cst_13 = arith.constant 9.99999974E-6 : f32
    %23 = vector.broadcast %cst_13 : f32 to vector<512x1xf32>
    %24 = arith.addf %20, %23 : vector<512x1xf32>
    %25 = math.rsqrt %24 : vector<512x1xf32>
    %26 = vector.broadcast %25 : vector<512x1xf32> to vector<512x256xf32>
    %27 = arith.mulf %22, %26 : vector<512x256xf32>
    %28 = vector.broadcast %6 : vector<1x256xf32> to vector<512x256xf32>
    %29 = arith.mulf %27, %28 : vector<512x256xf32>
    %30 = vector.broadcast %7 : vector<1x256xf32> to vector<512x256xf32>
    %31 = arith.addf %29, %30 : vector<512x256xf32>
    %cst_14 = arith.constant 0.000000e+00 : f32
    %32 = vector.broadcast %cst_14 : f32 to vector<512x256xf32>
    %33 = arith.maximumf %31, %32 : vector<512x256xf32>
    %c0_15 = arith.constant 0 : index
    %c0_16 = arith.constant 0 : index
    %34 = vector.load %arg6[%c0_15, %c0_16] : memref<256x16xf32, #tpu.memory_space<vmem>>, vector<256x16xf32>
    %cst_17 = arith.constant dense<0.000000e+00> : vector<512x16xf32>
    %35 = tpu.matmul %33, %34, %cst_17 {dimension_numbers = #tpu.dot_dimension_numbers<[1], [0], [0], [1], [0, 0, 1, 1], [], []>} : vector<512x256xf32>, vector<256x16xf32>, vector<512x16xf32> -> vector<512x16xf32>
    %c0_18 = arith.constant 0 : index
    %c0_19 = arith.constant 0 : index
    %36 = vector.load %arg7[%c0_18, %c0_19] : memref<1x16xf32, #tpu.memory_space<vmem>>, vector<1x16xf32>
    %37 = vector.broadcast %36 : vector<1x16xf32> to vector<512x16xf32>
    %38 = arith.addf %35, %37 : vector<512x16xf32>
    %c0_20 = arith.constant 0 : index
    %c0_21 = arith.constant 0 : index
    %39 = vector.load %arg8[%c0_20, %c0_21] : memref<1x16xf32, #tpu.memory_space<vmem>>, vector<1x16xf32>
    %c0_22 = arith.constant 0 : index
    %c0_23 = arith.constant 0 : index
    %40 = vector.load %arg9[%c0_22, %c0_23] : memref<1x16xf32, #tpu.memory_space<vmem>>, vector<1x16xf32>
    %cst_24 = arith.constant dense<0.000000e+00> : vector<512xf32>
    %41 = vector.multi_reduction <add>, %38, %cst_24 [1] : vector<512x16xf32> to vector<512xf32>
    %42 = vector.shape_cast %41 : vector<512xf32> to vector<512x1xf32>
    %cst_25 = arith.constant 1.600000e+01 : f32
    %43 = vector.broadcast %cst_25 : f32 to vector<512x1xf32>
    %44 = arith.divf %42, %43 : vector<512x1xf32>
    %45 = vector.broadcast %44 : vector<512x1xf32> to vector<512x16xf32>
    %46 = arith.subf %38, %45 : vector<512x16xf32>
    %47 = vector.broadcast %44 : vector<512x1xf32> to vector<512x16xf32>
    %48 = arith.subf %38, %47 : vector<512x16xf32>
    %49 = arith.mulf %46, %48 : vector<512x16xf32>
    %cst_26 = arith.constant dense<0.000000e+00> : vector<512xf32>
    %50 = vector.multi_reduction <add>, %49, %cst_26 [1] : vector<512x16xf32> to vector<512xf32>
    %51 = vector.shape_cast %50 : vector<512xf32> to vector<512x1xf32>
    %cst_27 = arith.constant 1.600000e+01 : f32
    %52 = vector.broadcast %cst_27 : f32 to vector<512x1xf32>
    %53 = arith.divf %51, %52 : vector<512x1xf32>
    %54 = vector.broadcast %44 : vector<512x1xf32> to vector<512x16xf32>
    %55 = arith.subf %38, %54 : vector<512x16xf32>
    %cst_28 = arith.constant 9.99999974E-6 : f32
    %56 = vector.broadcast %cst_28 : f32 to vector<512x1xf32>
    %57 = arith.addf %53, %56 : vector<512x1xf32>
    %58 = math.rsqrt %57 : vector<512x1xf32>
    %59 = vector.broadcast %58 : vector<512x1xf32> to vector<512x16xf32>
    %60 = arith.mulf %55, %59 : vector<512x16xf32>
    %61 = vector.broadcast %39 : vector<1x16xf32> to vector<512x16xf32>
    %62 = arith.mulf %60, %61 : vector<512x16xf32>
    %63 = vector.broadcast %40 : vector<1x16xf32> to vector<512x16xf32>
    %64 = arith.addf %62, %63 : vector<512x16xf32>
    %cst_29 = arith.constant 0.000000e+00 : f32
    %65 = vector.broadcast %cst_29 : f32 to vector<512x16xf32>
    %66 = arith.maximumf %64, %65 : vector<512x16xf32>
    %c0_30 = arith.constant 0 : index
    %c0_31 = arith.constant 0 : index
    %67 = vector.load %arg10[%c0_30, %c0_31] : memref<1x16xf32, #tpu.memory_space<vmem>>, vector<1x16xf32>
    %68 = vector.broadcast %67 : vector<1x16xf32> to vector<512x16xf32>
    %69 = arith.mulf %66, %68 : vector<512x16xf32>
    %cst_32 = arith.constant dense<0.000000e+00> : vector<512xf32>
    %70 = vector.multi_reduction <add>, %69, %cst_32 [1] : vector<512x16xf32> to vector<512xf32>
    %c0_33 = arith.constant 0 : index
    %c0_34 = arith.constant 0 : index
    %71 = vector.load %arg11[%c0_33, %c0_34] : memref<1x1xf32, #tpu.memory_space<vmem>>, vector<1x1xf32>
    %72 = vector.shape_cast %70 : vector<512xf32> to vector<1x512xf32>
    %73 = vector.broadcast %71 : vector<1x1xf32> to vector<1x512xf32>
    %74 = arith.addf %72, %73 : vector<1x512xf32>
    %75 = arith.negf %74 : vector<1x512xf32>
    %76 = math.exp %75 : vector<1x512xf32>
    %cst_35 = arith.constant 1.000000e+00 : f32
    %77 = vector.broadcast %cst_35 : f32 to vector<1x512xf32>
    %78 = arith.addf %77, %76 : vector<1x512xf32>
    %79 = arith.divf %77, %78 : vector<1x512xf32>
    %80 = vector.shape_cast %79 : vector<1x512xf32> to vector<1x1x512xf32>
    %c0_36 = arith.constant 0 : index
    %c0_37 = arith.constant 0 : index
    %c0_38 = arith.constant 0 : index
    %81 = vector.load %arg12[%c0_36, %c0_37, %c0_38] : memref<1x1x512xf32, #tpu.memory_space<vmem>>, vector<1x1x512xf32>
    tpu.vector_store %arg12[%c0_36, %c0_37, %c0_38], %80 {strides = array<i32>} : memref<1x1x512xf32, #tpu.memory_space<vmem>>, vector<1x1x512xf32>,
    return
  }
  func.func @transform_0(%arg0: i32) -> (i32, i32) {
    %c0_i32 = arith.constant 0 : i32
    %c0_i32_0 = arith.constant 0 : i32
    return %arg0, %c0_i32 : i32, i32
  }
  func.func @transform_1(%arg0: i32) -> (i32, i32) {
    %c0_i32 = arith.constant 0 : i32
    %c0_i32_0 = arith.constant 0 : i32
    %c0_i32_1 = arith.constant 0 : i32
    return %c0_i32, %c0_i32_0 : i32, i32
  }
  func.func @transform_2(%arg0: i32) -> (i32, i32) {
    %c0_i32 = arith.constant 0 : i32
    %c0_i32_0 = arith.constant 0 : i32
    %c0_i32_1 = arith.constant 0 : i32
    return %c0_i32, %c0_i32_0 : i32, i32
  }
  func.func @transform_3(%arg0: i32) -> (i32, i32) {
    %c0_i32 = arith.constant 0 : i32
    %c0_i32_0 = arith.constant 0 : i32
    %c0_i32_1 = arith.constant 0 : i32
    return %c0_i32, %c0_i32_0 : i32, i32
  }
  func.func @transform_4(%arg0: i32) -> (i32, i32) {
    %c0_i32 = arith.constant 0 : i32
    %c0_i32_0 = arith.constant 0 : i32
    %c0_i32_1 = arith.constant 0 : i32
    return %c0_i32, %c0_i32_0 : i32, i32
  }
  func.func @transform_5(%arg0: i32) -> (i32, i32) {
    %c0_i32 = arith.constant 0 : i32
    %c0_i32_0 = arith.constant 0 : i32
    %c0_i32_1 = arith.constant 0 : i32
    return %c0_i32, %c0_i32_0 : i32, i32
  }
  func.func @transform_6(%arg0: i32) -> (i32, i32) {
    %c0_i32 = arith.constant 0 : i32
    %c0_i32_0 = arith.constant 0 : i32
    %c0_i32_1 = arith.constant 0 : i32
    return %c0_i32, %c0_i32_0 : i32, i32
  }
  func.func @transform_7(%arg0: i32) -> (i32, i32) {
    %c0_i32 = arith.constant 0 : i32
    %c0_i32_0 = arith.constant 0 : i32
    %c0_i32_1 = arith.constant 0 : i32
    return %c0_i32, %c0_i32_0 : i32, i32
  }
  func.func @transform_8(%arg0: i32) -> (i32, i32) {
    %c0_i32 = arith.constant 0 : i32
    %c0_i32_0 = arith.constant 0 : i32
    %c0_i32_1 = arith.constant 0 : i32
    return %c0_i32, %c0_i32_0 : i32, i32
  }
  func.func @transform_9(%arg0: i32) -> (i32, i32) {
    %c0_i32 = arith.constant 0 : i32
    %c0_i32_0 = arith.constant 0 : i32
    %c0_i32_1 = arith.constant 0 : i32
    return %c0_i32, %c0_i32_0 : i32, i32
  }
  func.func @transform_10(%arg0: i32) -> (i32, i32) {
    %c0_i32 = arith.constant 0 : i32
    %c0_i32_0 = arith.constant 0 : i32
    %c0_i32_1 = arith.constant 0 : i32
    return %c0_i32, %c0_i32_0 : i32, i32
  }
  func.func @transform_11(%arg0: i32) -> (i32, i32, i32) {
    %c0_i32 = arith.constant 0 : i32
    %c0_i32_0 = arith.constant 0 : i32
    %c0_i32_1 = arith.constant 0 : i32
    return %arg0, %c0_i32, %c0_i32_0 : i32, i32, i32
  }
}

</mosaic_0001>

<bundles_post_ra>
// kernel: logistic_regressor_forward.1
= control target key start
LH: loop header
LB: loop body
LE: loop exit
PB: predicated region body
PF: predicated region fallthrough
CT: control target
= control target key end

     0   :  { %s20516_s0 = inlined_call_operand.vmem [shape: bf16[512,768], index: 0, kind: input, shape index: {}]   ;;  %s20517_s1 = inlined_call_operand.vmem [shape: bf16[768,256], index: 1, kind: input, shape index: {}]   ;;  %s20518_s2 = inlined_call_operand.hbm [shape: f32[1,256], index: 2, kind: input, shape index: {}]   ;;  %s20519_s3 = inlined_call_operand.hbm [shape: f32[1,256], index: 3, kind: input, shape index: {}]   ;;  %s20520_s4 = inlined_call_operand.hbm [shape: f32[1,256], index: 4, kind: input, shape index: {}]   ;;  %s20521_s5 = inlined_call_operand.vmem [shape: f32[256,16], index: 5, kind: input, shape index: {}]   ;;  %s20522_s6 = inlined_call_operand.hbm [shape: f32[1,16], index: 6, kind: input, shape index: {}]   ;;  %s20523_s7 = inlined_call_operand.hbm [shape: f32[1,16], index: 7, kind: input, shape index: {}]   ;;  %s20524_s8 = inlined_call_operand.hbm [shape: f32[1,16], index: 8, kind: input, shape index: {}]   ;;  %s20525_s9 = inlined_call_operand.hbm [shape: f32[1,16], index: 9, kind: input, shape index: {}]   ;;  %s20526_s10 = inlined_call_operand.<no memory space> [shape: f32[1,1], index: 10, kind: input, shape index: {}]   ;;  %s20527_s11 = inlined_call_operand.vmem [shape: f32[1,1,512], index: 11, kind: output, shape index: {}]  }
   0x1   :  { %v16_v0 = vstv %s20526_s10 }
   0x2   :  { %17 = vst [vmem:[#allocation2] sm:$0x1] %v16_v0 }
   0x3   :  { %18 = vsyncpa [#allocation4], 0 }
   0x4   :  { %19 = vsyncpa [#allocation6], 0 }
   0x5   :  { %20 = vsyncpa [#allocation9], 0 }
   0x6   :  { %21 = vsyncpa [#allocation12], 0  ;;  %s14283_s19 = smov [#allocation5]   ;;  %s14284_s21 = smov [#allocation8]  }
   0x7   :  { %s42_s20 = sshll.u32 %s14283_s19, 4  ;;  %s64_s22 = sshll.u32 %s14284_s21, 4  ;;  %s43_s20 = int_to_ptr.vmem [resolvable:$true] %s42_s20  ;;  %s65_s22 = int_to_ptr.vmem [resolvable:$true] %s64_s22 }
   0x8   :  { %s14121_s25 = scalar_lea.hbm %s20519_s3, 32 }
   0x9   :  { %p14122_p0 = scmp.ne.s32.totalorder %s20519_s3, %s14121_s25  ;;  %p14125_p1 = scmp.lt.u32.totalorder %s14121_s25, %s20519_s3 }
   0xb   :  { %p14127_p2 = pnand %p14125_p1, %p14122_p0 }
   0xd   :  { %14130 = shalt.err (!%p14127_p2)
}
   0xe   :  { %s14131_s29 = scalar_lea.vmem %s43_s20, 32  ;;  %p14136_p4 = scmp.lt.s32.totalorder %s43_s20, %s43_s20 }
   0xf   :  { %p14132_p3 = scmp.ne.s32.totalorder %s43_s20, %s14131_s29  ;;  %p14137_p5 = scmp.lt.s32.totalorder %s14131_s29, %s14131_s29 }
  0x11   :  { %p14138_p6 = por %p14137_p5, %p14136_p4 }
  0x13   :  { %p14139_p7 = pnand %p14138_p6, %p14132_p3 }
  0x15   :  { %14142 = shalt.err (!%p14139_p7)
}
  0x16   :  { %45 = dma.hbm_to_vmem [thread:$0]  %s20519_s3, 32, %s43_s20, [#allocation6]  }
  0x17   :  { %s14143_s15 = scalar_lea.hbm %s20522_s6, 16 }
  0x18   :  { %p14144_p8 = scmp.ne.s32.totalorder %s20522_s6, %s14143_s15  ;;  %p14147_p9 = scmp.lt.u32.totalorder %s14143_s15, %s20522_s6 }
  0x1a   :  { %p14149_p10 = pnand %p14147_p9, %p14144_p8 }
  0x1c   :  { %14152 = shalt.err (!%p14149_p10)
}
  0x1d   :  { %s14153_s21 = scalar_lea.vmem %s65_s22, 16  ;;  %s14157_s23 = scalar_lea.vmem %s65_s22, 32 }
  0x1e   :  { %p14154_p11 = scmp.ne.s32.totalorder %s65_s22, %s14153_s21  ;;  %p14158_p12 = scmp.lt.s32.totalorder %s65_s22, %s65_s22 }
  0x1f   :  { %p14159_p13 = scmp.lt.s32.totalorder %s14157_s23, %s14153_s21 }
  0x21   :  { %p14160_p0 = por %p14159_p13, %p14158_p12 }
  0x23   :  { %p14161_p1 = pnand %p14160_p0, %p14154_p11 }
  0x25   :  { %14164 = shalt.err (!%p14161_p1)
}
  0x26   :  { %67 = dma.hbm_to_vmem [thread:$0]  %s20522_s6, 16, %s65_s22, [#allocation9]  }
  0x27   :  { %s14285_s24 = smov [#allocation11]   ;;  %s14286_s26 = smov [#allocation3]  }
  0x28   :  { %s84_s25 = sshll.u32 %s14285_s24, 4  ;;  %s32_s27 = sshll.u32 %s14286_s26, 4  ;;  %s85_s25 = int_to_ptr.vmem [resolvable:$true] %s84_s25  ;;  %s33_s27 = int_to_ptr.vmem [resolvable:$true] %s32_s27 }
  0x29   :  { %s14165_s29 = scalar_lea.hbm %s20524_s8, 16 }
  0x2a   :  { %p14166_p2 = scmp.ne.s32.totalorder %s20524_s8, %s14165_s29  ;;  %p14169_p3 = scmp.lt.u32.totalorder %s14165_s29, %s20524_s8 }
  0x2c   :  { %p14171_p4 = pnand %p14169_p3, %p14166_p2 }
  0x2e   :  { %14174 = shalt.err (!%p14171_p4)
}
  0x2f   :  { %s14175_s6 = scalar_lea.vmem %s85_s25, 16  ;;  %s14179_s22 = scalar_lea.vmem %s85_s25, 32 }
  0x30   :  { %p14176_p5 = scmp.ne.s32.totalorder %s85_s25, %s14175_s6  ;;  %p14180_p6 = scmp.lt.s32.totalorder %s85_s25, %s85_s25 }
  0x31   :  { %p14181_p7 = scmp.lt.s32.totalorder %s14179_s22, %s14175_s6 }
  0x33   :  { %p14182_p8 = por %p14181_p7, %p14180_p6 }
  0x35   :  { %p14183_p9 = pnand %p14182_p8, %p14176_p5 }
  0x37   :  { %14186 = shalt.err (!%p14183_p9)
}
  0x38   :  { %87 = dma.hbm_to_vmem [thread:$0]  %s20524_s8, 16, %s85_s25, [#allocation12]  }
  0x39   :  { %s14187_s19 = scalar_lea.hbm %s20518_s2, 32 }
  0x3a   :  { %p14188_p10 = scmp.ne.s32.totalorder %s20518_s2, %s14187_s19  ;;  %p14191_p11 = scmp.lt.u32.totalorder %s14187_s19, %s20518_s2 }
  0x3c   :  { %p14193_p12 = pnand %p14191_p11, %p14188_p10 }
  0x3e   :  { %14196 = shalt.err (!%p14193_p12)
}
  0x3f   :  { %s14197_s24 = scalar_lea.vmem %s33_s27, 32  ;;  %p14202_p0 = scmp.lt.s32.totalorder %s33_s27, %s33_s27 }
  0x40   :  { %p14198_p13 = scmp.ne.s32.totalorder %s33_s27, %s14197_s24  ;;  %p14203_p1 = scmp.lt.s32.totalorder %s14197_s24, %s14197_s24 }
  0x42   :  { %p14204_p2 = por %p14203_p1, %p14202_p0 }
  0x44   :  { %p14205_p3 = pnand %p14204_p2, %p14198_p13 }
  0x46   :  { %14208 = shalt.err (!%p14205_p3)
}
  0x47   :  { %35 = dma.hbm_to_vmem [thread:$0]  %s20518_s2, 32, %s33_s27, [#allocation4]  }
  0x48   :  { %s14287_s26 = smov [#allocation7]   ;;  %s14288_s28 = smov [#allocation10]  }
  0x49   :  { %s52_s10 = sshll.u32 %s14287_s26, 4  ;;  %s74_s29 = sshll.u32 %s14288_s28, 4  ;;  %s53_s10 = int_to_ptr.vmem [resolvable:$true] %s52_s10  ;;  %s75_s29 = int_to_ptr.vmem [resolvable:$true] %s74_s29 }
  0x4a   :  { %s14209_s13 = scalar_lea.hbm %s20520_s4, 32 }
  0x4b   :  { %p14210_p4 = scmp.ne.s32.totalorder %s20520_s4, %s14209_s13  ;;  %p14213_p5 = scmp.lt.u32.totalorder %s14209_s13, %s20520_s4 }
  0x4d   :  { %p14215_p6 = pnand %p14213_p5, %p14210_p4 }
  0x4f   :  { %14218 = shalt.err (!%p14215_p6)
}
  0x50   :  { %s14219_s2 = scalar_lea.vmem %s53_s10, 32  ;;  %p14224_p8 = scmp.lt.s32.totalorder %s53_s10, %s53_s10 }
  0x51   :  { %p14220_p7 = scmp.ne.s32.totalorder %s53_s10, %s14219_s2  ;;  %p14225_p9 = scmp.lt.s32.totalorder %s14219_s2, %s14219_s2 }
  0x53   :  { %p14226_p10 = por %p14225_p9, %p14224_p8 }
  0x55   :  { %p14227_p11 = pnand %p14226_p10, %p14220_p7 }
  0x57   :  { %14230 = shalt.err (!%p14227_p11)
}
  0x58   :  { %55 = dma.hbm_to_vmem [thread:$0]  %s20520_s4, 32, %s53_s10, [#allocation6]  }
  0x59   :  { %s14231_s19 = scalar_lea.hbm %s20523_s7, 16 }
  0x5a   :  { %p14232_p12 = scmp.ne.s32.totalorder %s20523_s7, %s14231_s19  ;;  %p14235_p13 = scmp.lt.u32.totalorder %s14231_s19, %s20523_s7 }
  0x5c   :  { %p14237_p0 = pnand %p14235_p13, %p14232_p12 }
  0x5e   :  { %14240 = shalt.err (!%p14237_p0)
}
  0x5f   :  { %s14241_s24 = scalar_lea.vmem %s75_s29, 16  ;;  %s14245_s8 = scalar_lea.vmem %s75_s29, 32 }
  0x60   :  { %p14242_p1 = scmp.ne.s32.totalorder %s75_s29, %s14241_s24  ;;  %p14246_p2 = scmp.lt.s32.totalorder %s75_s29, %s75_s29 }
  0x61   :  { %p14247_p3 = scmp.lt.s32.totalorder %s14245_s8, %s14241_s24 }
  0x63   :  { %p14248_p4 = por %p14247_p3, %p14246_p2 }
  0x65   :  { %p14249_p5 = pnand %p14248_p4, %p14242_p1 }
  0x67   :  { %14252 = shalt.err (!%p14249_p5)
}
  0x68   :  { %77 = dma.hbm_to_vmem [thread:$0]  %s20523_s7, 16, %s75_s29, [#allocation9]  }
  0x69   :  { %s14289_s26 = smov [#allocation13]   ;;  %s14253_s12 = scalar_lea.hbm %s20525_s9, 16 }
  0x6a   :  { %s94_s10 = sshll.u32 %s14289_s26, 4  ;;  %p14254_p6 = scmp.ne.s32.totalorder %s20525_s9, %s14253_s12  ;;  %s95_s10 = int_to_ptr.vmem [resolvable:$true] %s94_s10 }
  0x6b   :  { %p14257_p7 = scmp.lt.u32.totalorder %s14253_s12, %s20525_s9 }
  0x6d   :  { %p14259_p8 = pnand %p14257_p7, %p14254_p6 }
  0x6f   :  { %14262 = shalt.err (!%p14259_p8)
}
  0x70   :  { %s14263_s15 = scalar_lea.vmem %s95_s10, 16  ;;  %s14267_s7 = scalar_lea.vmem %s95_s10, 32 }
  0x71   :  { %p14264_p9 = scmp.ne.s32.totalorder %s95_s10, %s14263_s15  ;;  %p14268_p10 = scmp.lt.s32.totalorder %s95_s10, %s95_s10 }
  0x72   :  { %p14269_p11 = scmp.lt.s32.totalorder %s14267_s7, %s14263_s15 }
  0x74   :  { %p14270_p12 = por %p14269_p11, %p14268_p10 }
  0x76   :  { %p14271_p13 = pnand %p14270_p12, %p14264_p9 }
  0x78   :  { %14274 = shalt.err (!%p14271_p13)
}
  0x79   :  { %97 = dma.hbm_to_vmem [thread:$0]  %s20525_s9, 16, %s95_s10, [#allocation12]  }
  0x7a   :  { %14275 = dma.done.wait [#allocation4], 32  }
  0x7b   :  { %14276 = vsyncadd [#allocation4], 4294967264 }
  0x7c   :  { %14277 = dma.done.wait [#allocation6], 64  }
  0x7d   :  { %14278 = vsyncadd [#allocation6], 4294967232 }
  0x7e   :  { %14279 = dma.done.wait [#allocation9], 32  }
  0x7f   :  { %14280 = vsyncadd [#allocation9], 4294967264 }
  0x80   :  { %14281 = dma.done.wait [#allocation12], 32  }
  0x81   :  { %14282 = vsyncadd [#allocation12], 4294967264  ;;  %v13164_v1 = vld [vmem:[%s20517_s1 + $0x104] ss:$8 sps:$4 sm:$0xff]   ;;  %v13166_v2 = vld [vmem:[%s20517_s1 + $0x100] ss:$8 sps:$4 sm:$0xff]  }
  0x82   :  { %2214 = vmatprep.subr.bf16.mxu0 %v13164_v1  ;;  %v13167_v3 = vld [vmem:[%s20517_s1 + $0x114] ss:$8 sps:$4 sm:$0xff]   ;;  %v13169_v4 = vld [vmem:[%s20517_s1 + $0x110] ss:$8 sps:$4 sm:$0xff]   ;;  %v13170_v5 = vld [vmem:[%s20517_s1 + $0x124] ss:$8 sps:$4 sm:$0xff]  }
  0x83   :  { %2215 = vmatpush1.bf16.msra.mxu0 %v13166_v2  ;;  %v13172_v6 = vld [vmem:[%s20517_s1 + $0x120] ss:$8 sps:$4 sm:$0xff]   ;;  %v13173_v7 = vld [vmem:[%s20517_s1 + $0x134] ss:$8 sps:$4 sm:$0xff]   ;;  %v13175_v8 = vld [vmem:[%s20517_s1 + $0x130] ss:$8 sps:$4 sm:$0xff]  }
  0x84   :  { %2216 = vmatprep.subr.bf16.mxu0 %v13167_v3  ;;  %v13176_v9 = vld [vmem:[%s20517_s1 + $0x144] ss:$8 sps:$4 sm:$0xff]   ;;  %v13178_v10 = vld [vmem:[%s20517_s1 + $0x140] ss:$8 sps:$4 sm:$0xff]   ;;  %v13179_v11 = vld [vmem:[%s20517_s1 + $0x154] ss:$8 sps:$4 sm:$0xff]  }
  0x85   :  { %v13181_v12 = vld [vmem:[%s20517_s1 + $0x150] ss:$8 sps:$4 sm:$0xff]   ;;  %v13182_v13 = vld [vmem:[%s20517_s1 + $0x164] ss:$8 sps:$4 sm:$0xff]   ;;  %v13184_v15 = vld [vmem:[%s20517_s1 + $0x160] ss:$8 sps:$4 sm:$0xff]  }
  0x86   :  { %v13214_v14 = vld [vmem:[%s20516_s0 + $0xc] ss:$24 sps:$4 sm:$0xff]   ;;  %v13185_v16 = vld [vmem:[%s20517_s1 + $0x174] ss:$8 sps:$4 sm:$0xff]   ;;  %v13187_v17 = vld [vmem:[%s20517_s1 + $0x170] ss:$8 sps:$4 sm:$0xff]  }
  0x87   :  { %2217 = vmatpush1.bf16.msra.mxu0 %v13169_v4  ;;  %2246 = vmatprep.mubr.bf16.mxu0 %v13214_v14  ;;  %v13188_v18 = vld [vmem:[%s20517_s1 + $0x184] ss:$8 sps:$4 sm:$0xff]   ;;  %v13190_v19 = vld [vmem:[%s20517_s1 + $0x180] ss:$8 sps:$4 sm:$0xff]   ;;  %v13191_v20 = vld [vmem:[%s20517_s1 + $0x194] ss:$8 sps:$4 sm:$0xff]  }
  0x88   :  { %2218 = vmatprep.subr.bf16.mxu0 %v13170_v5  ;;  %v13193_v21 = vld [vmem:[%s20517_s1 + $0x190] ss:$8 sps:$4 sm:$0xff]   ;;  %v13194_v22 = vld [vmem:[%s20517_s1 + $0x1a4] ss:$8 sps:$4 sm:$0xff]   ;;  %v13196_v23 = vld [vmem:[%s20517_s1 + $0x1a0] ss:$8 sps:$4 sm:$0xff]  }
  0x89   :  { %v13197_v24 = vld [vmem:[%s20517_s1 + $0x1b4] ss:$8 sps:$4 sm:$0xff]   ;;  %v13199_v25 = vld [vmem:[%s20517_s1 + $0x1b0] ss:$8 sps:$4 sm:$0xff]   ;;  %v13200_v26 = vld [vmem:[%s20517_s1 + $0x1c4] ss:$8 sps:$4 sm:$0xff]  }
  0x8a   :  { %v13202_v27 = vld [vmem:[%s20517_s1 + $0x1c0] ss:$8 sps:$4 sm:$0xff]   ;;  %v13203_v28 = vld [vmem:[%s20517_s1 + $0x1d4] ss:$8 sps:$4 sm:$0xff]   ;;  %v13205_v29 = vld [vmem:[%s20517_s1 + $0x1d0] ss:$8 sps:$4 sm:$0xff]  }
  0x8b   :  { %2219 = vmatpush1.bf16.msra.mxu0 %v13172_v6  ;;  %v13206_v30 = vld [vmem:[%s20517_s1 + $0x1e4] ss:$8 sps:$4 sm:$0xff]   ;;  %v13208_v31 = vld [vmem:[%s20517_s1 + $0x1e0] ss:$8 sps:$4 sm:$0xff]   ;;  %v13209_v32 = vld [vmem:[%s20517_s1 + $0x1f4] ss:$8 sps:$4 sm:$0xff]  }
  0x8c   :  { %2220 = vmatprep.subr.bf16.mxu0 %v13173_v7  ;;  %v13211_v33 = vld [vmem:[%s20517_s1 + $0x1f0] ss:$8 sps:$4 sm:$0xff]   ;;  %v13217_v34 = vld [vmem:[%s20517_s1 + $0x204] ss:$8 sps:$4 sm:$0xff]   ;;  %v13212_v35 = vld [vmem:[%s20516_s0 + $0x8] ss:$24 sps:$4 sm:$0xff]  }
  0x8d   :  { %v13215_v36 = vld [vmem:[%s20517_s1 + $0x200] ss:$8 sps:$4 sm:$0xff]   ;;  %v13218_v37 = vld [vmem:[%s20516_s0 + $0x3c] ss:$24 sps:$4 sm:$0xff]   ;;  %v13224_v39 = vld [vmem:[%s20517_s1 + $0x210] ss:$8 sps:$4 sm:$0xff]  }
  0x8e   :  { %v13226_v38 = vld [vmem:[%s20517_s1 + $0x214] ss:$8 sps:$4 sm:$0xff]   ;;  %v13235_v40 = vld [vmem:[%s20517_s1 + $0x224] ss:$8 sps:$4 sm:$0xff]   ;;  %v13220_v41 = vld [vmem:[%s20516_s0 + $0x38] ss:$24 sps:$4 sm:$0xff]  }
  0x8f   :  { %2221 = vmatpush1.bf16.msra.mxu0 %v13175_v8  ;;  %v13221_v42 = vld [vmem:[%s20516_s0 + $0x6c] ss:$24 sps:$4 sm:$0xff]   ;;  %v13233_v43 = vld [vmem:[%s20517_s1 + $0x220] ss:$8 sps:$4 sm:$0xff]   ;;  %v13244_v44 = vld [vmem:[%s20517_s1 + $0x234] ss:$8 sps:$4 sm:$0xff]  }
  0x90   :  { %2222 = vmatprep.subr.bf16.mxu0 %v13176_v9  ;;  %v13242_v45 = vld [vmem:[%s20517_s1 + $0x230] ss:$8 sps:$4 sm:$0xff]   ;;  %v13253_v46 = vld [vmem:[%s20517_s1 + $0x244] ss:$8 sps:$4 sm:$0xff]   ;;  %v13223_v47 = vld [vmem:[%s20516_s0 + $0x68] ss:$24 sps:$4 sm:$0xff]  }
  0x91   :  { %v13227_v48 = vld [vmem:[%s20516_s0 + $0x9c] ss:$24 sps:$4 sm:$0xff]   ;;  %v13251_v49 = vld [vmem:[%s20517_s1 + $0x240] ss:$8 sps:$4 sm:$0xff]   ;;  %v13260_v51 = vld [vmem:[%s20517_s1 + $0x250] ss:$8 sps:$4 sm:$0xff]  }
  0x92   :  { %v13262_v50 = vld [vmem:[%s20517_s1 + $0x254] ss:$8 sps:$4 sm:$0xff]   ;;  %v13271_v52 = vld [vmem:[%s20517_s1 + $0x264] ss:$8 sps:$4 sm:$0xff]   ;;  %v13229_v53 = vld [vmem:[%s20516_s0 + $0x98] ss:$24 sps:$4 sm:$0xff]  }
  0x93   :  { %2223 = vmatpush1.bf16.msra.mxu0 %v13178_v10  ;;  %v13230_v54 = vld [vmem:[%s20516_s0 + $0xcc] ss:$24 sps:$4 sm:$0xff]   ;;  %v13269_v55 = vld [vmem:[%s20517_s1 + $0x260] ss:$8 sps:$4 sm:$0xff]   ;;  %v13280_v56 = vld [vmem:[%s20517_s1 + $0x274] ss:$8 sps:$4 sm:$0xff]  }
  0x94   :  { %2224 = vmatprep.subr.bf16.mxu0 %v13179_v11  ;;  %v13278_v57 = vld [vmem:[%s20517_s1 + $0x270] ss:$8 sps:$4 sm:$0xff]   ;;  %v13289_v58 = vld [vmem:[%s20517_s1 + $0x284] ss:$8 sps:$4 sm:$0xff]   ;;  %v13232_v59 = vld [vmem:[%s20516_s0 + $0xc8] ss:$24 sps:$4 sm:$0xff]  }
  0x95   :  { %v13236_v60 = vld [vmem:[%s20516_s0 + $0xfc] ss:$24 sps:$4 sm:$0xff]   ;;  %v13287_v61 = vld [vmem:[%s20517_s1 + $0x280] ss:$8 sps:$4 sm:$0xff]   ;;  %v13296_v63 = vld [vmem:[%s20517_s1 + $0x290] ss:$8 sps:$4 sm:$0xff]  }
  0x96   :  { %v13298_v62 = vld [vmem:[%s20517_s1 + $0x294] ss:$8 sps:$4 sm:$0xff]   ;;  %v13307_v0 = vld [vmem:[%s20517_s1 + $0x2a4] ss:$8 sps:$4 sm:$0xff]   ;;  %v13238_v1 = vld [vmem:[%s20516_s0 + $0xf8] ss:$24 sps:$4 sm:$0xff]  }
  0x97   :  { %2225 = vmatpush1.bf16.msra.mxu0 %v13181_v12  ;;  %v13239_v2 = vld [vmem:[%s20516_s0 + $0x12c] ss:$24 sps:$4 sm:$0xff]   ;;  %v13305_v3 = vld [vmem:[%s20517_s1 + $0x2a0] ss:$8 sps:$4 sm:$0xff]   ;;  %v13245_v5 = vld [vmem:[%s20516_s0 + $0x15c] ss:$24 sps:$4 sm:$0xff]  }
  0x98   :  { %2226 = vmatprep.subr.bf16.mxu0 %v13182_v13  ;;  %v13241_v4 = vld [vmem:[%s20516_s0 + $0x128] ss:$24 sps:$4 sm:$0xff]   ;;  %v13314_v6 = vld [vmem:[%s20517_s1 + $0x2b0] ss:$8 sps:$4 sm:$0xff]   ;;  %v13316_v7 = vld [vmem:[%s20517_s1 + $0x2b4] ss:$8 sps:$4 sm:$0xff]  }
  0x99   :  { %v13247_v8 = vld [vmem:[%s20516_s0 + $0x158] ss:$24 sps:$4 sm:$0xff]   ;;  %v13248_v9 = vld [vmem:[%s20516_s0 + $0x18c] ss:$24 sps:$4 sm:$0xff]   ;;  %v13322_v11 = vld [vmem:[%s20517_s1] ss:$8 sps:$4 sm:$0xff]  }
  0x9a   :  { %v13320_v10 = vld [vmem:[%s20517_s1 + $0x4] ss:$8 sps:$4 sm:$0xff]   ;;  %v13325_v12 = vld [vmem:[%s20517_s1 + $0x14] ss:$8 sps:$4 sm:$0xff]   ;;  %v13250_v13 = vld [vmem:[%s20516_s0 + $0x188] ss:$24 sps:$4 sm:$0xff]  }
  0x9b   :  { %2227 = vmatpush1.bf16.msra.mxu0 %v13184_v15  ;;  %1861 = vmatprep.subr.bf16.mxu1 %v13320_v10  ;;  %v13254_v14 = vld [vmem:[%s20516_s0 + $0x1bc] ss:$24 sps:$4 sm:$0xff]   ;;  %v13331_v15 = vld [vmem:[%s20517_s1 + $0x10] ss:$8 sps:$4 sm:$0xff]   ;;  %vm4779_vm0 = vcmask 130048   ;;  %vm11989_vm1 = vcmask 130112  }
  0x9c   :  { %2228 = vmatprep.subr.bf16.mxu0 %v13185_v16  ;;  %1862 = vmatpush1.bf16.msra.mxu1 %v13322_v11  ;;  %v13328_v16 = vld [vmem:[%s20517_s1 + $0x2c0] ss:$8 sps:$4 sm:$0xff]   ;;  %v13416_v10 = vld [vmem:[%s20516_s0 + $0x64] ss:$24 sps:$4 sm:$0xff]   ;;  %vm11996_vm2 = vcmask 195712   ;;  %vm12003_vm3 = vcmask 261312  }
  0x9d   :  { %1863 = vmatprep.subr.bf16.mxu1 %v13325_v12  ;;  %v13418_v11 = vld [vmem:[%s20516_s0 + $0x60] ss:$24 sps:$4 sm:$0xff]   ;;  %vm12010_vm4 = vcmask 326912   ;;  %vm12017_vm5 = vcmask 392512   ;;  %vm12024_vm6 = vcmask 458112   ;;  %vm12031_vm7 = vcmask 523712  }
  0x9e   :  { %v13295_v12 = vld [vmem:[%s20516_s0 + $0x368] ss:$24 sps:$4 sm:$0xff]   ;;  %vm12038_vm8 = vcmask 589312   ;;  %vm12045_vm9 = vcmask 654912   ;;  %vm12052_vm10 = vcmask 720512   ;;  %vm12059_vm11 = vcmask 786112  }
  0x9f   :  { %2229 = vmatpush1.bf16.msra.mxu0 %v13187_v17  ;;  %v13330_v17 = vld [vmem:[%s20517_s1 + $0x2c4] ss:$8 sps:$4 sm:$0xff]   ;;  %vm12066_vm12 = vcmask 851712   ;;  %vm12073_vm13 = vcmask 917312   ;;  %vm12080_vm14 = vcmask 982912   ;;  %vm12087_vm15 = vcmask 1048512  }
  0xa0   :  { %2230 = vmatprep.subr.bf16.mxu0 %v13188_v18  ;;  %1864 = vmatpush1.bf16.msra.mxu1 %v13331_v15  ;;  %v13332_v18 = vld [vmem:[%s20517_s1 + $0x24] ss:$8 sps:$4 sm:$0xff]   ;;  %v13424_v15 = vld [vmem:[%s20516_s0 + $0x90] ss:$24 sps:$4 sm:$0xff]  }
  0xa1   :  { %1865 = vmatprep.subr.bf16.mxu1 %v13332_v18  ;;  %v13428_v18 = vld [vmem:[%s20516_s0 + $0xc4] ss:$24 sps:$4 sm:$0xff]  }
  0xa3   :  { %2231 = vmatpush1.bf16.msra.mxu0 %v13190_v19  ;;  %v13334_v19 = vld [vmem:[%s20517_s1 + $0x20] ss:$8 sps:$4 sm:$0xff]  }
  0xa4   :  { %2232 = vmatprep.subr.bf16.mxu0 %v13191_v20  ;;  %v13337_v20 = vld [vmem:[%s20517_s1 + $0x34] ss:$8 sps:$4 sm:$0xff]   ;;  %1866 = vmatpush1.bf16.msra.mxu1 %v13334_v19  ;;  %v13430_v19 = vld [vmem:[%s20516_s0 + $0xc0] ss:$24 sps:$4 sm:$0xff]  }
  0xa5   :  { %1867 = vmatprep.subr.bf16.mxu1 %v13337_v20  ;;  %v13304_v20 = vld [vmem:[%s20516_s0 + $0x3c8] ss:$24 sps:$4 sm:$0xff]  }
  0xa7   :  { %2233 = vmatpush1.bf16.msra.mxu0 %v13193_v21  ;;  %v13256_v21 = vld [vmem:[%s20516_s0 + $0x1b8] ss:$24 sps:$4 sm:$0xff]  }
  0xa8   :  { %2234 = vmatprep.subr.bf16.mxu0 %v13194_v22  ;;  %v13257_v22 = vld [vmem:[%s20516_s0 + $0x1ec] ss:$24 sps:$4 sm:$0xff]  }
  0xab   :  { %2235 = vmatpush1.bf16.msra.mxu0 %v13196_v23  ;;  %v13340_v23 = vld [vmem:[%s20517_s1 + $0x30] ss:$8 sps:$4 sm:$0xff]  }
  0xac   :  { %2236 = vmatprep.subr.bf16.mxu0 %v13197_v24  ;;  %1868 = vmatpush1.bf16.msra.mxu1 %v13340_v23  ;;  %v13341_v24 = vld [vmem:[%s20517_s1 + $0x44] ss:$8 sps:$4 sm:$0xff]   ;;  %v13436_v23 = vld [vmem:[%s20516_s0 + $0xf0] ss:$24 sps:$4 sm:$0xff]  }
  0xad   :  { %1869 = vmatprep.subr.bf16.mxu1 %v13341_v24  ;;  %v13310_v24 = vld [vmem:[%s20516_s0 + $0x3f8] ss:$24 sps:$4 sm:$0xff]  }
  0xaf   :  { %2237 = vmatpush1.bf16.msra.mxu0 %v13199_v25  ;;  %v13343_v25 = vld [vmem:[%s20517_s1 + $0x40] ss:$8 sps:$4 sm:$0xff]  }
  0xb0   :  { %2238 = vmatprep.subr.bf16.mxu0 %v13200_v26  ;;  %v13346_v26 = vld [vmem:[%s20517_s1 + $0x54] ss:$8 sps:$4 sm:$0xff]   ;;  %1870 = vmatpush1.bf16.msra.mxu1 %v13343_v25  ;;  %v13311_v25 = vld [vmem:[%s20516_s0 + $0x42c] ss:$24 sps:$4 sm:$0xff]  }
  0xb1   :  { %1871 = vmatprep.subr.bf16.mxu1 %v13346_v26  ;;  %v13440_v26 = vld [vmem:[%s20516_s0 + $0x124] ss:$24 sps:$4 sm:$0xff]  }
  0xb3   :  { %2239 = vmatpush1.bf16.msra.mxu0 %v13202_v27  ;;  %v13259_v27 = vld [vmem:[%s20516_s0 + $0x1e8] ss:$24 sps:$4 sm:$0xff]  }
  0xb4   :  { %2240 = vmatprep.subr.bf16.mxu0 %v13203_v28  ;;  %v13263_v28 = vld [vmem:[%s20516_s0 + $0x21c] ss:$24 sps:$4 sm:$0xff]  }
  0xb7   :  { %2241 = vmatpush1.bf16.msra.mxu0 %v13205_v29  ;;  %v13352_v29 = vld [vmem:[%s20517_s1 + $0x50] ss:$8 sps:$4 sm:$0xff]  }
  0xb8   :  { %2242 = vmatprep.subr.bf16.mxu0 %v13206_v30  ;;  %v13349_v30 = vld [vmem:[%s20517_s1 + $0x2d0] ss:$8 sps:$4 sm:$0xff]   ;;  %1872 = vmatpush1.bf16.msra.mxu1 %v13352_v29  ;;  %v13317_v29 = vld [vmem:[%s20516_s0 + $0x45c] ss:$24 sps:$4 sm:$0xff]  }
  0xbb   :  { %2243 = vmatpush1.bf16.msra.mxu0 %v13208_v31  ;;  %v13351_v31 = vld [vmem:[%s20517_s1 + $0x2d4] ss:$8 sps:$4 sm:$0xff]  }
  0xbc   :  { %2244 = vmatprep.subr.bf16.mxu0 %v13209_v32  ;;  %v13353_v32 = vld [vmem:[%s20517_s1 + $0x64] ss:$8 sps:$4 sm:$0xff]  }
  0xbd   :  { %1873 = vmatprep.subr.bf16.mxu1 %v13353_v32  ;;  %v13319_v32 = vld [vmem:[%s20516_s0 + $0x458] ss:$24 sps:$4 sm:$0xff]  }
  0xbf   :  { %2245 = vmatpush1.bf16.msra.mxu0 %v13211_v33  ;;  %v13355_v33 = vld [vmem:[%s20517_s1 + $0x60] ss:$8 sps:$4 sm:$0xff]  }
  0xc0   :  { %2567 = vmatprep.subr.bf16.mxu0 %v13217_v34  ;;  %v13358_v34 = vld [vmem:[%s20517_s1 + $0x74] ss:$8 sps:$4 sm:$0xff]   ;;  %1874 = vmatpush1.bf16.msra.mxu1 %v13355_v33  ;;  %v13323_v33 = vld [vmem:[%s20516_s0 + $0x48c] ss:$24 sps:$4 sm:$0xff]  }
  0xc1   :  { %1875 = vmatprep.subr.bf16.mxu1 %v13358_v34  ;;  %v13452_v34 = vld [vmem:[%s20516_s0 + $0x184] ss:$24 sps:$4 sm:$0xff]  }
  0xc2   :  { %2247 = vmatmul.mubr.bf16.vlgmr.msra.gmra.mrb[0].mxu0 %v13212_v35  ;;  %v13265_v35 = vld [vmem:[%s20516_s0 + $0x218] ss:$24 sps:$4 sm:$0xff]  }
  0xc3   :  { %2568 = vmatpush1.bf16.msra.mxu0 %v13215_v36  ;;  %2256 = vmatprep.mubr.bf16.mxu0 %v13218_v37  ;;  %v13266_v36 = vld [vmem:[%s20516_s0 + $0x24c] ss:$24 sps:$4 sm:$0xff]   ;;  %v13361_v37 = vld [vmem:[%s20517_s1 + $0x70] ss:$8 sps:$4 sm:$0xff]  }
  0xc4   :  { %2569 = vmatprep.subr.bf16.mxu0 %v13226_v38  ;;  %1876 = vmatpush1.bf16.msra.mxu1 %v13361_v37  ;;  %v13362_v38 = vld [vmem:[%s20517_s1 + $0x84] ss:$8 sps:$4 sm:$0xff]   ;;  %v13335_v37 = vld [vmem:[%s20516_s0 + $0x4bc] ss:$24 sps:$4 sm:$0xff]  }
  0xc5   :  { %1877 = vmatprep.subr.bf16.mxu1 %v13362_v38  ;;  %v13458_v38 = vld [vmem:[%s20516_s0 + $0x1b4] ss:$24 sps:$4 sm:$0xff]  }
  0xc7   :  { %2570 = vmatpush1.bf16.msra.mxu0 %v13224_v39  ;;  %v13364_v39 = vld [vmem:[%s20517_s1 + $0x80] ss:$8 sps:$4 sm:$0xff]  }
  0xc8   :  { %2571 = vmatprep.subr.bf16.mxu0 %v13235_v40  ;;  %v13367_v40 = vld [vmem:[%s20517_s1 + $0x94] ss:$8 sps:$4 sm:$0xff]   ;;  %1878 = vmatpush1.bf16.msra.mxu1 %v13364_v39  ;;  %v13460_v39 = vld [vmem:[%s20516_s0 + $0x1b0] ss:$24 sps:$4 sm:$0xff]  }
  0xc9   :  { %1879 = vmatprep.subr.bf16.mxu1 %v13367_v40  ;;  %v13339_v40 = vld [vmem:[%s20516_s0 + $0x4b8] ss:$24 sps:$4 sm:$0xff]  }
  0xca   :  { %2257 = vmatmul.mubr.bf16.gmra.mrb[4].mxu0 %v13220_v41  ;;  %v13268_v41 = vld [vmem:[%s20516_s0 + $0x248] ss:$24 sps:$4 sm:$0xff]  }
  0xcb   :  { %2266 = vmatprep.mubr.bf16.mxu0 %v13221_v42  ;;  %2572 = vmatpush1.bf16.msra.mxu0 %v13233_v43  ;;  %v13272_v42 = vld [vmem:[%s20516_s0 + $0x27c] ss:$24 sps:$4 sm:$0xff]   ;;  %v13373_v43 = vld [vmem:[%s20517_s1 + $0x90] ss:$8 sps:$4 sm:$0xff]  }
  0xcc   :  { %2573 = vmatprep.subr.bf16.mxu0 %v13244_v44  ;;  %v13370_v44 = vld [vmem:[%s20517_s1 + $0x2e0] ss:$8 sps:$4 sm:$0xff]   ;;  %1880 = vmatpush1.bf16.msra.mxu1 %v13373_v43 }
  0xcd   :  { %v13466_v43 = vld [vmem:[%s20516_s0 + $0x1e0] ss:$24 sps:$4 sm:$0xff]  }
  0xcf   :  { %2574 = vmatpush1.bf16.msra.mxu0 %v13242_v45  ;;  %v13372_v45 = vld [vmem:[%s20517_s1 + $0x2e4] ss:$8 sps:$4 sm:$0xff]  }
  0xd0   :  { %2575 = vmatprep.subr.bf16.mxu0 %v13253_v46  ;;  %v13374_v46 = vld [vmem:[%s20517_s1 + $0xa4] ss:$8 sps:$4 sm:$0xff]  }
  0xd1   :  { %1881 = vmatprep.subr.bf16.mxu1 %v13374_v46  ;;  %v13470_v46 = vld [vmem:[%s20516_s0 + $0x214] ss:$24 sps:$4 sm:$0xff]  }
  0xd2   :  { %2267 = vmatmul.mubr.bf16.gmra.mrb[8].mxu0 %v13223_v47  ;;  %v13376_v47 = vld [vmem:[%s20517_s1 + $0xa0] ss:$8 sps:$4 sm:$0xff]  }
  0xd3   :  { %2276 = vmatprep.mubr.bf16.mxu0 %v13227_v48  ;;  %2576 = vmatpush1.bf16.msra.mxu0 %v13251_v49  ;;  %v13379_v48 = vld [vmem:[%s20517_s1 + $0xb4] ss:$8 sps:$4 sm:$0xff]   ;;  %v13274_v49 = vld [vmem:[%s20516_s0 + $0x278] ss:$24 sps:$4 sm:$0xff]  }
  0xd4   :  { %2577 = vmatprep.subr.bf16.mxu0 %v13262_v50  ;;  %1882 = vmatpush1.bf16.msra.mxu1 %v13376_v47  ;;  %v13275_v50 = vld [vmem:[%s20516_s0 + $0x2ac] ss:$24 sps:$4 sm:$0xff]   ;;  %v13472_v47 = vld [vmem:[%s20516_s0 + $0x210] ss:$24 sps:$4 sm:$0xff]  }
  0xd5   :  { %1883 = vmatprep.subr.bf16.mxu1 %v13379_v48  ;;  %v13360_v48 = vld [vmem:[%s20516_s0 + $0x518] ss:$24 sps:$4 sm:$0xff]  }
  0xd7   :  { %2578 = vmatpush1.bf16.msra.mxu0 %v13260_v51  ;;  %v13382_v51 = vld [vmem:[%s20517_s1 + $0xb0] ss:$8 sps:$4 sm:$0xff]  }
  0xd8   :  { %2579 = vmatprep.subr.bf16.mxu0 %v13271_v52  ;;  %1884 = vmatpush1.bf16.msra.mxu1 %v13382_v51  ;;  %v13383_v52 = vld [vmem:[%s20517_s1 + $0xc4] ss:$8 sps:$4 sm:$0xff]   ;;  %v13478_v51 = vld [vmem:[%s20516_s0 + $0x240] ss:$24 sps:$4 sm:$0xff]  }
  0xd9   :  { %1885 = vmatprep.subr.bf16.mxu1 %v13383_v52  ;;  %v13369_v52 = vld [vmem:[%s20516_s0 + $0x548] ss:$24 sps:$4 sm:$0xff]  }
  0xda   :  { %2277 = vmatmul.mubr.bf16.gmra.mrb[12].mxu0 %v13229_v53  ;;  %v13385_v53 = vld [vmem:[%s20517_s1 + $0xc0] ss:$8 sps:$4 sm:$0xff]  }
  0xdb   :  { %2286 = vmatprep.mubr.bf16.mxu0 %v13230_v54  ;;  %2580 = vmatpush1.bf16.msra.mxu0 %v13269_v55  ;;  %v13388_v54 = vld [vmem:[%s20517_s1 + $0xd4] ss:$8 sps:$4 sm:$0xff]   ;;  %v13277_v55 = vld [vmem:[%s20516_s0 + $0x2a8] ss:$24 sps:$4 sm:$0xff]  }
  0xdc   :  { %2581 = vmatprep.subr.bf16.mxu0 %v13280_v56  ;;  %1886 = vmatpush1.bf16.msra.mxu1 %v13385_v53  ;;  %v13281_v56 = vld [vmem:[%s20516_s0 + $0x2dc] ss:$24 sps:$4 sm:$0xff]  }
  0xdd   :  { %1887 = vmatprep.subr.bf16.mxu1 %v13388_v54  ;;  %v13377_v53 = vld [vmem:[%s20516_s0 + $0x57c] ss:$24 sps:$4 sm:$0xff]  }
  0xde   :  { %v13482_v54 = vld [vmem:[%s20516_s0 + $0x274] ss:$24 sps:$4 sm:$0xff]  }
  0xdf   :  { %2582 = vmatpush1.bf16.msra.mxu0 %v13278_v57  ;;  %v13394_v57 = vld [vmem:[%s20517_s1 + $0xd0] ss:$8 sps:$4 sm:$0xff]  }
  0xe0   :  { %2583 = vmatprep.subr.bf16.mxu0 %v13289_v58  ;;  %v13391_v58 = vld [vmem:[%s20517_s1 + $0x2f0] ss:$8 sps:$4 sm:$0xff]   ;;  %1888 = vmatpush1.bf16.msra.mxu1 %v13394_v57  ;;  %v13386_v57 = vld [vmem:[%s20516_s0 + $0x5ac] ss:$24 sps:$4 sm:$0xff]  }
  0xe2   :  { %2287 = vmatmul.mubr.bf16.gmra.mrb[16].mxu0 %v13232_v59  ;;  %v13393_v59 = vld [vmem:[%s20517_s1 + $0x2f4] ss:$8 sps:$4 sm:$0xff]  }
  0xe3   :  { %2296 = vmatprep.mubr.bf16.mxu0 %v13236_v60  ;;  %2584 = vmatpush1.bf16.msra.mxu0 %v13287_v61  ;;  %v13395_v60 = vld [vmem:[%s20517_s1 + $0xe4] ss:$8 sps:$4 sm:$0xff]   ;;  %v13397_v61 = vld [vmem:[%s20517_s1 + $0xe0] ss:$8 sps:$4 sm:$0xff]  }
  0xe4   :  { %2585 = vmatprep.subr.bf16.mxu0 %v13298_v62  ;;  %v13400_v62 = vld [vmem:[%s20517_s1 + $0xf4] ss:$8 sps:$4 sm:$0xff]   ;;  %1889 = vmatprep.subr.bf16.mxu1 %v13395_v60  ;;  %v13390_v60 = vld [vmem:[%s20516_s0 + $0x5a8] ss:$24 sps:$4 sm:$0xff]  }
  0xe5   :  { %1890 = vmatpush1.bf16.msra.mxu1 %v13397_v61  ;;  %v13398_v61 = vld [vmem:[%s20516_s0 + $0x5dc] ss:$24 sps:$4 sm:$0xff]  }
  0xe6   :  { %1891 = vmatprep.subr.bf16.mxu1 %v13400_v62  ;;  %v13494_v62 = vld [vmem:[%s20516_s0 + $0x2d4] ss:$24 sps:$4 sm:$0xff]  }
  0xe7   :  { %2586 = vmatpush1.bf16.msra.mxu0 %v13296_v63  ;;  %v13283_v63 = vld [vmem:[%s20516_s0 + $0x2d8] ss:$24 sps:$4 sm:$0xff]  }
  0xe8   :  { %2587 = vmatprep.subr.bf16.mxu0 %v13307_v0  ;;  %v13284_v0 = vld [vmem:[%s20516_s0 + $0x30c] ss:$24 sps:$4 sm:$0xff]  }
  0xea   :  { %2297 = vmatmul.mubr.bf16.gmra.mrb[20].mxu0 %v13238_v1  ;;  %v13403_v1 = vld [vmem:[%s20517_s1 + $0xf0] ss:$8 sps:$4 sm:$0xff]  }
  0xeb   :  { %2306 = vmatprep.mubr.bf16.mxu0 %v13239_v2  ;;  %2588 = vmatpush1.bf16.msra.mxu0 %v13305_v3  ;;  %v13404_v2 = vld [vmem:[%s20516_s0] ss:$24 sps:$4 sm:$0xff]   ;;  %v13406_v3 = vld [vmem:[%s20516_s0 + $0x4] ss:$24 sps:$4 sm:$0xff]  }
  0xec   :  { %2589 = vmatprep.subr.bf16.mxu0 %v13316_v7  ;;  %1892 = vmatpush1.bf16.msra.mxu1 %v13403_v1  ;;  %v13412_v7 = vld [vmem:[%s20516_s0 + $0x30] ss:$24 sps:$4 sm:$0xff]   ;;  %v13409_v1 = vld [vmem:[%s20516_s0 + $0x14] ss:$24 sps:$4 sm:$0xff]  }
  0xed   :  { %1893 = vmatprep.mubr.bf16.mxu1 %v13406_v3  ;;  %v13502_v3 = vld [vmem:[%s20516_s0 + $0x300] ss:$24 sps:$4 sm:$0xff]  }
  0xef   :  { %2590 = vmatpush1.bf16.msra.mxu0 %v13314_v6  ;;  %1894 = vmatmul.mubr.bf16.vlgmr.msra.gmra.mrb[0].mxu1 %v13404_v2  ;;  %v13410_v6 = vld [vmem:[%s20516_s0 + $0x34] ss:$24 sps:$4 sm:$0xff]   ;;  %v13500_v2 = vld [vmem:[%s20516_s0 + $0x304] ss:$24 sps:$4 sm:$0xff]  }
  0xf0   :  { %2591 = vmatprep.subr.bf16.mxu0 %v13330_v17  ;;  %1903 = vmatprep.mubr.bf16.mxu1 %v13410_v6  ;;  %v13302_v17 = vld [vmem:[%s20516_s0 + $0x3cc] ss:$24 sps:$4 sm:$0xff]  }
  0xf1   :  { %v13506_v6 = vld [vmem:[%s20516_s0 + $0x334] ss:$24 sps:$4 sm:$0xff]  }
  0xf2   :  { %2307 = vmatmul.mubr.bf16.gmra.mrb[24].mxu0 %v13241_v4  ;;  %v13286_v4 = vld [vmem:[%s20516_s0 + $0x308] ss:$24 sps:$4 sm:$0xff]  }
  0xf3   :  { %2316 = vmatprep.mubr.bf16.mxu0 %v13245_v5  ;;  %2592 = vmatpush1.bf16.msra.mxu0 %v13328_v16  ;;  %v13290_v5 = vld [vmem:[%s20516_s0 + $0x33c] ss:$24 sps:$4 sm:$0xff]   ;;  %v13301_v16 = vld [vmem:[%s20516_s0 + $0x398] ss:$24 sps:$4 sm:$0xff]  }
  0xf4   :  { %2593 = vmatprep.subr.bf16.mxu0 %v13351_v31  ;;  %v13448_v31 = vld [vmem:[%s20516_s0 + $0x150] ss:$24 sps:$4 sm:$0xff]  }
  0xf7   :  { %2594 = vmatpush1.bf16.msra.mxu0 %v13349_v30  ;;  %1904 = vmatmul.mubr.bf16.gmra.mrb[4].mxu1 %v13412_v7  ;;  %v13446_v30 = vld [vmem:[%s20516_s0 + $0x154] ss:$24 sps:$4 sm:$0xff]   ;;  %v13508_v7 = vld [vmem:[%s20516_s0 + $0x330] ss:$24 sps:$4 sm:$0xff]  }
  0xf8   :  { %2595 = vmatprep.subr.bf16.mxu0 %v13372_v45  ;;  %1913 = vmatprep.mubr.bf16.mxu1 %v13416_v10  ;;  %v13356_v45 = vld [vmem:[%s20516_s0 + $0x51c] ss:$24 sps:$4 sm:$0xff]  }
  0xf9   :  { %v13512_v10 = vld [vmem:[%s20516_s0 + $0x364] ss:$24 sps:$4 sm:$0xff]  }
  0xfa   :  { %2317 = vmatmul.mubr.bf16.gmra.mrb[28].mxu0 %v13247_v8  ;;  %v13292_v8 = vld [vmem:[%s20516_s0 + $0x338] ss:$24 sps:$4 sm:$0xff]  }
  0xfb   :  { %2326 = vmatprep.mubr.bf16.mxu0 %v13248_v9  ;;  %2596 = vmatpush1.bf16.msra.mxu0 %v13370_v44  ;;  %v13293_v9 = vld [vmem:[%s20516_s0 + $0x36c] ss:$24 sps:$4 sm:$0xff]   ;;  %v13348_v44 = vld [vmem:[%s20516_s0 + $0x4e8] ss:$24 sps:$4 sm:$0xff]  }
  0xfc   :  { %2597 = vmatprep.subr.bf16.mxu0 %v13393_v59  ;;  %v13490_v59 = vld [vmem:[%s20516_s0 + $0x2a0] ss:$24 sps:$4 sm:$0xff]  }
  0xff   :  { %2598 = vmatpush1.bf16.msra.mxu0 %v13391_v58  ;;  %1914 = vmatmul.mubr.bf16.gmra.mrb[8].mxu1 %v13418_v11  ;;  %v13488_v58 = vld [vmem:[%s20516_s0 + $0x2a4] ss:$24 sps:$4 sm:$0xff]   ;;  %v13514_v11 = vld [vmem:[%s20516_s0 + $0x360] ss:$24 sps:$4 sm:$0xff]  }
 0x102   :  { %2327 = vmatmul.mubr.bf16.gmra.mrb[32].mxu0 %v13250_v13  ;;  %v13299_v13 = vld [vmem:[%s20516_s0 + $0x39c] ss:$24 sps:$4 sm:$0xff]  }
 0x103   :  { %2336 = vmatprep.mubr.bf16.mxu0 %v13254_v14  ;;  %v13422_v14 = vld [vmem:[%s20516_s0 + $0x94] ss:$24 sps:$4 sm:$0xff]  }
 0x104   :  { %1923 = vmatprep.mubr.bf16.mxu1 %v13422_v14  ;;  %v13518_v14 = vld [vmem:[%s20516_s0 + $0x394] ss:$24 sps:$4 sm:$0xff]  }
 0x107   :  { %1924 = vmatmul.mubr.bf16.gmra.mrb[12].mxu1 %v13424_v15  ;;  %v13520_v15 = vld [vmem:[%s20516_s0 + $0x390] ss:$24 sps:$4 sm:$0xff]  }
 0x108   :  { %1933 = vmatprep.mubr.bf16.mxu1 %v13428_v18  ;;  %v13524_v18 = vld [vmem:[%s20516_s0 + $0x3c4] ss:$24 sps:$4 sm:$0xff]  }
 0x10a   :  { %2337 = vmatmul.mubr.bf16.gmra.mrb[36].mxu0 %v13256_v21  ;;  %v13308_v21 = vld [vmem:[%s20516_s0 + $0x3fc] ss:$24 sps:$4 sm:$0xff]  }
 0x10b   :  { %2346 = vmatprep.mubr.bf16.mxu0 %v13257_v22  ;;  %v13434_v22 = vld [vmem:[%s20516_s0 + $0xf4] ss:$24 sps:$4 sm:$0xff]  }
 0x10f   :  { %1934 = vmatmul.mubr.bf16.gmra.mrb[16].mxu1 %v13430_v19  ;;  %v13526_v19 = vld [vmem:[%s20516_s0 + $0x3c0] ss:$24 sps:$4 sm:$0xff]  }
 0x110   :  { %1943 = vmatprep.mubr.bf16.mxu1 %v13434_v22  ;;  %v13530_v22 = vld [vmem:[%s20516_s0 + $0x3f4] ss:$24 sps:$4 sm:$0xff]  }
 0x112   :  { %2347 = vmatmul.mubr.bf16.gmra.mrb[40].mxu0 %v13259_v27  ;;  %v13442_v27 = vld [vmem:[%s20516_s0 + $0x120] ss:$24 sps:$4 sm:$0xff]  }
 0x113   :  { %2356 = vmatprep.mubr.bf16.mxu0 %v13263_v28  ;;  %v13313_v28 = vld [vmem:[%s20516_s0 + $0x428] ss:$24 sps:$4 sm:$0xff]  }
 0x117   :  { %1944 = vmatmul.mubr.bf16.gmra.mrb[20].mxu1 %v13436_v23  ;;  %v13532_v23 = vld [vmem:[%s20516_s0 + $0x3f0] ss:$24 sps:$4 sm:$0xff]  }
 0x118   :  { %1953 = vmatprep.mubr.bf16.mxu1 %v13440_v26  ;;  %v13536_v26 = vld [vmem:[%s20516_s0 + $0x424] ss:$24 sps:$4 sm:$0xff]  }
 0x11a   :  { %2357 = vmatmul.mubr.bf16.gmra.mrb[44].mxu0 %v13265_v35  ;;  %v13454_v35 = vld [vmem:[%s20516_s0 + $0x180] ss:$24 sps:$4 sm:$0xff]  }
 0x11b   :  { %2366 = vmatprep.mubr.bf16.mxu0 %v13266_v36  ;;  %v13327_v36 = vld [vmem:[%s20516_s0 + $0x488] ss:$24 sps:$4 sm:$0xff]  }
 0x11f   :  { %1954 = vmatmul.mubr.bf16.gmra.mrb[24].mxu1 %v13442_v27  ;;  %v13538_v27 = vld [vmem:[%s20516_s0 + $0x420] ss:$24 sps:$4 sm:$0xff]  }
 0x120   :  { %1963 = vmatprep.mubr.bf16.mxu1 %v13446_v30  ;;  %v13542_v30 = vld [vmem:[%s20516_s0 + $0x454] ss:$24 sps:$4 sm:$0xff]  }
 0x122   :  { %2367 = vmatmul.mubr.bf16.gmra.mrb[48].mxu0 %v13268_v41  ;;  %v13344_v41 = vld [vmem:[%s20516_s0 + $0x4ec] ss:$24 sps:$4 sm:$0xff]  }
 0x123   :  { %2376 = vmatprep.mubr.bf16.mxu0 %v13272_v42  ;;  %v13464_v42 = vld [vmem:[%s20516_s0 + $0x1e4] ss:$24 sps:$4 sm:$0xff]  }
 0x127   :  { %1964 = vmatmul.mubr.bf16.gmra.mrb[28].mxu1 %v13448_v31  ;;  %v13544_v31 = vld [vmem:[%s20516_s0 + $0x450] ss:$24 sps:$4 sm:$0xff]  }
 0x128   :  { %1973 = vmatprep.mubr.bf16.mxu1 %v13452_v34  ;;  %v6080_v34 = vld [vmem:[#allocation2] sm:$0x1] }
 0x12a   :  { %2377 = vmatmul.mubr.bf16.gmra.mrb[52].mxu0 %v13274_v49  ;;  %v13365_v49 = vld [vmem:[%s20516_s0 + $0x54c] ss:$24 sps:$4 sm:$0xff]  }
 0x12b   :  { %2386 = vmatprep.mubr.bf16.mxu0 %v13275_v50  ;;  %v13476_v50 = vld [vmem:[%s20516_s0 + $0x244] ss:$24 sps:$4 sm:$0xff]  }
 0x12f   :  { %1974 = vmatmul.mubr.bf16.gmra.mrb[32].mxu1 %v13454_v35  ;;  %v13548_v35 = vld [vmem:[%s20516_s0 + $0x484] ss:$24 sps:$4 sm:$0xff]  }
 0x130   :  { %1983 = vmatprep.mubr.bf16.mxu1 %v13458_v38  ;;  %v13457_v38 = vld [vmem:[%s20516_s0 + $0x190] ss:$24 sps:$4 sm:$0xff]  }
 0x132   :  { %2387 = vmatmul.mubr.bf16.gmra.mrb[56].mxu0 %v13277_v55  ;;  %v13484_v55 = vld [vmem:[%s20516_s0 + $0x270] ss:$24 sps:$4 sm:$0xff]  }
 0x133   :  { %2396 = vmatprep.mubr.bf16.mxu0 %v13281_v56  ;;  %v13381_v56 = vld [vmem:[%s20516_s0 + $0x578] ss:$24 sps:$4 sm:$0xff]  }
 0x137   :  { %1984 = vmatmul.mubr.bf16.gmra.mrb[36].mxu1 %v13460_v39  ;;  %v13461_v39 = vld [vmem:[%s20516_s0 + $0x1c4] ss:$24 sps:$4 sm:$0xff]  }
 0x138   :  { %1993 = vmatprep.mubr.bf16.mxu1 %v13464_v42  ;;  %v13463_v42 = vld [vmem:[%s20516_s0 + $0x1c0] ss:$24 sps:$4 sm:$0xff]  }
 0x13a   :  { %2397 = vmatmul.mubr.bf16.gmra.mrb[60].mxu0 %v13283_v63  ;;  %v13496_v63 = vld [vmem:[%s20516_s0 + $0x2d0] ss:$24 sps:$4 sm:$0xff]  }
 0x13b   :  { %2406 = vmatprep.mubr.bf16.mxu0 %v13284_v0  ;;  %v13402_v0 = vld [vmem:[%s20516_s0 + $0x5d8] ss:$24 sps:$4 sm:$0xff]  }
 0x13f   :  { %1994 = vmatmul.mubr.bf16.gmra.mrb[40].mxu1 %v13466_v43  ;;  %v13467_v43 = vld [vmem:[%s20516_s0 + $0x1f4] ss:$24 sps:$4 sm:$0xff]  }
 0x140   :  { %2003 = vmatprep.mubr.bf16.mxu1 %v13470_v46  ;;  %v13469_v46 = vld [vmem:[%s20516_s0 + $0x1f0] ss:$24 sps:$4 sm:$0xff]  }
 0x142   :  { %2407 = vmatmul.mubr.bf16.gmra.mrb[64].mxu0 %v13286_v4  ;;  %v13407_v4 = vld [vmem:[%s20516_s0 + $0x10] ss:$24 sps:$4 sm:$0xff]  }
 0x143   :  { %2416 = vmatprep.mubr.bf16.mxu0 %v13290_v5  ;;  %v13413_v5 = vld [vmem:[%s20516_s0 + $0x44] ss:$24 sps:$4 sm:$0xff]  }
 0x147   :  { %2004 = vmatmul.mubr.bf16.gmra.mrb[44].mxu1 %v13472_v47  ;;  %v13473_v47 = vld [vmem:[%s20516_s0 + $0x224] ss:$24 sps:$4 sm:$0xff]  }
 0x148   :  { %2013 = vmatprep.mubr.bf16.mxu1 %v13476_v50 }
 0x14a   :  { %2417 = vmatmul.mubr.bf16.gmra.mrb[68].mxu0 %v13292_v8  ;;  %v13415_v8 = vld [vmem:[%s20516_s0 + $0x40] ss:$24 sps:$4 sm:$0xff]  }
 0x14b   :  { %2426 = vmatprep.mubr.bf16.mxu0 %v13293_v9  ;;  %v13419_v9 = vld [vmem:[%s20516_s0 + $0x74] ss:$24 sps:$4 sm:$0xff]  }
 0x14f   :  { %2014 = vmatmul.mubr.bf16.gmra.mrb[48].mxu1 %v13478_v51 }
 0x150   :  { %2023 = vmatprep.mubr.bf16.mxu1 %v13482_v54  ;;  %v13568_v54 = vld [vmem:[%s20516_s0 + $0x510] ss:$24 sps:$4 sm:$0xff]  }
 0x152   :  { %2427 = vmatmul.mubr.bf16.gmra.mrb[72].mxu0 %v13295_v12  ;;  %v13421_v12 = vld [vmem:[%s20516_s0 + $0x70] ss:$24 sps:$4 sm:$0xff]  }
 0x153   :  { %2436 = vmatprep.mubr.bf16.mxu0 %v13299_v13  ;;  %v13425_v13 = vld [vmem:[%s20516_s0 + $0xa4] ss:$24 sps:$4 sm:$0xff]  }
 0x157   :  { %2024 = vmatmul.mubr.bf16.gmra.mrb[52].mxu1 %v13484_v55  ;;  %v13479_v55 = vld [vmem:[%s20516_s0 + $0x254] ss:$24 sps:$4 sm:$0xff]  }
 0x158   :  { %2033 = vmatprep.mubr.bf16.mxu1 %v13488_v58 }
 0x15a   :  { %2437 = vmatmul.mubr.bf16.gmra.mrb[76].mxu0 %v13301_v16  ;;  %v13427_v16 = vld [vmem:[%s20516_s0 + $0xa0] ss:$24 sps:$4 sm:$0xff]  }
 0x15b   :  { %2446 = vmatprep.mubr.bf16.mxu0 %v13302_v17  ;;  %v13431_v17 = vld [vmem:[%s20516_s0 + $0xd4] ss:$24 sps:$4 sm:$0xff]  }
 0x15f   :  { %2034 = vmatmul.mubr.bf16.gmra.mrb[56].mxu1 %v13490_v59 }
 0x160   :  { %2043 = vmatprep.mubr.bf16.mxu1 %v13494_v62  ;;  %v13574_v62 = vld [vmem:[%s20516_s0 + $0x540] ss:$24 sps:$4 sm:$0xff]  }
 0x162   :  { %2447 = vmatmul.mubr.bf16.gmra.mrb[80].mxu0 %v13304_v20  ;;  %v13433_v20 = vld [vmem:[%s20516_s0 + $0xd0] ss:$24 sps:$4 sm:$0xff]  }
 0x163   :  { %2456 = vmatprep.mubr.bf16.mxu0 %v13308_v21  ;;  %v13437_v21 = vld [vmem:[%s20516_s0 + $0x104] ss:$24 sps:$4 sm:$0xff]  }
 0x167   :  { %2044 = vmatmul.mubr.bf16.gmra.mrb[60].mxu1 %v13496_v63  ;;  %v13485_v63 = vld [vmem:[%s20516_s0 + $0x284] ss:$24 sps:$4 sm:$0xff]  }
 0x168   :  { %2053 = vmatprep.mubr.bf16.mxu1 %v13500_v2 }
 0x16a   :  { %2457 = vmatmul.mubr.bf16.gmra.mrb[84].mxu0 %v13310_v24  ;;  %v13439_v24 = vld [vmem:[%s20516_s0 + $0x100] ss:$24 sps:$4 sm:$0xff]  }
 0x16b   :  { %2466 = vmatprep.mubr.bf16.mxu0 %v13311_v25  ;;  %v13443_v25 = vld [vmem:[%s20516_s0 + $0x134] ss:$24 sps:$4 sm:$0xff]  }
 0x16f   :  { %2054 = vmatmul.mubr.bf16.gmra.mrb[64].mxu1 %v13502_v3 }
 0x170   :  { %2063 = vmatprep.mubr.bf16.mxu1 %v13506_v6  ;;  %v13580_v6 = vld [vmem:[%s20516_s0 + $0x570] ss:$24 sps:$4 sm:$0xff]  }
 0x172   :  { %2467 = vmatmul.mubr.bf16.gmra.mrb[88].mxu0 %v13313_v28  ;;  %v13445_v28 = vld [vmem:[%s20516_s0 + $0x130] ss:$24 sps:$4 sm:$0xff]  }
 0x173   :  { %2476 = vmatprep.mubr.bf16.mxu0 %v13317_v29  ;;  %v13449_v29 = vld [vmem:[%s20516_s0 + $0x164] ss:$24 sps:$4 sm:$0xff]  }
 0x177   :  { %2064 = vmatmul.mubr.bf16.gmra.mrb[68].mxu1 %v13508_v7  ;;  %v13491_v7 = vld [vmem:[%s20516_s0 + $0x2b4] ss:$24 sps:$4 sm:$0xff]  }
 0x178   :  { %2073 = vmatprep.mubr.bf16.mxu1 %v13512_v10 }
 0x17a   :  { %2477 = vmatmul.mubr.bf16.gmra.mrb[92].mxu0 %v13319_v32  ;;  %v13451_v32 = vld [vmem:[%s20516_s0 + $0x160] ss:$24 sps:$4 sm:$0xff]  }
 0x17b   :  { %2486 = vmatprep.mubr.bf16.mxu0 %v13323_v33  ;;  %v13455_v33 = vld [vmem:[%s20516_s0 + $0x194] ss:$24 sps:$4 sm:$0xff]  }
 0x17f   :  { %2074 = vmatmul.mubr.bf16.gmra.mrb[72].mxu1 %v13514_v11 }
 0x180   :  { %2083 = vmatprep.mubr.bf16.mxu1 %v13518_v14  ;;  %v13586_v14 = vld [vmem:[%s20516_s0 + $0x5a0] ss:$24 sps:$4 sm:$0xff]  }
 0x182   :  { %2487 = vmatmul.mubr.bf16.gmra.mrb[96].mxu0 %v13327_v36  ;;  %v14290_v36 = vmov 0  }
 0x183   :  { %2496 = vmatprep.mubr.bf16.mxu0 %v13335_v37  ;;  %13162 = vset.pattern.permute.xlu0 %v14290_v36  ;;  %v13550_v37 = vld [vmem:[%s20516_s0 + $0x480] ss:$24 sps:$4 sm:$0xff]  }
 0x184   :  { %6083 = vperm.xlu0 %13162, %v6080_v34   ;;  %13163 = vset.pattern.permute.xlu1 %v14290_v36  ;;  %v13511_v34 = vld [vmem:[%s20516_s0 + $0x340] ss:$24 sps:$4 sm:$0xff]  }
 0x187   :  { %2084 = vmatmul.mubr.bf16.gmra.mrb[76].mxu1 %v13520_v15  ;;  %v13497_v15 = vld [vmem:[%s20516_s0 + $0x2e4] ss:$24 sps:$4 sm:$0xff]  }
 0x188   :  { %2093 = vmatprep.mubr.bf16.mxu1 %v13524_v18 }
 0x18a   :  { %2497 = vmatmul.mubr.bf16.gmra.mrb[100].mxu0 %v13339_v40  ;;  %v13554_v40 = vld [vmem:[%s20516_s0 + $0x4b4] ss:$24 sps:$4 sm:$0xff]  }
 0x18b   :  { %2506 = vmatprep.mubr.bf16.mxu0 %v13344_v41  ;;  %v13556_v41 = vld [vmem:[%s20516_s0 + $0x4b0] ss:$24 sps:$4 sm:$0xff]  }
 0x18f   :  { %2094 = vmatmul.mubr.bf16.gmra.mrb[80].mxu1 %v13526_v19 }
 0x190   :  { %2103 = vmatprep.mubr.bf16.mxu1 %v13530_v22  ;;  %v13592_v22 = vld [vmem:[%s20516_s0 + $0x5d0] ss:$24 sps:$4 sm:$0xff]  }
 0x192   :  { %2507 = vmatmul.mubr.bf16.gmra.mrb[104].mxu0 %v13348_v44  ;;  %v13560_v44 = vld [vmem:[%s20516_s0 + $0x4e4] ss:$24 sps:$4 sm:$0xff]  }
 0x193   :  { %2516 = vmatprep.mubr.bf16.mxu0 %v13356_v45  ;;  %v13562_v45 = vld [vmem:[%s20516_s0 + $0x4e0] ss:$24 sps:$4 sm:$0xff]  }
 0x197   :  { %2104 = vmatmul.mubr.bf16.gmra.mrb[84].mxu1 %v13532_v23  ;;  %v13503_v23 = vld [vmem:[%s20516_s0 + $0x314] ss:$24 sps:$4 sm:$0xff]  }
 0x198   :  { %2113 = vmatprep.mubr.bf16.mxu1 %v13536_v26 }
 0x19a   :  { %2517 = vmatmul.mubr.bf16.gmra.mrb[108].mxu0 %v13360_v48 }
 0x19b   :  { %2526 = vmatprep.mubr.bf16.mxu0 %v13365_v49 }
 0x19f   :  { %2114 = vmatmul.mubr.bf16.gmra.mrb[88].mxu1 %v13538_v27 }
 0x1a0   :  { %2123 = vmatprep.mubr.bf16.mxu1 %v13542_v30 }
 0x1a2   :  { %2527 = vmatmul.mubr.bf16.gmra.mrb[112].mxu0 %v13369_v52  ;;  %v13566_v52 = vld [vmem:[%s20516_s0 + $0x514] ss:$24 sps:$4 sm:$0xff]  }
 0x1a3   :  { %2536 = vmatprep.mubr.bf16.mxu0 %v13377_v53  ;;  %v13475_v53 = vld [vmem:[%s20516_s0 + $0x220] ss:$24 sps:$4 sm:$0xff]  }
 0x1a7   :  { %2124 = vmatmul.mubr.bf16.gmra.mrb[92].mxu1 %v13544_v31 }
 0x1a8   :  { %2133 = vmatprep.mubr.bf16.mxu1 %v13548_v35  ;;  %v13515_v35 = vld [vmem:[%s20516_s0 + $0x374] ss:$24 sps:$4 sm:$0xff]  }
 0x1aa   :  { %2537 = vmatmul.mubr.bf16.gmra.mrb[116].mxu0 %v13381_v56 }
 0x1ab   :  { %2546 = vmatprep.mubr.bf16.mxu0 %v13386_v57 }
 0x1af   :  { %2134 = vmatmul.mubr.bf16.gmra.mrb[96].mxu1 %v13550_v37 }
 0x1b0   :  { %2143 = vmatprep.mubr.bf16.mxu1 %v13554_v40  ;;  %v13517_v40 = vld [vmem:[%s20516_s0 + $0x370] ss:$24 sps:$4 sm:$0xff]  }
 0x1b2   :  { %2547 = vmatmul.mubr.bf16.gmra.mrb[120].mxu0 %v13390_v60  ;;  %v13572_v60 = vld [vmem:[%s20516_s0 + $0x544] ss:$24 sps:$4 sm:$0xff]  }
 0x1b3   :  { %2556 = vmatprep.mubr.bf16.mxu0 %v13398_v61  ;;  %v13481_v61 = vld [vmem:[%s20516_s0 + $0x250] ss:$24 sps:$4 sm:$0xff]  }
 0x1b7   :  { %2144 = vmatmul.mubr.bf16.gmra.mrb[100].mxu1 %v13556_v41  ;;  %v13521_v41 = vld [vmem:[%s20516_s0 + $0x3a4] ss:$24 sps:$4 sm:$0xff]  }
 0x1b8   :  { %2153 = vmatprep.mubr.bf16.mxu1 %v13560_v44 }
 0x1ba   :  { %2557 = vmatmul.mubr.bf16.gmra.mrb[124].mxu0 %v13402_v0 }
 0x1bb   :  { %2599 = vmatprep.mubr.bf16.mxu0 %v13409_v1 }
 0x1bf   :  { %2154 = vmatmul.mubr.bf16.gmra.mrb[104].mxu1 %v13562_v45 }
 0x1c0   :  { %2163 = vmatprep.mubr.bf16.mxu1 %v13566_v52  ;;  %v20528_v52 = vmov 0.0|0.0  }
 0x1c1   :  { %12720 = vmatprep.subr.bf16.mxu1 %v20528_v52 }
 0x1c2   :  { %2600 = vmatmul.mubr.bf16.vlgmr.msra.gmra.mrb[0].mxu0 %v13407_v4  ;;  %v15151_v48 = vpop.f32.mrb[0].mxu1  ;;  %v13578_v4 = vld [vmem:[%s20516_s0 + $0x574] ss:$24 sps:$4 sm:$0xff]  }
 0x1c3   :  { %2609 = vmatprep.mubr.bf16.mxu0 %v13413_v5  ;;  %v15153_v49 = vpop.f32.mrb[1].mxu1  ;;  %v13487_v5 = vld [vmem:[%s20516_s0 + $0x280] ss:$24 sps:$4 sm:$0xff]  }
 0x1c4   :  { %v15155_v50 = vpop.f32.mrb[2].mxu1 }
 0x1c5   :  { %v15157_v51 = vpop.f32.mrb[3].mxu1 }
 0x1c7   :  { %2164 = vmatmul.mubr.bf16.gmra.mrb[108].mxu1 %v13568_v54  ;;  %v4354_v54 = vld [vmem:[%s20521_s5 + $0x8] sm:$0xff] }
 0x1c8   :  { %2173 = vmatprep.mubr.bf16.mxu1 %v13572_v60 }
 0x1ca   :  { %2610 = vmatmul.mubr.bf16.gmra.mrb[4].mxu0 %v13415_v8  ;;  %v15171_v56 = vpop.f32.mrb[4].mxu1 }
 0x1cb   :  { %2619 = vmatprep.mubr.bf16.mxu0 %v13419_v9  ;;  %v15173_v57 = vpop.f32.mrb[5].mxu1 }
 0x1cc   :  { %v15175_v58 = vpop.f32.mrb[6].mxu1 }
 0x1cd   :  { %v15177_v59 = vpop.f32.mrb[7].mxu1 }
 0x1cf   :  { %2174 = vmatmul.mubr.bf16.gmra.mrb[112].mxu1 %v13574_v62 }
 0x1d0   :  { %2183 = vmatprep.mubr.bf16.mxu1 %v13578_v4  ;;  %v13529_v4 = vld [vmem:[%s20516_s0 + $0x3d0] ss:$24 sps:$4 sm:$0xff]  }
 0x1d2   :  { %2620 = vmatmul.mubr.bf16.gmra.mrb[8].mxu0 %v13421_v12  ;;  %v15191_v0 = vpop.f32.mrb[8].mxu1  ;;  %v13584_v12 = vld [vmem:[%s20516_s0 + $0x5a4] ss:$24 sps:$4 sm:$0xff]  }
 0x1d3   :  { %2629 = vmatprep.mubr.bf16.mxu0 %v13425_v13  ;;  %v15193_v1 = vpop.f32.mrb[9].mxu1  ;;  %v13493_v13 = vld [vmem:[%s20516_s0 + $0x2b0] ss:$24 sps:$4 sm:$0xff]  }
 0x1d4   :  { %v15195_v2 = vpop.f32.mrb[10].mxu1 }
 0x1d5   :  { %v15197_v3 = vpop.f32.mrb[11].mxu1 }
 0x1d7   :  { %2184 = vmatmul.mubr.bf16.gmra.mrb[116].mxu1 %v13580_v6 }
 0x1d8   :  { %2193 = vmatprep.mubr.bf16.mxu1 %v13584_v12 }
 0x1da   :  { %2630 = vmatmul.mubr.bf16.gmra.mrb[12].mxu0 %v13427_v16  ;;  %v15211_v8 = vpop.f32.mrb[12].mxu1 }
 0x1db   :  { %2639 = vmatprep.mubr.bf16.mxu0 %v13431_v17  ;;  %v15213_v9 = vpop.f32.mrb[13].mxu1 }
 0x1dc   :  { %v15215_v10 = vpop.f32.mrb[14].mxu1 }
 0x1dd   :  { %v15217_v11 = vpop.f32.mrb[15].mxu1 }
 0x1df   :  { %2194 = vmatmul.mubr.bf16.gmra.mrb[120].mxu1 %v13586_v14  ;;  %v13535_v14 = vld [vmem:[%s20516_s0 + $0x400] ss:$24 sps:$4 sm:$0xff]  }
 0x1e2   :  { %2640 = vmatmul.mubr.bf16.gmra.mrb[16].mxu0 %v13433_v20  ;;  %v15231_v16 = vpop.f32.mrb[16].mxu1  ;;  %v13590_v20 = vld [vmem:[%s20516_s0 + $0x5d4] ss:$24 sps:$4 sm:$0xff]  }
 0x1e3   :  { %2649 = vmatprep.mubr.bf16.mxu0 %v13437_v21  ;;  %v15233_v17 = vpop.f32.mrb[17].mxu1  ;;  %v13499_v21 = vld [vmem:[%s20516_s0 + $0x2e0] ss:$24 sps:$4 sm:$0xff]   ;;  %2203 = vmatprep.mubr.bf16.mxu1 %v13590_v20  ;;  %v4355_v20 = vld [vmem:[%s20521_s5 + $0x10] sm:$0xff] }
 0x1e4   :  { %v15235_v18 = vpop.f32.mrb[18].mxu1 }
 0x1e5   :  { %v15237_v19 = vpop.f32.mrb[19].mxu1 }
 0x1e7   :  { %2204 = vmatmul.mubr.bf16.gmra.mrb[124].mxu1 %v13592_v22 }
 0x1ea   :  { %2650 = vmatmul.mubr.bf16.gmra.mrb[20].mxu0 %v13439_v24  ;;  %v15251_v24 = vpop.f32.mrb[20].mxu1 }
 0x1eb   :  { %2659 = vmatprep.mubr.bf16.mxu0 %v13443_v25  ;;  %v15253_v25 = vpop.f32.mrb[21].mxu1 }
 0x1ec   :  { %v15255_v26 = vpop.f32.mrb[22].mxu1 }
 0x1ed   :  { %v15257_v27 = vpop.f32.mrb[23].mxu1 }
 0x1f2   :  { %2660 = vmatmul.mubr.bf16.gmra.mrb[24].mxu0 %v13445_v28  ;;  %v13505_v28 = vld [vmem:[%s20516_s0 + $0x310] ss:$24 sps:$4 sm:$0xff]   ;;  %v15265_v30 = vpop.f32.mrb[24].mxu1 }
 0x1f3   :  { %2669 = vmatprep.mubr.bf16.mxu0 %v13449_v29  ;;  %v13509_v29 = vld [vmem:[%s20516_s0 + $0x344] ss:$24 sps:$4 sm:$0xff]   ;;  %v15267_v31 = vpop.f32.mrb[25].mxu1 }
 0x1fa   :  { %2670 = vmatmul.mubr.bf16.gmra.mrb[28].mxu0 %v13451_v32  ;;  %v15269_v32 = vpop.f32.mrb[26].mxu1 }
 0x1fb   :  { %2679 = vmatprep.mubr.bf16.mxu0 %v13455_v33  ;;  %v15271_v33 = vpop.f32.mrb[27].mxu1 }
 0x1fc   :  { %v15279_v36 = vpop.f32.mrb[28].mxu1 }
 0x1fd   :  { %v15281_v37 = vpop.f32.mrb[29].mxu1 }
 0x202   :  { %2680 = vmatmul.mubr.bf16.gmra.mrb[32].mxu0 %v13457_v38  ;;  %v15283_v38 = vpop.f32.mrb[30].mxu1 }
 0x203   :  { %2689 = vmatprep.mubr.bf16.mxu0 %v13461_v39  ;;  %v15285_v39 = vpop.f32.mrb[31].mxu1 }
 0x20a   :  { %2690 = vmatmul.mubr.bf16.gmra.mrb[36].mxu0 %v13463_v42  ;;  %v15293_v42 = vpop.f32.mrb[32].mxu1 }
 0x20b   :  { %2699 = vmatprep.mubr.bf16.mxu0 %v13467_v43  ;;  %v15295_v43 = vpop.f32.mrb[33].mxu1 }
 0x20c   :  { %v15297_v44 = vpop.f32.mrb[34].mxu1 }
 0x20d   :  { %v15299_v45 = vpop.f32.mrb[35].mxu1 }
 0x212   :  { %2700 = vmatmul.mubr.bf16.gmra.mrb[40].mxu0 %v13469_v46  ;;  %v13523_v46 = vld [vmem:[%s20516_s0 + $0x3a0] ss:$24 sps:$4 sm:$0xff]  }
 0x213   :  { %2709 = vmatprep.mubr.bf16.mxu0 %v13473_v47  ;;  %v13527_v47 = vld [vmem:[%s20516_s0 + $0x3d4] ss:$24 sps:$4 sm:$0xff]  }
 0x21a   :  { %2710 = vmatmul.mubr.bf16.gmra.mrb[44].mxu0 %v13475_v53  ;;  %v4353_v53 = vld [vmem:[%s20521_s5] sm:$0xff] }
 0x21b   :  { %2719 = vmatprep.mubr.bf16.mxu0 %v13479_v55  ;;  %v15314_v55 = vpop.f32.mrb[36].mxu1  ;;  %v12721_v60 = vpack.c.bf16 %v4354_v54, %v4353_v53  ;;  %v13547_v54 = vld [vmem:[%s20516_s0 + $0x460] ss:$24 sps:$4 sm:$0xff]  }
 0x21d   :  { %12722 = vmatpush1.bf16.msra.mxu1 %v12721_v60  ;;  %v13551_v60 = vld [vmem:[%s20516_s0 + $0x494] ss:$24 sps:$4 sm:$0xff]  }
 0x21e   :  { %12723 = vmatprep.subr.bf16.mxu1 %v20528_v52 }
 0x222   :  { %2720 = vmatmul.mubr.bf16.gmra.mrb[48].mxu0 %v13481_v61  ;;  %v15316_v61 = vpop.f32.mrb[37].mxu1 }
 0x223   :  { %2729 = vmatprep.mubr.bf16.mxu0 %v13485_v63  ;;  %v15318_v62 = vpop.f32.mrb[38].mxu1 }
 0x224   :  { %v15320_v63 = vpop.f32.mrb[39].mxu1 }
 0x225   :  { %v15329_v6 = vpop.f32.mrb[40].mxu1 }
 0x22a   :  { %2730 = vmatmul.mubr.bf16.gmra.mrb[52].mxu0 %v13487_v5  ;;  %v13533_v5 = vld [vmem:[%s20516_s0 + $0x404] ss:$24 sps:$4 sm:$0xff]  }
 0x22b   :  { %2739 = vmatprep.mubr.bf16.mxu0 %v13491_v7  ;;  %v15331_v7 = vpop.f32.mrb[41].mxu1 }
 0x22c   :  { %v15333_v12 = vpop.f32.mrb[42].mxu1 }
 0x232   :  { %2740 = vmatmul.mubr.bf16.gmra.mrb[56].mxu0 %v13493_v13  ;;  %v15335_v13 = vpop.f32.mrb[43].mxu1 }
 0x233   :  { %2749 = vmatprep.mubr.bf16.mxu0 %v13497_v15  ;;  %v13539_v15 = vld [vmem:[%s20516_s0 + $0x434] ss:$24 sps:$4 sm:$0xff]   ;;  %v15349_v22 = vpop.f32.mrb[44].mxu1 }
 0x23a   :  { %2750 = vmatmul.mubr.bf16.gmra.mrb[60].mxu0 %v13499_v21  ;;  %v4356_v21 = vld [vmem:[%s20521_s5 + $0x18] sm:$0xff] }
 0x23b   :  { %2759 = vmatprep.mubr.bf16.mxu0 %v13503_v23  ;;  %v12724_v23 = vpack.c.bf16 %v4356_v21, %v4355_v20 }
 0x23d   :  { %12725 = vmatpush1.bf16.msra.mxu1 %v12724_v23 }
 0x23e   :  { %12726 = vmatprep.subr.bf16.mxu1 %v20528_v52 }
 0x242   :  { %2760 = vmatmul.mubr.bf16.gmra.mrb[64].mxu0 %v13505_v28  ;;  %v15351_v28 = vpop.f32.mrb[45].mxu1 }
 0x243   :  { %2769 = vmatprep.mubr.bf16.mxu0 %v13509_v29  ;;  %v15353_v29 = vpop.f32.mrb[46].mxu1 }
 0x24a   :  { %2770 = vmatmul.mubr.bf16.gmra.mrb[68].mxu0 %v13511_v34  ;;  %v15355_v34 = vpop.f32.mrb[47].mxu1 }
 0x24b   :  { %2779 = vmatprep.mubr.bf16.mxu0 %v13515_v35  ;;  %v13541_v35 = vld [vmem:[%s20516_s0 + $0x430] ss:$24 sps:$4 sm:$0xff]  }
 0x252   :  { %2780 = vmatmul.mubr.bf16.gmra.mrb[72].mxu0 %v13517_v40  ;;  %v13545_v40 = vld [vmem:[%s20516_s0 + $0x464] ss:$24 sps:$4 sm:$0xff]  }
 0x253   :  { %2789 = vmatprep.mubr.bf16.mxu0 %v13521_v41  ;;  %v15364_v41 = vpop.f32.mrb[48].mxu1 }
 0x25a   :  { %2790 = vmatmul.mubr.bf16.gmra.mrb[76].mxu0 %v13523_v46  ;;  %v15366_v46 = vpop.f32.mrb[49].mxu1 }
 0x25b   :  { %2799 = vmatprep.mubr.bf16.mxu0 %v13527_v47  ;;  %v15368_v47 = vpop.f32.mrb[50].mxu1 }
 0x25c   :  { %20792 = vst [vmem:[#allocation18_spill] sm:$0xff] %v15368_v47  ;;  %v15370_v53 = vpop.f32.mrb[51].mxu1  ;;  %v20809_v47 = vmov 0.0|0.0  }
 0x25d   :  { %20793 = vst [vmem:[#allocation19_spill] sm:$0xff] %v15370_v53 }
 0x262   :  { %2800 = vmatmul.mubr.bf16.gmra.mrb[80].mxu0 %v13529_v4  ;;  %v4357_v4 = vld [vmem:[%s20521_s5 + $0x20] sm:$0xff] }
 0x263   :  { %2809 = vmatprep.mubr.bf16.mxu0 %v13533_v5  ;;  %v4358_v5 = vld [vmem:[%s20521_s5 + $0x28] sm:$0xff] }
 0x26a   :  { %2810 = vmatmul.mubr.bf16.gmra.mrb[84].mxu0 %v13535_v14  ;;  %v15384_v14 = vpop.f32.mrb[52].mxu1 }
 0x26b   :  { %2819 = vmatprep.mubr.bf16.mxu0 %v13539_v15  ;;  %20794 = vst [vmem:[#allocation20_spill] sm:$0xff] %v15384_v14  ;;  %v12727_v15 = vpack.c.bf16 %v4358_v5, %v4357_v4  ;;  %v15386_v20 = vpop.f32.mrb[53].mxu1  ;;  %v20530_v4 = vlaneseq }
 0x26c   :  { %20795 = vst [vmem:[#allocation21_spill] sm:$0xff] %v15386_v20  ;;  %v15388_v21 = vpop.f32.mrb[54].mxu1 }
 0x26d   :  { %20796 = vst [vmem:[#allocation22_spill] sm:$0xff] %v15388_v21  ;;  %12728 = vmatpush1.bf16.msra.mxu1 %v12727_v15  ;;  %v15390_v23 = vpop.f32.mrb[55].mxu1  ;;  %v409_v21 = vld [vmem:[#allocation3] sm:$0x3] }
 0x26e   :  { %20797 = vst [vmem:[#allocation23_spill] sm:$0xff] %v15390_v23  ;;  %12729 = vmatprep.subr.bf16.mxu1 %v20528_v52  ;;  %v13559_v52 = vld [vmem:[%s20516_s0 + $0x4c0] ss:$24 sps:$4 sm:$0xff]   ;;  %v15411_v23 = vshrl.u32 %v20530_v4, 7 }
 0x270   :  { %20802 = vst [vmem:[#allocation28_spill] sm:$0xff] %v15411_v23  ;;  %v15430_v20 = vsub.s32 1, %v15411_v23 }
 0x272   :  { %2820 = vmatmul.mubr.bf16.gmra.mrb[88].mxu0 %v13541_v35  ;;  %v13553_v35 = vld [vmem:[%s20516_s0 + $0x490] ss:$24 sps:$4 sm:$0xff]   ;;  %20806 = vst [vmem:[#allocation32_spill] sm:$0xff] %v15430_v20 }
 0x273   :  { %2829 = vmatprep.mubr.bf16.mxu0 %v13545_v40  ;;  %v13557_v40 = vld [vmem:[%s20516_s0 + $0x4c4] ss:$24 sps:$4 sm:$0xff]  }
 0x27a   :  { %2830 = vmatmul.mubr.bf16.gmra.mrb[92].mxu0 %v13547_v54  ;;  %v15399_v54 = vpop.f32.mrb[56].mxu1 }
 0x27b   :  { %2839 = vmatprep.mubr.bf16.mxu0 %v13551_v60  ;;  %20798 = vst [vmem:[#allocation24_spill] sm:$0xff] %v15399_v54  ;;  %v15401_v60 = vpop.f32.mrb[57].mxu1  ;;  %v13563_v54 = vld [vmem:[%s20516_s0 + $0x4f4] ss:$24 sps:$4 sm:$0xff]  }
 0x27c   :  { %20799 = vst [vmem:[#allocation25_spill] sm:$0xff] %v15401_v60  ;;  %v15403_v5 = vpop.f32.mrb[58].mxu1 }
 0x27d   :  { %20800 = vst [vmem:[#allocation26_spill] sm:$0xff] %v15403_v5  ;;  %v15405_v15 = vpop.f32.mrb[59].mxu1  ;;  %v15425_v5 = vsub.s32 0, %v15411_v23 }
 0x27e   :  { %20801 = vst [vmem:[#allocation27_spill] sm:$0xff] %v15405_v15  ;;  %v15422_v15 = vpop.f32.mrb[60].mxu1 }
 0x27f   :  { %20803 = vst [vmem:[#allocation29_spill] sm:$0xff] %v15422_v15  ;;  %20804 = vst [vmem:[#allocation30_spill] sm:$0xff] %v15425_v5  ;;  %v15427_v60 = vpop.f32.mrb[61].mxu1 }
 0x280   :  { %20805 = vst [vmem:[#allocation31_spill] sm:$0xff] %v15427_v60  ;;  %v15432_v14 = vpop.f32.mrb[62].mxu1 }
 0x281   :  { %20807 = vst [vmem:[#allocation33_spill] sm:$0xff] %v15432_v14  ;;  %v15434_v53 = vpop.f32.mrb[63].mxu1 }
 0x282   :  { %2840 = vmatmul.mubr.bf16.gmra.mrb[96].mxu0 %v13553_v35  ;;  %v4359_v35 = vld [vmem:[%s20521_s5 + $0x30] sm:$0xff]  ;;  %20808 = vst [vmem:[#allocation34_spill] sm:$0xff] %v15434_v53  ;;  %v15449_v23 = vpop.f32.mrb[64].mxu1 }
 0x283   :  { %2849 = vmatprep.mubr.bf16.mxu0 %v13557_v40  ;;  %v4360_v40 = vld [vmem:[%s20521_s5 + $0x38] sm:$0xff]  ;;  %20810 = vst [vmem:[#allocation35_spill] sm:$0xff] %v15449_v23  ;;  %v15453_v53 = vpop.f32.mrb[65].mxu1 }
 0x284   :  { %v12730_v4 = vpack.c.bf16 %v4360_v40, %v4359_v35  ;;  %v13565_v35 = vld [vmem:[%s20516_s0 + $0x4f0] ss:$24 sps:$4 sm:$0xff]   ;;  %v15444_v40 = vrot.slane %v409_v21, %v15430_v20  ;;  %20811 = vst [vmem:[#allocation36_spill] sm:$0xff] %v15453_v53  ;;  %v15457_v14 = vpop.f32.mrb[66].mxu1  ;;  %v4361_v53 = vld [vmem:[%s20521_s5 + $0x40] sm:$0xff] }
 0x285   :  { %20812 = vst [vmem:[#allocation37_spill] sm:$0xff] %v15457_v14 }
 0x286   :  { %12731 = vmatpush1.bf16.msra.mxu1 %v12730_v4 }
 0x287   :  { %12732 = vmatprep.subr.bf16.mxu1 %v20809_v47 }
 0x28a   :  { %2850 = vmatmul.mubr.bf16.gmra.mrb[100].mxu0 %v13559_v52  ;;  %v15438_v52 = vrot.slane %v409_v21, %v15425_v5  ;;  %v1898_v5 = vadd.f32 %v15153_v49, %v15444_v40  ;;  %v15459_v21 = vpop.f32.mrb[67].mxu1 }
 0x28b   :  { %2859 = vmatprep.mubr.bf16.mxu0 %v13563_v54  ;;  %v13569_v54 = vld [vmem:[%s20516_s0 + $0x524] ss:$24 sps:$4 sm:$0xff]   ;;  %20813 = vst [vmem:[#allocation38_spill] sm:$0xff] %v15459_v21  ;;  %v13575_v21 = vld [vmem:[%s20516_s0 + $0x554] ss:$24 sps:$4 sm:$0xff]  }
 0x28c   :  { %v1896_v4 = vadd.f32 %v15151_v48, %v15438_v52  ;;  %v1900_v60 = vadd.f32 %v15155_v50, %v15438_v52  ;;  %v13571_v48 = vld [vmem:[%s20516_s0 + $0x520] ss:$24 sps:$4 sm:$0xff]  }
 0x292   :  { %2860 = vmatmul.mubr.bf16.gmra.mrb[104].mxu0 %v13565_v35  ;;  %v1902_v35 = vadd.f32 %v15157_v51, %v15444_v40  ;;  %v4362_v51 = vld [vmem:[%s20521_s5 + $0x48] sm:$0xff] }
 0x293   :  { %2869 = vmatprep.mubr.bf16.mxu0 %v13569_v54 }
 0x295   :  { %v2601_v20 = vpop.f32.mrb[0].mxu0 }
 0x296   :  { %v15463_v15 = vadd.f32 %v2601_v20, %v1896_v4  ;;  %v2603_v23 = vpop.f32.mrb[1].mxu0 }
 0x297   :  { %v15470_v49 = vadd.f32 %v2603_v23, %v1898_v5  ;;  %v2605_v54 = vpop.f32.mrb[2].mxu0  ;;  %v15487_v23 = vpop.f32.mrb[68].mxu1  ;;  %v12733_v5 = vpack.c.bf16 %v4362_v51, %v4361_v53 }
 0x298   :  { %20814 = vst [vmem:[#allocation39_spill] sm:$0xff] %v15463_v15  ;;  %v15475_v14 = vadd.f32 %v2605_v54, %v1900_v60  ;;  %v2607_v50 = vpop.f32.mrb[3].mxu0  ;;  %20818 = vst [vmem:[#allocation43_spill] sm:$0xff] %v15487_v23  ;;  %v1906_v60 = vadd.f32 %v15171_v56, %v15438_v52  ;;  %v1908_v54 = vadd.f32 %v15173_v57, %v15444_v40  ;;  %v13577_v57 = vld [vmem:[%s20516_s0 + $0x550] ss:$24 sps:$4 sm:$0xff]  }
 0x299   :  { %20815 = vst [vmem:[#allocation40_spill] sm:$0xff] %v15470_v49  ;;  %v15477_v20 = vadd.f32 %v2607_v50, %v1902_v35  ;;  %v2922_v4 = vadd.f32 %v15470_v49, %v15463_v15  ;;  %v15491_v35 = vpop.f32.mrb[69].mxu1  ;;  %12734 = vmatpush1.bf16.msra.mxu1 %v12733_v5  ;;  %v1910_v56 = vadd.f32 %v15175_v58, %v15438_v52  ;;  %v13581_v5 = vld [vmem:[%s20516_s0 + $0x584] ss:$24 sps:$4 sm:$0xff]  }
 0x29a   :  { %20816 = vst [vmem:[#allocation41_spill] sm:$0xff] %v15475_v14  ;;  %2870 = vmatmul.mubr.bf16.gmra.mrb[108].mxu0 %v13571_v48  ;;  %v15495_v50 = vpop.f32.mrb[70].mxu1  ;;  %12735 = vmatprep.subr.bf16.mxu1 %v20809_v47 }
 0x29b   :  { %20817 = vst [vmem:[#allocation42_spill] sm:$0xff] %v15477_v20  ;;  %2923 = vadd.xlane.f32.xlu0 %v2922_v4  ;;  %2879 = vmatprep.mubr.bf16.mxu0 %v13575_v21  ;;  %v15497_v49 = vpop.f32.mrb[71].mxu1  ;;  %v2925_v23 = vadd.f32 %v15477_v20, %v15475_v14  ;;  %v1912_v21 = vadd.f32 %v15177_v59, %v15444_v40 }
 0x29c   :  { %v15522_v14 = vpop.f32.mrb[72].mxu1  ;;  %v1916_v59 = vadd.f32 %v15191_v0, %v15438_v52 }
 0x29d   :  { %v2611_v15 = vpop.f32.mrb[4].mxu0 }
 0x29e   :  { %v15504_v53 = vadd.f32 %v2611_v15, %v1906_v60  ;;  %v2613_v48 = vpop.f32.mrb[5].mxu0 }
 0x29f   :  { %v15511_v4 = vadd.f32 %v2613_v48, %v1908_v54  ;;  %v2615_v51 = vpop.f32.mrb[6].mxu0  ;;  %2926 = vadd.xlane.f32.xlu0 %v2925_v23  ;;  %v15526_v54 = vpop.f32.mrb[73].mxu1  ;;  %v1918_v23 = vadd.f32 %v15193_v1, %v15444_v40  ;;  %v13583_v1 = vld [vmem:[%s20516_s0 + $0x580] ss:$24 sps:$4 sm:$0xff]  }
 0x2a0   :  { %20819 = vst [vmem:[#allocation44_spill] sm:$0xff] %v15504_v53  ;;  %v15516_v20 = vadd.f32 %v2615_v51, %v1910_v56  ;;  %v2617_v58 = vpop.f32.mrb[7].mxu0  ;;  %v15530_v56 = vpop.f32.mrb[74].mxu1 }
 0x2a1   :  { %20820 = vst [vmem:[#allocation45_spill] sm:$0xff] %v15511_v4  ;;  %v15518_v15 = vadd.f32 %v2617_v58, %v1912_v21  ;;  %v2928_v60 = vadd.f32 %v15511_v4, %v15504_v53  ;;  %v15532_v48 = vpop.f32.mrb[75].mxu1  ;;  %v1920_v58 = vadd.f32 %v15195_v2, %v15438_v52 }
 0x2a2   :  { %20821 = vst [vmem:[#allocation46_spill] sm:$0xff] %v15516_v20  ;;  %2880 = vmatmul.mubr.bf16.gmra.mrb[112].mxu0 %v13577_v57 }
 0x2a3   :  { %20822 = vst [vmem:[#allocation47_spill] sm:$0xff] %v15518_v15  ;;  %2929 = vadd.xlane.f32.xlu1 %v2928_v60  ;;  %2889 = vmatprep.mubr.bf16.mxu0 %v13581_v5  ;;  %v2931_v51 = vadd.f32 %v15518_v15, %v15516_v20  ;;  %v1922_v5 = vadd.f32 %v15197_v3, %v15444_v40  ;;  %v13587_v15 = vld [vmem:[%s20516_s0 + $0x5b4] ss:$24 sps:$4 sm:$0xff]  }
 0x2a4   :  { %v4363_v3 = vld [vmem:[%s20521_s5 + $0x50] sm:$0xff] }
 0x2a5   :  { %v2621_v21 = vpop.f32.mrb[8].mxu0 }
 0x2a6   :  { %v15538_v0 = vadd.f32 %v2621_v21, %v1916_v59  ;;  %v2623_v57 = vpop.f32.mrb[9].mxu0 }
 0x2a7   :  { %v15545_v60 = vadd.f32 %v2623_v57, %v1918_v23  ;;  %v2625_v4 = vpop.f32.mrb[10].mxu0  ;;  %2932 = vadd.xlane.f32.xlu1 %v2931_v51  ;;  %v4364_v23 = vld [vmem:[%s20521_s5 + $0x58] sm:$0xff]  ;;  %v15562_v51 = vpop.f32.mrb[76].mxu1 }
 0x2a8   :  { %20823 = vst [vmem:[#allocation48_spill] sm:$0xff] %v15538_v0  ;;  %v15550_v20 = vadd.f32 %v2625_v4, %v1920_v58  ;;  %v2627_v2 = vpop.f32.mrb[11].mxu0  ;;  %v1926_v4 = vadd.f32 %v15211_v8, %v15438_v52  ;;  %v12736_v58 = vpack.c.bf16 %v4364_v23, %v4363_v3  ;;  %v15566_v57 = vpop.f32.mrb[77].mxu1  ;;  %v1930_v8 = vadd.f32 %v15215_v10, %v15438_v52 }
 0x2a9   :  { %20824 = vst [vmem:[#allocation49_spill] sm:$0xff] %v15545_v60  ;;  %v15552_v59 = vadd.f32 %v2627_v2, %v1922_v5  ;;  %v2934_v21 = vadd.f32 %v15545_v60, %v15538_v0  ;;  %v1928_v5 = vadd.f32 %v15213_v9, %v15444_v40  ;;  %v15572_v60 = vpop.f32.mrb[78].mxu1 }
 0x2aa   :  { %2890 = vmatmul.mubr.bf16.gmra.mrb[116].mxu0 %v13583_v1  ;;  %12737 = vmatpush1.bf16.msra.mxu1 %v12736_v58  ;;  %v15574_v0 = vpop.f32.mrb[79].mxu1  ;;  %v13593_v58 = vld [vmem:[%s20516_s0 + $0x5e4] ss:$24 sps:$4 sm:$0xff]  }
 0x2ab   :  { %20825 = vst [vmem:[#allocation50_spill] sm:$0xff] %v15552_v59  ;;  %2935 = vadd.xlane.f32.xlu0 %v2934_v21  ;;  %v2937_v2 = vadd.f32 %v15552_v59, %v15550_v20  ;;  %2899 = vmatprep.mubr.bf16.mxu0 %v13587_v15  ;;  %v13589_v21 = vld [vmem:[%s20516_s0 + $0x5b0] ss:$24 sps:$4 sm:$0xff]   ;;  %v1932_v15 = vadd.f32 %v15217_v11, %v15444_v40  ;;  %v15597_v59 = vpop.f32.mrb[80].mxu1 }
 0x2ac   :  { %12738 = vmatprep.subr.bf16.mxu1 %v20809_v47  ;;  %v1936_v11 = vadd.f32 %v15231_v16, %v15438_v52 }
 0x2ad   :  { %v2631_v53 = vpop.f32.mrb[12].mxu0  ;;  %2938 = vadd.xlane.f32.xlu1 %v2937_v2 }
 0x2ae   :  { %v15579_v1 = vadd.f32 %v2631_v53, %v1926_v4  ;;  %v2633_v9 = vpop.f32.mrb[13].mxu0 }
 0x2af   :  { %v15586_v3 = vadd.f32 %v2633_v9, %v1928_v5  ;;  %v2635_v23 = vpop.f32.mrb[14].mxu0  ;;  %v15601_v5 = vpop.f32.mrb[81].mxu1  ;;  %v1938_v9 = vadd.f32 %v15233_v17, %v15444_v40  ;;  %v13595_v17 = vld [vmem:[%s20516_s0 + $0x5e0] ss:$24 sps:$4 sm:$0xff]  }
 0x2b0   :  { %20826 = vst [vmem:[#allocation51_spill] sm:$0xff] %v15579_v1  ;;  %v15591_v2 = vadd.f32 %v2635_v23, %v1930_v8  ;;  %v2637_v10 = vpop.f32.mrb[15].mxu0  ;;  %v1940_v23 = vadd.f32 %v15235_v18, %v15438_v52 }
 0x2b1   :  { %20827 = vst [vmem:[#allocation52_spill] sm:$0xff] %v15586_v3  ;;  %v15593_v53 = vadd.f32 %v2637_v10, %v1932_v15  ;;  %v2940_v4 = vadd.f32 %v15586_v3, %v15579_v1  ;;  %v15607_v15 = vpop.f32.mrb[82].mxu1 }
 0x2b2   :  { %20828 = vst [vmem:[#allocation53_spill] sm:$0xff] %v15591_v2  ;;  %2900 = vmatmul.mubr.bf16.gmra.mrb[120].mxu0 %v13589_v21  ;;  %v15611_v10 = vpop.f32.mrb[83].mxu1 }
 0x2b3   :  { %20829 = vst [vmem:[#allocation54_spill] sm:$0xff] %v15593_v53  ;;  %2941 = vadd.xlane.f32.xlu0 %v2940_v4  ;;  %v2943_v8 = vadd.f32 %v15593_v53, %v15591_v2  ;;  %2909 = vmatprep.mubr.bf16.mxu0 %v13593_v58  ;;  %v1942_v4 = vadd.f32 %v15237_v19, %v15444_v40 }
 0x2b4   :  { %v1946_v19 = vadd.f32 %v15251_v24, %v15438_v52 }
 0x2b5   :  { %v2641_v3 = vpop.f32.mrb[16].mxu0  ;;  %2944 = vadd.xlane.f32.xlu1 %v2943_v8  ;;  %v4366_v8 = vld [vmem:[%s20521_s5 + $0x68] sm:$0xff] }
 0x2b6   :  { %v15613_v16 = vadd.f32 %v2641_v3, %v1936_v11  ;;  %v2643_v21 = vpop.f32.mrb[17].mxu0  ;;  %v4365_v11 = vld [vmem:[%s20521_s5 + $0x60] sm:$0xff] }
 0x2b7   :  { %v15620_v58 = vadd.f32 %v2643_v21, %v1938_v9  ;;  %v2645_v53 = vpop.f32.mrb[18].mxu0  ;;  %v15636_v9 = vpop.f32.mrb[84].mxu1 }
 0x2b8   :  { %20830 = vst [vmem:[#allocation55_spill] sm:$0xff] %v15613_v16  ;;  %v15622_v2 = vadd.f32 %v2645_v53, %v1940_v23  ;;  %v2647_v18 = vpop.f32.mrb[19].mxu0  ;;  %v12739_v53 = vpack.c.bf16 %v4366_v8, %v4365_v11  ;;  %v1948_v23 = vadd.f32 %v15253_v25, %v15444_v40 }
 0x2b9   :  { %20831 = vst [vmem:[#allocation56_spill] sm:$0xff] %v15620_v58  ;;  %v15624_v1 = vadd.f32 %v2647_v18, %v1942_v4  ;;  %v2946_v3 = vadd.f32 %v15620_v58, %v15613_v16  ;;  %v15642_v4 = vpop.f32.mrb[85].mxu1  ;;  %v1950_v18 = vadd.f32 %v15255_v26, %v15438_v52  ;;  %v1956_v16 = vadd.f32 %v15265_v30, %v15438_v52 }
 0x2ba   :  { %20832 = vst [vmem:[#allocation57_spill] sm:$0xff] %v15622_v2  ;;  %2910 = vmatmul.mubr.bf16.gmra.mrb[124].mxu0 %v13595_v17  ;;  %12740 = vmatpush1.bf16.msra.mxu1 %v12739_v53  ;;  %v15646_v58 = vpop.f32.mrb[86].mxu1 }
 0x2bb   :  { %20833 = vst [vmem:[#allocation58_spill] sm:$0xff] %v15624_v1  ;;  %2947 = vadd.xlane.f32.xlu0 %v2946_v3  ;;  %v2949_v21 = vadd.f32 %v15624_v1, %v15622_v2  ;;  %v15648_v17 = vpop.f32.mrb[87].mxu1  ;;  %12741 = vmatprep.subr.bf16.mxu1 %v20809_v47  ;;  %v1952_v3 = vadd.f32 %v15257_v27, %v15444_v40 }
 0x2bd   :  { %v2651_v24 = vpop.f32.mrb[20].mxu0  ;;  %2950 = vadd.xlane.f32.xlu1 %v2949_v21 }
 0x2be   :  { %v15651_v11 = vadd.f32 %v2651_v24, %v1946_v19  ;;  %v2653_v25 = vpop.f32.mrb[21].mxu0  ;;  %v15665_v19 = vpop.f32.mrb[88].mxu1  ;;  %v1958_v24 = vadd.f32 %v15267_v31, %v15444_v40  ;;  %v1962_v31 = vadd.f32 %v15271_v33, %v15444_v40  ;;  %v1966_v33 = vadd.f32 %v15279_v36, %v15438_v52 }
 0x2bf   :  { %v15655_v8 = vadd.f32 %v2653_v25, %v1948_v23  ;;  %v2655_v1 = vpop.f32.mrb[22].mxu0  ;;  %v1960_v23 = vadd.f32 %v15269_v32, %v15438_v52 }
 0x2c0   :  { %20834 = vst [vmem:[#allocation59_spill] sm:$0xff] %v15651_v11  ;;  %v15657_v2 = vadd.f32 %v2655_v1, %v1950_v18  ;;  %v2657_v26 = vpop.f32.mrb[23].mxu0  ;;  %v15671_v1 = vpop.f32.mrb[89].mxu1 }
 0x2c1   :  { %20835 = vst [vmem:[#allocation60_spill] sm:$0xff] %v15655_v8  ;;  %v15659_v53 = vadd.f32 %v2657_v26, %v1952_v3  ;;  %v2952_v21 = vadd.f32 %v15655_v8, %v15651_v11  ;;  %v15675_v18 = vpop.f32.mrb[90].mxu1 }
 0x2c2   :  { %20836 = vst [vmem:[#allocation61_spill] sm:$0xff] %v15657_v2  ;;  %v15677_v3 = vpop.f32.mrb[91].mxu1 }
 0x2c3   :  { %20837 = vst [vmem:[#allocation62_spill] sm:$0xff] %v15659_v53  ;;  %2953 = vadd.xlane.f32.xlu0 %v2952_v21  ;;  %v2955_v27 = vadd.f32 %v15659_v53, %v15657_v2 }
 0x2c5   :  { %v2661_v25 = vpop.f32.mrb[24].mxu0  ;;  %2956 = vadd.xlane.f32.xlu1 %v2955_v27  ;;  %v4368_v27 = vld [vmem:[%s20521_s5 + $0x78] sm:$0xff] }
 0x2c6   :  { %v15679_v30 = vadd.f32 %v2661_v25, %v1956_v16  ;;  %v2663_v26 = vpop.f32.mrb[25].mxu0  ;;  %v4367_v16 = vld [vmem:[%s20521_s5 + $0x70] sm:$0xff]  ;;  %v15705_v25 = vpop.f32.mrb[92].mxu1 }
 0x2c7   :  { %v15683_v21 = vadd.f32 %v2663_v26, %v1958_v24  ;;  %v2665_v53 = vpop.f32.mrb[26].mxu0  ;;  %v12742_v24 = vpack.c.bf16 %v4368_v27, %v4367_v16 }
 0x2c8   :  { %v15685_v2 = vadd.f32 %v2665_v53, %v1960_v23  ;;  %v2667_v8 = vpop.f32.mrb[27].mxu0  ;;  %v1968_v53 = vadd.f32 %v15281_v37, %v15444_v40  ;;  %v1970_v23 = vadd.f32 %v15283_v38, %v15438_v52 }
 0x2c9   :  { %20838 = vst [vmem:[#allocation63_spill] sm:$0xff] %v15683_v21  ;;  %v15687_v11 = vadd.f32 %v2667_v8, %v1962_v31  ;;  %v2958_v32 = vadd.f32 %v15683_v21, %v15679_v30  ;;  %12743 = vmatpush1.bf16.msra.mxu1 %v12742_v24  ;;  %v15707_v31 = vpop.f32.mrb[93].mxu1  ;;  %v1978_v21 = vadd.f32 %v15295_v43, %v15444_v40 }
 0x2ca   :  { %20839 = vst [vmem:[#allocation64_spill] sm:$0xff] %v15685_v2  ;;  %12744 = vmatprep.subr.bf16.mxu1 %v20809_v47  ;;  %v15712_v37 = vpop.f32.mrb[94].mxu1  ;;  %v1982_v43 = vadd.f32 %v15299_v45, %v15444_v40  ;;  %v4370_v45 = vld [vmem:[%s20521_s5 + $0x88] sm:$0xff] }
 0x2cb   :  { %20840 = vst [vmem:[#allocation65_spill] sm:$0xff] %v15687_v11  ;;  %2959 = vadd.xlane.f32.xlu0 %v2958_v32  ;;  %v2961_v8 = vadd.f32 %v15687_v11, %v15685_v2  ;;  %v1972_v32 = vadd.f32 %v15285_v39, %v15444_v40  ;;  %v15718_v24 = vpop.f32.mrb[95].mxu1 }
 0x2cd   :  { %v2671_v26 = vpop.f32.mrb[28].mxu0  ;;  %2962 = vadd.xlane.f32.xlu1 %v2961_v8 }
 0x2ce   :  { %v15710_v36 = vadd.f32 %v2671_v26, %v1966_v33  ;;  %v2673_v16 = vpop.f32.mrb[29].mxu0  ;;  %v1976_v26 = vadd.f32 %v15293_v42, %v15438_v52 }
 0x2cf   :  { %v15716_v27 = vadd.f32 %v2673_v16, %v1968_v53  ;;  %v2675_v38 = vpop.f32.mrb[30].mxu0  ;;  %v1980_v53 = vadd.f32 %v15297_v44, %v15438_v52 }
 0x2d0   :  { %20841 = vst [vmem:[#allocation66_spill] sm:$0xff] %v15710_v36  ;;  %v15720_v11 = vadd.f32 %v2675_v38, %v1970_v23  ;;  %v2677_v8 = vpop.f32.mrb[31].mxu0  ;;  %v15734_v23 = vpop.f32.mrb[96].mxu1 }
 0x2d1   :  { %20842 = vst [vmem:[#allocation67_spill] sm:$0xff] %v15716_v27  ;;  %v15722_v2 = vadd.f32 %v2677_v8, %v1972_v32  ;;  %v2964_v33 = vadd.f32 %v15716_v27, %v15710_v36  ;;  %v15736_v32 = vpop.f32.mrb[97].mxu1 }
 0x2d2   :  { %20843 = vst [vmem:[#allocation68_spill] sm:$0xff] %v15720_v11  ;;  %v15740_v42 = vpop.f32.mrb[98].mxu1 }
 0x2d3   :  { %20844 = vst [vmem:[#allocation69_spill] sm:$0xff] %v15722_v2  ;;  %2965 = vadd.xlane.f32.xlu0 %v2964_v33  ;;  %v2967_v39 = vadd.f32 %v15722_v2, %v15720_v11  ;;  %v15746_v11 = vpop.f32.mrb[99].mxu1 }
 0x2d5   :  { %v2681_v16 = vpop.f32.mrb[32].mxu0  ;;  %2968 = vadd.xlane.f32.xlu1 %v2967_v39  ;;  %v4369_v39 = vld [vmem:[%s20521_s5 + $0x80] sm:$0xff] }
 0x2d6   :  { %v15738_v38 = vadd.f32 %v2681_v16, %v1976_v26  ;;  %v2683_v8 = vpop.f32.mrb[33].mxu0  ;;  %v12745_v16 = vpack.c.bf16 %v4370_v45, %v4369_v39 }
 0x2d7   :  { %v15744_v33 = vadd.f32 %v2683_v8, %v1978_v21  ;;  %v2685_v2 = vpop.f32.mrb[34].mxu0  ;;  %v1986_v21 = vadd.f32 %v15314_v55, %v15438_v52  ;;  %v15768_v8 = vpop.f32.mrb[100].mxu1 }
 0x2d8   :  { %20845 = vst [vmem:[#allocation70_spill] sm:$0xff] %v15738_v38  ;;  %v15748_v44 = vadd.f32 %v2685_v2, %v1980_v53  ;;  %v2687_v27 = vpop.f32.mrb[35].mxu0  ;;  %v1988_v2 = vadd.f32 %v15316_v61, %v15444_v40  ;;  %v1990_v53 = vadd.f32 %v15318_v62, %v15438_v52  ;;  %12746 = vmatpush1.bf16.msra.mxu1 %v12745_v16 }
 0x2d9   :  { %20846 = vst [vmem:[#allocation71_spill] sm:$0xff] %v15744_v33  ;;  %v15750_v36 = vadd.f32 %v2687_v27, %v1982_v43  ;;  %v2970_v26 = vadd.f32 %v15744_v33, %v15738_v38  ;;  %v15770_v33 = vpop.f32.mrb[101].mxu1  ;;  %12747 = vmatprep.subr.bf16.mxu1 %v20809_v47  ;;  %v1998_v38 = vadd.f32 %v15331_v7, %v15444_v40 }
 0x2da   :  { %20847 = vst [vmem:[#allocation72_spill] sm:$0xff] %v15748_v44  ;;  %v15775_v61 = vpop.f32.mrb[102].mxu1  ;;  %v2002_v7 = vadd.f32 %v15335_v13, %v15444_v40  ;;  %v4372_v13 = vld [vmem:[%s20521_s5 + $0x98] sm:$0xff] }
 0x2db   :  { %20848 = vst [vmem:[#allocation73_spill] sm:$0xff] %v15750_v36  ;;  %2971 = vadd.xlane.f32.xlu0 %v2970_v26  ;;  %v2973_v27 = vadd.f32 %v15750_v36, %v15748_v44  ;;  %v1992_v26 = vadd.f32 %v15320_v63, %v15444_v40  ;;  %v15781_v16 = vpop.f32.mrb[103].mxu1 }
 0x2dd   :  { %v2691_v43 = vpop.f32.mrb[36].mxu0  ;;  %2974 = vadd.xlane.f32.xlu1 %v2973_v27 }
 0x2de   :  { %v15773_v55 = vadd.f32 %v2691_v43, %v1986_v21  ;;  %v2693_v39 = vpop.f32.mrb[37].mxu0  ;;  %v1996_v43 = vadd.f32 %v15329_v6, %v15438_v52 }
 0x2df   :  { %v15779_v45 = vadd.f32 %v2693_v39, %v1988_v2  ;;  %v2695_v62 = vpop.f32.mrb[38].mxu0  ;;  %v2000_v2 = vadd.f32 %v15333_v12, %v15438_v52 }
 0x2e0   :  { %20849 = vst [vmem:[#allocation74_spill] sm:$0xff] %v15773_v55  ;;  %v15783_v36 = vadd.f32 %v2695_v62, %v1990_v53  ;;  %v2697_v27 = vpop.f32.mrb[39].mxu0  ;;  %v15797_v53 = vpop.f32.mrb[104].mxu1 }
 0x2e1   :  { %20850 = vst [vmem:[#allocation75_spill] sm:$0xff] %v15779_v45  ;;  %v15785_v44 = vadd.f32 %v2697_v27, %v1992_v26  ;;  %v2976_v21 = vadd.f32 %v15779_v45, %v15773_v55  ;;  %v15799_v26 = vpop.f32.mrb[105].mxu1 }
 0x2e2   :  { %20851 = vst [vmem:[#allocation76_spill] sm:$0xff] %v15783_v36  ;;  %v15803_v6 = vpop.f32.mrb[106].mxu1 }
 0x2e3   :  { %20852 = vst [vmem:[#allocation77_spill] sm:$0xff] %v15785_v44  ;;  %2977 = vadd.xlane.f32.xlu0 %v2976_v21  ;;  %v2979_v63 = vadd.f32 %v15785_v44, %v15783_v36  ;;  %v15809_v36 = vpop.f32.mrb[107].mxu1 }
 0x2e5   :  { %v2701_v39 = vpop.f32.mrb[40].mxu0  ;;  %2980 = vadd.xlane.f32.xlu1 %v2979_v63  ;;  %v4371_v63 = vld [vmem:[%s20521_s5 + $0x90] sm:$0xff] }
 0x2e6   :  { %v15801_v62 = vadd.f32 %v2701_v39, %v1996_v43  ;;  %v2703_v27 = vpop.f32.mrb[41].mxu0  ;;  %v12748_v39 = vpack.c.bf16 %v4372_v13, %v4371_v63 }
 0x2e7   :  { %v15807_v21 = vadd.f32 %v2703_v27, %v1998_v38  ;;  %v2705_v44 = vpop.f32.mrb[42].mxu0  ;;  %v2006_v38 = vadd.f32 %v15349_v22, %v15438_v52 }
 0x2e8   :  { %20853 = vst [vmem:[#allocation78_spill] sm:$0xff] %v15801_v62  ;;  %v15811_v12 = vadd.f32 %v2705_v44, %v2000_v2  ;;  %v2707_v45 = vpop.f32.mrb[43].mxu0  ;;  %v2008_v44 = vadd.f32 %v15351_v28, %v15444_v40  ;;  %12749 = vmatpush1.bf16.msra.mxu1 %v12748_v39  ;;  %v15829_v2 = vpop.f32.mrb[108].mxu1  ;;  %v2012_v28 = vadd.f32 %v15355_v34, %v15444_v40 }
 0x2e9   :  { %20854 = vst [vmem:[#allocation79_spill] sm:$0xff] %v15807_v21  ;;  %v15813_v55 = vadd.f32 %v2707_v45, %v2002_v7  ;;  %v2982_v43 = vadd.f32 %v15807_v21, %v15801_v62  ;;  %v2010_v45 = vadd.f32 %v15353_v29, %v15438_v52  ;;  %v15833_v21 = vpop.f32.mrb[109].mxu1  ;;  %12750 = vmatprep.subr.bf16.mxu1 %v20809_v47 }
 0x2ea   :  { %20855 = vst [vmem:[#allocation80_spill] sm:$0xff] %v15811_v12  ;;  %20857 = vst [vmem:[#allocation82_spill] sm:$0xff] %v15833_v21  ;;  %v15838_v13 = vpop.f32.mrb[110].mxu1  ;;  %v2018_v34 = vadd.f32 %v15366_v46, %v15444_v40 }
 0x2eb   :  { %20856 = vst [vmem:[#allocation81_spill] sm:$0xff] %v15813_v55  ;;  %2983 = vadd.xlane.f32.xlu0 %v2982_v43  ;;  %v2985_v7 = vadd.f32 %v15813_v55, %v15811_v12  ;;  %20859 = vst [vmem:[#allocation84_spill] sm:$0xff] %v15838_v13  ;;  %v15844_v39 = vpop.f32.mrb[111].mxu1 }
 0x2ec   :  { %20861 = vst [vmem:[#allocation86_spill] sm:$0xff] %v15844_v39 }
 0x2ed   :  { %v2711_v27 = vpop.f32.mrb[44].mxu0 }
 0x2ee   :  { %v15836_v22 = vadd.f32 %v2711_v27, %v2006_v38  ;;  %v2713_v63 = vpop.f32.mrb[45].mxu0  ;;  %v2016_v27 = vadd.f32 %v15364_v41, %v15438_v52  ;;  %v20869_v41 = vld [vmem:[#allocation19_spill] sm:$0xff] }
 0x2ef   :  { %v15842_v29 = vadd.f32 %v2713_v63, %v2008_v44  ;;  %v2715_v43 = vpop.f32.mrb[46].mxu0  ;;  %2986 = vadd.xlane.f32.xlu0 %v2985_v7  ;;  %v20864_v44 = vld [vmem:[#allocation18_spill] sm:$0xff]  ;;  %v15858_v63 = vpop.f32.mrb[112].mxu1  ;;  %v2022_v46 = vadd.f32 %v20869_v41, %v15444_v40 }
 0x2f0   :  { %20858 = vst [vmem:[#allocation83_spill] sm:$0xff] %v15836_v22  ;;  %v15846_v62 = vadd.f32 %v2715_v43, %v2010_v45  ;;  %v2717_v55 = vpop.f32.mrb[47].mxu0  ;;  %v2020_v7 = vadd.f32 %v20864_v44, %v15438_v52  ;;  %20865 = vst [vmem:[#allocation18_spill] sm:$0xff] %v15858_v63 }
 0x2f1   :  { %20860 = vst [vmem:[#allocation85_spill] sm:$0xff] %v15842_v29  ;;  %v15848_v12 = vadd.f32 %v2717_v55, %v2012_v28  ;;  %v2988_v38 = vadd.f32 %v15842_v29, %v15836_v22  ;;  %v15862_v28 = vpop.f32.mrb[113].mxu1 }
 0x2f2   :  { %20862 = vst [vmem:[#allocation87_spill] sm:$0xff] %v15846_v62  ;;  %20866 = vst [vmem:[#allocation89_spill] sm:$0xff] %v15862_v28  ;;  %v15866_v22 = vpop.f32.mrb[114].mxu1 }
 0x2f3   :  { %20863 = vst [vmem:[#allocation88_spill] sm:$0xff] %v15848_v12  ;;  %2989 = vadd.xlane.f32.xlu0 %v2988_v38  ;;  %v2991_v55 = vadd.f32 %v15848_v12, %v15846_v62  ;;  %20868 = vst [vmem:[#allocation91_spill] sm:$0xff] %v15866_v22  ;;  %v15872_v44 = vpop.f32.mrb[115].mxu1 }
 0x2f4   :  { %20871 = vst [vmem:[#allocation92_spill] sm:$0xff] %v15872_v44 }
 0x2f5   :  { %v2721_v45 = vpop.f32.mrb[48].mxu0 }
 0x2f6   :  { %v15864_v43 = vadd.f32 %v2721_v45, %v2016_v27  ;;  %v2723_v29 = vpop.f32.mrb[49].mxu0  ;;  %v4373_v45 = vld [vmem:[%s20521_s5 + $0xa0] sm:$0xff] }
 0x2f7   :  { %v15870_v38 = vadd.f32 %v2723_v29, %v2018_v34  ;;  %v2725_v39 = vpop.f32.mrb[50].mxu0  ;;  %2992 = vadd.xlane.f32.xlu0 %v2991_v55  ;;  %v4374_v29 = vld [vmem:[%s20521_s5 + $0xa8] sm:$0xff]  ;;  %v20874_v34 = vld [vmem:[#allocation20_spill] sm:$0xff] }
 0x2f8   :  { %20867 = vst [vmem:[#allocation90_spill] sm:$0xff] %v15864_v43  ;;  %v15874_v63 = vadd.f32 %v2725_v39, %v2020_v7  ;;  %v2727_v13 = vpop.f32.mrb[51].mxu0  ;;  %v2026_v55 = vadd.f32 %v20874_v34, %v15438_v52  ;;  %v12751_v41 = vpack.c.bf16 %v4374_v29, %v4373_v45  ;;  %v20875_v39 = vld [vmem:[#allocation21_spill] sm:$0xff] }
 0x2f9   :  { %20870 = vst [vmem:[#allocation19_spill] sm:$0xff] %v15870_v38  ;;  %v15876_v12 = vadd.f32 %v2727_v13, %v2022_v46  ;;  %v2994_v27 = vadd.f32 %v15870_v38, %v15864_v43  ;;  %v2028_v7 = vadd.f32 %v20875_v39, %v15444_v40  ;;  %v15890_v13 = vpop.f32.mrb[116].mxu1  ;;  %v20877_v46 = vld [vmem:[#allocation22_spill] sm:$0xff] }
 0x2fa   :  { %20872 = vst [vmem:[#allocation93_spill] sm:$0xff] %v15874_v63  ;;  %20876 = vst [vmem:[#allocation20_spill] sm:$0xff] %v15890_v13  ;;  %v2030_v38 = vadd.f32 %v20877_v46, %v15438_v52  ;;  %12752 = vmatpush1.bf16.msra.mxu1 %v12751_v41  ;;  %v15894_v43 = vpop.f32.mrb[117].mxu1 }
 0x2fb   :  { %20873 = vst [vmem:[#allocation94_spill] sm:$0xff] %v15876_v12  ;;  %2995 = vadd.xlane.f32.xlu0 %v2994_v27  ;;  %20878 = vst [vmem:[#allocation21_spill] sm:$0xff] %v15894_v43  ;;  %v2997_v44 = vadd.f32 %v15876_v12, %v15874_v63  ;;  %12753 = vmatprep.subr.bf16.mxu1 %v20809_v47  ;;  %v15901_v29 = vpop.f32.mrb[118].mxu1  ;;  %v20881_v27 = vld [vmem:[#allocation23_spill] sm:$0xff] }
 0x2fc   :  { %20880 = vst [vmem:[#allocation95_spill] sm:$0xff] %v15901_v29  ;;  %v2032_v39 = vadd.f32 %v20881_v27, %v15444_v40  ;;  %v15907_v41 = vpop.f32.mrb[119].mxu1  ;;  %v20887_v29 = vld [vmem:[#allocation25_spill] sm:$0xff] }
 0x2fd   :  { %v2731_v62 = vpop.f32.mrb[52].mxu0  ;;  %20883 = vst [vmem:[#allocation96_spill] sm:$0xff] %v15907_v41  ;;  %v2038_v27 = vadd.f32 %v20887_v29, %v15444_v40 }
 0x2fe   :  { %v15899_v34 = vadd.f32 %v2731_v62, %v2026_v55  ;;  %v2733_v45 = vpop.f32.mrb[53].mxu0  ;;  %v20886_v55 = vld [vmem:[#allocation24_spill] sm:$0xff] }
 0x2ff   :  { %v15905_v13 = vadd.f32 %v2733_v45, %v2028_v7  ;;  %v2735_v46 = vpop.f32.mrb[54].mxu0  ;;  %2998 = vadd.xlane.f32.xlu0 %v2997_v44  ;;  %v2036_v63 = vadd.f32 %v20886_v55, %v15438_v52  ;;  %v15919_v7 = vpop.f32.mrb[120].mxu1  ;;  %v20889_v44 = vld [vmem:[#allocation26_spill] sm:$0xff]  ;;  %v20893_v55 = vld [vmem:[#allocation27_spill] sm:$0xff] }
 0x300   :  { %20879 = vst [vmem:[#allocation22_spill] sm:$0xff] %v15899_v34  ;;  %v15909_v43 = vadd.f32 %v2735_v46, %v2030_v38  ;;  %v2737_v22 = vpop.f32.mrb[55].mxu0  ;;  %20888 = vst [vmem:[#allocation24_spill] sm:$0xff] %v15919_v7  ;;  %v2040_v45 = vadd.f32 %v20889_v44, %v15438_v52  ;;  %v15923_v38 = vpop.f32.mrb[121].mxu1  ;;  %v2042_v29 = vadd.f32 %v20893_v55, %v15444_v40 }
 0x301   :  { %20882 = vst [vmem:[#allocation23_spill] sm:$0xff] %v15905_v13  ;;  %v15911_v12 = vadd.f32 %v2737_v22, %v2032_v39  ;;  %v3000_v62 = vadd.f32 %v15905_v13, %v15899_v34  ;;  %20890 = vst [vmem:[#allocation25_spill] sm:$0xff] %v15923_v38  ;;  %v15929_v34 = vpop.f32.mrb[122].mxu1 }
 0x302   :  { %20884 = vst [vmem:[#allocation97_spill] sm:$0xff] %v15909_v43  ;;  %20892 = vst [vmem:[#allocation99_spill] sm:$0xff] %v15929_v34  ;;  %v15935_v41 = vpop.f32.mrb[123].mxu1 }
 0x303   :  { %20885 = vst [vmem:[#allocation98_spill] sm:$0xff] %v15911_v12  ;;  %3001 = vadd.xlane.f32.xlu0 %v3000_v62  ;;  %v3003_v22 = vadd.f32 %v15911_v12, %v15909_v43  ;;  %20895 = vst [vmem:[#allocation100_spill] sm:$0xff] %v15935_v41  ;;  %v20899_v43 = vld [vmem:[#allocation31_spill] sm:$0xff]  ;;  %v20903_v41 = vld [vmem:[#allocation34_spill] sm:$0xff] }
 0x304   :  { %v2048_v55 = vadd.f32 %v20899_v43, %v15444_v40  ;;  %v2052_v34 = vadd.f32 %v20903_v41, %v15444_v40  ;;  %v20907_v41 = vld [vmem:[#allocation36_spill] sm:$0xff] }
 0x305   :  { %v2741_v46 = vpop.f32.mrb[56].mxu0 }
 0x306   :  { %v15927_v39 = vadd.f32 %v2741_v46, %v2036_v63  ;;  %v2743_v13 = vpop.f32.mrb[57].mxu0  ;;  %v20898_v46 = vld [vmem:[#allocation29_spill] sm:$0xff] }
 0x307   :  { %v15933_v62 = vadd.f32 %v2743_v13, %v2038_v27  ;;  %v2745_v7 = vpop.f32.mrb[58].mxu0  ;;  %3004 = vadd.xlane.f32.xlu0 %v3003_v22  ;;  %v2046_v12 = vadd.f32 %v20898_v46, %v15438_v52  ;;  %v4375_v13 = vld [vmem:[%s20521_s5 + $0xb0] sm:$0xff]  ;;  %v4376_v27 = vld [vmem:[%s20521_s5 + $0xb8] sm:$0xff] }
 0x308   :  { %20891 = vst [vmem:[#allocation26_spill] sm:$0xff] %v15927_v39  ;;  %v15937_v44 = vadd.f32 %v2745_v7, %v2040_v45  ;;  %v2747_v38 = vpop.f32.mrb[59].mxu0  ;;  %v15953_v7 = vpop.f32.mrb[124].mxu1  ;;  %v20901_v45 = vld [vmem:[#allocation33_spill] sm:$0xff]  ;;  %v12754_v22 = vpack.c.bf16 %v4376_v27, %v4375_v13 }
 0x309   :  { %20894 = vst [vmem:[#allocation27_spill] sm:$0xff] %v15933_v62  ;;  %v15939_v28 = vadd.f32 %v2747_v38, %v2042_v29  ;;  %v3006_v63 = vadd.f32 %v15933_v62, %v15927_v39  ;;  %20900 = vst [vmem:[#allocation29_spill] sm:$0xff] %v15953_v7  ;;  %v2050_v38 = vadd.f32 %v20901_v45, %v15438_v52  ;;  %v15957_v29 = vpop.f32.mrb[125].mxu1 }
 0x30a   :  { %20896 = vst [vmem:[#allocation101_spill] sm:$0xff] %v15937_v44  ;;  %12755 = vmatpush1.bf16.msra.mxu1 %v12754_v22  ;;  %v15963_v39 = vpop.f32.mrb[126].mxu1 }
 0x30b   :  { %20897 = vst [vmem:[#allocation102_spill] sm:$0xff] %v15939_v28  ;;  %3007 = vadd.xlane.f32.xlu0 %v3006_v63  ;;  %v3009_v43 = vadd.f32 %v15939_v28, %v15937_v44  ;;  %v15969_v13 = vpop.f32.mrb[127].mxu1  ;;  %12756 = vmatprep.subr.bf16.mxu1 %v20809_v47 }
 0x30d   :  { %v2751_v46 = vpop.f32.mrb[60].mxu0 }
 0x30e   :  { %v15961_v63 = vadd.f32 %v2751_v46, %v2046_v12  ;;  %v2753_v62 = vpop.f32.mrb[61].mxu0  ;;  %v20906_v46 = vld [vmem:[#allocation35_spill] sm:$0xff] }
 0x30f   :  { %v15967_v7 = vadd.f32 %v2753_v62, %v2048_v55  ;;  %v2755_v21 = vpop.f32.mrb[62].mxu0  ;;  %3010 = vadd.xlane.f32.xlu0 %v3009_v43  ;;  %v2056_v28 = vadd.f32 %v20906_v46, %v15438_v52  ;;  %v2058_v62 = vadd.f32 %v20907_v41, %v15444_v40  ;;  %v20908_v55 = vld [vmem:[#allocation37_spill] sm:$0xff] }
 0x310   :  { %20902 = vst [vmem:[#allocation31_spill] sm:$0xff] %v15961_v63  ;;  %v15972_v27 = vadd.f32 %v2755_v21, %v2050_v38  ;;  %v2757_v45 = vpop.f32.mrb[63].mxu0  ;;  %v2060_v43 = vadd.f32 %v20908_v55, %v15438_v52  ;;  %v4378_v41 = vld [vmem:[%s20521_s5 + $0xc8] sm:$0xff] }
 0x311   :  { %20904 = vst [vmem:[#allocation33_spill] sm:$0xff] %v15967_v7  ;;  %v15974_v12 = vadd.f32 %v2757_v45, %v2052_v34  ;;  %v3012_v22 = vadd.f32 %v15967_v7, %v15961_v63  ;;  %v20909_v45 = vld [vmem:[#allocation38_spill] sm:$0xff] }
 0x312   :  { %v2062_v7 = vadd.f32 %v20909_v45, %v15444_v40  ;;  %v2068_v45 = vadd.f32 %v15491_v35, %v15444_v40 }
 0x313   :  { %20905 = vst [vmem:[#allocation34_spill] sm:$0xff] %v15974_v12  ;;  %3013 = vadd.xlane.f32.xlu0 %v3012_v22  ;;  %v3015_v21 = vadd.f32 %v15974_v12, %v15972_v27  ;;  %v4377_v22 = vld [vmem:[%s20521_s5 + $0xc0] sm:$0xff] }
 0x315   :  { %v2761_v44 = vpop.f32.mrb[64].mxu0 }
 0x316   :  { %v15986_v38 = vadd.f32 %v2761_v44, %v2056_v28  ;;  %v2763_v34 = vpop.f32.mrb[65].mxu0  ;;  %v12757_v44 = vpack.c.bf16 %v4378_v41, %v4377_v22 }
 0x317   :  { %v15990_v63 = vadd.f32 %v2763_v34, %v2058_v62  ;;  %v2765_v46 = vpop.f32.mrb[66].mxu0  ;;  %3016 = vadd.xlane.f32.xlu0 %v3015_v21  ;;  %v20911_v34 = vld [vmem:[#allocation43_spill] sm:$0xff] }
 0x318   :  { %v15998_v55 = vadd.f32 %v2765_v46, %v2060_v43  ;;  %v2767_v28 = vpop.f32.mrb[67].mxu0  ;;  %v2066_v21 = vadd.f32 %v20911_v34, %v15438_v52  ;;  %12758 = vmatpush1.bf16.msra.mxu1 %v12757_v44  ;;  %v2070_v43 = vadd.f32 %v15495_v50, %v15438_v52 }
 0x319   :  { %20910 = vst [vmem:[#allocation35_spill] sm:$0xff] %v15990_v63  ;;  %v16000_v12 = vadd.f32 %v2767_v28, %v2062_v7  ;;  %v3018_v62 = vadd.f32 %v15990_v63, %v15986_v38  ;;  %12759 = vmatprep.subr.bf16.mxu1 %v20809_v47  ;;  %v2072_v28 = vadd.f32 %v15497_v49, %v15444_v40  ;;  %v16029_v49 = vpop.permute.xlu0 %6083 }
 0x31a   :  { %20916 = vst [vmem:[#allocation103_spill] sm:$0xff] %v16029_v49 }
 0x31b   :  { %3019 = vadd.xlane.f32.xlu0 %v3018_v62  ;;  %v3021_v7 = vadd.f32 %v16000_v12, %v15998_v55 }
 0x31d   :  { %v2771_v46 = vpop.f32.mrb[68].mxu0 }
 0x31e   :  { %v16013_v22 = vadd.f32 %v2771_v46, %v2066_v21  ;;  %v2773_v41 = vpop.f32.mrb[69].mxu0  ;;  %v2076_v21 = vadd.f32 %v15522_v14, %v15438_v52  ;;  %v2078_v46 = vadd.f32 %v15526_v54, %v15444_v40  ;;  %v4379_v54 = vld [vmem:[%s20521_s5 + $0xd0] sm:$0xff] }
 0x31f   :  { %v16017_v44 = vadd.f32 %v2773_v41, %v2068_v45  ;;  %v2775_v34 = vpop.f32.mrb[70].mxu0  ;;  %3022 = vadd.xlane.f32.xlu0 %v3021_v7  ;;  %v2080_v45 = vadd.f32 %v15530_v56, %v15438_v52  ;;  %v4380_v56 = vld [vmem:[%s20521_s5 + $0xd8] sm:$0xff] }
 0x320   :  { %20912 = vst [vmem:[#allocation36_spill] sm:$0xff] %v16013_v22  ;;  %v16019_v35 = vadd.f32 %v2775_v34, %v2070_v43  ;;  %v2777_v62 = vpop.f32.mrb[71].mxu0  ;;  %v2082_v34 = vadd.f32 %v15532_v48, %v15444_v40  ;;  %v12760_v49 = vpack.c.bf16 %v4380_v56, %v4379_v54 }
 0x321   :  { %20913 = vst [vmem:[#allocation37_spill] sm:$0xff] %v16017_v44  ;;  %v16021_v63 = vadd.f32 %v2777_v62, %v2072_v28  ;;  %v3024_v50 = vadd.f32 %v16017_v44, %v16013_v22  ;;  %v20923_v44 = vld [vmem:[#allocation40_spill] sm:$0xff] }
 0x322   :  { %20914 = vst [vmem:[#allocation38_spill] sm:$0xff] %v16019_v35  ;;  %12761 = vmatpush1.bf16.msra.mxu1 %v12760_v49 }
 0x323   :  { %20915 = vst [vmem:[#allocation43_spill] sm:$0xff] %v16021_v63  ;;  %3025 = vadd.xlane.f32.xlu0 %v3024_v50  ;;  %v3027_v7 = vadd.f32 %v16021_v63, %v16019_v35  ;;  %12762 = vmatprep.subr.bf16.mxu1 %v20809_v47 }
 0x325   :  { %v2781_v43 = vpop.f32.mrb[72].mxu0 }
 0x326   :  { %v16035_v41 = vadd.f32 %v2781_v43, %v2076_v21  ;;  %v2783_v28 = vpop.f32.mrb[73].mxu0 }
 0x327   :  { %v16039_v14 = vadd.f32 %v2783_v28, %v2078_v46  ;;  %v2785_v62 = vpop.f32.mrb[74].mxu0  ;;  %3028 = vadd.xlane.f32.xlu0 %v3027_v7  ;;  %v2086_v7 = vadd.f32 %v15562_v51, %v15438_v52  ;;  %v20921_v28 = vld [vmem:[#allocation39_spill] sm:$0xff] }
 0x328   :  { %20917 = vst [vmem:[#allocation104_spill] sm:$0xff] %v16035_v41  ;;  %v16047_v50 = vadd.f32 %v2785_v62, %v2080_v45  ;;  %v2787_v21 = vpop.f32.mrb[75].mxu0  ;;  %v2924_v43 = vpop.xlane.xlu0 %2923  ;;  %v2088_v45 = vadd.f32 %v15566_v57, %v15444_v40  ;;  %v2092_v57 = vadd.f32 %v15574_v0, %v15444_v40 }
 0x329   :  { %20918 = vst [vmem:[#allocation105_spill] sm:$0xff] %v16039_v14  ;;  %v16049_v63 = vadd.f32 %v2787_v21, %v2082_v34  ;;  %v3115_v48 = vmul.f32 0.00390625, %v2924_v43  ;;  %v3030_v46 = vadd.f32 %v16039_v14, %v16035_v41  ;;  %v2090_v34 = vadd.f32 %v15572_v60, %v15438_v52 }
 0x32a   :  { %20919 = vst [vmem:[#allocation106_spill] sm:$0xff] %v16047_v50 }
 0x32b   :  { %20920 = vst [vmem:[#allocation107_spill] sm:$0xff] %v16049_v63  ;;  %v16056_v35 = vsub.f32 %v20921_v28, %v3115_v48  ;;  %v16059_v22 = vsub.f32 %v20923_v44, %v3115_v48  ;;  %3031 = vadd.xlane.f32.xlu0 %v3030_v46  ;;  %v3033_v51 = vadd.f32 %v16049_v63, %v16047_v50  ;;  %v20925_v48 = vld [vmem:[#allocation41_spill] sm:$0xff]  ;;  %v20926_v46 = vld [vmem:[#allocation42_spill] sm:$0xff] }
 0x32c   :  { %v2927_v62 = vpop.xlane.xlu0 %2926 }
 0x32d   :  { %20922 = vst [vmem:[#allocation39_spill] sm:$0xff] %v16056_v35  ;;  %20924 = vst [vmem:[#allocation40_spill] sm:$0xff] %v16059_v22  ;;  %v3116_v54 = vmul.f32 0.00390625, %v2927_v62  ;;  %v2791_v56 = vpop.f32.mrb[76].mxu0  ;;  %v3307_v49 = vmul.f32 %v16056_v35, %v16056_v35  ;;  %v3308_v44 = vmul.f32 %v16059_v22, %v16059_v22 }
 0x32e   :  { %v16074_v21 = vadd.f32 %v2791_v56, %v2086_v7  ;;  %v2793_v43 = vpop.f32.mrb[77].mxu0 }
 0x32f   :  { %v16077_v60 = vsub.f32 %v20925_v48, %v3116_v54  ;;  %v16080_v28 = vsub.f32 %v20926_v46, %v3116_v54  ;;  %v16082_v62 = vadd.f32 %v2793_v43, %v2088_v45  ;;  %v2795_v63 = vpop.f32.mrb[78].mxu0  ;;  %3034 = vadd.xlane.f32.xlu0 %v3033_v51  ;;  %v3435_v35 = vadd.f32 %v3308_v44, %v3307_v49  ;;  %v20929_v51 = vld [vmem:[#allocation45_spill] sm:$0xff] }
 0x330   :  { %v16084_v50 = vadd.f32 %v2795_v63, %v2090_v34  ;;  %v2797_v22 = vpop.f32.mrb[79].mxu0  ;;  %v2930_v14 = vpop.xlane.xlu1 %2929  ;;  %v2096_v45 = vadd.f32 %v15597_v59, %v15438_v52  ;;  %v20927_v63 = vld [vmem:[#allocation44_spill] sm:$0xff] }
 0x331   :  { %v16086_v41 = vadd.f32 %v2797_v22, %v2092_v57  ;;  %v3117_v0 = vmul.f32 0.00390625, %v2930_v14  ;;  %3436 = vadd.xlane.f32.xlu1 %v3435_v35  ;;  %v3036_v7 = vadd.f32 %v16082_v62, %v16074_v21  ;;  %v3309_v54 = vmul.f32 %v16077_v60, %v16077_v60 }
 0x332   :  { %v3310_v56 = vmul.f32 %v16080_v28, %v16080_v28  ;;  %v2098_v35 = vadd.f32 %v15601_v5, %v15444_v40  ;;  %v2100_v14 = vadd.f32 %v15607_v15, %v15438_v52  ;;  %v2102_v5 = vadd.f32 %v15611_v10, %v15444_v40  ;;  %v4382_v10 = vld [vmem:[%s20521_s5 + $0xe8] sm:$0xff] }
 0x333   :  { %v16097_v34 = vsub.f32 %v20927_v63, %v3117_v0  ;;  %v16100_v22 = vsub.f32 %v20929_v51, %v3117_v0  ;;  %3037 = vadd.xlane.f32.xlu0 %v3036_v7  ;;  %v3039_v43 = vadd.f32 %v16086_v41, %v16084_v50  ;;  %v20931_v7 = vld [vmem:[#allocation46_spill] sm:$0xff] }
 0x334   :  { %v2933_v49 = vpop.xlane.xlu1 %2932  ;;  %v3438_v44 = vadd.f32 %v3310_v56, %v3309_v54  ;;  %v20933_v56 = vld [vmem:[#allocation47_spill] sm:$0xff] }
 0x335   :  { %20928 = vst [vmem:[#allocation41_spill] sm:$0xff] %v16097_v34  ;;  %20930 = vst [vmem:[#allocation42_spill] sm:$0xff] %v16100_v22  ;;  %v3118_v57 = vmul.f32 0.00390625, %v2933_v49  ;;  %v2801_v59 = vpop.f32.mrb[80].mxu0  ;;  %v3311_v48 = vmul.f32 %v16097_v34, %v16097_v34  ;;  %v3312_v46 = vmul.f32 %v16100_v22, %v16100_v22  ;;  %v4381_v22 = vld [vmem:[%s20521_s5 + $0xe0] sm:$0xff] }
 0x336   :  { %v16114_v0 = vadd.f32 %v2801_v59, %v2096_v45  ;;  %3439 = vadd.xlane.f32.xlu1 %v3438_v44  ;;  %v2803_v15 = vpop.f32.mrb[81].mxu0 }
 0x337   :  { %v16117_v54 = vsub.f32 %v20931_v7, %v3118_v57  ;;  %v16120_v63 = vsub.f32 %v20933_v56, %v3118_v57  ;;  %v16122_v51 = vadd.f32 %v2803_v15, %v2098_v35  ;;  %v2805_v49 = vpop.f32.mrb[82].mxu0  ;;  %3040 = vadd.xlane.f32.xlu0 %v3039_v43  ;;  %v3441_v34 = vadd.f32 %v3312_v46, %v3311_v48  ;;  %v20934_v56 = vld [vmem:[#allocation48_spill] sm:$0xff] }
 0x338   :  { %v16130_v45 = vadd.f32 %v2805_v49, %v2100_v14  ;;  %v2807_v44 = vpop.f32.mrb[83].mxu0  ;;  %v2936_v59 = vpop.xlane.xlu0 %2935  ;;  %v12763_v7 = vpack.c.bf16 %v4382_v10, %v4381_v22  ;;  %v2106_v46 = vadd.f32 %v15636_v9, %v15438_v52  ;;  %v2110_v9 = vadd.f32 %v15646_v58, %v15438_v52 }
 0x339   :  { %20932 = vst [vmem:[#allocation44_spill] sm:$0xff] %v16117_v54  ;;  %v16132_v57 = vadd.f32 %v2807_v44, %v2102_v5  ;;  %v3119_v35 = vmul.f32 0.00390625, %v2936_v59  ;;  %v3042_v43 = vadd.f32 %v16122_v51, %v16114_v0  ;;  %v3313_v48 = vmul.f32 %v16117_v54, %v16117_v54  ;;  %v20936_v5 = vld [vmem:[#allocation49_spill] sm:$0xff] }
 0x33a   :  { %3442 = vadd.xlane.f32.xlu1 %v3441_v34  ;;  %v2939_v15 = vpop.xlane.xlu1 %2938  ;;  %v3314_v14 = vmul.f32 %v16120_v63, %v16120_v63  ;;  %12764 = vmatpush1.bf16.msra.mxu1 %v12763_v7  ;;  %v2108_v44 = vadd.f32 %v15642_v4, %v15444_v40 }
 0x33b   :  { %v16143_v22 = vsub.f32 %v20934_v56, %v3119_v35  ;;  %v16146_v49 = vsub.f32 %v20936_v5, %v3119_v35  ;;  %v3120_v10 = vmul.f32 0.00390625, %v2939_v15  ;;  %3043 = vadd.xlane.f32.xlu0 %v3042_v43  ;;  %12765 = vmatprep.subr.bf16.mxu1 %v20809_v47  ;;  %v3045_v59 = vadd.f32 %v16132_v57, %v16130_v45  ;;  %v20939_v56 = vld [vmem:[#allocation50_spill] sm:$0xff] }
 0x33c   :  { %v3444_v34 = vadd.f32 %v3314_v14, %v3313_v48  ;;  %v2112_v48 = vadd.f32 %v15648_v17, %v15444_v40 }
 0x33d   :  { %20935 = vst [vmem:[#allocation45_spill] sm:$0xff] %v16143_v22  ;;  %20937 = vst [vmem:[#allocation46_spill] sm:$0xff] %v16146_v49  ;;  %v16156_v7 = vsub.f32 %v15550_v20, %v3120_v10  ;;  %v16159_v35 = vsub.f32 %v20939_v56, %v3120_v10  ;;  %v2811_v15 = vpop.f32.mrb[84].mxu0  ;;  %v3315_v4 = vmul.f32 %v16143_v22, %v16143_v22 }
 0x33e   :  { %v3316_v47 = vmul.f32 %v16146_v49, %v16146_v49  ;;  %v16165_v43 = vadd.f32 %v2811_v15, %v2106_v46  ;;  %3445 = vadd.xlane.f32.xlu1 %v3444_v34  ;;  %v2813_v58 = vpop.f32.mrb[85].mxu0 }
 0x33f   :  { %20938 = vst [vmem:[#allocation47_spill] sm:$0xff] %v16156_v7  ;;  %20940 = vst [vmem:[#allocation48_spill] sm:$0xff] %v16159_v35  ;;  %v16169_v14 = vadd.f32 %v2813_v58, %v2108_v44  ;;  %v2815_v20 = vpop.f32.mrb[86].mxu0  ;;  %3046 = vadd.xlane.f32.xlu0 %v3045_v59  ;;  %v3317_v22 = vmul.f32 %v16156_v7, %v16156_v7  ;;  %v3318_v46 = vmul.f32 %v16159_v35, %v16159_v35  ;;  %v20941_v59 = vld [vmem:[#allocation51_spill] sm:$0xff] }
 0x340   :  { %v3447_v5 = vadd.f32 %v3316_v47, %v3315_v4  ;;  %v16171_v10 = vadd.f32 %v2815_v20, %v2110_v9  ;;  %v2817_v56 = vpop.f32.mrb[87].mxu0  ;;  %v2942_v54 = vpop.xlane.xlu0 %2941  ;;  %v2116_v44 = vadd.f32 %v15665_v19, %v15438_v52  ;;  %v20943_v47 = vld [vmem:[#allocation52_spill] sm:$0xff]  ;;  %v20945_v19 = vld [vmem:[#allocation53_spill] sm:$0xff] }
 0x341   :  { %v16177_v34 = vadd.f32 %v2817_v56, %v2112_v48  ;;  %v3121_v15 = vmul.f32 0.00390625, %v2942_v54  ;;  %v3048_v17 = vadd.f32 %v16169_v14, %v16165_v43  ;;  %v2118_v48 = vadd.f32 %v15671_v1, %v15444_v40 }
 0x342   :  { %3448 = vadd.xlane.f32.xlu1 %v3447_v5  ;;  %v2945_v9 = vpop.xlane.xlu1 %2944  ;;  %v2120_v54 = vadd.f32 %v15675_v18, %v15438_v52  ;;  %v3450_v56 = vadd.f32 %v3318_v46, %v3317_v22  ;;  %v2122_v22 = vadd.f32 %v15677_v3, %v15444_v40 }
 0x343   :  { %v16184_v4 = vsub.f32 %v20941_v59, %v3121_v15  ;;  %v16187_v58 = vsub.f32 %v20943_v47, %v3121_v15  ;;  %v3122_v20 = vmul.f32 0.00390625, %v2945_v9  ;;  %3049 = vadd.xlane.f32.xlu0 %v3048_v17  ;;  %v3051_v5 = vadd.f32 %v16177_v34, %v16171_v10  ;;  %v20947_v59 = vld [vmem:[#allocation54_spill] sm:$0xff] }
 0x345   :  { %20942 = vst [vmem:[#allocation49_spill] sm:$0xff] %v16184_v4  ;;  %20944 = vst [vmem:[#allocation50_spill] sm:$0xff] %v16187_v58  ;;  %v16196_v7 = vsub.f32 %v20945_v19, %v3122_v20  ;;  %v16199_v35 = vsub.f32 %v20947_v59, %v3122_v20  ;;  %v2821_v15 = vpop.f32.mrb[88].mxu0  ;;  %v3319_v9 = vmul.f32 %v16184_v4, %v16184_v4 }
 0x346   :  { %v3320_v1 = vmul.f32 %v16187_v58, %v16187_v58  ;;  %v16205_v17 = vadd.f32 %v2821_v15, %v2116_v44  ;;  %3451 = vadd.xlane.f32.xlu1 %v3450_v56  ;;  %v2823_v18 = vpop.f32.mrb[89].mxu0 }
 0x347   :  { %20946 = vst [vmem:[#allocation51_spill] sm:$0xff] %v16196_v7  ;;  %20948 = vst [vmem:[#allocation52_spill] sm:$0xff] %v16199_v35  ;;  %v16209_v46 = vadd.f32 %v2823_v18, %v2118_v48  ;;  %v2825_v47 = vpop.f32.mrb[90].mxu0  ;;  %3052 = vadd.xlane.f32.xlu0 %v3051_v5  ;;  %v3321_v4 = vmul.f32 %v16196_v7, %v16196_v7  ;;  %v3322_v44 = vmul.f32 %v16199_v35, %v16199_v35  ;;  %v20950_v5 = vld [vmem:[#allocation55_spill] sm:$0xff] }
 0x348   :  { %v3453_v20 = vadd.f32 %v3320_v1, %v3319_v9  ;;  %v16211_v19 = vadd.f32 %v2825_v47, %v2120_v54  ;;  %v2827_v59 = vpop.f32.mrb[91].mxu0  ;;  %v2948_v49 = vpop.xlane.xlu0 %2947  ;;  %v2126_v54 = vadd.f32 %v15705_v25, %v15438_v52  ;;  %v20952_v1 = vld [vmem:[#allocation56_spill] sm:$0xff] }
 0x349   :  { %v16217_v56 = vadd.f32 %v2827_v59, %v2122_v22  ;;  %v3123_v15 = vmul.f32 0.00390625, %v2948_v49  ;;  %v3054_v3 = vadd.f32 %v16209_v46, %v16205_v17  ;;  %v2128_v22 = vadd.f32 %v15707_v31, %v15444_v40 }
 0x34a   :  { %3454 = vadd.xlane.f32.xlu1 %v3453_v20  ;;  %v2951_v48 = vpop.xlane.xlu1 %2950  ;;  %v2130_v49 = vadd.f32 %v15712_v37, %v15438_v52  ;;  %v3456_v59 = vadd.f32 %v3322_v44, %v3321_v4  ;;  %v2132_v20 = vadd.f32 %v15718_v24, %v15444_v40  ;;  %v4383_v44 = vld [vmem:[%s20521_s5 + $0xf0] sm:$0xff] }
 0x34b   :  { %20949 = vst [vmem:[#allocation53_spill] sm:$0xff] %v16217_v56  ;;  %v16224_v9 = vsub.f32 %v20950_v5, %v3123_v15  ;;  %v16227_v18 = vsub.f32 %v20952_v1, %v3123_v15  ;;  %v3124_v47 = vmul.f32 0.00390625, %v2951_v48  ;;  %3055 = vadd.xlane.f32.xlu0 %v3054_v3  ;;  %v3057_v25 = vadd.f32 %v16217_v56, %v16211_v19  ;;  %v20954_v5 = vld [vmem:[#allocation57_spill] sm:$0xff]  ;;  %v20956_v15 = vld [vmem:[#allocation58_spill] sm:$0xff]  ;;  %v4384_v48 = vld [vmem:[%s20521_s5 + $0xf8] sm:$0xff] }
 0x34c   :  { %v12766_v35 = vpack.c.bf16 %v4384_v48, %v4383_v44  ;;  %v2142_v48 = vadd.f32 %v15746_v11, %v15444_v40 }
 0x34d   :  { %20951 = vst [vmem:[#allocation54_spill] sm:$0xff] %v16224_v9  ;;  %20953 = vst [vmem:[#allocation55_spill] sm:$0xff] %v16227_v18  ;;  %v16238_v7 = vsub.f32 %v20954_v5, %v3124_v47  ;;  %v16241_v1 = vsub.f32 %v20956_v15, %v3124_v47  ;;  %v2831_v3 = vpop.f32.mrb[92].mxu0  ;;  %v3323_v31 = vmul.f32 %v16224_v9, %v16224_v9 }
 0x34e   :  { %v3324_v37 = vmul.f32 %v16227_v18, %v16227_v18  ;;  %v16247_v4 = vadd.f32 %v2831_v3, %v2126_v54  ;;  %3457 = vadd.xlane.f32.xlu1 %v3456_v59  ;;  %v2833_v24 = vpop.f32.mrb[93].mxu0  ;;  %12767 = vmatpush1.bf16.msra.mxu1 %v12766_v35  ;;  %v20961_v35 = vld [vmem:[#allocation61_spill] sm:$0xff] }
 0x34f   :  { %20955 = vst [vmem:[#allocation56_spill] sm:$0xff] %v16238_v7  ;;  %v16255_v47 = vadd.f32 %v2833_v24, %v2128_v22  ;;  %v2835_v5 = vpop.f32.mrb[94].mxu0  ;;  %3058 = vadd.xlane.f32.xlu0 %v3057_v25  ;;  %v3325_v59 = vmul.f32 %v16238_v7, %v16238_v7  ;;  %v3326_v3 = vmul.f32 %v16241_v1, %v16241_v1  ;;  %v20959_v24 = vld [vmem:[#allocation60_spill] sm:$0xff] }
 0x350   :  { %v3459_v15 = vadd.f32 %v3324_v37, %v3323_v31  ;;  %v16257_v9 = vadd.f32 %v2835_v5, %v2130_v49  ;;  %v2837_v18 = vpop.f32.mrb[95].mxu0  ;;  %v2954_v54 = vpop.xlane.xlu0 %2953  ;;  %v2136_v49 = vadd.f32 %v15734_v23, %v15438_v52  ;;  %v20957_v31 = vld [vmem:[#allocation59_spill] sm:$0xff] }
 0x351   :  { %v16263_v58 = vadd.f32 %v2837_v18, %v2132_v20  ;;  %v3125_v56 = vmul.f32 0.00390625, %v2954_v54  ;;  %v3060_v22 = vadd.f32 %v16255_v47, %v16247_v4  ;;  %v2138_v18 = vadd.f32 %v15736_v32, %v15444_v40 }
 0x352   :  { %3460 = vadd.xlane.f32.xlu1 %v3459_v15  ;;  %v2957_v25 = vpop.xlane.xlu1 %2956  ;;  %v2140_v20 = vadd.f32 %v15740_v42, %v15438_v52  ;;  %v3462_v44 = vadd.f32 %v3326_v3, %v3325_v59 }
 0x353   :  { %v16270_v37 = vsub.f32 %v20957_v31, %v3125_v56  ;;  %v16273_v5 = vsub.f32 %v20959_v24, %v3125_v56  ;;  %v3126_v7 = vmul.f32 0.00390625, %v2957_v25  ;;  %3061 = vadd.xlane.f32.xlu0 %v3060_v22  ;;  %v3063_v23 = vadd.f32 %v16263_v58, %v16257_v9  ;;  %v20963_v56 = vld [vmem:[#allocation62_spill] sm:$0xff] }
 0x355   :  { %20958 = vst [vmem:[#allocation57_spill] sm:$0xff] %v16270_v37  ;;  %20960 = vst [vmem:[#allocation58_spill] sm:$0xff] %v16273_v5  ;;  %v16284_v15 = vsub.f32 %v20961_v35, %v3126_v7  ;;  %v16287_v54 = vsub.f32 %v20963_v56, %v3126_v7  ;;  %v2841_v22 = vpop.f32.mrb[96].mxu0  ;;  %v3327_v32 = vmul.f32 %v16270_v37, %v16270_v37 }
 0x356   :  { %v3328_v42 = vmul.f32 %v16273_v5, %v16273_v5  ;;  %v16293_v59 = vadd.f32 %v2841_v22, %v2136_v49  ;;  %3463 = vadd.xlane.f32.xlu1 %v3462_v44  ;;  %v2843_v11 = vpop.f32.mrb[97].mxu0  ;;  %v20966_v22 = vld [vmem:[#allocation63_spill] sm:$0xff] }
 0x357   :  { %20962 = vst [vmem:[#allocation59_spill] sm:$0xff] %v16284_v15  ;;  %20964 = vst [vmem:[#allocation60_spill] sm:$0xff] %v16287_v54  ;;  %v16295_v3 = vadd.f32 %v2843_v11, %v2138_v18  ;;  %v2845_v25 = vpop.f32.mrb[98].mxu0  ;;  %3064 = vadd.xlane.f32.xlu0 %v3063_v23  ;;  %v3329_v56 = vmul.f32 %v16284_v15, %v16284_v15  ;;  %v3330_v37 = vmul.f32 %v16287_v54, %v16287_v54 }
 0x358   :  { %v3465_v31 = vadd.f32 %v3328_v42, %v3327_v32  ;;  %v16297_v24 = vadd.f32 %v2845_v25, %v2140_v20  ;;  %v2847_v7 = vpop.f32.mrb[99].mxu0  ;;  %v2960_v35 = vpop.xlane.xlu0 %2959  ;;  %v2146_v20 = vadd.f32 %v15768_v8, %v15438_v52  ;;  %v2150_v11 = vadd.f32 %v15775_v61, %v15438_v52 }
 0x359   :  { %v16303_v5 = vadd.f32 %v2847_v7, %v2142_v48  ;;  %v3127_v49 = vmul.f32 0.00390625, %v2960_v35  ;;  %v3066_v18 = vadd.f32 %v16295_v3, %v16293_v59  ;;  %v2148_v48 = vadd.f32 %v15770_v33, %v15444_v40  ;;  %v20970_v35 = vld [vmem:[#allocation65_spill] sm:$0xff] }
 0x35a   :  { %3466 = vadd.xlane.f32.xlu1 %v3465_v31  ;;  %v2963_v44 = vpop.xlane.xlu1 %2962  ;;  %v3468_v25 = vadd.f32 %v3330_v37, %v3329_v56  ;;  %v2152_v31 = vadd.f32 %v15781_v16, %v15444_v40 }
 0x35b   :  { %v16310_v23 = vsub.f32 %v15679_v30, %v3127_v49  ;;  %v16313_v32 = vsub.f32 %v20966_v22, %v3127_v49  ;;  %v3128_v42 = vmul.f32 0.00390625, %v2963_v44  ;;  %3067 = vadd.xlane.f32.xlu0 %v3066_v18  ;;  %v3069_v8 = vadd.f32 %v16303_v5, %v16297_v24  ;;  %v20968_v30 = vld [vmem:[#allocation64_spill] sm:$0xff] }
 0x35d   :  { %20965 = vst [vmem:[#allocation61_spill] sm:$0xff] %v16310_v23  ;;  %20967 = vst [vmem:[#allocation62_spill] sm:$0xff] %v16313_v32  ;;  %v16324_v7 = vsub.f32 %v20968_v30, %v3128_v42  ;;  %v16327_v49 = vsub.f32 %v20970_v35, %v3128_v42  ;;  %v2851_v18 = vpop.f32.mrb[100].mxu0  ;;  %v3331_v33 = vmul.f32 %v16310_v23, %v16310_v23 }
 0x35e   :  { %v3332_v61 = vmul.f32 %v16313_v32, %v16313_v32  ;;  %v16333_v37 = vadd.f32 %v2851_v18, %v2146_v20  ;;  %3469 = vadd.xlane.f32.xlu1 %v3468_v25  ;;  %v2853_v16 = vpop.f32.mrb[101].mxu0 }
 0x35f   :  { %20969 = vst [vmem:[#allocation63_spill] sm:$0xff] %v16324_v7  ;;  %20971 = vst [vmem:[#allocation64_spill] sm:$0xff] %v16327_v49  ;;  %v16335_v56 = vadd.f32 %v2853_v16, %v2148_v48  ;;  %v2855_v44 = vpop.f32.mrb[102].mxu0  ;;  %3070 = vadd.xlane.f32.xlu0 %v3069_v8  ;;  %v3333_v15 = vmul.f32 %v16324_v7, %v16324_v7  ;;  %v3334_v23 = vmul.f32 %v16327_v49, %v16327_v49  ;;  %v20972_v8 = vld [vmem:[#allocation66_spill] sm:$0xff] }
 0x360   :  { %v3471_v22 = vadd.f32 %v3332_v61, %v3331_v33  ;;  %v16337_v30 = vadd.f32 %v2855_v44, %v2150_v11  ;;  %v2857_v42 = vpop.f32.mrb[103].mxu0  ;;  %v2966_v35 = vpop.xlane.xlu0 %2965  ;;  %v2156_v11 = vadd.f32 %v15797_v53, %v15438_v52  ;;  %v20974_v33 = vld [vmem:[#allocation67_spill] sm:$0xff]  ;;  %v2160_v44 = vadd.f32 %v15803_v6, %v15438_v52 }
 0x361   :  { %v16343_v32 = vadd.f32 %v2857_v42, %v2152_v31  ;;  %v3129_v20 = vmul.f32 0.00390625, %v2966_v35  ;;  %v3072_v48 = vadd.f32 %v16335_v56, %v16333_v37  ;;  %v2158_v31 = vadd.f32 %v15799_v26, %v15444_v40  ;;  %v20976_v35 = vld [vmem:[#allocation68_spill] sm:$0xff] }
 0x362   :  { %3472 = vadd.xlane.f32.xlu1 %v3471_v22  ;;  %v2969_v25 = vpop.xlane.xlu1 %2968  ;;  %v3474_v42 = vadd.f32 %v3334_v23, %v3333_v15  ;;  %v2162_v22 = vadd.f32 %v15809_v36, %v15444_v40 }
 0x363   :  { %v16350_v18 = vsub.f32 %v20972_v8, %v3129_v20  ;;  %v16353_v61 = vsub.f32 %v20974_v33, %v3129_v20  ;;  %v3130_v16 = vmul.f32 0.00390625, %v2969_v25  ;;  %3073 = vadd.xlane.f32.xlu0 %v3072_v48  ;;  %v3075_v53 = vadd.f32 %v16343_v32, %v16337_v30  ;;  %v20978_v20 = vld [vmem:[#allocation69_spill] sm:$0xff] }
 0x365   :  { %20973 = vst [vmem:[#allocation65_spill] sm:$0xff] %v16350_v18  ;;  %20975 = vst [vmem:[#allocation66_spill] sm:$0xff] %v16353_v61  ;;  %v16364_v8 = vsub.f32 %v20976_v35, %v3130_v16  ;;  %v16367_v33 = vsub.f32 %v20978_v20, %v3130_v16  ;;  %v2861_v48 = vpop.f32.mrb[104].mxu0  ;;  %v3335_v26 = vmul.f32 %v16350_v18, %v16350_v18 }
 0x366   :  { %v3336_v6 = vmul.f32 %v16353_v61, %v16353_v61  ;;  %v16373_v15 = vadd.f32 %v2861_v48, %v2156_v11  ;;  %3475 = vadd.xlane.f32.xlu1 %v3474_v42  ;;  %v2863_v36 = vpop.f32.mrb[105].mxu0 }
 0x367   :  { %20977 = vst [vmem:[#allocation67_spill] sm:$0xff] %v16364_v8  ;;  %20979 = vst [vmem:[#allocation68_spill] sm:$0xff] %v16367_v33  ;;  %v16375_v23 = vadd.f32 %v2863_v36, %v2158_v31  ;;  %v2865_v25 = vpop.f32.mrb[106].mxu0  ;;  %3076 = vadd.xlane.f32.xlu0 %v3075_v53  ;;  %v3337_v49 = vmul.f32 %v16364_v8, %v16364_v8  ;;  %v3338_v18 = vmul.f32 %v16367_v33, %v16367_v33  ;;  %v20983_v53 = vld [vmem:[#allocation70_spill] sm:$0xff] }
 0x368   :  { %v3477_v35 = vadd.f32 %v3336_v6, %v3335_v26  ;;  %v16377_v7 = vadd.f32 %v2865_v25, %v2160_v44  ;;  %v2867_v16 = vpop.f32.mrb[107].mxu0  ;;  %v2972_v20 = vpop.xlane.xlu0 %2971  ;;  %v2166_v44 = vadd.f32 %v15829_v2, %v15438_v52  ;;  %v20985_v26 = vld [vmem:[#allocation71_spill] sm:$0xff] }
 0x369   :  { %20980 = vst [vmem:[#allocation69_spill] sm:$0xff] %v16375_v23  ;;  %v16383_v61 = vadd.f32 %v2867_v16, %v2162_v22  ;;  %v3131_v11 = vmul.f32 0.00390625, %v2972_v20  ;;  %v3078_v31 = vadd.f32 %v16375_v23, %v16373_v15  ;;  %v20987_v22 = vld [vmem:[#allocation82_spill] sm:$0xff]  ;;  %v20988_v16 = vld [vmem:[#allocation84_spill] sm:$0xff]  ;;  %v3480_v8 = vadd.f32 %v3338_v18, %v3337_v49 }
 0x36a   :  { %20981 = vst [vmem:[#allocation108_spill] sm:$0xff] %v16377_v7  ;;  %3478 = vadd.xlane.f32.xlu1 %v3477_v35  ;;  %v2975_v42 = vpop.xlane.xlu1 %2974  ;;  %v2168_v25 = vadd.f32 %v20987_v22, %v15444_v40  ;;  %v2170_v20 = vadd.f32 %v20988_v16, %v15438_v52  ;;  %v20989_v35 = vld [vmem:[#allocation86_spill] sm:$0xff] }
 0x36b   :  { %20982 = vst [vmem:[#allocation109_spill] sm:$0xff] %v16383_v61  ;;  %v16390_v48 = vsub.f32 %v20983_v53, %v3131_v11  ;;  %v16393_v6 = vsub.f32 %v20985_v26, %v3131_v11  ;;  %v3132_v36 = vmul.f32 0.00390625, %v2975_v42  ;;  %3079 = vadd.xlane.f32.xlu0 %v3078_v31  ;;  %v2172_v33 = vadd.f32 %v20989_v35, %v15444_v40  ;;  %v20990_v53 = vld [vmem:[#allocation72_spill] sm:$0xff]  ;;  %v20992_v11 = vld [vmem:[#allocation73_spill] sm:$0xff] }
 0x36c   :  { %v3081_v2 = vadd.f32 %v16383_v61, %v16377_v7 }
 0x36d   :  { %20984 = vst [vmem:[#allocation70_spill] sm:$0xff] %v16390_v48  ;;  %20986 = vst [vmem:[#allocation71_spill] sm:$0xff] %v16393_v6  ;;  %v16404_v54 = vsub.f32 %v20990_v53, %v3132_v36  ;;  %v16407_v26 = vsub.f32 %v20992_v11, %v3132_v36  ;;  %v2871_v31 = vpop.f32.mrb[108].mxu0  ;;  %v3339_v42 = vmul.f32 %v16390_v48, %v16390_v48 }
 0x36e   :  { %v3340_v22 = vmul.f32 %v16393_v6, %v16393_v6  ;;  %v16413_v49 = vadd.f32 %v2871_v31, %v2166_v44  ;;  %3481 = vadd.xlane.f32.xlu1 %v3480_v8  ;;  %v2873_v18 = vpop.f32.mrb[109].mxu0  ;;  %v20999_v31 = vld [vmem:[#allocation74_spill] sm:$0xff] }
 0x36f   :  { %20991 = vst [vmem:[#allocation82_spill] sm:$0xff] %v16404_v54  ;;  %20993 = vst [vmem:[#allocation84_spill] sm:$0xff] %v16407_v26  ;;  %v16415_v16 = vadd.f32 %v2873_v18, %v2168_v25  ;;  %v2875_v35 = vpop.f32.mrb[110].mxu0  ;;  %3082 = vadd.xlane.f32.xlu0 %v3081_v2  ;;  %v3341_v7 = vmul.f32 %v16404_v54, %v16404_v54  ;;  %v3342_v48 = vmul.f32 %v16407_v26, %v16407_v26  ;;  %v20998_v2 = vld [vmem:[#allocation18_spill] sm:$0xff] }
 0x370   :  { %20994 = vst [vmem:[#allocation86_spill] sm:$0xff] %v16413_v49  ;;  %v3483_v53 = vadd.f32 %v3340_v22, %v3339_v42  ;;  %v16417_v61 = vadd.f32 %v2875_v35, %v2170_v20  ;;  %v2877_v36 = vpop.f32.mrb[111].mxu0  ;;  %v2978_v11 = vpop.xlane.xlu0 %2977  ;;  %v2176_v20 = vadd.f32 %v20998_v2, %v15438_v52  ;;  %v21001_v22 = vld [vmem:[#allocation75_spill] sm:$0xff] }
 0x371   :  { %20995 = vst [vmem:[#allocation72_spill] sm:$0xff] %v16415_v16  ;;  %v16423_v6 = vadd.f32 %v2877_v36, %v2172_v33  ;;  %v3133_v44 = vmul.f32 0.00390625, %v2978_v11  ;;  %v3084_v8 = vadd.f32 %v16415_v16, %v16413_v49  ;;  %v21003_v33 = vld [vmem:[#allocation89_spill] sm:$0xff]  ;;  %v21004_v11 = vld [vmem:[#allocation91_spill] sm:$0xff]  ;;  %v3486_v26 = vadd.f32 %v3342_v48, %v3341_v7 }
 0x372   :  { %20996 = vst [vmem:[#allocation73_spill] sm:$0xff] %v16417_v61  ;;  %3484 = vadd.xlane.f32.xlu1 %v3483_v53  ;;  %v2981_v25 = vpop.xlane.xlu1 %2980  ;;  %v2178_v36 = vadd.f32 %v21003_v33, %v15444_v40  ;;  %v2180_v54 = vadd.f32 %v21004_v11, %v15438_v52  ;;  %v21005_v53 = vld [vmem:[#allocation92_spill] sm:$0xff] }
 0x373   :  { %20997 = vst [vmem:[#allocation110_spill] sm:$0xff] %v16423_v6  ;;  %v16430_v42 = vsub.f32 %v20999_v31, %v3133_v44  ;;  %v16433_v18 = vsub.f32 %v21001_v22, %v3133_v44  ;;  %v3134_v35 = vmul.f32 0.00390625, %v2981_v25  ;;  %3085 = vadd.xlane.f32.xlu0 %v3084_v8  ;;  %v2182_v16 = vadd.f32 %v21005_v53, %v15444_v40  ;;  %v21006_v31 = vld [vmem:[#allocation76_spill] sm:$0xff]  ;;  %v21008_v44 = vld [vmem:[#allocation77_spill] sm:$0xff] }
 0x374   :  { %v3087_v2 = vadd.f32 %v16423_v6, %v16417_v61 }
 0x375   :  { %21000 = vst [vmem:[#allocation18_spill] sm:$0xff] %v16430_v42  ;;  %21002 = vst [vmem:[#allocation74_spill] sm:$0xff] %v16433_v18  ;;  %v16444_v49 = vsub.f32 %v21006_v31, %v3134_v35  ;;  %v16447_v22 = vsub.f32 %v21008_v44, %v3134_v35  ;;  %v2881_v8 = vpop.f32.mrb[112].mxu0  ;;  %v3343_v25 = vmul.f32 %v16430_v42, %v16430_v42 }
 0x376   :  { %v3344_v33 = vmul.f32 %v16433_v18, %v16433_v18  ;;  %v16453_v7 = vadd.f32 %v2881_v8, %v2176_v20  ;;  %3487 = vadd.xlane.f32.xlu1 %v3486_v26  ;;  %v2883_v48 = vpop.f32.mrb[113].mxu0 }
 0x377   :  { %21007 = vst [vmem:[#allocation75_spill] sm:$0xff] %v16444_v49  ;;  %21009 = vst [vmem:[#allocation89_spill] sm:$0xff] %v16447_v22  ;;  %v16455_v11 = vadd.f32 %v2883_v48, %v2178_v36  ;;  %v2885_v53 = vpop.f32.mrb[114].mxu0  ;;  %3088 = vadd.xlane.f32.xlu0 %v3087_v2  ;;  %v3345_v61 = vmul.f32 %v16444_v49, %v16444_v49  ;;  %v3346_v42 = vmul.f32 %v16447_v22, %v16447_v22  ;;  %v21014_v36 = vld [vmem:[#allocation20_spill] sm:$0xff]  ;;  %v21019_v48 = vld [vmem:[#allocation21_spill] sm:$0xff] }
 0x378   :  { %21010 = vst [vmem:[#allocation91_spill] sm:$0xff] %v16453_v7  ;;  %v3489_v31 = vadd.f32 %v3344_v33, %v3343_v25  ;;  %v16457_v6 = vadd.f32 %v2885_v53, %v2180_v54  ;;  %v2887_v35 = vpop.f32.mrb[115].mxu0  ;;  %v2984_v44 = vpop.xlane.xlu0 %2983  ;;  %v2186_v2 = vadd.f32 %v21014_v36, %v15438_v52  ;;  %v21015_v54 = vld [vmem:[#allocation78_spill] sm:$0xff]  ;;  %v21017_v25 = vld [vmem:[#allocation79_spill] sm:$0xff]  ;;  %v2188_v53 = vadd.f32 %v21019_v48, %v15444_v40 }
 0x379   :  { %21011 = vst [vmem:[#allocation92_spill] sm:$0xff] %v16455_v11  ;;  %v16463_v18 = vadd.f32 %v2887_v35, %v2182_v16  ;;  %v3135_v20 = vmul.f32 0.00390625, %v2984_v44  ;;  %v3090_v26 = vadd.f32 %v16455_v11, %v16453_v7  ;;  %v21020_v35 = vld [vmem:[#allocation95_spill] sm:$0xff]  ;;  %v3492_v49 = vadd.f32 %v3346_v42, %v3345_v61  ;;  %v21025_v42 = vld [vmem:[#allocation81_spill] sm:$0xff] }
 0x37a   :  { %21012 = vst [vmem:[#allocation76_spill] sm:$0xff] %v16457_v6  ;;  %3490 = vadd.xlane.f32.xlu1 %v3489_v31  ;;  %v2190_v44 = vadd.f32 %v21020_v35, %v15438_v52  ;;  %v21021_v31 = vld [vmem:[#allocation96_spill] sm:$0xff] }
 0x37b   :  { %21013 = vst [vmem:[#allocation77_spill] sm:$0xff] %v16463_v18  ;;  %v16470_v8 = vsub.f32 %v21015_v54, %v3135_v20  ;;  %v16473_v33 = vsub.f32 %v21017_v25, %v3135_v20  ;;  %3091 = vadd.xlane.f32.xlu0 %v3090_v26  ;;  %v2192_v22 = vadd.f32 %v21021_v31, %v15444_v40  ;;  %v21023_v35 = vld [vmem:[#allocation80_spill] sm:$0xff] }
 0x37c   :  { %v2987_v16 = vpop.xlane.xlu0 %2986  ;;  %v3093_v54 = vadd.f32 %v16463_v18, %v16457_v6 }
 0x37d   :  { %21016 = vst [vmem:[#allocation20_spill] sm:$0xff] %v16470_v8  ;;  %21018 = vst [vmem:[#allocation78_spill] sm:$0xff] %v16473_v33  ;;  %v3136_v11 = vmul.f32 0.00390625, %v2987_v16  ;;  %v2891_v36 = vpop.f32.mrb[116].mxu0  ;;  %v3347_v20 = vmul.f32 %v16470_v8, %v16470_v8  ;;  %v3348_v26 = vmul.f32 %v16473_v33, %v16473_v33 }
 0x37e   :  { %v16487_v25 = vadd.f32 %v2891_v36, %v2186_v2  ;;  %3493 = vadd.xlane.f32.xlu1 %v3492_v49  ;;  %v2893_v48 = vpop.f32.mrb[117].mxu0 }
 0x37f   :  { %v16490_v61 = vsub.f32 %v21023_v35, %v3136_v11  ;;  %v16493_v31 = vsub.f32 %v21025_v42, %v3136_v11  ;;  %v16495_v16 = vadd.f32 %v2893_v48, %v2188_v53  ;;  %v2895_v7 = vpop.f32.mrb[118].mxu0  ;;  %3094 = vadd.xlane.f32.xlu0 %v3093_v54  ;;  %v3495_v18 = vadd.f32 %v3348_v26, %v3347_v20  ;;  %v21030_v11 = vld [vmem:[#allocation24_spill] sm:$0xff]  ;;  %v21033_v20 = vld [vmem:[#allocation85_spill] sm:$0xff]  ;;  %v21035_v48 = vld [vmem:[#allocation99_spill] sm:$0xff] }
 0x380   :  { %21022 = vst [vmem:[#allocation79_spill] sm:$0xff] %v16487_v25  ;;  %v16497_v6 = vadd.f32 %v2895_v7, %v2190_v44  ;;  %v2897_v8 = vpop.f32.mrb[119].mxu0  ;;  %v2990_v23 = vpop.xlane.xlu0 %2989  ;;  %v2196_v53 = vadd.f32 %v21030_v11, %v15438_v52  ;;  %v21031_v7 = vld [vmem:[#allocation83_spill] sm:$0xff]  ;;  %v21036_v11 = vld [vmem:[#allocation100_spill] sm:$0xff] }
 0x381   :  { %21024 = vst [vmem:[#allocation21_spill] sm:$0xff] %v16490_v61  ;;  %21026 = vst [vmem:[#allocation95_spill] sm:$0xff] %v16493_v31  ;;  %v3096_v2 = vadd.f32 %v16495_v16, %v16487_v25  ;;  %v16501_v49 = vadd.f32 %v2897_v8, %v2192_v22  ;;  %v3137_v36 = vmul.f32 0.00390625, %v2990_v23  ;;  %v3349_v35 = vmul.f32 %v16490_v61, %v16490_v61  ;;  %v21034_v22 = vld [vmem:[#allocation25_spill] sm:$0xff] }
 0x382   :  { %21027 = vst [vmem:[#allocation96_spill] sm:$0xff] %v16495_v16  ;;  %21028 = vst [vmem:[#allocation80_spill] sm:$0xff] %v16497_v6  ;;  %3496 = vadd.xlane.f32.xlu1 %v3495_v18  ;;  %v3350_v54 = vmul.f32 %v16493_v31, %v16493_v31  ;;  %v2198_v23 = vadd.f32 %v21034_v22, %v15444_v40  ;;  %v2200_v18 = vadd.f32 %v21035_v48, %v15438_v52  ;;  %v21037_v48 = vld [vmem:[#allocation87_spill] sm:$0xff] }
 0x383   :  { %21029 = vst [vmem:[#allocation81_spill] sm:$0xff] %v16501_v49  ;;  %v16510_v44 = vsub.f32 %v21031_v7, %v3137_v36  ;;  %v16513_v26 = vsub.f32 %v21033_v20, %v3137_v36  ;;  %3097 = vadd.xlane.f32.xlu0 %v3096_v2  ;;  %v2202_v61 = vadd.f32 %v21036_v11, %v15444_v40 }
 0x384   :  { %v2993_v8 = vpop.xlane.xlu0 %2992  ;;  %v3498_v42 = vadd.f32 %v3350_v54, %v3349_v35  ;;  %v3099_v31 = vadd.f32 %v16501_v49, %v16497_v6  ;;  %v21039_v54 = vld [vmem:[#allocation88_spill] sm:$0xff] }
 0x385   :  { %21032 = vst [vmem:[#allocation24_spill] sm:$0xff] %v16510_v44  ;;  %v3138_v7 = vmul.f32 0.00390625, %v2993_v8  ;;  %v2901_v33 = vpop.f32.mrb[120].mxu0  ;;  %v3351_v36 = vmul.f32 %v16510_v44, %v16510_v44  ;;  %v3352_v2 = vmul.f32 %v16513_v26, %v16513_v26 }
 0x386   :  { %v16527_v20 = vadd.f32 %v2901_v33, %v2196_v53  ;;  %3499 = vadd.xlane.f32.xlu1 %v3498_v42  ;;  %v2903_v22 = vpop.f32.mrb[121].mxu0 }
 0x387   :  { %v16530_v35 = vsub.f32 %v21037_v48, %v3138_v7  ;;  %v16533_v11 = vsub.f32 %v21039_v54, %v3138_v7  ;;  %v16535_v16 = vadd.f32 %v2903_v22, %v2198_v23  ;;  %v2905_v8 = vpop.f32.mrb[122].mxu0  ;;  %3100 = vadd.xlane.f32.xlu0 %v3099_v31  ;;  %v3501_v49 = vadd.f32 %v3352_v2, %v3351_v36  ;;  %v21041_v23 = vld [vmem:[#allocation29_spill] sm:$0xff]  ;;  %v21044_v2 = vld [vmem:[#allocation19_spill] sm:$0xff] }
 0x388   :  { %v16537_v6 = vadd.f32 %v2905_v8, %v2200_v18  ;;  %v2907_v44 = vpop.f32.mrb[123].mxu0  ;;  %v2996_v25 = vpop.xlane.xlu0 %2995  ;;  %v2206_v7 = vadd.f32 %v21041_v23, %v15438_v52  ;;  %v21042_v18 = vld [vmem:[#allocation90_spill] sm:$0xff]  ;;  %v2212_v54 = vadd.f32 %v15969_v13, %v15444_v40 }
 0x389   :  { %21038 = vst [vmem:[#allocation83_spill] sm:$0xff] %v16530_v35  ;;  %21040 = vst [vmem:[#allocation85_spill] sm:$0xff] %v16533_v11  ;;  %v3102_v33 = vadd.f32 %v16535_v16, %v16527_v20  ;;  %v16541_v53 = vadd.f32 %v2907_v44, %v2202_v61  ;;  %v3139_v42 = vmul.f32 0.00390625, %v2996_v25  ;;  %v3353_v48 = vmul.f32 %v16530_v35, %v16530_v35 }
 0x38a   :  { %3502 = vadd.xlane.f32.xlu1 %v3501_v49  ;;  %v3354_v31 = vmul.f32 %v16533_v11, %v16533_v11  ;;  %v2208_v25 = vadd.f32 %v15957_v29, %v15444_v40  ;;  %v2210_v49 = vadd.f32 %v15963_v39, %v15438_v52  ;;  %v21045_v52 = vld [vmem:[#allocation93_spill] sm:$0xff] }
 0x38b   :  { %v16550_v36 = vsub.f32 %v21042_v18, %v3139_v42  ;;  %v16553_v22 = vsub.f32 %v21044_v2, %v3139_v42  ;;  %3103 = vadd.xlane.f32.xlu0 %v3102_v33  ;;  %v3105_v8 = vadd.f32 %v16541_v53, %v16537_v6 }
 0x38c   :  { %v2999_v61 = vpop.xlane.xlu0 %2998  ;;  %v3504_v44 = vadd.f32 %v3354_v31, %v3353_v48  ;;  %v21047_v48 = vld [vmem:[#allocation94_spill] sm:$0xff] }
 0x38d   :  { %21043 = vst [vmem:[#allocation25_spill] sm:$0xff] %v16550_v36  ;;  %v3140_v23 = vmul.f32 0.00390625, %v2999_v61  ;;  %v2911_v18 = vpop.f32.mrb[124].mxu0  ;;  %v3355_v42 = vmul.f32 %v16550_v36, %v16550_v36  ;;  %v3356_v33 = vmul.f32 %v16553_v22, %v16553_v22 }
 0x38e   :  { %v16567_v29 = vadd.f32 %v2911_v18, %v2206_v7  ;;  %3505 = vadd.xlane.f32.xlu1 %v3504_v44  ;;  %v2913_v2 = vpop.f32.mrb[125].mxu0 }
 0x38f   :  { %v16570_v39 = vsub.f32 %v21045_v52, %v3140_v23  ;;  %v16573_v40 = vsub.f32 %v21047_v48, %v3140_v23  ;;  %v16575_v13 = vadd.f32 %v2913_v2, %v2208_v25  ;;  %v2915_v31 = vpop.f32.mrb[126].mxu0  ;;  %3106 = vadd.xlane.f32.xlu0 %v3105_v8  ;;  %v3507_v61 = vadd.f32 %v3356_v33, %v3355_v42  ;;  %v21048_v23 = vld [vmem:[#allocation22_spill] sm:$0xff] }
 0x390   :  { %v16577_v35 = vadd.f32 %v2915_v31, %v2210_v49  ;;  %v2917_v36 = vpop.f32.mrb[127].mxu0  ;;  %v3002_v11 = vpop.xlane.xlu0 %3001  ;;  %v21050_v49 = vld [vmem:[#allocation23_spill] sm:$0xff]  ;;  %v21052_v31 = vld [vmem:[#allocation97_spill] sm:$0xff] }
 0x391   :  { %21046 = vst [vmem:[#allocation99_spill] sm:$0xff] %v16570_v39  ;;  %v3108_v7 = vadd.f32 %v16575_v13, %v16567_v29  ;;  %v16581_v44 = vadd.f32 %v2917_v36, %v2212_v54  ;;  %v3141_v18 = vmul.f32 0.00390625, %v3002_v11  ;;  %v3357_v52 = vmul.f32 %v16570_v39, %v16570_v39 }
 0x392   :  { %3508 = vadd.xlane.f32.xlu1 %v3507_v61  ;;  %v3358_v25 = vmul.f32 %v16573_v40, %v16573_v40 }
 0x393   :  { %v16588_v8 = vsub.f32 %v21048_v23, %v3141_v18  ;;  %v16591_v42 = vsub.f32 %v21050_v49, %v3141_v18  ;;  %3109 = vadd.xlane.f32.xlu0 %v3108_v7  ;;  %v3111_v36 = vadd.f32 %v16581_v44, %v16577_v35  ;;  %v21054_v23 = vld [vmem:[#allocation98_spill] sm:$0xff] }
 0x394   :  { %v3005_v33 = vpop.xlane.xlu0 %3004  ;;  %v3510_v2 = vadd.f32 %v3358_v25, %v3357_v52 }
 0x395   :  { %21049 = vst [vmem:[#allocation100_spill] sm:$0xff] %v16588_v8  ;;  %21051 = vst [vmem:[#allocation87_spill] sm:$0xff] %v16591_v42  ;;  %v3142_v11 = vmul.f32 0.00390625, %v3005_v33  ;;  %v3359_v54 = vmul.f32 %v16588_v8, %v16588_v8  ;;  %v3360_v48 = vmul.f32 %v16591_v42, %v16591_v42  ;;  %v21056_v8 = vld [vmem:[#allocation26_spill] sm:$0xff] }
 0x396   :  { %3511 = vadd.xlane.f32.xlu1 %v3510_v2  ;;  %v21058_v2 = vld [vmem:[#allocation27_spill] sm:$0xff] }
 0x397   :  { %v16600_v61 = vsub.f32 %v21052_v31, %v3142_v11  ;;  %v16603_v18 = vsub.f32 %v21054_v23, %v3142_v11  ;;  %3112 = vadd.xlane.f32.xlu0 %v3111_v36  ;;  %v3513_v7 = vadd.f32 %v3360_v48, %v3359_v54  ;;  %v21060_v48 = vld [vmem:[#allocation101_spill] sm:$0xff] }
 0x398   :  { %v3008_v52 = vpop.xlane.xlu0 %3007 }
 0x399   :  { %21053 = vst [vmem:[#allocation88_spill] sm:$0xff] %v16600_v61  ;;  %21055 = vst [vmem:[#allocation29_spill] sm:$0xff] %v16603_v18  ;;  %v3143_v25 = vmul.f32 0.00390625, %v3008_v52  ;;  %v3361_v49 = vmul.f32 %v16600_v61, %v16600_v61  ;;  %v3362_v33 = vmul.f32 %v16603_v18, %v16603_v18 }
 0x39a   :  { %3514 = vadd.xlane.f32.xlu1 %v3513_v7  ;;  %v21062_v7 = vld [vmem:[#allocation102_spill] sm:$0xff] }
 0x39b   :  { %v16610_v42 = vsub.f32 %v21056_v8, %v3143_v25  ;;  %v16613_v31 = vsub.f32 %v21058_v2, %v3143_v25  ;;  %v3516_v39 = vadd.f32 %v3362_v33, %v3361_v49  ;;  %v21063_v2 = vld [vmem:[#allocation31_spill] sm:$0xff] }
 0x39c   :  { %v3011_v11 = vpop.xlane.xlu0 %3010 }
 0x39d   :  { %21057 = vst [vmem:[#allocation90_spill] sm:$0xff] %v16610_v42  ;;  %21059 = vst [vmem:[#allocation19_spill] sm:$0xff] %v16613_v31  ;;  %v3144_v23 = vmul.f32 0.00390625, %v3011_v11  ;;  %v3363_v36 = vmul.f32 %v16610_v42, %v16610_v42  ;;  %v3364_v54 = vmul.f32 %v16613_v31, %v16613_v31 }
 0x39e   :  { %3517 = vadd.xlane.f32.xlu1 %v3516_v39  ;;  %v21065_v39 = vld [vmem:[#allocation33_spill] sm:$0xff] }
 0x39f   :  { %v16620_v52 = vsub.f32 %v21060_v48, %v3144_v23  ;;  %v16623_v61 = vsub.f32 %v21062_v7, %v3144_v23  ;;  %v3519_v8 = vadd.f32 %v3364_v54, %v3363_v36  ;;  %v21066_v7 = vld [vmem:[#allocation34_spill] sm:$0xff] }
 0x3a0   :  { %v3014_v18 = vpop.xlane.xlu0 %3013 }
 0x3a1   :  { %21061 = vst [vmem:[#allocation93_spill] sm:$0xff] %v16620_v52  ;;  %v3145_v25 = vmul.f32 0.00390625, %v3014_v18  ;;  %v3365_v49 = vmul.f32 %v16620_v52, %v16620_v52  ;;  %v3366_v33 = vmul.f32 %v16623_v61, %v16623_v61 }
 0x3a2   :  { %3520 = vadd.xlane.f32.xlu1 %v3519_v8 }
 0x3a3   :  { %v16630_v11 = vsub.f32 %v21063_v2, %v3145_v25  ;;  %v16633_v42 = vsub.f32 %v21065_v39, %v3145_v25  ;;  %v3522_v48 = vadd.f32 %v3366_v33, %v3365_v49  ;;  %v21068_v39 = vld [vmem:[#allocation35_spill] sm:$0xff] }
 0x3a4   :  { %v3017_v31 = vpop.xlane.xlu0 %3016 }
 0x3a5   :  { %21064 = vst [vmem:[#allocation94_spill] sm:$0xff] %v16630_v11  ;;  %v3146_v23 = vmul.f32 0.00390625, %v3017_v31  ;;  %v3367_v36 = vmul.f32 %v16630_v11, %v16630_v11  ;;  %v3368_v18 = vmul.f32 %v16633_v42, %v16633_v42 }
 0x3a6   :  { %3523 = vadd.xlane.f32.xlu1 %v3522_v48 }
 0x3a7   :  { %v16640_v54 = vsub.f32 %v15972_v27, %v3146_v23  ;;  %v16643_v8 = vsub.f32 %v21066_v7, %v3146_v23  ;;  %v3525_v2 = vadd.f32 %v3368_v18, %v3367_v36 }
 0x3a8   :  { %v3020_v52 = vpop.xlane.xlu0 %3019 }
 0x3a9   :  { %v3147_v25 = vmul.f32 0.00390625, %v3020_v52  ;;  %v3369_v49 = vmul.f32 %v16640_v54, %v16640_v54  ;;  %v3370_v31 = vmul.f32 %v16643_v8, %v16643_v8 }
 0x3aa   :  { %3526 = vadd.xlane.f32.xlu1 %v3525_v2 }
 0x3ab   :  { %v16650_v33 = vsub.f32 %v15986_v38, %v3147_v25  ;;  %v16653_v48 = vsub.f32 %v21068_v39, %v3147_v25  ;;  %v3528_v27 = vadd.f32 %v3370_v31, %v3369_v49  ;;  %v21072_v31 = vld [vmem:[#allocation36_spill] sm:$0xff] }
 0x3ac   :  { %v3023_v11 = vpop.xlane.xlu0 %3022 }
 0x3ad   :  { %21067 = vst [vmem:[#allocation22_spill] sm:$0xff] %v16650_v33  ;;  %21069 = vst [vmem:[#allocation23_spill] sm:$0xff] %v16653_v48  ;;  %v3148_v23 = vmul.f32 0.00390625, %v3023_v11  ;;  %v3371_v36 = vmul.f32 %v16650_v33, %v16650_v33  ;;  %v3372_v52 = vmul.f32 %v16653_v48, %v16653_v48 }
 0x3ae   :  { %3529 = vadd.xlane.f32.xlu1 %v3528_v27  ;;  %v21074_v27 = vld [vmem:[#allocation37_spill] sm:$0xff] }
 0x3af   :  { %v16660_v18 = vsub.f32 %v15998_v55, %v3148_v23  ;;  %v16663_v7 = vsub.f32 %v16000_v12, %v3148_v23  ;;  %v3531_v38 = vadd.f32 %v3372_v52, %v3371_v36  ;;  %v21076_v52 = vld [vmem:[#allocation38_spill] sm:$0xff] }
 0x3b0   :  { %v3026_v2 = vpop.xlane.xlu0 %3025 }
 0x3b1   :  { %21070 = vst [vmem:[#allocation97_spill] sm:$0xff] %v16660_v18  ;;  %21071 = vst [vmem:[#allocation98_spill] sm:$0xff] %v16663_v7  ;;  %v3149_v25 = vmul.f32 0.00390625, %v3026_v2  ;;  %v3373_v49 = vmul.f32 %v16660_v18, %v16660_v18  ;;  %v3374_v11 = vmul.f32 %v16663_v7, %v16663_v7 }
 0x3b2   :  { %3532 = vadd.xlane.f32.xlu1 %v3531_v38  ;;  %v21078_v38 = vld [vmem:[#allocation43_spill] sm:$0xff] }
 0x3b3   :  { %v16670_v39 = vsub.f32 %v21072_v31, %v3149_v25  ;;  %v16673_v33 = vsub.f32 %v21074_v27, %v3149_v25  ;;  %v3534_v55 = vadd.f32 %v3374_v11, %v3373_v49  ;;  %v21080_v11 = vld [vmem:[#allocation104_spill] sm:$0xff] }
 0x3b4   :  { %v3029_v48 = vpop.xlane.xlu0 %3028 }
 0x3b5   :  { %21073 = vst [vmem:[#allocation26_spill] sm:$0xff] %v16670_v39  ;;  %21075 = vst [vmem:[#allocation27_spill] sm:$0xff] %v16673_v33  ;;  %v3150_v12 = vmul.f32 0.00390625, %v3029_v48  ;;  %v3375_v23 = vmul.f32 %v16670_v39, %v16670_v39  ;;  %v3376_v36 = vmul.f32 %v16673_v33, %v16673_v33 }
 0x3b6   :  { %3535 = vadd.xlane.f32.xlu1 %v3534_v55  ;;  %v21082_v55 = vld [vmem:[#allocation105_spill] sm:$0xff] }
 0x3b7   :  { %v16680_v2 = vsub.f32 %v21076_v52, %v3150_v12  ;;  %v16683_v18 = vsub.f32 %v21078_v38, %v3150_v12  ;;  %v3537_v31 = vadd.f32 %v3376_v36, %v3375_v23  ;;  %v21084_v38 = vld [vmem:[#allocation106_spill] sm:$0xff] }
 0x3b8   :  { %v3032_v7 = vpop.xlane.xlu0 %3031 }
 0x3b9   :  { %21077 = vst [vmem:[#allocation101_spill] sm:$0xff] %v16680_v2  ;;  %21079 = vst [vmem:[#allocation102_spill] sm:$0xff] %v16683_v18  ;;  %v3151_v25 = vmul.f32 0.00390625, %v3032_v7  ;;  %v3377_v49 = vmul.f32 %v16680_v2, %v16680_v2  ;;  %v3378_v48 = vmul.f32 %v16683_v18, %v16683_v18 }
 0x3ba   :  { %3538 = vadd.xlane.f32.xlu1 %v3537_v31  ;;  %v21086_v31 = vld [vmem:[#allocation107_spill] sm:$0xff] }
 0x3bb   :  { %v16690_v27 = vsub.f32 %v21080_v11, %v3151_v25  ;;  %v16693_v39 = vsub.f32 %v21082_v55, %v3151_v25  ;;  %v3540_v52 = vadd.f32 %v3378_v48, %v3377_v49 }
 0x3bc   :  { %v3035_v33 = vpop.xlane.xlu0 %3034 }
 0x3bd   :  { %21081 = vst [vmem:[#allocation31_spill] sm:$0xff] %v16690_v27  ;;  %21083 = vst [vmem:[#allocation33_spill] sm:$0xff] %v16693_v39  ;;  %v3152_v12 = vmul.f32 0.00390625, %v3035_v33  ;;  %v3379_v23 = vmul.f32 %v16690_v27, %v16690_v27  ;;  %v3380_v7 = vmul.f32 %v16693_v39, %v16693_v39 }
 0x3be   :  { %3541 = vadd.xlane.f32.xlu1 %v3540_v52  ;;  %v3437_v36 = vpop.xlane.xlu1 %3436 }
 0x3bf   :  { %v16700_v2 = vsub.f32 %v21084_v38, %v3152_v12  ;;  %v16703_v11 = vsub.f32 %v21086_v31, %v3152_v12  ;;  %v3627_v18 = vmul.f32 0.00390625, %v3437_v36  ;;  %v3543_v25 = vadd.f32 %v3380_v7, %v3379_v23 }
 0x3c0   :  { %v3038_v55 = vpop.xlane.xlu0 %3037 }
 0x3c1   :  { %21085 = vst [vmem:[#allocation34_spill] sm:$0xff] %v16700_v2  ;;  %21087 = vst [vmem:[#allocation35_spill] sm:$0xff] %v16703_v11  ;;  %v3691_v49 = vadd.f32 1e-05, %v3627_v18  ;;  %v3153_v48 = vmul.f32 0.00390625, %v3038_v55  ;;  %v3381_v33 = vmul.f32 %v16700_v2, %v16700_v2  ;;  %v3382_v27 = vmul.f32 %v16703_v11, %v16703_v11 }
 0x3c2   :  { %3544 = vadd.xlane.f32.xlu1 %v3543_v25 }
 0x3c3   :  { %13596 = vrsqrt.f32 %v3691_v49  ;;  %v16710_v52 = vsub.f32 %v16074_v21, %v3153_v48  ;;  %v16713_v38 = vsub.f32 %v16082_v62, %v3153_v48  ;;  %v3440_v12 = vpop.xlane.xlu1 %3439  ;;  %v3546_v36 = vadd.f32 %v3382_v27, %v3381_v33 }
 0x3c4   :  { %v3628_v23 = vmul.f32 0.00390625, %v3440_v12  ;;  %v3041_v7 = vpop.xlane.xlu0 %3040 }
 0x3c5   :  { %21088 = vst [vmem:[#allocation36_spill] sm:$0xff] %v16710_v52  ;;  %21089 = vst [vmem:[#allocation37_spill] sm:$0xff] %v16713_v38  ;;  %v3154_v18 = vmul.f32 0.00390625, %v3041_v7  ;;  %v3383_v31 = vmul.f32 %v16710_v52, %v16710_v52  ;;  %v3384_v55 = vmul.f32 %v16713_v38, %v16713_v38 }
 0x3c6   :  { %v3692_v2 = vadd.f32 1e-05, %v3628_v23  ;;  %3547 = vadd.xlane.f32.xlu1 %v3546_v36  ;;  %v2920_v23 = vld [vmem:[#allocation5] sm:$0x3] }
 0x3c7   :  { %v16720_v25 = vsub.f32 %v16084_v50, %v3154_v18  ;;  %v16723_v21 = vsub.f32 %v16086_v41, %v3154_v18  ;;  %v3443_v62 = vpop.xlane.xlu1 %3442  ;;  %v3549_v49 = vadd.f32 %v3384_v55, %v3383_v31  ;;  %v2921_v50 = vld [vmem:[#allocation7] sm:$0x3] }
 0x3c8   :  { %13598 = vrsqrt.f32 %v3692_v2  ;;  %v3629_v27 = vmul.f32 0.00390625, %v3443_v62  ;;  %v3044_v48 = vpop.xlane.xlu0 %3043  ;;  %v21094_v62 = vld [vmem:[#allocation30_spill] sm:$0xff] }
 0x3c9   :  { %21090 = vst [vmem:[#allocation38_spill] sm:$0xff] %v16720_v25  ;;  %21091 = vst [vmem:[#allocation43_spill] sm:$0xff] %v16723_v21  ;;  %v3385_v33 = vmul.f32 %v16720_v25, %v16720_v25  ;;  %v3386_v12 = vmul.f32 %v16723_v21, %v16723_v21  ;;  %v3155_v7 = vmul.f32 0.00390625, %v3044_v48  ;;  %v16736_v25 = vrot.slane %v2920_v23, %v21094_v62  ;;  %v21095_v21 = vld [vmem:[#allocation32_spill] sm:$0xff] }
 0x3ca   :  { %v3693_v36 = vadd.f32 1e-05, %v3629_v27  ;;  %3550 = vadd.xlane.f32.xlu1 %v3549_v49  ;;  %v16739_v48 = vrot.slane %v2920_v23, %v21095_v21  ;;  %v16751_v23 = vrot.slane %v2921_v50, %v21095_v21 }
 0x3cb   :  { %v16730_v52 = vsub.f32 %v16114_v0, %v3155_v7  ;;  %v16733_v41 = vsub.f32 %v16122_v51, %v3155_v7  ;;  %v3446_v2 = vpop.xlane.xlu1 %3445  ;;  %v3552_v18 = vadd.f32 %v3386_v12, %v3385_v33  ;;  %v16746_v7 = vrot.slane %v2921_v50, %v21094_v62  ;;  %v21096_v33 = vld [vmem:[#allocation39_spill] sm:$0xff] }
 0x3cc   :  { %13600 = vrsqrt.f32 %v3693_v36  ;;  %v3630_v31 = vmul.f32 0.00390625, %v3446_v2  ;;  %v3047_v55 = vpop.xlane.xlu0 %3046  ;;  %v21097_v2 = vld [vmem:[#allocation40_spill] sm:$0xff] }
 0x3cd   :  { %21092 = vst [vmem:[#allocation104_spill] sm:$0xff] %v16730_v52  ;;  %21093 = vst [vmem:[#allocation105_spill] sm:$0xff] %v16733_v41  ;;  %v13597_v27 = vpop.eup %13596  ;;  %v3387_v49 = vmul.f32 %v16730_v52, %v16730_v52  ;;  %v3388_v0 = vmul.f32 %v16733_v41, %v16733_v41  ;;  %v3156_v51 = vmul.f32 0.00390625, %v3047_v55 }
 0x3ce   :  { %v3819_v12 = vmul.f32 %v13597_v27, %v21096_v33  ;;  %v3694_v36 = vadd.f32 1e-05, %v3630_v31  ;;  %3553 = vadd.xlane.f32.xlu1 %v3552_v18  ;;  %v3820_v38 = vmul.f32 %v13597_v27, %v21097_v2 }
 0x3cf   :  { %v16754_v11 = vsub.f32 %v16130_v45, %v3156_v51  ;;  %v16757_v52 = vsub.f32 %v16132_v57, %v3156_v51  ;;  %v3449_v41 = vpop.xlane.xlu1 %3448  ;;  %v3555_v55 = vadd.f32 %v3388_v0, %v3387_v49 }
 0x3d0   :  { %13602 = vrsqrt.f32 %v3694_v36  ;;  %v3631_v62 = vmul.f32 0.00390625, %v3449_v41  ;;  %v3050_v39 = vpop.xlane.xlu0 %3049  ;;  %v3959_v33 = vmul.f32 %v16739_v48, %v3820_v38  ;;  %v3958_v18 = vmul.f32 %v16736_v25, %v3819_v12 }
 0x3d1   :  { %v3389_v31 = vmul.f32 %v16754_v11, %v16754_v11  ;;  %v3390_v50 = vmul.f32 %v16757_v52, %v16757_v52  ;;  %v3157_v45 = vmul.f32 0.00390625, %v3050_v39 }
 0x3d2   :  { %v13599_v27 = vpop.eup %13598  ;;  %v3695_v2 = vadd.f32 1e-05, %v3631_v62  ;;  %3556 = vadd.xlane.f32.xlu1 %v3555_v55  ;;  %v4098_v57 = vadd.f32 %v16751_v23, %v3959_v33  ;;  %v4097_v49 = vadd.f32 %v16746_v7, %v3958_v18 }
 0x3d3   :  { %v16768_v41 = vsub.f32 %v16165_v43, %v3157_v45  ;;  %v16771_v38 = vsub.f32 %v16169_v14, %v3157_v45  ;;  %v3452_v0 = vpop.xlane.xlu1 %3451  ;;  %v3558_v51 = vadd.f32 %v3390_v50, %v3389_v31  ;;  %v3822_v12 = vmul.f32 %v13599_v27, %v16080_v28 }
 0x3d4   :  { %13604 = vrsqrt.f32 %v3695_v2  ;;  %v3632_v36 = vmul.f32 0.00390625, %v3452_v0  ;;  %v3053_v39 = vpop.xlane.xlu0 %3052  ;;  %v4226_v21 = vmax.f32 %v4098_v57, 0.0  ;;  %v4225_v62 = vmax.f32 %v4097_v49, 0.0 }
 0x3d5   :  { %v3391_v55 = vmul.f32 %v16768_v41, %v16768_v41  ;;  %v3392_v33 = vmul.f32 %v16771_v38, %v16771_v38  ;;  %v3158_v43 = vmul.f32 0.00390625, %v3053_v39  ;;  %v3961_v18 = vmul.f32 %v16739_v48, %v3822_v12 }
 0x3d6   :  { %v13601_v14 = vpop.eup %13600  ;;  %v3696_v45 = vadd.f32 1e-05, %v3632_v36  ;;  %3559 = vadd.xlane.f32.xlu1 %v3558_v51  ;;  %4456 = vmatprep.mubr.f32.mxu1 %v4226_v21  ;;  %v3821_v28 = vmul.f32 %v13599_v27, %v16077_v60  ;;  %v21098_v51 = vld [vmem:[#allocation42_spill] sm:$0xff] }
 0x3d7   :  { %v16781_v31 = vsub.f32 %v16171_v10, %v3158_v43  ;;  %v16784_v50 = vsub.f32 %v16177_v34, %v3158_v43  ;;  %v3455_v2 = vpop.xlane.xlu1 %3454  ;;  %4457 = vmatmul.mubr.f32.vlgmr.msra.gmra.mrb[128].mxu1 %v4225_v62  ;;  %v3561_v57 = vadd.f32 %v3392_v33, %v3391_v55  ;;  %v4100_v49 = vadd.f32 %v16751_v23, %v3961_v18  ;;  %v21099_v43 = vld [vmem:[#allocation41_spill] sm:$0xff] }
 0x3d8   :  { %13606 = vrsqrt.f32 %v3696_v45  ;;  %v3633_v0 = vmul.f32 0.00390625, %v3455_v2  ;;  %v3056_v12 = vpop.xlane.xlu0 %3055  ;;  %v3960_v36 = vmul.f32 %v16736_v25, %v3821_v28  ;;  %v3824_v21 = vmul.f32 %v13601_v14, %v21098_v51 }
 0x3d9   :  { %v3393_v60 = vmul.f32 %v16781_v31, %v16781_v31  ;;  %v3394_v10 = vmul.f32 %v16784_v50, %v16784_v50  ;;  %v3159_v34 = vmul.f32 0.00390625, %v3056_v12  ;;  %v4228_v27 = vmax.f32 %v4100_v49, 0.0 }
 0x3da   :  { %v13603_v39 = vpop.eup %13602  ;;  %v3697_v62 = vadd.f32 1e-05, %v3633_v0  ;;  %3562 = vadd.xlane.f32.xlu1 %v3561_v57  ;;  %v4099_v55 = vadd.f32 %v16746_v7, %v3960_v36  ;;  %v3963_v33 = vmul.f32 %v16739_v48, %v3824_v21  ;;  %v3823_v18 = vmul.f32 %v13601_v14, %v21099_v43 }
 0x3db   :  { %v16797_v45 = vsub.f32 %v16205_v17, %v3159_v34  ;;  %v16800_v28 = vsub.f32 %v16209_v46, %v3159_v34  ;;  %4461 = vmatprep.mubr.f32.mxu1 %v4228_v27  ;;  %v3458_v2 = vpop.xlane.xlu1 %3457  ;;  %v3564_v51 = vadd.f32 %v3394_v10, %v3393_v60  ;;  %v3826_v49 = vmul.f32 %v13603_v39, %v16120_v63  ;;  %v21101_v10 = vld [vmem:[#allocation44_spill] sm:$0xff] }
 0x3dc   :  { %13608 = vrsqrt.f32 %v3697_v62  ;;  %v3634_v0 = vmul.f32 0.00390625, %v3458_v2  ;;  %v4227_v57 = vmax.f32 %v4099_v55, 0.0  ;;  %v3059_v12 = vpop.xlane.xlu0 %3058  ;;  %v4102_v36 = vadd.f32 %v16751_v23, %v3963_v33  ;;  %v21102_v33 = vld [vmem:[#allocation53_spill] sm:$0xff] }
 0x3dd   :  { %21100 = vst [vmem:[#allocation106_spill] sm:$0xff] %v16797_v45  ;;  %v3395_v14 = vmul.f32 %v16797_v45, %v16797_v45  ;;  %v3396_v17 = vmul.f32 %v16800_v28, %v16800_v28  ;;  %v3160_v21 = vmul.f32 0.00390625, %v3059_v12  ;;  %v3962_v46 = vmul.f32 %v16736_v25, %v3823_v18 }
 0x3de   :  { %v13605_v34 = vpop.eup %13604  ;;  %v3698_v27 = vadd.f32 1e-05, %v3634_v0  ;;  %4462 = vmatmul.mubr.f32.gmra.mrb[130].mxu1 %v4227_v57  ;;  %3565 = vadd.xlane.f32.xlu1 %v3564_v51  ;;  %v4230_v63 = vmax.f32 %v4102_v36, 0.0  ;;  %v3965_v60 = vmul.f32 %v16739_v48, %v3826_v49  ;;  %v3825_v62 = vmul.f32 %v13603_v39, %v21101_v10 }
 0x3df   :  { %v16812_v55 = vsub.f32 %v16211_v19, %v3160_v21  ;;  %v16815_v43 = vsub.f32 %v21102_v33, %v3160_v21  ;;  %v3461_v2 = vpop.xlane.xlu1 %3460  ;;  %v4101_v12 = vadd.f32 %v16746_v7, %v3962_v46  ;;  %v3567_v45 = vadd.f32 %v3396_v17, %v3395_v14 }
 0x3e0   :  { %13610 = vrsqrt.f32 %v3698_v27  ;;  %4466 = vmatprep.mubr.f32.mxu1 %v4230_v63  ;;  %v3635_v18 = vmul.f32 0.00390625, %v3461_v2  ;;  %v3062_v0 = vpop.xlane.xlu0 %3061  ;;  %v4104_v51 = vadd.f32 %v16751_v23, %v3965_v60  ;;  %v3964_v49 = vmul.f32 %v16736_v25, %v3825_v62  ;;  %v21103_v27 = vld [vmem:[#allocation46_spill] sm:$0xff]  ;;  %v21104_v2 = vld [vmem:[#allocation45_spill] sm:$0xff] }
 0x3e1   :  { %v3397_v39 = vmul.f32 %v16812_v55, %v16812_v55  ;;  %v3398_v19 = vmul.f32 %v16815_v43, %v16815_v43  ;;  %v4229_v57 = vmax.f32 %v4101_v12, 0.0  ;;  %v3161_v36 = vmul.f32 0.00390625, %v3062_v0  ;;  %3568 = vadd.xlane.f32.xlu0 %v3567_v45 }
 0x3e2   :  { %v13607_v21 = vpop.eup %13606  ;;  %v3699_v46 = vadd.f32 1e-05, %v3635_v18  ;;  %v4232_v14 = vmax.f32 %v4104_v51, 0.0  ;;  %v4103_v17 = vadd.f32 %v16746_v7, %v3964_v49  ;;  %v3828_v63 = vmul.f32 %v13605_v34, %v21103_v27 }
 0x3e3   :  { %4467 = vmatmul.mubr.f32.gmra.mrb[132].mxu1 %v4229_v57  ;;  %v16827_v60 = vsub.f32 %v16247_v4, %v3161_v36  ;;  %v16830_v10 = vsub.f32 %v16255_v47, %v3161_v36  ;;  %v3464_v62 = vpop.xlane.xlu1 %3463  ;;  %v3570_v33 = vadd.f32 %v3398_v19, %v3397_v39  ;;  %v3827_v12 = vmul.f32 %v13605_v34, %v21104_v2  ;;  %v21105_v36 = vld [vmem:[#allocation48_spill] sm:$0xff] }
 0x3e4   :  { %13612 = vrsqrt.f32 %v3699_v46  ;;  %4471 = vmatprep.mubr.f32.mxu1 %v4232_v14  ;;  %v3636_v45 = vmul.f32 0.00390625, %v3464_v62  ;;  %v4231_v18 = vmax.f32 %v4103_v17, 0.0  ;;  %v3065_v0 = vpop.xlane.xlu0 %3064  ;;  %v3967_v51 = vmul.f32 %v16739_v48, %v3828_v63  ;;  %v21106_v14 = vld [vmem:[#allocation47_spill] sm:$0xff] }
 0x3e5   :  { %v3399_v49 = vmul.f32 %v16827_v60, %v16827_v60  ;;  %v3400_v4 = vmul.f32 %v16830_v10, %v16830_v10  ;;  %v3162_v57 = vmul.f32 0.00390625, %v3065_v0  ;;  %3571 = vadd.xlane.f32.xlu1 %v3570_v33  ;;  %v3966_v47 = vmul.f32 %v16736_v25, %v3827_v12 }
 0x3e6   :  { %v13609_v39 = vpop.eup %13608  ;;  %v3700_v19 = vadd.f32 1e-05, %v3636_v45  ;;  %v4106_v34 = vadd.f32 %v16751_v23, %v3967_v51  ;;  %v3830_v46 = vmul.f32 %v13607_v21, %v21105_v36  ;;  %v3829_v17 = vmul.f32 %v13607_v21, %v21106_v14 }
 0x3e7   :  { %4472 = vmatmul.mubr.f32.gmra.mrb[134].mxu1 %v4231_v18  ;;  %v16843_v27 = vsub.f32 %v16257_v9, %v3162_v57  ;;  %v16846_v63 = vsub.f32 %v16263_v58, %v3162_v57  ;;  %v3467_v62 = vpop.xlane.xlu1 %3466  ;;  %v4105_v33 = vadd.f32 %v16746_v7, %v3966_v47  ;;  %v3573_v2 = vadd.f32 %v3400_v4, %v3399_v49  ;;  %v21107_v47 = vld [vmem:[#allocation50_spill] sm:$0xff] }
 0x3e8   :  { %13614 = vrsqrt.f32 %v3700_v19  ;;  %v4234_v12 = vmax.f32 %v4106_v34, 0.0  ;;  %v3637_v45 = vmul.f32 0.00390625, %v3467_v62  ;;  %v3068_v0 = vpop.xlane.xlu0 %3067  ;;  %v3969_v51 = vmul.f32 %v16739_v48, %v3830_v46 }
 0x3e9   :  { %v3401_v21 = vmul.f32 %v16843_v27, %v16843_v27  ;;  %v3402_v9 = vmul.f32 %v16846_v63, %v16846_v63  ;;  %v4233_v18 = vmax.f32 %v4105_v33, 0.0  ;;  %v3163_v36 = vmul.f32 0.00390625, %v3068_v0  ;;  %3574 = vadd.xlane.f32.xlu0 %v3573_v2  ;;  %v21108_v33 = vld [vmem:[#allocation49_spill] sm:$0xff] }
 0x3ea   :  { %v13611_v58 = vpop.eup %13610  ;;  %4476 = vmatprep.mubr.f32.mxu1 %v4234_v12  ;;  %v3701_v57 = vadd.f32 1e-05, %v3637_v45  ;;  %v4108_v49 = vadd.f32 %v16751_v23, %v3969_v51  ;;  %v3968_v4 = vmul.f32 %v16736_v25, %v3829_v17  ;;  %v3832_v19 = vmul.f32 %v13609_v39, %v21107_v47 }
 0x3eb   :  { %4477 = vmatmul.mubr.f32.gmra.mrb[136].mxu1 %v4233_v18  ;;  %v16858_v34 = vsub.f32 %v16293_v59, %v3163_v36  ;;  %v16861_v46 = vsub.f32 %v16295_v3, %v3163_v36  ;;  %v3470_v14 = vpop.xlane.xlu1 %3469  ;;  %v3576_v62 = vadd.f32 %v3402_v9, %v3401_v21  ;;  %v3831_v2 = vmul.f32 %v13609_v39, %v21108_v33 }
 0x3ec   :  { %13616 = vrsqrt.f32 %v3701_v57  ;;  %v4236_v12 = vmax.f32 %v4108_v49, 0.0  ;;  %v3638_v45 = vmul.f32 0.00390625, %v3470_v14  ;;  %v4107_v0 = vadd.f32 %v16746_v7, %v3968_v4  ;;  %v3071_v51 = vpop.xlane.xlu0 %3070  ;;  %v21109_v57 = vld [vmem:[#allocation52_spill] sm:$0xff] }
 0x3ed   :  { %v3403_v17 = vmul.f32 %v16858_v34, %v16858_v34  ;;  %v3404_v59 = vmul.f32 %v16861_v46, %v16861_v46  ;;  %v3164_v18 = vmul.f32 0.00390625, %v3071_v51  ;;  %3577 = vadd.xlane.f32.xlu1 %v3576_v62  ;;  %v3971_v3 = vmul.f32 %v16739_v48, %v3832_v19 }
 0x3ee   :  { %v13613_v36 = vpop.eup %13612  ;;  %4481 = vmatprep.mubr.f32.mxu1 %v4236_v12  ;;  %v3702_v21 = vadd.f32 1e-05, %v3638_v45  ;;  %v4235_v39 = vmax.f32 %v4107_v0, 0.0  ;;  %v3970_v9 = vmul.f32 %v16736_v25, %v3831_v2  ;;  %v3834_v49 = vmul.f32 %v13611_v58, %v21109_v57 }
 0x3ef   :  { %v16873_v4 = vsub.f32 %v16297_v24, %v3164_v18  ;;  %v16876_v47 = vsub.f32 %v16303_v5, %v3164_v18  ;;  %v4110_v14 = vadd.f32 %v16751_v23, %v3971_v3  ;;  %v3473_v33 = vpop.xlane.xlu1 %3472  ;;  %v3579_v62 = vadd.f32 %v3404_v59, %v3403_v17 }
 0x3f0   :  { %13618 = vrsqrt.f32 %v3702_v21  ;;  %4482 = vmatmul.mubr.f32.gmra.mrb[138].mxu1 %v4235_v39  ;;  %v3639_v19 = vmul.f32 0.00390625, %v3473_v33  ;;  %v4109_v12 = vadd.f32 %v16746_v7, %v3970_v9  ;;  %v3074_v45 = vpop.xlane.xlu0 %3073  ;;  %v3973_v2 = vmul.f32 %v16739_v48, %v3834_v49  ;;  %v21111_v21 = vld [vmem:[#allocation51_spill] sm:$0xff] }
 0x3f1   :  { %21110 = vst [vmem:[#allocation107_spill] sm:$0xff] %v16873_v4  ;;  %v3405_v0 = vmul.f32 %v16873_v4, %v16873_v4  ;;  %v3406_v24 = vmul.f32 %v16876_v47, %v16876_v47  ;;  %v4238_v5 = vmax.f32 %v4110_v14, 0.0  ;;  %v3165_v51 = vmul.f32 0.00390625, %v3074_v45  ;;  %3580 = vadd.xlane.f32.xlu0 %v3579_v62  ;;  %v21113_v4 = vld [vmem:[#allocation55_spill] sm:$0xff] }
 0x3f2   :  { %v13615_v18 = vpop.eup %13614  ;;  %v3703_v3 = vadd.f32 1e-05, %v3639_v19  ;;  %v4237_v17 = vmax.f32 %v4109_v12, 0.0  ;;  %v4112_v59 = vadd.f32 %v16751_v23, %v3973_v2  ;;  %v3833_v39 = vmul.f32 %v13611_v58, %v21111_v21 }
 0x3f3   :  { %4486 = vmatprep.mubr.f32.mxu1 %v4238_v5  ;;  %v16888_v9 = vsub.f32 %v16333_v37, %v3165_v51  ;;  %v16891_v57 = vsub.f32 %v16335_v56, %v3165_v51  ;;  %v3476_v49 = vpop.xlane.xlu1 %3475  ;;  %v3582_v33 = vadd.f32 %v3406_v24, %v3405_v0  ;;  %v3836_v14 = vmul.f32 %v13613_v36, %v21113_v4  ;;  %v21114_v5 = vld [vmem:[#allocation54_spill] sm:$0xff] }
 0x3f4   :  { %13620 = vrsqrt.f32 %v3703_v3  ;;  %4487 = vmatmul.mubr.f32.gmra.mrb[140].mxu1 %v4237_v17  ;;  %v4240_v62 = vmax.f32 %v4112_v59, 0.0  ;;  %v3640_v19 = vmul.f32 0.00390625, %v3476_v49  ;;  %v3972_v12 = vmul.f32 %v16736_v25, %v3833_v39  ;;  %v3077_v45 = vpop.xlane.xlu0 %3076 }
 0x3f5   :  { %21112 = vst [vmem:[#allocation39_spill] sm:$0xff] %v16888_v9  ;;  %v3407_v58 = vmul.f32 %v16888_v9, %v16888_v9  ;;  %v3408_v37 = vmul.f32 %v16891_v57, %v16891_v57  ;;  %v3166_v2 = vmul.f32 0.00390625, %v3077_v45  ;;  %3583 = vadd.xlane.f32.xlu1 %v3582_v33  ;;  %v3975_v56 = vmul.f32 %v16739_v48, %v3836_v14 }
 0x3f6   :  { %v13617_v0 = vpop.eup %13616  ;;  %4491 = vmatprep.mubr.f32.mxu1 %v4240_v62  ;;  %v3704_v4 = vadd.f32 1e-05, %v3640_v19  ;;  %v4111_v24 = vadd.f32 %v16746_v7, %v3972_v12  ;;  %v3835_v51 = vmul.f32 %v13613_v36, %v21114_v5  ;;  %v3838_v3 = vmul.f32 %v13615_v18, %v16241_v1 }
 0x3f7   :  { %v16904_v17 = vsub.f32 %v16337_v30, %v3166_v2  ;;  %v16907_v59 = vsub.f32 %v16343_v32, %v3166_v2  ;;  %v4114_v21 = vadd.f32 %v16751_v23, %v3975_v56  ;;  %v3479_v39 = vpop.xlane.xlu1 %3478  ;;  %v3585_v49 = vadd.f32 %v3408_v37, %v3407_v58  ;;  %v21117_v2 = vld [vmem:[#allocation56_spill] sm:$0xff] }
 0x3f8   :  { %13622 = vrsqrt.f32 %v3704_v4  ;;  %v4239_v33 = vmax.f32 %v4111_v24, 0.0  ;;  %v3641_v14 = vmul.f32 0.00390625, %v3479_v39  ;;  %v3974_v62 = vmul.f32 %v16736_v25, %v3835_v51  ;;  %v3080_v19 = vpop.xlane.xlu0 %3079  ;;  %v21119_v24 = vld [vmem:[#allocation69_spill] sm:$0xff]  ;;  %v21121_v39 = vld [vmem:[#allocation58_spill] sm:$0xff] }
 0x3f9   :  { %21115 = vst [vmem:[#allocation40_spill] sm:$0xff] %v16904_v17  ;;  %21116 = vst [vmem:[#allocation42_spill] sm:$0xff] %v16907_v59  ;;  %v3409_v36 = vmul.f32 %v16904_v17, %v16904_v17  ;;  %v3410_v1 = vmul.f32 %v16907_v59, %v16907_v59  ;;  %v4242_v30 = vmax.f32 %v4114_v21, 0.0  ;;  %v3167_v12 = vmul.f32 0.00390625, %v3080_v19  ;;  %3586 = vadd.xlane.f32.xlu0 %v3585_v49 }
 0x3fa   :  { %v13619_v32 = vpop.eup %13618  ;;  %4492 = vmatmul.mubr.f32.gmra.mrb[142].mxu1 %v4239_v33  ;;  %v3705_v45 = vadd.f32 1e-05, %v3641_v14  ;;  %v4113_v58 = vadd.f32 %v16746_v7, %v3974_v62  ;;  %v3977_v37 = vmul.f32 %v16739_v48, %v3838_v3  ;;  %v3837_v56 = vmul.f32 %v13615_v18, %v21117_v2 }
 0x3fb   :  { %4496 = vmatprep.mubr.f32.mxu1 %v4242_v30  ;;  %v16919_v4 = vsub.f32 %v16373_v15, %v3167_v12  ;;  %v16922_v5 = vsub.f32 %v21119_v24, %v3167_v12  ;;  %v3482_v51 = vpop.xlane.xlu1 %3481  ;;  %v3588_v21 = vadd.f32 %v3410_v1, %v3409_v36  ;;  %v3840_v49 = vmul.f32 %v13617_v0, %v21121_v39  ;;  %v21123_v24 = vld [vmem:[#allocation108_spill] sm:$0xff]  ;;  %v21125_v39 = vld [vmem:[#allocation109_spill] sm:$0xff] }
 0x3fc   :  { %13624 = vrsqrt.f32 %v3705_v45  ;;  %v4241_v33 = vmax.f32 %v4113_v58, 0.0  ;;  %v4116_v14 = vadd.f32 %v16751_v23, %v3977_v37  ;;  %v3642_v62 = vmul.f32 0.00390625, %v3482_v51  ;;  %v3083_v19 = vpop.xlane.xlu0 %3082  ;;  %v21122_v58 = vld [vmem:[#allocation57_spill] sm:$0xff] }
 0x3fd   :  { %21118 = vst [vmem:[#allocation41_spill] sm:$0xff] %v16919_v4  ;;  %21120 = vst [vmem:[#allocation44_spill] sm:$0xff] %v16922_v5  ;;  %v3411_v18 = vmul.f32 %v16919_v4, %v16919_v4  ;;  %v3412_v15 = vmul.f32 %v16922_v5, %v16922_v5  ;;  %v3976_v3 = vmul.f32 %v16736_v25, %v3837_v56  ;;  %v3168_v30 = vmul.f32 0.00390625, %v3083_v19 }
 0x3fe   :  { %3589 = vadd.xlane.f32.xlu1 %v3588_v21  ;;  %v13621_v12 = vpop.eup %13620  ;;  %4497 = vmatmul.mubr.f32.gmra.mrb[144].mxu1 %v4241_v33  ;;  %v4244_v36 = vmax.f32 %v4116_v14, 0.0  ;;  %v3706_v1 = vadd.f32 1e-05, %v3642_v62  ;;  %v3979_v45 = vmul.f32 %v16739_v48, %v3840_v49  ;;  %v3839_v37 = vmul.f32 %v13617_v0, %v21122_v58 }
 0x3ff   :  { %v4115_v2 = vadd.f32 %v16746_v7, %v3976_v3  ;;  %v16935_v51 = vsub.f32 %v21123_v24, %v3168_v30  ;;  %v16938_v4 = vsub.f32 %v21125_v39, %v3168_v30  ;;  %v3485_v5 = vpop.xlane.xlu1 %3484  ;;  %v3591_v56 = vadd.f32 %v3412_v15, %v3411_v18  ;;  %v21132_v39 = vld [vmem:[#allocation59_spill] sm:$0xff] }
 0x400   :  { %4501 = vmatprep.mubr.f32.mxu1 %v4244_v36  ;;  %13626 = vrsqrt.f32 %v3706_v1  ;;  %v4118_v21 = vadd.f32 %v16751_v23, %v3979_v45  ;;  %v3643_v33 = vmul.f32 0.00390625, %v3485_v5  ;;  %v3978_v14 = vmul.f32 %v16736_v25, %v3839_v37  ;;  %v3086_v49 = vpop.xlane.xlu0 %3085  ;;  %v21127_v36 = vld [vmem:[#allocation60_spill] sm:$0xff]  ;;  %v21128_v5 = vld [vmem:[#allocation86_spill] sm:$0xff] }
 0x401   :  { %21124 = vst [vmem:[#allocation53_spill] sm:$0xff] %v16935_v51  ;;  %21126 = vst [vmem:[#allocation46_spill] sm:$0xff] %v16938_v4  ;;  %v4243_v62 = vmax.f32 %v4115_v2, 0.0  ;;  %v3413_v0 = vmul.f32 %v16935_v51, %v16935_v51  ;;  %v3414_v19 = vmul.f32 %v16938_v4, %v16938_v4  ;;  %v3169_v3 = vmul.f32 0.00390625, %v3086_v49  ;;  %3592 = vadd.xlane.f32.xlu0 %v3591_v56  ;;  %v21130_v37 = vld [vmem:[#allocation72_spill] sm:$0xff] }
 0x402   :  { %v13623_v30 = vpop.eup %13622  ;;  %v4246_v58 = vmax.f32 %v4118_v21, 0.0  ;;  %v3707_v18 = vadd.f32 1e-05, %v3643_v33  ;;  %v4117_v15 = vadd.f32 %v16746_v7, %v3978_v14  ;;  %v3842_v1 = vmul.f32 %v13619_v32, %v21127_v36 }
 0x403   :  { %4502 = vmatmul.mubr.f32.gmra.mrb[146].mxu1 %v4243_v62  ;;  %v16949_v45 = vsub.f32 %v21128_v5, %v3169_v3  ;;  %v16952_v2 = vsub.f32 %v21130_v37, %v3169_v3  ;;  %v3488_v24 = vpop.xlane.xlu1 %3487  ;;  %v3841_v51 = vmul.f32 %v13619_v32, %v21132_v39  ;;  %v3594_v4 = vadd.f32 %v3414_v19, %v3413_v0  ;;  %v21133_v19 = vld [vmem:[#allocation62_spill] sm:$0xff]  ;;  %v21135_v37 = vld [vmem:[#allocation73_spill] sm:$0xff] }
 0x404   :  { %4506 = vmatprep.mubr.f32.mxu1 %v4246_v58  ;;  %13628 = vrsqrt.f32 %v3707_v18  ;;  %v4245_v56 = vmax.f32 %v4117_v15, 0.0  ;;  %v3981_v21 = vmul.f32 %v16739_v48, %v3842_v1  ;;  %v3644_v33 = vmul.f32 0.00390625, %v3488_v24  ;;  %v3089_v14 = vpop.xlane.xlu0 %3088  ;;  %v21134_v18 = vld [vmem:[#allocation61_spill] sm:$0xff]  ;;  %v21137_v39 = vld [vmem:[#allocation110_spill] sm:$0xff] }
 0x405   :  { %21129 = vst [vmem:[#allocation45_spill] sm:$0xff] %v16949_v45  ;;  %21131 = vst [vmem:[#allocation48_spill] sm:$0xff] %v16952_v2  ;;  %v3415_v49 = vmul.f32 %v16949_v45, %v16949_v45  ;;  %v3416_v62 = vmul.f32 %v16952_v2, %v16952_v2  ;;  %v3980_v3 = vmul.f32 %v16736_v25, %v3841_v51  ;;  %v3170_v36 = vmul.f32 0.00390625, %v3089_v14 }
 0x406   :  { %3595 = vadd.xlane.f32.xlu1 %v3594_v4  ;;  %v13625_v5 = vpop.eup %13624  ;;  %v4120_v32 = vadd.f32 %v16751_v23, %v3981_v21  ;;  %v3708_v0 = vadd.f32 1e-05, %v3644_v33  ;;  %v3844_v58 = vmul.f32 %v13621_v12, %v21133_v19  ;;  %v3843_v15 = vmul.f32 %v13621_v12, %v21134_v18 }
 0x407   :  { %4507 = vmatmul.mubr.f32.gmra.mrb[148].mxu1 %v4245_v56  ;;  %v4119_v1 = vadd.f32 %v16746_v7, %v3980_v3  ;;  %v16966_v24 = vsub.f32 %v21135_v37, %v3170_v36  ;;  %v16969_v45 = vsub.f32 %v21137_v39, %v3170_v36  ;;  %v3491_v51 = vpop.xlane.xlu1 %3490  ;;  %v3597_v14 = vadd.f32 %v3416_v62, %v3415_v49  ;;  %v21140_v37 = vld [vmem:[#allocation63_spill] sm:$0xff] }
 0x408   :  { %v4248_v4 = vmax.f32 %v4120_v32, 0.0  ;;  %13630 = vrsqrt.f32 %v3708_v0  ;;  %v3983_v21 = vmul.f32 %v16739_v48, %v3844_v58  ;;  %v3645_v33 = vmul.f32 0.00390625, %v3491_v51  ;;  %v3092_v2 = vpop.xlane.xlu0 %3091  ;;  %v21139_v0 = vld [vmem:[#allocation64_spill] sm:$0xff] }
 0x409   :  { %21136 = vst [vmem:[#allocation47_spill] sm:$0xff] %v16966_v24  ;;  %21138 = vst [vmem:[#allocation50_spill] sm:$0xff] %v16969_v45  ;;  %v4247_v19 = vmax.f32 %v4119_v1, 0.0  ;;  %v3417_v12 = vmul.f32 %v16966_v24, %v16966_v24  ;;  %v3418_v56 = vmul.f32 %v16969_v45, %v16969_v45  ;;  %v3982_v3 = vmul.f32 %v16736_v25, %v3843_v15  ;;  %v21141_v24 = vld [vmem:[#allocation66_spill] sm:$0xff]  ;;  %v21142_v15 = vld [vmem:[#allocation91_spill] sm:$0xff] }
 0x40a   :  { %3598 = vadd.xlane.f32.xlu0 %v3597_v14  ;;  %v13627_v36 = vpop.eup %13626  ;;  %4511 = vmatprep.mubr.f32.mxu1 %v4248_v4  ;;  %v4122_v49 = vadd.f32 %v16751_v23, %v3983_v21  ;;  %v3709_v62 = vadd.f32 1e-05, %v3645_v33  ;;  %v3171_v32 = vmul.f32 0.00390625, %v3092_v2  ;;  %v3846_v58 = vmul.f32 %v13623_v30, %v21139_v0  ;;  %v21144_v4 = vld [vmem:[#allocation92_spill] sm:$0xff] }
 0x40b   :  { %4512 = vmatmul.mubr.f32.gmra.mrb[150].mxu1 %v4247_v19  ;;  %v4121_v18 = vadd.f32 %v16746_v7, %v3982_v3  ;;  %v3494_v1 = vpop.xlane.xlu1 %3493  ;;  %v3845_v39 = vmul.f32 %v13623_v30, %v21140_v37  ;;  %v3600_v51 = vadd.f32 %v3418_v56, %v3417_v12  ;;  %v3848_v45 = vmul.f32 %v13625_v5, %v21141_v24 }
 0x40c   :  { %v4250_v17 = vmax.f32 %v4122_v49, 0.0  ;;  %13632 = vrsqrt.f32 %v3709_v62  ;;  %v16983_v14 = vsub.f32 %v21142_v15, %v3171_v32  ;;  %v16986_v21 = vsub.f32 %v21144_v4, %v3171_v32  ;;  %v3095_v2 = vpop.xlane.xlu0 %3094 }
 0x40d   :  { %v4249_v33 = vmax.f32 %v4121_v18, 0.0  ;;  %v3985_v19 = vmul.f32 %v16739_v48, %v3846_v58  ;;  %v3646_v0 = vmul.f32 0.00390625, %v3494_v1  ;;  %v3984_v3 = vmul.f32 %v16736_v25, %v3845_v39  ;;  %3601 = vadd.xlane.f32.xlu1 %v3600_v51  ;;  %v21146_v1 = vld [vmem:[#allocation65_spill] sm:$0xff]  ;;  %v21147_v39 = vld [vmem:[#allocation76_spill] sm:$0xff] }
 0x40e   :  { %21143 = vst [vmem:[#allocation49_spill] sm:$0xff] %v16983_v14  ;;  %21145 = vst [vmem:[#allocation52_spill] sm:$0xff] %v16986_v21  ;;  %v13629_v30 = vpop.eup %13628  ;;  %4516 = vmatprep.mubr.f32.mxu1 %v4250_v17  ;;  %v3419_v24 = vmul.f32 %v16983_v14, %v16983_v14  ;;  %v3420_v12 = vmul.f32 %v16986_v21, %v16986_v21  ;;  %v3172_v56 = vmul.f32 0.00390625, %v3095_v2  ;;  %v21149_v51 = vld [vmem:[#allocation77_spill] sm:$0xff] }
 0x40f   :  { %v3987_v49 = vmul.f32 %v16739_v48, %v3848_v45  ;;  %4517 = vmatmul.mubr.f32.gmra.mrb[152].mxu1 %v4249_v33  ;;  %v4124_v62 = vadd.f32 %v16751_v23, %v3985_v19  ;;  %v3710_v32 = vadd.f32 1e-05, %v3646_v0  ;;  %v4123_v58 = vadd.f32 %v16746_v7, %v3984_v3  ;;  %v3497_v18 = vpop.xlane.xlu1 %3496 }
 0x410   :  { %v3847_v37 = vmul.f32 %v13625_v5, %v21146_v1  ;;  %v16999_v17 = vsub.f32 %v21147_v39, %v3172_v56  ;;  %v17002_v15 = vsub.f32 %v21149_v51, %v3172_v56  ;;  %v3647_v2 = vmul.f32 0.00390625, %v3497_v18  ;;  %v3098_v14 = vpop.xlane.xlu0 %3097  ;;  %v21152_v51 = vld [vmem:[#allocation67_spill] sm:$0xff] }
 0x411   :  { %v4126_v4 = vadd.f32 %v16751_v23, %v3987_v49  ;;  %v4252_v45 = vmax.f32 %v4124_v62, 0.0  ;;  %13634 = vrsqrt.f32 %v3710_v32  ;;  %v4251_v33 = vmax.f32 %v4123_v58, 0.0  ;;  %v21151_v62 = vld [vmem:[#allocation68_spill] sm:$0xff] }
 0x412   :  { %21148 = vst [vmem:[#allocation51_spill] sm:$0xff] %v16999_v17  ;;  %21150 = vst [vmem:[#allocation55_spill] sm:$0xff] %v17002_v15  ;;  %v3986_v19 = vmul.f32 %v16736_v25, %v3847_v37  ;;  %v17006_v0 = vpop.eup %13630  ;;  %v3421_v5 = vmul.f32 %v16999_v17, %v16999_v17  ;;  %v3422_v3 = vmul.f32 %v17002_v15, %v17002_v15  ;;  %v3711_v56 = vadd.f32 1e-05, %v3647_v2  ;;  %v21153_v15 = vld [vmem:[#allocation79_spill] sm:$0xff]  ;;  %v21154_v2 = vld [vmem:[#allocation96_spill] sm:$0xff] }
 0x413   :  { %v4254_v1 = vmax.f32 %v4126_v4, 0.0  ;;  %4521 = vmatprep.mubr.f32.mxu1 %v4252_v45  ;;  %v3173_v18 = vmul.f32 0.00390625, %v3098_v14  ;;  %v3603_v39 = vadd.f32 %v3420_v12, %v3419_v24  ;;  %v3850_v32 = vmul.f32 %v13627_v36, %v21151_v62  ;;  %v3500_v58 = vpop.xlane.xlu1 %3499 }
 0x414   :  { %v4125_v49 = vadd.f32 %v16746_v7, %v3986_v19  ;;  %4522 = vmatmul.mubr.f32.gmra.mrb[154].mxu1 %v4251_v33  ;;  %13636 = vrsqrt.f32 %v3711_v56  ;;  %v3648_v37 = vmul.f32 0.00390625, %v3500_v58  ;;  %v3849_v21 = vmul.f32 %v13627_v36, %v21152_v51  ;;  %v3101_v59 = vpop.xlane.xlu0 %3100  ;;  %v21155_v36 = vld [vmem:[#allocation71_spill] sm:$0xff] }
 0x415   :  { %v3606_v17 = vadd.f32 %v3422_v3, %v3421_v5  ;;  %4526 = vmatprep.mubr.f32.mxu1 %v4254_v1  ;;  %v17016_v4 = vsub.f32 %v21153_v15, %v3173_v18  ;;  %v17019_v45 = vsub.f32 %v21154_v2, %v3173_v18  ;;  %3604 = vadd.xlane.f32.xlu0 %v3603_v39  ;;  %v3174_v19 = vmul.f32 0.00390625, %v3101_v59 }
 0x416   :  { %v4253_v9 = vmax.f32 %v4125_v49, 0.0  ;;  %v3989_v14 = vmul.f32 %v16739_v48, %v3850_v32  ;;  %v13633_v24 = vpop.eup %13632  ;;  %v3712_v12 = vadd.f32 1e-05, %v3648_v37  ;;  %v3988_v33 = vmul.f32 %v16736_v25, %v3849_v21  ;;  %v21156_v49 = vld [vmem:[#allocation70_spill] sm:$0xff]  ;;  %v21157_v21 = vld [vmem:[#allocation80_spill] sm:$0xff] }
 0x417   :  { %3607 = vadd.xlane.f32.xlu1 %v3606_v17  ;;  %v3852_v56 = vmul.f32 %v13629_v30, %v21155_v36  ;;  %v3423_v5 = vmul.f32 %v17016_v4, %v17016_v4  ;;  %v3424_v15 = vmul.f32 %v17019_v45, %v17019_v45  ;;  %v3503_v1 = vpop.xlane.xlu1 %3502  ;;  %v3851_v18 = vmul.f32 %v13629_v30, %v21156_v49  ;;  %v21159_v17 = vld [vmem:[#allocation81_spill] sm:$0xff] }
 0x418   :  { %v4128_v3 = vadd.f32 %v16751_v23, %v3989_v14  ;;  %4527 = vmatmul.mubr.f32.gmra.mrb[156].mxu1 %v4253_v9  ;;  %13638 = vrsqrt.f32 %v3712_v12  ;;  %v4127_v39 = vadd.f32 %v16746_v7, %v3988_v33  ;;  %v17032_v59 = vsub.f32 %v21157_v21, %v3174_v19  ;;  %v3104_v32 = vpop.xlane.xlu0 %3103 }
 0x419   :  { %v17035_v62 = vsub.f32 %v21159_v17, %v3174_v19  ;;  %v3991_v37 = vmul.f32 %v16739_v48, %v3852_v56  ;;  %v3649_v51 = vmul.f32 0.00390625, %v3503_v1  ;;  %v3990_v2 = vmul.f32 %v16736_v25, %v3851_v18 }
 0x41a   :  { %21158 = vst [vmem:[#allocation54_spill] sm:$0xff] %v17032_v59  ;;  %v4256_v58 = vmax.f32 %v4128_v3, 0.0  ;;  %v4255_v14 = vmax.f32 %v4127_v39, 0.0  ;;  %v3425_v9 = vmul.f32 %v17032_v59, %v17032_v59  ;;  %v3175_v12 = vmul.f32 0.00390625, %v3104_v32  ;;  %v21162_v39 = vld [vmem:[#allocation84_spill] sm:$0xff] }
 0x41b   :  { %v3426_v30 = vmul.f32 %v17035_v62, %v17035_v62  ;;  %v17043_v33 = vpop.eup %13634  ;;  %v4130_v19 = vadd.f32 %v16751_v23, %v3991_v37  ;;  %v3713_v36 = vadd.f32 1e-05, %v3649_v51  ;;  %v4129_v3 = vadd.f32 %v16746_v7, %v3990_v2  ;;  %v3506_v1 = vpop.xlane.xlu1 %3505  ;;  %v21163_v51 = vld [vmem:[#allocation82_spill] sm:$0xff] }
 0x41c   :  { %4531 = vmatprep.mubr.f32.mxu1 %v4256_v58  ;;  %v3609_v56 = vadd.f32 %v3424_v15, %v3423_v5  ;;  %v17048_v49 = vsub.f32 %v16527_v20, %v3175_v12  ;;  %v17051_v18 = vsub.f32 %v16535_v16, %v3175_v12  ;;  %v3854_v21 = vmul.f32 %v17006_v0, %v21162_v39  ;;  %v3107_v32 = vpop.xlane.xlu0 %3106 }
 0x41d   :  { %4532 = vmatmul.mubr.f32.gmra.mrb[158].mxu1 %v4255_v14  ;;  %v3650_v17 = vmul.f32 0.00390625, %v3506_v1  ;;  %v4258_v58 = vmax.f32 %v4130_v19, 0.0  ;;  %13640 = vrsqrt.f32 %v3713_v36  ;;  %v4257_v37 = vmax.f32 %v4129_v3, 0.0  ;;  %v21164_v3 = vld [vmem:[#allocation74_spill] sm:$0xff] }
 0x41e   :  { %21160 = vst [vmem:[#allocation56_spill] sm:$0xff] %v17048_v49  ;;  %21161 = vst [vmem:[#allocation69_spill] sm:$0xff] %v17051_v18  ;;  %3610 = vadd.xlane.f32.xlu0 %v3609_v56  ;;  %v3853_v5 = vmul.f32 %v17006_v0, %v21163_v51  ;;  %v13637_v15 = vpop.eup %13636  ;;  %v3427_v20 = vmul.f32 %v17048_v49, %v17048_v49  ;;  %v3428_v16 = vmul.f32 %v17051_v18, %v17051_v18  ;;  %v21165_v51 = vld [vmem:[#allocation18_spill] sm:$0xff] }
 0x41f   :  { %v3993_v2 = vmul.f32 %v16739_v48, %v3854_v21  ;;  %v3714_v14 = vadd.f32 1e-05, %v3650_v17  ;;  %4536 = vmatprep.mubr.f32.mxu1 %v4258_v58  ;;  %v3176_v19 = vmul.f32 0.00390625, %v3107_v32  ;;  %v3612_v36 = vadd.f32 %v3426_v30, %v3425_v9  ;;  %v3509_v1 = vpop.xlane.xlu1 %3508 }
 0x420   :  { %v3992_v12 = vmul.f32 %v16736_v25, %v3853_v5  ;;  %v3856_v56 = vmul.f32 %v13633_v24, %v21164_v3  ;;  %v3651_v39 = vmul.f32 0.00390625, %v3509_v1  ;;  %v3855_v49 = vmul.f32 %v13633_v24, %v21165_v51  ;;  %v3110_v59 = vpop.xlane.xlu0 %3109  ;;  %v21167_v3 = vld [vmem:[#allocation89_spill] sm:$0xff] }
 0x421   :  { %4537 = vmatmul.mubr.f32.gmra.mrb[160].mxu1 %v4257_v37  ;;  %v4132_v0 = vadd.f32 %v16751_v23, %v3993_v2  ;;  %13642 = vrsqrt.f32 %v3714_v14  ;;  %v17068_v21 = vsub.f32 %v16537_v6, %v3176_v19  ;;  %v17071_v17 = vsub.f32 %v16541_v53, %v3176_v19  ;;  %3613 = vadd.xlane.f32.xlu1 %v3612_v36 }
 0x422   :  { %v4131_v18 = vadd.f32 %v16746_v7, %v3992_v12  ;;  %v3995_v9 = vmul.f32 %v16739_v48, %v3856_v56  ;;  %v13639_v30 = vpop.eup %13638  ;;  %v3715_v58 = vadd.f32 1e-05, %v3651_v39  ;;  %v3994_v37 = vmul.f32 %v16736_v25, %v3855_v49 }
 0x423   :  { %v4260_v32 = vmax.f32 %v4132_v0, 0.0  ;;  %v3177_v5 = vmul.f32 0.00390625, %v3110_v59  ;;  %v3429_v24 = vmul.f32 %v17068_v21, %v17068_v21  ;;  %v3430_v6 = vmul.f32 %v17071_v17, %v17071_v17  ;;  %v3512_v53 = vpop.xlane.xlu1 %3511 }
 0x424   :  { %v4259_v2 = vmax.f32 %v4131_v18, 0.0  ;;  %v4134_v14 = vadd.f32 %v16751_v23, %v3995_v9  ;;  %13644 = vrsqrt.f32 %v3715_v58  ;;  %v4133_v12 = vadd.f32 %v16746_v7, %v3994_v37  ;;  %v3113_v59 = vpop.xlane.xlu0 %3112 }
 0x425   :  { %4541 = vmatprep.mubr.f32.mxu1 %v4260_v32  ;;  %v17082_v19 = vsub.f32 %v16567_v29, %v3177_v5  ;;  %v17085_v49 = vsub.f32 %v16575_v13, %v3177_v5  ;;  %v3615_v36 = vadd.f32 %v3428_v16, %v3427_v20  ;;  %v3858_v56 = vmul.f32 %v17043_v33, %v21167_v3  ;;  %v21168_v29 = vld [vmem:[#allocation75_spill] sm:$0xff] }
 0x426   :  { %4542 = vmatmul.mubr.f32.gmra.mrb[162].mxu1 %v4259_v2  ;;  %v4262_v18 = vmax.f32 %v4134_v14, 0.0  ;;  %v3652_v1 = vmul.f32 0.00390625, %v3512_v53  ;;  %v4261_v0 = vmax.f32 %v4133_v12, 0.0  ;;  %v3857_v9 = vmul.f32 %v17043_v33, %v21168_v29  ;;  %v21169_v2 = vld [vmem:[#allocation78_spill] sm:$0xff]  ;;  %v21170_v12 = vld [vmem:[#allocation20_spill] sm:$0xff] }
 0x427   :  { %21166 = vst [vmem:[#allocation58_spill] sm:$0xff] %v17082_v19  ;;  %v3431_v39 = vmul.f32 %v17082_v19, %v17082_v19  ;;  %v3432_v51 = vmul.f32 %v17085_v49, %v17085_v49  ;;  %v13641_v13 = vpop.eup %13640  ;;  %3616 = vadd.xlane.f32.xlu0 %v3615_v36  ;;  %v3997_v32 = vmul.f32 %v16739_v48, %v3858_v56  ;;  %v3178_v16 = vmul.f32 0.00390625, %v3113_v59  ;;  %v3515_v37 = vpop.xlane.xlu1 %3514 }
 0x428   :  { %4546 = vmatprep.mubr.f32.mxu1 %v4262_v18  ;;  %v3716_v20 = vadd.f32 1e-05, %v3652_v1  ;;  %v3618_v58 = vadd.f32 %v3430_v6, %v3429_v24  ;;  %v3996_v5 = vmul.f32 %v16736_v25, %v3857_v9  ;;  %v3860_v14 = vmul.f32 %v13637_v15, %v21169_v2 }
 0x429   :  { %v3653_v53 = vmul.f32 0.00390625, %v3515_v37  ;;  %v3859_v3 = vmul.f32 %v13637_v15, %v21170_v12  ;;  %v4136_v19 = vadd.f32 %v16751_v23, %v3997_v32  ;;  %v17101_v33 = vsub.f32 %v16577_v35, %v3178_v16 }
 0x42a   :  { %4547 = vmatmul.mubr.f32.gmra.mrb[164].mxu1 %v4261_v0  ;;  %13646 = vrsqrt.f32 %v3716_v20  ;;  %v17104_v18 = vsub.f32 %v16581_v44, %v3178_v16  ;;  %3619 = vadd.xlane.f32.xlu1 %v3618_v58  ;;  %v4135_v6 = vadd.f32 %v16746_v7, %v3996_v5  ;;  %v3999_v59 = vmul.f32 %v16739_v48, %v3860_v14  ;;  %v21171_v20 = vld [vmem:[#allocation95_spill] sm:$0xff] }
 0x42b   :  { %v13643_v24 = vpop.eup %13642  ;;  %v3717_v36 = vadd.f32 1e-05, %v3653_v53  ;;  %v3998_v56 = vmul.f32 %v16736_v25, %v3859_v3  ;;  %v4264_v15 = vmax.f32 %v4136_v19, 0.0  ;;  %v3433_v1 = vmul.f32 %v17101_v33, %v17101_v33  ;;  %v3518_v29 = vpop.xlane.xlu1 %3517  ;;  %v21172_v19 = vld [vmem:[#allocation21_spill] sm:$0xff] }
 0x42c   :  { %v3434_v35 = vmul.f32 %v17104_v18, %v17104_v18  ;;  %v3621_v0 = vadd.f32 %v3432_v51, %v3431_v39  ;;  %v4263_v44 = vmax.f32 %v4135_v6, 0.0  ;;  %v4138_v9 = vadd.f32 %v16751_v23, %v3999_v59  ;;  %v21173_v51 = vld [vmem:[#allocation24_spill] sm:$0xff] }
 0x42d   :  { %13648 = vrsqrt.f32 %v3717_v36  ;;  %v4137_v32 = vadd.f32 %v16746_v7, %v3998_v56  ;;  %4551 = vmatprep.mubr.f32.mxu1 %v4264_v15  ;;  %v3862_v16 = vmul.f32 %v13639_v30, %v21171_v20  ;;  %v3654_v58 = vmul.f32 0.00390625, %v3518_v29  ;;  %v21174_v56 = vld [vmem:[#allocation85_spill] sm:$0xff] }
 0x42e   :  { %3622 = vadd.xlane.f32.xlu0 %v3621_v0  ;;  %v3861_v37 = vmul.f32 %v13639_v30, %v21172_v19  ;;  %v3624_v5 = vadd.f32 %v3434_v35, %v3433_v1  ;;  %v13645_v2 = vpop.eup %13644  ;;  %4552 = vmatmul.mubr.f32.gmra.mrb[166].mxu1 %v4263_v44  ;;  %v4266_v14 = vmax.f32 %v4138_v9, 0.0  ;;  %v3864_v39 = vmul.f32 %v13641_v13, %v16513_v26  ;;  %v21175_v0 = vld [vmem:[#allocation83_spill] sm:$0xff] }
 0x42f   :  { %v4265_v53 = vmax.f32 %v4137_v32, 0.0  ;;  %v3863_v12 = vmul.f32 %v13641_v13, %v21173_v51  ;;  %v4001_v3 = vmul.f32 %v16739_v48, %v3862_v16  ;;  %v3718_v6 = vadd.f32 1e-05, %v3654_v58  ;;  %v3521_v36 = vpop.xlane.xlu1 %3520 }
 0x430   :  { %v4000_v59 = vmul.f32 %v16736_v25, %v3861_v37  ;;  %3625 = vadd.xlane.f32.xlu1 %v3624_v5  ;;  %v3866_v15 = vmul.f32 %v13643_v24, %v21174_v56  ;;  %4556 = vmatprep.mubr.f32.mxu1 %v4266_v14  ;;  %v4003_v30 = vmul.f32 %v16739_v48, %v3864_v39  ;;  %v3655_v1 = vmul.f32 0.00390625, %v3521_v36 }
 0x431   :  { %v4002_v35 = vmul.f32 %v16736_v25, %v3863_v12  ;;  %v3865_v29 = vmul.f32 %v13643_v24, %v21175_v0  ;;  %v4140_v26 = vadd.f32 %v16751_v23, %v4001_v3  ;;  %13650 = vrsqrt.f32 %v3718_v6  ;;  %v21176_v3 = vld [vmem:[#allocation25_spill] sm:$0xff] }
 0x432   :  { %v4139_v13 = vadd.f32 %v16746_v7, %v4000_v59  ;;  %v4005_v44 = vmul.f32 %v16739_v48, %v3866_v15  ;;  %4557 = vmatmul.mubr.f32.gmra.mrb[168].mxu1 %v4265_v53  ;;  %v4142_v9 = vadd.f32 %v16751_v23, %v4003_v30  ;;  %v3719_v32 = vadd.f32 1e-05, %v3655_v1  ;;  %v21177_v30 = vld [vmem:[#allocation99_spill] sm:$0xff] }
 0x433   :  { %v4141_v20 = vadd.f32 %v16746_v7, %v4002_v35  ;;  %v4004_v16 = vmul.f32 %v16736_v25, %v3865_v29  ;;  %v4268_v19 = vmax.f32 %v4140_v26, 0.0  ;;  %v3524_v5 = vpop.xlane.xlu1 %3523  ;;  %v3868_v14 = vmul.f32 %v13645_v2, %v16553_v22  ;;  %v21178_v26 = vld [vmem:[#allocation87_spill] sm:$0xff] }
 0x434   :  { %v13647_v58 = vpop.eup %13646  ;;  %v4267_v37 = vmax.f32 %v4139_v13, 0.0  ;;  %v4144_v24 = vadd.f32 %v16751_v23, %v4005_v44  ;;  %v4270_v39 = vmax.f32 %v4142_v9, 0.0  ;;  %13652 = vrsqrt.f32 %v3719_v32 }
 0x435   :  { %v3656_v51 = vmul.f32 0.00390625, %v3524_v5  ;;  %4561 = vmatprep.mubr.f32.mxu1 %v4268_v19  ;;  %v4143_v53 = vadd.f32 %v16746_v7, %v4004_v16  ;;  %v4007_v12 = vmul.f32 %v16739_v48, %v3868_v14  ;;  %v3867_v6 = vmul.f32 %v13645_v2, %v21176_v3  ;;  %v21179_v16 = vld [vmem:[#allocation100_spill] sm:$0xff] }
 0x436   :  { %4562 = vmatmul.mubr.f32.gmra.mrb[170].mxu1 %v4267_v37  ;;  %v4269_v36 = vmax.f32 %v4141_v20, 0.0  ;;  %v3870_v15 = vmul.f32 %v13647_v58, %v16573_v40  ;;  %v3869_v1 = vmul.f32 %v13647_v58, %v21177_v30  ;;  %v4272_v22 = vmax.f32 %v4144_v24, 0.0 }
 0x437   :  { %v13649_v59 = vpop.eup %13648  ;;  %v3720_v56 = vadd.f32 1e-05, %v3656_v51  ;;  %4566 = vmatprep.mubr.f32.mxu1 %v4270_v39  ;;  %v4146_v35 = vadd.f32 %v16751_v23, %v4007_v12  ;;  %v3527_v0 = vpop.xlane.xlu1 %3526  ;;  %v4006_v29 = vmul.f32 %v16736_v25, %v3867_v6  ;;  %v4271_v9 = vmax.f32 %v4143_v53, 0.0  ;;  %v21180_v51 = vld [vmem:[#allocation29_spill] sm:$0xff]  ;;  %v21181_v12 = vld [vmem:[#allocation88_spill] sm:$0xff] }
 0x438   :  { %v3872_v13 = vmul.f32 %v13649_v59, %v21178_v26  ;;  %v3657_v44 = vmul.f32 0.00390625, %v3527_v0  ;;  %v4009_v2 = vmul.f32 %v16739_v48, %v3870_v15  ;;  %v4008_v20 = vmul.f32 %v16736_v25, %v3869_v1  ;;  %v21182_v0 = vld [vmem:[#allocation19_spill] sm:$0xff] }
 0x439   :  { %13654 = vrsqrt.f32 %v3720_v56  ;;  %v4145_v40 = vadd.f32 %v16746_v7, %v4006_v29  ;;  %v3871_v58 = vmul.f32 %v13649_v59, %v21179_v16  ;;  %v4274_v37 = vmax.f32 %v4146_v35, 0.0 }
 0x43a   :  { %4567 = vmatmul.mubr.f32.gmra.mrb[172].mxu1 %v4269_v36  ;;  %v3721_v32 = vadd.f32 1e-05, %v3657_v44  ;;  %v4148_v24 = vadd.f32 %v16751_v23, %v4009_v2  ;;  %v4011_v14 = vmul.f32 %v16739_v48, %v3872_v13  ;;  %v4147_v59 = vadd.f32 %v16746_v7, %v4008_v20 }
 0x43b   :  { %v13651_v19 = vpop.eup %13650  ;;  %4571 = vmatprep.mubr.f32.mxu1 %v4272_v22  ;;  %v3530_v5 = vpop.xlane.xlu1 %3529  ;;  %v4273_v36 = vmax.f32 %v4145_v40, 0.0  ;;  %v4010_v15 = vmul.f32 %v16736_v25, %v3871_v58  ;;  %v21183_v40 = vld [vmem:[#allocation90_spill] sm:$0xff] }
 0x43c   :  { %13656 = vrsqrt.f32 %v3721_v32  ;;  %v3658_v39 = vmul.f32 0.00390625, %v3530_v5  ;;  %v3874_v53 = vmul.f32 %v13651_v19, %v21180_v51  ;;  %v3873_v3 = vmul.f32 %v13651_v19, %v21181_v12 }
 0x43d   :  { %v4276_v30 = vmax.f32 %v4148_v24, 0.0  ;;  %v4150_v1 = vadd.f32 %v16751_v23, %v4011_v14  ;;  %v4275_v2 = vmax.f32 %v4147_v59, 0.0  ;;  %v4149_v32 = vadd.f32 %v16746_v7, %v4010_v15 }
 0x43e   :  { %v13653_v6 = vpop.eup %13652  ;;  %4572 = vmatmul.mubr.f32.gmra.mrb[174].mxu1 %v4271_v9  ;;  %v3722_v56 = vadd.f32 1e-05, %v3658_v39  ;;  %v4013_v35 = vmul.f32 %v16739_v48, %v3874_v53  ;;  %v4012_v13 = vmul.f32 %v16736_v25, %v3873_v3  ;;  %v21184_v3 = vld [vmem:[#allocation93_spill] sm:$0xff] }
 0x43f   :  { %4576 = vmatprep.mubr.f32.mxu1 %v4274_v37  ;;  %v3533_v22 = vpop.xlane.xlu1 %3532  ;;  %v3876_v29 = vmul.f32 %v13653_v6, %v21182_v0  ;;  %v3875_v20 = vmul.f32 %v13653_v6, %v21183_v40  ;;  %v4278_v16 = vmax.f32 %v4150_v1, 0.0  ;;  %v4277_v51 = vmax.f32 %v4149_v32, 0.0 }
 0x440   :  { %13658 = vrsqrt.f32 %v3722_v56  ;;  %v3659_v26 = vmul.f32 0.00390625, %v3533_v22  ;;  %v4152_v58 = vadd.f32 %v16751_v23, %v4013_v35  ;;  %v4151_v14 = vadd.f32 %v16746_v7, %v4012_v13 }
 0x441   :  { %v4015_v37 = vmul.f32 %v16739_v48, %v3876_v29  ;;  %v4014_v12 = vmul.f32 %v16736_v25, %v3875_v20 }
 0x442   :  { %4577 = vmatmul.mubr.f32.gmra.mrb[176].mxu1 %v4273_v36  ;;  %v3723_v9 = vadd.f32 1e-05, %v3659_v26  ;;  %v4280_v36 = vmax.f32 %v4152_v58, 0.0  ;;  %v4279_v1 = vmax.f32 %v4151_v14, 0.0  ;;  %v21185_v26 = vld [vmem:[#allocation94_spill] sm:$0xff] }
 0x443   :  { %v13655_v44 = vpop.eup %13654  ;;  %4581 = vmatprep.mubr.f32.mxu1 %v4276_v30  ;;  %v3536_v19 = vpop.xlane.xlu1 %3535  ;;  %v4154_v56 = vadd.f32 %v16751_v23, %v4015_v37  ;;  %v4153_v0 = vadd.f32 %v16746_v7, %v4014_v12 }
 0x444   :  { %v3878_v24 = vmul.f32 %v13655_v44, %v16623_v61  ;;  %13660 = vrsqrt.f32 %v3723_v9  ;;  %v3660_v5 = vmul.f32 0.00390625, %v3536_v19  ;;  %v3877_v6 = vmul.f32 %v13655_v44, %v21184_v3 }
 0x445   :  { %v4282_v44 = vmax.f32 %v4154_v56, 0.0  ;;  %v4281_v58 = vmax.f32 %v4153_v0, 0.0 }
 0x446   :  { %v13657_v39 = vpop.eup %13656  ;;  %4582 = vmatmul.mubr.f32.gmra.mrb[178].mxu1 %v4275_v2  ;;  %v3724_v53 = vadd.f32 1e-05, %v3660_v5  ;;  %v4017_v15 = vmul.f32 %v16739_v48, %v3878_v24  ;;  %v4016_v29 = vmul.f32 %v16736_v25, %v3877_v6 }
 0x447   :  { %4586 = vmatprep.mubr.f32.mxu1 %v4278_v16  ;;  %v3539_v59 = vpop.xlane.xlu1 %3538  ;;  %v3880_v61 = vmul.f32 %v13657_v39, %v16633_v42  ;;  %v3879_v13 = vmul.f32 %v13657_v39, %v21185_v26 }
 0x448   :  { %13662 = vrsqrt.f32 %v3724_v53  ;;  %v3661_v30 = vmul.f32 0.00390625, %v3539_v59  ;;  %v4156_v2 = vadd.f32 %v16751_v23, %v4017_v15  ;;  %v4155_v37 = vadd.f32 %v16746_v7, %v4016_v29  ;;  %v21187_v59 = vld [vmem:[#allocation22_spill] sm:$0xff] }
 0x449   :  { %v4019_v32 = vmul.f32 %v16739_v48, %v3880_v61  ;;  %v4018_v24 = vmul.f32 %v16736_v25, %v3879_v13 }
 0x44a   :  { %v13659_v22 = vpop.eup %13658  ;;  %4587 = vmatmul.mubr.f32.gmra.mrb[180].mxu1 %v4277_v51  ;;  %v3725_v35 = vadd.f32 1e-05, %v3661_v30  ;;  %v4284_v5 = vmax.f32 %v4156_v2, 0.0  ;;  %v4283_v6 = vmax.f32 %v4155_v37, 0.0 }
 0x44b   :  { %4591 = vmatprep.mubr.f32.mxu1 %v4280_v36  ;;  %v3542_v9 = vpop.xlane.xlu1 %3541  ;;  %v3882_v42 = vmul.f32 %v13659_v22, %v16643_v8  ;;  %v3881_v20 = vmul.f32 %v13659_v22, %v16640_v54  ;;  %v4158_v14 = vadd.f32 %v16751_v23, %v4019_v32  ;;  %v21186_v8 = vld [vmem:[#allocation23_spill] sm:$0xff]  ;;  %v4157_v56 = vadd.f32 %v16746_v7, %v4018_v24  ;;  %v21189_v32 = vld [vmem:[#allocation97_spill] sm:$0xff] }
 0x44c   :  { %13664 = vrsqrt.f32 %v3725_v35  ;;  %v3662_v40 = vmul.f32 0.00390625, %v3542_v9  ;;  %v21188_v35 = vld [vmem:[#allocation98_spill] sm:$0xff] }
 0x44d   :  { %v4021_v51 = vmul.f32 %v16739_v48, %v3882_v42  ;;  %v4020_v54 = vmul.f32 %v16736_v25, %v3881_v20  ;;  %v4286_v61 = vmax.f32 %v4158_v14, 0.0 }
 0x44e   :  { %v13661_v16 = vpop.eup %13660  ;;  %4592 = vmatmul.mubr.f32.gmra.mrb[182].mxu1 %v4279_v1  ;;  %v3726_v19 = vadd.f32 1e-05, %v3662_v40 }
 0x44f   :  { %4596 = vmatprep.mubr.f32.mxu1 %v4282_v44  ;;  %v3545_v39 = vpop.xlane.xlu1 %3544  ;;  %v3884_v53 = vmul.f32 %v13661_v16, %v21186_v8  ;;  %v3883_v15 = vmul.f32 %v13661_v16, %v21187_v59  ;;  %v4160_v30 = vadd.f32 %v16751_v23, %v4021_v51  ;;  %v4159_v26 = vadd.f32 %v16746_v7, %v4020_v54 }
 0x450   :  { %13666 = vrsqrt.f32 %v3726_v19  ;;  %v3663_v12 = vmul.f32 0.00390625, %v3545_v39  ;;  %v4285_v44 = vmax.f32 %v4157_v56, 0.0  ;;  %v21190_v19 = vld [vmem:[#allocation27_spill] sm:$0xff]  ;;  %v21192_v56 = vld [vmem:[#allocation102_spill] sm:$0xff] }
 0x451   :  { %v4023_v22 = vmul.f32 %v16739_v48, %v3884_v53  ;;  %v4022_v9 = vmul.f32 %v16736_v25, %v3883_v15  ;;  %v4288_v40 = vmax.f32 %v4160_v30, 0.0  ;;  %v21191_v53 = vld [vmem:[#allocation26_spill] sm:$0xff] }
 0x452   :  { %v13663_v3 = vpop.eup %13662  ;;  %4597 = vmatmul.mubr.f32.gmra.mrb[184].mxu1 %v4281_v58  ;;  %v3727_v36 = vadd.f32 1e-05, %v3663_v12 }
 0x453   :  { %4601 = vmatprep.mubr.f32.mxu1 %v4284_v5  ;;  %v3548_v1 = vpop.xlane.xlu1 %3547  ;;  %v3886_v0 = vmul.f32 %v13663_v3, %v21188_v35  ;;  %v3885_v42 = vmul.f32 %v13663_v3, %v21189_v32  ;;  %v4162_v20 = vadd.f32 %v16751_v23, %v4023_v22  ;;  %v4287_v5 = vmax.f32 %v4159_v26, 0.0 }
 0x454   :  { %13668 = vrsqrt.f32 %v3727_v36  ;;  %v3664_v29 = vmul.f32 0.00390625, %v3548_v1  ;;  %v4161_v51 = vadd.f32 %v16746_v7, %v4022_v9  ;;  %v21194_v9 = vld [vmem:[#allocation33_spill] sm:$0xff] }
 0x455   :  { %v4025_v58 = vmul.f32 %v16739_v48, %v3886_v0  ;;  %v4024_v8 = vmul.f32 %v16736_v25, %v3885_v42  ;;  %v4290_v54 = vmax.f32 %v4162_v20, 0.0 }
 0x456   :  { %v13665_v13 = vpop.eup %13664  ;;  %4602 = vmatmul.mubr.f32.gmra.mrb[186].mxu1 %v4283_v6  ;;  %v3728_v2 = vadd.f32 1e-05, %v3664_v29  ;;  %v4289_v22 = vmax.f32 %v4161_v51, 0.0 }
 0x457   :  { %4606 = vmatprep.mubr.f32.mxu1 %v4286_v61  ;;  %v3551_v16 = vpop.xlane.xlu1 %3550  ;;  %v3888_v37 = vmul.f32 %v13665_v13, %v21190_v19  ;;  %v3887_v12 = vmul.f32 %v13665_v13, %v21191_v53  ;;  %v4164_v3 = vadd.f32 %v16751_v23, %v4025_v58  ;;  %v21193_v61 = vld [vmem:[#allocation101_spill] sm:$0xff]  ;;  %v4163_v0 = vadd.f32 %v16746_v7, %v4024_v8  ;;  %v21196_v8 = vld [vmem:[#allocation35_spill] sm:$0xff] }
 0x458   :  { %13670 = vrsqrt.f32 %v3728_v2  ;;  %v3665_v24 = vmul.f32 0.00390625, %v3551_v16 }
 0x459   :  { %v4027_v36 = vmul.f32 %v16739_v48, %v3888_v37  ;;  %v4026_v29 = vmul.f32 %v16736_v25, %v3887_v12  ;;  %v4292_v26 = vmax.f32 %v4164_v3, 0.0  ;;  %v4291_v16 = vmax.f32 %v4163_v0, 0.0  ;;  %v21195_v37 = vld [vmem:[#allocation31_spill] sm:$0xff] }
 0x45a   :  { %v13667_v14 = vpop.eup %13666  ;;  %4607 = vmatmul.mubr.f32.gmra.mrb[188].mxu1 %v4285_v44  ;;  %v3729_v39 = vadd.f32 1e-05, %v3665_v24 }
 0x45b   :  { %4611 = vmatprep.mubr.f32.mxu1 %v4288_v40  ;;  %v3554_v6 = vpop.xlane.xlu1 %3553  ;;  %v3890_v59 = vmul.f32 %v13667_v14, %v21192_v56  ;;  %v3889_v30 = vmul.f32 %v13667_v14, %v21193_v61  ;;  %v4166_v13 = vadd.f32 %v16751_v23, %v4027_v36  ;;  %v4165_v19 = vadd.f32 %v16746_v7, %v4026_v29 }
 0x45c   :  { %13672 = vrsqrt.f32 %v3729_v39  ;;  %v3666_v15 = vmul.f32 0.00390625, %v3554_v6 }
 0x45d   :  { %v4029_v2 = vmul.f32 %v16739_v48, %v3890_v59  ;;  %v4028_v40 = vmul.f32 %v16736_v25, %v3889_v30  ;;  %v4293_v6 = vmax.f32 %v4165_v19, 0.0  ;;  %v21197_v59 = vld [vmem:[#allocation34_spill] sm:$0xff]  ;;  %v21200_v19 = vld [vmem:[#allocation43_spill] sm:$0xff] }
 0x45e   :  { %v13669_v1 = vpop.eup %13668  ;;  %4612 = vmatmul.mubr.f32.gmra.mrb[190].mxu1 %v4287_v5  ;;  %v3730_v35 = vadd.f32 1e-05, %v3666_v15  ;;  %v4294_v5 = vmax.f32 %v4166_v13, 0.0  ;;  %v21199_v13 = vld [vmem:[#allocation36_spill] sm:$0xff] }
 0x45f   :  { %4616 = vmatprep.mubr.f32.mxu1 %v4290_v54  ;;  %v3557_v44 = vpop.xlane.xlu1 %3556  ;;  %v3892_v32 = vmul.f32 %v13669_v1, %v21194_v9  ;;  %v3891_v24 = vmul.f32 %v13669_v1, %v21195_v37  ;;  %v4168_v14 = vadd.f32 %v16751_v23, %v4029_v2  ;;  %v4167_v54 = vadd.f32 %v16746_v7, %v4028_v40 }
 0x460   :  { %13674 = vrsqrt.f32 %v3730_v35  ;;  %v3667_v42 = vmul.f32 0.00390625, %v3557_v44  ;;  %v21198_v35 = vld [vmem:[#allocation37_spill] sm:$0xff] }
 0x461   :  { %v4031_v51 = vmul.f32 %v16739_v48, %v3892_v32  ;;  %v4030_v56 = vmul.f32 %v16736_v25, %v3891_v24  ;;  %v4296_v61 = vmax.f32 %v4168_v14, 0.0  ;;  %v21201_v14 = vld [vmem:[#allocation38_spill] sm:$0xff] }
 0x462   :  { %v13671_v20 = vpop.eup %13670  ;;  %4617 = vmatmul.mubr.f32.gmra.mrb[192].mxu1 %v4289_v22  ;;  %v3731_v58 = vadd.f32 1e-05, %v3667_v42 }
 0x463   :  { %4621 = vmatprep.mubr.f32.mxu1 %v4292_v26  ;;  %v3560_v39 = vpop.xlane.xlu1 %3559  ;;  %v3894_v53 = vmul.f32 %v13671_v20, %v21196_v8  ;;  %v3893_v15 = vmul.f32 %v13671_v20, %v21197_v59  ;;  %v4170_v30 = vadd.f32 %v16751_v23, %v4031_v51  ;;  %v4295_v26 = vmax.f32 %v4167_v54, 0.0  ;;  %v21202_v59 = vld [vmem:[#allocation105_spill] sm:$0xff] }
 0x464   :  { %13676 = vrsqrt.f32 %v3731_v58  ;;  %v3668_v12 = vmul.f32 0.00390625, %v3560_v39  ;;  %v4169_v32 = vadd.f32 %v16746_v7, %v4030_v56 }
 0x465   :  { %v4033_v22 = vmul.f32 %v16739_v48, %v3894_v53  ;;  %v4032_v42 = vmul.f32 %v16736_v25, %v3893_v15  ;;  %v4298_v20 = vmax.f32 %v4170_v30, 0.0 }
 0x466   :  { %v13673_v3 = vpop.eup %13672  ;;  %4622 = vmatmul.mubr.f32.gmra.mrb[194].mxu1 %v4291_v16  ;;  %v3732_v36 = vadd.f32 1e-05, %v3668_v12  ;;  %v4297_v8 = vmax.f32 %v4169_v32, 0.0 }
 0x467   :  { %4626 = vmatprep.mubr.f32.mxu1 %v4294_v5  ;;  %v3563_v1 = vpop.xlane.xlu1 %3562  ;;  %v3896_v0 = vmul.f32 %v13673_v3, %v21198_v35  ;;  %v3895_v44 = vmul.f32 %v13673_v3, %v21199_v13  ;;  %v4172_v16 = vadd.f32 %v16751_v23, %v4033_v22  ;;  %v4171_v12 = vadd.f32 %v16746_v7, %v4032_v42  ;;  %v21203_v13 = vld [vmem:[#allocation104_spill] sm:$0xff] }
 0x468   :  { %13678 = vrsqrt.f32 %v3732_v36  ;;  %v3669_v29 = vmul.f32 0.00390625, %v3563_v1 }
 0x469   :  { %v4035_v40 = vmul.f32 %v16739_v48, %v3896_v0  ;;  %v4034_v5 = vmul.f32 %v16736_v25, %v3895_v44  ;;  %v4299_v35 = vmax.f32 %v4171_v12, 0.0 }
 0x46a   :  { %v13675_v2 = vpop.eup %13674  ;;  %4627 = vmatmul.mubr.f32.gmra.mrb[196].mxu1 %v4293_v6  ;;  %v3733_v9 = vadd.f32 1e-05, %v3669_v29  ;;  %v4300_v6 = vmax.f32 %v4172_v16, 0.0 }
 0x46b   :  { %4631 = vmatprep.mubr.f32.mxu1 %v4296_v61  ;;  %v3566_v58 = vpop.xlane.xlu1 %3565  ;;  %v3898_v37 = vmul.f32 %v13675_v2, %v21200_v19  ;;  %v3897_v39 = vmul.f32 %v13675_v2, %v21201_v14  ;;  %v4174_v54 = vadd.f32 %v16751_v23, %v4035_v40  ;;  %v4173_v30 = vadd.f32 %v16746_v7, %v4034_v5 }
 0x46c   :  { %13680 = vrsqrt.f32 %v3733_v9  ;;  %v3670_v24 = vmul.f32 0.00390625, %v3566_v58 }
 0x46d   :  { %v4037_v56 = vmul.f32 %v16739_v48, %v3898_v37  ;;  %v4036_v1 = vmul.f32 %v16736_v25, %v3897_v39  ;;  %v4302_v0 = vmax.f32 %v4174_v54, 0.0  ;;  %v4301_v42 = vmax.f32 %v4173_v30, 0.0 }
 0x46e   :  { %v13677_v51 = vpop.eup %13676  ;;  %4632 = vmatmul.mubr.f32.gmra.mrb[198].mxu1 %v4295_v26  ;;  %v3734_v53 = vadd.f32 1e-05, %v3670_v24  ;;  %v3569_v3 = vpop.xlane.xlu0 %3568 }
 0x46f   :  { %4636 = vmatprep.mubr.f32.mxu1 %v4298_v20  ;;  %v3671_v36 = vmul.f32 0.00390625, %v3569_v3  ;;  %v3900_v15 = vmul.f32 %v13677_v51, %v21202_v59  ;;  %v3899_v44 = vmul.f32 %v13677_v51, %v21203_v13  ;;  %v4176_v2 = vadd.f32 %v16751_v23, %v4037_v56 }
 0x470   :  { %13682 = vrsqrt.f32 %v3734_v53  ;;  %v4175_v20 = vadd.f32 %v16746_v7, %v4036_v1 }
 0x471   :  { %v3735_v61 = vadd.f32 1e-05, %v3671_v36  ;;  %v4039_v26 = vmul.f32 %v16739_v48, %v3900_v15  ;;  %v4038_v37 = vmul.f32 %v16736_v25, %v3899_v44  ;;  %v4304_v14 = vmax.f32 %v4176_v2, 0.0 }
 0x472   :  { %v13679_v22 = vpop.eup %13678  ;;  %4637 = vmatmul.mubr.f32.gmra.mrb[200].mxu1 %v4297_v8  ;;  %v3572_v29 = vpop.xlane.xlu1 %3571  ;;  %v4303_v51 = vmax.f32 %v4175_v20, 0.0  ;;  %v21204_v20 = vld [vmem:[#allocation106_spill] sm:$0xff] }
 0x473   :  { %4641 = vmatprep.mubr.f32.mxu1 %v4300_v6  ;;  %13684 = vrsqrt.f32 %v3735_v61  ;;  %v3672_v9 = vmul.f32 0.00390625, %v3572_v29  ;;  %v3902_v32 = vmul.f32 %v13679_v22, %v16757_v52  ;;  %v4178_v58 = vadd.f32 %v16751_v23, %v4039_v26 }
 0x474   :  { %v3901_v5 = vmul.f32 %v13679_v22, %v16754_v11  ;;  %v4177_v3 = vadd.f32 %v16746_v7, %v4038_v37 }
 0x475   :  { %v3736_v40 = vadd.f32 1e-05, %v3672_v9  ;;  %v4041_v24 = vmul.f32 %v16739_v48, %v3902_v32  ;;  %v4306_v54 = vmax.f32 %v4178_v58, 0.0 }
 0x476   :  { %v13681_v16 = vpop.eup %13680  ;;  %4642 = vmatmul.mubr.f32.gmra.mrb[202].mxu1 %v4299_v35  ;;  %v3575_v19 = vpop.xlane.xlu0 %3574  ;;  %v4040_v11 = vmul.f32 %v16736_v25, %v3901_v5  ;;  %v4305_v1 = vmax.f32 %v4177_v3, 0.0 }
 0x477   :  { %4646 = vmatprep.mubr.f32.mxu1 %v4302_v0  ;;  %13686 = vrsqrt.f32 %v3736_v40  ;;  %v3673_v39 = vmul.f32 0.00390625, %v3575_v19  ;;  %v3904_v52 = vmul.f32 %v13681_v16, %v16771_v38  ;;  %v3903_v53 = vmul.f32 %v13681_v16, %v16768_v41 }
 0x478   :  { %v4180_v6 = vadd.f32 %v16751_v23, %v4041_v24  ;;  %v4179_v35 = vadd.f32 %v16746_v7, %v4040_v11 }
 0x479   :  { %v3737_v8 = vadd.f32 1e-05, %v3673_v39  ;;  %v4043_v59 = vmul.f32 %v16739_v48, %v3904_v52  ;;  %v4042_v41 = vmul.f32 %v16736_v25, %v3903_v53 }
 0x47a   :  { %v13683_v12 = vpop.eup %13682  ;;  %4647 = vmatmul.mubr.f32.gmra.mrb[204].mxu1 %v4301_v42  ;;  %v3578_v36 = vpop.xlane.xlu1 %3577  ;;  %v4308_v22 = vmax.f32 %v4180_v6, 0.0  ;;  %v4307_v32 = vmax.f32 %v4179_v35, 0.0 }
 0x47b   :  { %4651 = vmatprep.mubr.f32.mxu1 %v4304_v14  ;;  %13688 = vrsqrt.f32 %v3737_v8  ;;  %v3674_v56 = vmul.f32 0.00390625, %v3578_v36  ;;  %v3906_v38 = vmul.f32 %v13683_v12, %v16784_v50  ;;  %v3905_v30 = vmul.f32 %v13683_v12, %v16781_v31 }
 0x47c   :  { %v4182_v26 = vadd.f32 %v16751_v23, %v4043_v59  ;;  %v4181_v9 = vadd.f32 %v16746_v7, %v4042_v41 }
 0x47d   :  { %v13685_v15 = vpop.eup %13684  ;;  %v3738_v61 = vadd.f32 1e-05, %v3674_v56  ;;  %v4045_v50 = vmul.f32 %v16739_v48, %v3906_v38  ;;  %v4044_v31 = vmul.f32 %v16736_v25, %v3905_v30 }
 0x47e   :  { %4652 = vmatmul.mubr.f32.gmra.mrb[206].mxu1 %v4303_v51  ;;  %v3581_v0 = vpop.xlane.xlu0 %3580  ;;  %v3908_v29 = vmul.f32 %v13685_v15, %v16800_v28  ;;  %v3907_v28 = vmul.f32 %v13685_v15, %v21204_v20  ;;  %v4310_v58 = vmax.f32 %v4182_v26, 0.0  ;;  %v4309_v5 = vmax.f32 %v4181_v9, 0.0 }
 0x47f   :  { %4656 = vmatprep.mubr.f32.mxu1 %v4306_v54  ;;  %13690 = vrsqrt.f32 %v3738_v61  ;;  %v3675_v13 = vmul.f32 0.00390625, %v3581_v0  ;;  %v4184_v19 = vadd.f32 %v16751_v23, %v4045_v50  ;;  %v4183_v39 = vadd.f32 %v16746_v7, %v4044_v31 }
 0x480   :  { %v4047_v40 = vmul.f32 %v16739_v48, %v3908_v29  ;;  %v4046_v8 = vmul.f32 %v16736_v25, %v3907_v28 }
 0x481   :  { %v13687_v44 = vpop.eup %13686  ;;  %v3739_v2 = vadd.f32 1e-05, %v3675_v13  ;;  %v4312_v12 = vmax.f32 %v4184_v19, 0.0  ;;  %v4311_v36 = vmax.f32 %v4183_v39, 0.0 }
 0x482   :  { %4657 = vmatmul.mubr.f32.gmra.mrb[208].mxu1 %v4305_v1  ;;  %v3584_v42 = vpop.xlane.xlu1 %3583  ;;  %v3910_v16 = vmul.f32 %v13687_v44, %v16815_v43  ;;  %v4186_v52 = vadd.f32 %v16751_v23, %v4047_v40  ;;  %v3909_v43 = vmul.f32 %v13687_v44, %v16812_v55  ;;  %v4185_v38 = vadd.f32 %v16746_v7, %v4046_v8 }
 0x483   :  { %4661 = vmatprep.mubr.f32.mxu1 %v4308_v22  ;;  %13692 = vrsqrt.f32 %v3739_v2  ;;  %v3676_v37 = vmul.f32 0.00390625, %v3584_v42 }
 0x484   :  { %v4049_v53 = vmul.f32 %v16739_v48, %v3910_v16  ;;  %v4314_v59 = vmax.f32 %v4186_v52, 0.0  ;;  %v4048_v55 = vmul.f32 %v16736_v25, %v3909_v43  ;;  %v4313_v0 = vmax.f32 %v4185_v38, 0.0 }
 0x485   :  { %v13689_v24 = vpop.eup %13688  ;;  %v3740_v14 = vadd.f32 1e-05, %v3676_v37 }
 0x486   :  { %4662 = vmatmul.mubr.f32.gmra.mrb[210].mxu1 %v4307_v32  ;;  %v3587_v51 = vpop.xlane.xlu0 %3586  ;;  %v3912_v3 = vmul.f32 %v13689_v24, %v16830_v10  ;;  %v3911_v56 = vmul.f32 %v13689_v24, %v16827_v60  ;;  %v4188_v61 = vadd.f32 %v16751_v23, %v4049_v53  ;;  %v4187_v26 = vadd.f32 %v16746_v7, %v4048_v55 }
 0x487   :  { %4666 = vmatprep.mubr.f32.mxu1 %v4310_v58  ;;  %13694 = vrsqrt.f32 %v3740_v14  ;;  %v3677_v54 = vmul.f32 0.00390625, %v3587_v51 }
 0x488   :  { %v4051_v30 = vmul.f32 %v16739_v48, %v3912_v3  ;;  %v4050_v60 = vmul.f32 %v16736_v25, %v3911_v56  ;;  %v4316_v29 = vmax.f32 %v4188_v61, 0.0  ;;  %v4315_v42 = vmax.f32 %v4187_v26, 0.0  ;;  %v21209_v26 = vld [vmem:[#allocation44_spill] sm:$0xff] }
 0x489   :  { %v13691_v6 = vpop.eup %13690  ;;  %v3741_v11 = vadd.f32 1e-05, %v3677_v54 }
 0x48a   :  { %4667 = vmatmul.mubr.f32.gmra.mrb[212].mxu1 %v4309_v5  ;;  %v3914_v10 = vmul.f32 %v13691_v6, %v16846_v63  ;;  %v3913_v35 = vmul.f32 %v13691_v6, %v16843_v27  ;;  %v4190_v44 = vadd.f32 %v16751_v23, %v4051_v30  ;;  %v4189_v32 = vadd.f32 %v16746_v7, %v4050_v60 }
 0x48b   :  { %v3590_v15 = vpop.xlane.xlu1 %3589  ;;  %4671 = vmatprep.mubr.f32.mxu1 %v4312_v12  ;;  %13696 = vrsqrt.f32 %v3741_v11 }
 0x48c   :  { %v3678_v41 = vmul.f32 0.00390625, %v3590_v15  ;;  %v4053_v63 = vmul.f32 %v16739_v48, %v3914_v10  ;;  %v4052_v27 = vmul.f32 %v16736_v25, %v3913_v35  ;;  %v4318_v16 = vmax.f32 %v4190_v44, 0.0 }
 0x48d   :  { %v13693_v1 = vpop.eup %13692  ;;  %v4317_v24 = vmax.f32 %v4189_v32, 0.0 }
 0x48e   :  { %v3742_v22 = vadd.f32 1e-05, %v3678_v41  ;;  %4672 = vmatmul.mubr.f32.gmra.mrb[214].mxu1 %v4311_v36  ;;  %v3593_v13 = vpop.xlane.xlu0 %3592  ;;  %v3916_v50 = vmul.f32 %v13693_v1, %v16861_v46  ;;  %v3915_v46 = vmul.f32 %v13693_v1, %v16858_v34  ;;  %v4192_v19 = vadd.f32 %v16751_v23, %v4053_v63  ;;  %v21206_v36 = vld [vmem:[#allocation39_spill] sm:$0xff] }
 0x48f   :  { %4676 = vmatprep.mubr.f32.mxu1 %v4314_v59  ;;  %v3679_v2 = vmul.f32 0.00390625, %v3593_v13  ;;  %v4191_v14 = vadd.f32 %v16746_v7, %v4052_v27 }
 0x490   :  { %13698 = vrsqrt.f32 %v3742_v22  ;;  %v4055_v20 = vmul.f32 %v16739_v48, %v3916_v50  ;;  %v4054_v51 = vmul.f32 %v16736_v25, %v3915_v46  ;;  %v4320_v53 = vmax.f32 %v4192_v19, 0.0  ;;  %v21211_v19 = vld [vmem:[#allocation46_spill] sm:$0xff] }
 0x491   :  { %v13695_v9 = vpop.eup %13694  ;;  %v3743_v31 = vadd.f32 1e-05, %v3679_v2  ;;  %v4319_v3 = vmax.f32 %v4191_v14, 0.0 }
 0x492   :  { %4677 = vmatmul.mubr.f32.gmra.mrb[216].mxu1 %v4313_v0  ;;  %v3918_v28 = vmul.f32 %v13695_v9, %v16876_v47  ;;  %v4194_v39 = vadd.f32 %v16751_v23, %v4055_v20  ;;  %v21205_v47 = vld [vmem:[#allocation107_spill] sm:$0xff]  ;;  %v4193_v59 = vadd.f32 %v16746_v7, %v4054_v51  ;;  %v21208_v0 = vld [vmem:[#allocation40_spill] sm:$0xff] }
 0x493   :  { %v3596_v40 = vpop.xlane.xlu1 %3595  ;;  %4681 = vmatprep.mubr.f32.mxu1 %v4316_v29  ;;  %13700 = vrsqrt.f32 %v3743_v31  ;;  %v3917_v8 = vmul.f32 %v13695_v9, %v21205_v47 }
 0x494   :  { %v3680_v58 = vmul.f32 0.00390625, %v3596_v40  ;;  %v4057_v34 = vmul.f32 %v16739_v48, %v3918_v28  ;;  %v4322_v56 = vmax.f32 %v4194_v39, 0.0  ;;  %v4321_v60 = vmax.f32 %v4193_v59, 0.0  ;;  %v21210_v40 = vld [vmem:[#allocation41_spill] sm:$0xff] }
 0x495   :  { %v13697_v37 = vpop.eup %13696  ;;  %v4056_v61 = vmul.f32 %v16736_v25, %v3917_v8 }
 0x496   :  { %v3744_v5 = vadd.f32 1e-05, %v3680_v58  ;;  %4682 = vmatmul.mubr.f32.gmra.mrb[218].mxu1 %v4315_v42  ;;  %v3920_v12 = vmul.f32 %v13697_v37, %v16891_v57  ;;  %v3919_v11 = vmul.f32 %v13697_v37, %v21206_v36  ;;  %v4196_v15 = vadd.f32 %v16751_v23, %v4057_v34  ;;  %v21207_v57 = vld [vmem:[#allocation42_spill] sm:$0xff] }
 0x497   :  { %v3599_v52 = vpop.xlane.xlu0 %3598  ;;  %4686 = vmatprep.mubr.f32.mxu1 %v4318_v16  ;;  %v4195_v35 = vadd.f32 %v16746_v7, %v4056_v61 }
 0x498   :  { %13702 = vrsqrt.f32 %v3744_v5  ;;  %v3681_v43 = vmul.f32 0.00390625, %v3599_v52  ;;  %v4059_v41 = vmul.f32 %v16739_v48, %v3920_v12  ;;  %v4058_v22 = vmul.f32 %v16736_v25, %v3919_v11  ;;  %v21212_v5 = vld [vmem:[#allocation53_spill] sm:$0xff] }
 0x499   :  { %v4324_v50 = vmax.f32 %v4196_v15, 0.0  ;;  %v4323_v31 = vmax.f32 %v4195_v35, 0.0 }
 0x49a   :  { %v13699_v54 = vpop.eup %13698  ;;  %v3745_v6 = vadd.f32 1e-05, %v3681_v43  ;;  %4687 = vmatmul.mubr.f32.gmra.mrb[220].mxu1 %v4317_v24  ;;  %v3602_v38 = vpop.xlane.xlu1 %3601  ;;  %v4198_v44 = vadd.f32 %v16751_v23, %v4059_v41  ;;  %v4197_v9 = vadd.f32 %v16746_v7, %v4058_v22 }
 0x49b   :  { %4691 = vmatprep.mubr.f32.mxu1 %v4320_v53  ;;  %v3682_v55 = vmul.f32 0.00390625, %v3602_v38  ;;  %v3922_v30 = vmul.f32 %v13699_v54, %v21207_v57  ;;  %v3921_v29 = vmul.f32 %v13699_v54, %v21208_v0  ;;  %v21213_v54 = vld [vmem:[#allocation48_spill] sm:$0xff]  ;;  %v21215_v57 = vld [vmem:[#allocation50_spill] sm:$0xff] }
 0x49c   :  { %13704 = vrsqrt.f32 %v3745_v6  ;;  %v4326_v46 = vmax.f32 %v4198_v44, 0.0  ;;  %v4325_v51 = vmax.f32 %v4197_v9, 0.0  ;;  %v17310_v6 = vld [vmem:[#allocation8] ss:$0 sm:$0xff] }
 0x49d   :  { %v13701_v10 = vpop.eup %13700  ;;  %v3746_v1 = vadd.f32 1e-05, %v3682_v55  ;;  %v4061_v2 = vmul.f32 %v16739_v48, %v3922_v30  ;;  %v4060_v27 = vmul.f32 %v16736_v25, %v3921_v29 }
 0x49e   :  { %4692 = vmatmul.mubr.f32.gmra.mrb[222].mxu1 %v4319_v3  ;;  %v3924_v13 = vmul.f32 %v13701_v10, %v21209_v26  ;;  %v3923_v20 = vmul.f32 %v13701_v10, %v21210_v40 }
 0x49f   :  { %4696 = vmatprep.mubr.f32.mxu1 %v4322_v56  ;;  %13706 = vrsqrt.f32 %v3746_v1  ;;  %v4200_v58 = vadd.f32 %v16751_v23, %v4061_v2  ;;  %v4199_v47 = vadd.f32 %v16746_v7, %v4060_v27  ;;  %v21214_v56 = vld [vmem:[#allocation45_spill] sm:$0xff] }
 0x4a0   :  { %v4063_v42 = vmul.f32 %v16739_v48, %v3924_v13  ;;  %v4062_v53 = vmul.f32 %v16736_v25, %v3923_v20 }
 0x4a1   :  { %v4328_v43 = vmax.f32 %v4200_v58, 0.0  ;;  %v4327_v38 = vmax.f32 %v4199_v47, 0.0 }
 0x4a2   :  { %v13703_v63 = vpop.eup %13702  ;;  %4697 = vmatmul.mubr.f32.gmra.mrb[224].mxu1 %v4321_v60  ;;  %v3605_v32 = vpop.xlane.xlu0 %3604  ;;  %v4202_v8 = vadd.f32 %v16751_v23, %v4063_v42  ;;  %v4201_v55 = vadd.f32 %v16746_v7, %v4062_v53 }
 0x4a3   :  { %4701 = vmatprep.mubr.f32.mxu1 %v4324_v50  ;;  %v3683_v28 = vmul.f32 0.00390625, %v3605_v32  ;;  %v3926_v37 = vmul.f32 %v13703_v63, %v21211_v19  ;;  %v3925_v14 = vmul.f32 %v13703_v63, %v21212_v5  ;;  %v21216_v50 = vld [vmem:[#allocation47_spill] sm:$0xff]  ;;  %v21217_v5 = vld [vmem:[#allocation52_spill] sm:$0xff] }
 0x4a4   :  { %v3608_v16 = vpop.xlane.xlu1 %3607  ;;  %v4330_v15 = vmax.f32 %v4202_v8, 0.0  ;;  %v4329_v2 = vmax.f32 %v4201_v55, 0.0 }
 0x4a5   :  { %v3684_v24 = vmul.f32 0.00390625, %v3608_v16  ;;  %v3747_v52 = vadd.f32 1e-05, %v3683_v28  ;;  %v4065_v12 = vmul.f32 %v16739_v48, %v3926_v37  ;;  %v4064_v36 = vmul.f32 %v16736_v25, %v3925_v14 }
 0x4a6   :  { %v13705_v39 = vpop.eup %13704  ;;  %4702 = vmatmul.mubr.f32.gmra.mrb[226].mxu1 %v4323_v31 }
 0x4a7   :  { %v3748_v34 = vadd.f32 1e-05, %v3684_v24  ;;  %4706 = vmatprep.mubr.f32.mxu1 %v4326_v46  ;;  %13708 = vrsqrt.f32 %v3747_v52  ;;  %v3928_v3 = vmul.f32 %v13705_v39, %v21213_v54  ;;  %v3927_v59 = vmul.f32 %v13705_v39, %v21214_v56  ;;  %v21218_v39 = vld [vmem:[#allocation49_spill] sm:$0xff] }
 0x4a8   :  { %v4204_v22 = vadd.f32 %v16751_v23, %v4065_v12  ;;  %v4203_v0 = vadd.f32 %v16746_v7, %v4064_v36 }
 0x4a9   :  { %13710 = vrsqrt.f32 %v3748_v34  ;;  %v13707_v11 = vpop.eup %13706  ;;  %v4067_v35 = vmul.f32 %v16739_v48, %v3928_v3  ;;  %v4066_v13 = vmul.f32 %v16736_v25, %v3927_v59  ;;  %v21219_v34 = vld [vmem:[#allocation55_spill] sm:$0xff] }
 0x4aa   :  { %4707 = vmatmul.mubr.f32.gmra.mrb[228].mxu1 %v4325_v51  ;;  %v4458_v41 = vpop.f32.mrb[128].mxu1  ;;  %v3930_v30 = vmul.f32 %v13707_v11, %v21215_v57  ;;  %v3929_v44 = vmul.f32 %v13707_v11, %v21216_v50  ;;  %v4332_v32 = vmax.f32 %v4204_v22, 0.0  ;;  %v4331_v20 = vmax.f32 %v4203_v0, 0.0  ;;  %v21220_v3 = vld [vmem:[#allocation51_spill] sm:$0xff] }
 0x4ab   :  { %v3611_v61 = vpop.xlane.xlu0 %3610  ;;  %4711 = vmatprep.mubr.f32.mxu1 %v4328_v43  ;;  %v17317_v1 = vadd.f32 %v17310_v6, %v4458_v41  ;;  %v4460_v60 = vpop.f32.mrb[129].mxu1  ;;  %v4206_v27 = vadd.f32 %v16751_v23, %v4067_v35  ;;  %v4205_v28 = vadd.f32 %v16746_v7, %v4066_v13 }
 0x4ac   :  { %v3685_v10 = vmul.f32 0.00390625, %v3611_v61  ;;  %v4069_v9 = vmul.f32 %v16739_v48, %v3930_v30  ;;  %v4068_v16 = vmul.f32 %v16736_v25, %v3929_v44 }
 0x4ad   :  { %v4780_v26 = vsel %vm4779_vm0, %v17317_v1, 0.0  ;;  %v4334_v51 = vmax.f32 %v4206_v27, 0.0  ;;  %v4333_v11 = vmax.f32 %v4205_v28, 0.0 }
 0x4ae   :  { %v3749_v29 = vadd.f32 1e-05, %v3685_v10  ;;  %4712 = vmatmul.mubr.f32.gmra.mrb[230].mxu1 %v4327_v38  ;;  %v3614_v63 = vpop.xlane.xlu1 %3613  ;;  %4781 = vadd.xlane.f32.xlu0 %v4780_v26  ;;  %v4208_v24 = vadd.f32 %v16751_v23, %v4069_v9 }
 0x4af   :  { %4716 = vmatprep.mubr.f32.mxu1 %v4330_v15  ;;  %v3686_v31 = vmul.f32 0.00390625, %v3614_v63  ;;  %v4207_v15 = vadd.f32 %v16746_v7, %v4068_v16 }
 0x4b0   :  { %13712 = vrsqrt.f32 %v3749_v29  ;;  %v4336_v38 = vmax.f32 %v4208_v24, 0.0 }
 0x4b1   :  { %v13709_v42 = vpop.eup %13708  ;;  %v3750_v40 = vadd.f32 1e-05, %v3686_v31  ;;  %v4463_v46 = vpop.f32.mrb[130].mxu1  ;;  %v4335_v26 = vmax.f32 %v4207_v15, 0.0 }
 0x4b2   :  { %4717 = vmatmul.mubr.f32.gmra.mrb[232].mxu1 %v4329_v2  ;;  %v17331_v19 = vadd.f32 %v17310_v6, %v4463_v46  ;;  %v4465_v37 = vpop.f32.mrb[131].mxu1  ;;  %v3932_v14 = vmul.f32 %v13709_v42, %v21217_v5  ;;  %v3931_v52 = vmul.f32 %v13709_v42, %v21218_v39 }
 0x4b3   :  { %v13711_v58 = vpop.eup %13710  ;;  %13714 = vrsqrt.f32 %v3750_v40  ;;  %4721 = vmatprep.mubr.f32.mxu1 %v4332_v32 }
 0x4b4   :  { %v3934_v47 = vmul.f32 %v13711_v58, %v21219_v34  ;;  %v3617_v8 = vpop.xlane.xlu0 %3616  ;;  %v4783_v53 = vsel %vm4779_vm0, %v17331_v19, 0.0  ;;  %v4071_v43 = vmul.f32 %v16739_v48, %v3932_v14  ;;  %v4070_v12 = vmul.f32 %v16736_v25, %v3931_v52  ;;  %v21221_v34 = vld [vmem:[#allocation54_spill] sm:$0xff] }
 0x4b5   :  { %v3687_v54 = vmul.f32 0.00390625, %v3617_v8  ;;  %4784 = vadd.xlane.f32.xlu1 %v4783_v53  ;;  %v3933_v36 = vmul.f32 %v13711_v58, %v21220_v3 }
 0x4b6   :  { %4722 = vmatmul.mubr.f32.gmra.mrb[234].mxu1 %v4331_v20  ;;  %v4468_v56 = vpop.f32.mrb[132].mxu1  ;;  %v4073_v61 = vmul.f32 %v16739_v48, %v3934_v47  ;;  %v4210_v10 = vadd.f32 %v16751_v23, %v4071_v43  ;;  %v4209_v22 = vadd.f32 %v16746_v7, %v4070_v12 }
 0x4b7   :  { %v3620_v59 = vpop.xlane.xlu1 %3619  ;;  %4726 = vmatprep.mubr.f32.mxu1 %v4334_v51  ;;  %v3751_v55 = vadd.f32 1e-05, %v3687_v54  ;;  %v17345_v41 = vadd.f32 %v17310_v6, %v4468_v56  ;;  %v4470_v30 = vpop.f32.mrb[133].mxu1  ;;  %v4072_v29 = vmul.f32 %v16736_v25, %v3933_v36 }
 0x4b8   :  { %v3688_v57 = vmul.f32 0.00390625, %v3620_v59  ;;  %v4212_v44 = vadd.f32 %v16751_v23, %v4073_v61  ;;  %v4338_v31 = vmax.f32 %v4210_v10, 0.0  ;;  %v4337_v42 = vmax.f32 %v4209_v22, 0.0  ;;  %v21223_v61 = vld [vmem:[#allocation56_spill] sm:$0xff] }
 0x4b9   :  { %13716 = vrsqrt.f32 %v3751_v55  ;;  %v4786_v0 = vsel %vm4779_vm0, %v17345_v41, 0.0  ;;  %v4211_v24 = vadd.f32 %v16746_v7, %v4072_v29 }
 0x4ba   :  { %v13713_v60 = vpop.eup %13712  ;;  %v3752_v35 = vadd.f32 1e-05, %v3688_v57  ;;  %4727 = vmatmul.mubr.f32.gmra.mrb[236].mxu1 %v4333_v11  ;;  %v4473_v13 = vpop.f32.mrb[134].mxu1  ;;  %4787 = vadd.xlane.f32.xlu0 %v4786_v0  ;;  %v4340_v37 = vmax.f32 %v4212_v44, 0.0 }
 0x4bb   :  { %v3623_v50 = vpop.xlane.xlu0 %3622  ;;  %v3936_v2 = vmul.f32 %v13713_v60, %v17019_v45  ;;  %v3935_v63 = vmul.f32 %v13713_v60, %v17016_v4  ;;  %4731 = vmatprep.mubr.f32.mxu1 %v4336_v38  ;;  %v17356_v9 = vadd.f32 %v17310_v6, %v4473_v13  ;;  %v4475_v27 = vpop.f32.mrb[135].mxu1  ;;  %v21222_v38 = vld [vmem:[#allocation69_spill] sm:$0xff] }
 0x4bc   :  { %13718 = vrsqrt.f32 %v3752_v35  ;;  %v3689_v32 = vmul.f32 0.00390625, %v3623_v50 }
 0x4bd   :  { %v3626_v40 = vpop.xlane.xlu1 %3625  ;;  %v4075_v20 = vmul.f32 %v16739_v48, %v3936_v2  ;;  %v13715_v46 = vpop.eup %13714  ;;  %v4789_v16 = vsel %vm4779_vm0, %v17356_v9, 0.0  ;;  %v4074_v4 = vmul.f32 %v16736_v25, %v3935_v63 }
 0x4be   :  { %v3753_v28 = vadd.f32 1e-05, %v3689_v32  ;;  %v3690_v45 = vmul.f32 0.00390625, %v3626_v40  ;;  %4732 = vmatmul.mubr.f32.gmra.mrb[238].mxu1 %v4335_v26  ;;  %v4478_v58 = vpop.f32.mrb[136].mxu1  ;;  %4790 = vadd.xlane.f32.xlu1 %v4789_v16  ;;  %v3938_v14 = vmul.f32 %v13715_v46, %v17035_v62  ;;  %v3937_v47 = vmul.f32 %v13715_v46, %v21221_v34 }
 0x4bf   :  { %v4214_v5 = vadd.f32 %v16751_v23, %v4075_v20  ;;  %4736 = vmatprep.mubr.f32.mxu1 %v4338_v31  ;;  %v17366_v39 = vadd.f32 %v17310_v6, %v4478_v58  ;;  %v4480_v51 = vpop.f32.mrb[137].mxu1  ;;  %v4213_v43 = vadd.f32 %v16746_v7, %v4074_v4  ;;  %v4339_v62 = vmax.f32 %v4211_v24, 0.0 }
 0x4c0   :  { %13720 = vrsqrt.f32 %v3753_v28  ;;  %v3754_v52 = vadd.f32 1e-05, %v3690_v45  ;;  %v4077_v8 = vmul.f32 %v16739_v48, %v3938_v14  ;;  %v4076_v12 = vmul.f32 %v16736_v25, %v3937_v47  ;;  %v21224_v28 = vld [vmem:[#allocation58_spill] sm:$0xff] }
 0x4c1   :  { %v4792_v53 = vsel %vm4779_vm0, %v17366_v39, 0.0  ;;  %v4342_v36 = vmax.f32 %v4214_v5, 0.0  ;;  %v4341_v30 = vmax.f32 %v4213_v43, 0.0 }
 0x4c2   :  { %13722 = vrsqrt.f32 %v3754_v52  ;;  %4737 = vmatmul.mubr.f32.gmra.mrb[240].mxu1 %v4337_v42  ;;  %4793 = vadd.xlane.f32.xlu0 %v4792_v53  ;;  %v4216_v11 = vadd.f32 %v16751_v23, %v4077_v8  ;;  %v4215_v10 = vadd.f32 %v16746_v7, %v4076_v12 }
 0x4c3   :  { %v13717_v54 = vpop.eup %13716  ;;  %4741 = vmatprep.mubr.f32.mxu1 %v4340_v37  ;;  %v4483_v3 = vpop.f32.mrb[138].mxu1 }
 0x4c4   :  { %v17376_v56 = vadd.f32 %v17310_v6, %v4483_v3  ;;  %v4485_v59 = vpop.f32.mrb[139].mxu1  ;;  %v3940_v15 = vmul.f32 %v13717_v54, %v21222_v38  ;;  %v3939_v55 = vmul.f32 %v13717_v54, %v21223_v61  ;;  %v4344_v26 = vmax.f32 %v4216_v11, 0.0 }
 0x4c5   :  { %v4343_v27 = vmax.f32 %v4215_v10, 0.0 }
 0x4c6   :  { %v13719_v57 = vpop.eup %13718  ;;  %4742 = vmatmul.mubr.f32.gmra.mrb[242].mxu1 %v4339_v62  ;;  %v4795_v22 = vsel %vm4779_vm0, %v17376_v56, 0.0  ;;  %v4079_v60 = vmul.f32 %v16739_v48, %v3940_v15  ;;  %v4078_v35 = vmul.f32 %v16736_v25, %v3939_v55 }
 0x4c7   :  { %v3942_v0 = vmul.f32 %v13719_v57, %v17071_v17  ;;  %4746 = vmatprep.mubr.f32.mxu1 %v4342_v36  ;;  %v4488_v29 = vpop.f32.mrb[140].mxu1  ;;  %4796 = vadd.xlane.f32.xlu1 %v4795_v22  ;;  %v3941_v13 = vmul.f32 %v13719_v57, %v17068_v21 }
 0x4c8   :  { %v17388_v50 = vadd.f32 %v17310_v6, %v4488_v29  ;;  %v4490_v44 = vpop.f32.mrb[141].mxu1  ;;  %v4218_v2 = vadd.f32 %v16751_v23, %v4079_v60  ;;  %v4217_v32 = vadd.f32 %v16746_v7, %v4078_v35 }
 0x4c9   :  { %v4081_v63 = vmul.f32 %v16739_v48, %v3942_v0  ;;  %v4080_v42 = vmul.f32 %v16736_v25, %v3941_v13 }
 0x4ca   :  { %v13721_v31 = vpop.eup %13720  ;;  %4747 = vmatmul.mubr.f32.gmra.mrb[244].mxu1 %v4341_v30  ;;  %v4798_v17 = vsel %vm4779_vm0, %v17388_v50, 0.0  ;;  %v4346_v21 = vmax.f32 %v4218_v2, 0.0  ;;  %v4345_v58 = vmax.f32 %v4217_v32, 0.0 }
 0x4cb   :  { %4751 = vmatprep.mubr.f32.mxu1 %v4344_v26  ;;  %4799 = vadd.xlane.f32.xlu0 %v4798_v17  ;;  %v4220_v20 = vadd.f32 %v16751_v23, %v4081_v63  ;;  %v3944_v46 = vmul.f32 %v13721_v31, %v17085_v49  ;;  %v3943_v16 = vmul.f32 %v13721_v31, %v21224_v28 }
 0x4cc   :  { %v13723_v40 = vpop.eup %13722  ;;  %v4219_v14 = vadd.f32 %v16746_v7, %v4080_v42 }
 0x4cd   :  { %v3946_v45 = vmul.f32 %v13723_v40, %v17104_v18  ;;  %v4493_v4 = vpop.f32.mrb[142].mxu1  ;;  %v4083_v37 = vmul.f32 %v16739_v48, %v3944_v46  ;;  %v4082_v52 = vmul.f32 %v16736_v25, %v3943_v16  ;;  %v3945_v51 = vmul.f32 %v13723_v40, %v17101_v33 }
 0x4ce   :  { %4752 = vmatmul.mubr.f32.gmra.mrb[246].mxu1 %v4343_v27  ;;  %v17402_v24 = vadd.f32 %v17310_v6, %v4493_v4  ;;  %v4495_v5 = vpop.f32.mrb[143].mxu1  ;;  %v4348_v49 = vmax.f32 %v4220_v20, 0.0  ;;  %v4347_v12 = vmax.f32 %v4219_v14, 0.0 }
 0x4cf   :  { %4756 = vmatprep.mubr.f32.mxu1 %v4346_v21  ;;  %v4222_v34 = vadd.f32 %v16751_v23, %v4083_v37  ;;  %v4085_v18 = vmul.f32 %v16739_v48, %v3946_v45  ;;  %v4221_v62 = vadd.f32 %v16746_v7, %v4082_v52  ;;  %v4084_v33 = vmul.f32 %v16736_v25, %v3945_v51 }
 0x4d0   :  { %v4801_v47 = vsel %vm4779_vm0, %v17402_v24, 0.0 }
 0x4d1   :  { %v4498_v8 = vpop.f32.mrb[144].mxu1  ;;  %4802 = vadd.xlane.f32.xlu1 %v4801_v47  ;;  %v4350_v54 = vmax.f32 %v4222_v34, 0.0  ;;  %v4224_v3 = vadd.f32 %v16751_v23, %v4085_v18  ;;  %v4349_v11 = vmax.f32 %v4221_v62, 0.0  ;;  %v4223_v59 = vadd.f32 %v16746_v7, %v4084_v33 }
 0x4d2   :  { %4757 = vmatmul.mubr.f32.gmra.mrb[248].mxu1 %v4345_v58  ;;  %v17412_v53 = vadd.f32 %v17310_v6, %v4498_v8  ;;  %v4500_v43 = vpop.f32.mrb[145].mxu1 }
 0x4d3   :  { %4761 = vmatprep.mubr.f32.mxu1 %v4348_v49  ;;  %v4352_v61 = vmax.f32 %v4224_v3, 0.0  ;;  %v4351_v55 = vmax.f32 %v4223_v59, 0.0 }
 0x4d4   :  { %v4804_v48 = vsel %vm4779_vm0, %v17412_v53, 0.0 }
 0x4d5   :  { %4805 = vadd.xlane.f32.xlu0 %v4804_v48 }
 0x4d6   :  { %4762 = vmatmul.mubr.f32.gmra.mrb[250].mxu1 %v4347_v12  ;;  %v4503_v36 = vpop.f32.mrb[146].mxu1 }
 0x4d7   :  { %v17421_v38 = vadd.f32 %v17310_v6, %v4503_v36  ;;  %4766 = vmatprep.mubr.f32.mxu1 %v4350_v54  ;;  %v4505_v15 = vpop.f32.mrb[147].mxu1 }
 0x4d9   :  { %v4807_v25 = vsel %vm4779_vm0, %v17421_v38, 0.0 }
 0x4da   :  { %4767 = vmatmul.mubr.f32.gmra.mrb[252].mxu1 %v4349_v11  ;;  %v4508_v23 = vpop.f32.mrb[148].mxu1  ;;  %4808 = vadd.xlane.f32.xlu1 %v4807_v25 }
 0x4db   :  { %v17426_v57 = vadd.f32 %v17310_v6, %v4508_v23  ;;  %4771 = vmatprep.mubr.f32.mxu1 %v4352_v61  ;;  %v4510_v30 = vpop.f32.mrb[149].mxu1 }
 0x4dd   :  { %v4810_v7 = vsel %vm4779_vm0, %v17426_v57, 0.0 }
 0x4de   :  { %4772 = vmatmul.mubr.f32.gmra.mrb[254].mxu1 %v4351_v55  ;;  %v4513_v10 = vpop.f32.mrb[150].mxu1  ;;  %4811 = vadd.xlane.f32.xlu0 %v4810_v7 }
 0x4df   :  { %v17431_v22 = vadd.f32 %v17310_v6, %v4513_v10  ;;  %v4515_v60 = vpop.f32.mrb[151].mxu1 }
 0x4e1   :  { %v4813_v35 = vsel %vm4779_vm0, %v17431_v22, 0.0 }
 0x4e2   :  { %v4518_v0 = vpop.f32.mrb[152].mxu1  ;;  %4814 = vadd.xlane.f32.xlu1 %v4813_v35 }
 0x4e3   :  { %v17436_v29 = vadd.f32 %v17310_v6, %v4518_v0  ;;  %v4520_v26 = vpop.f32.mrb[153].mxu1 }
 0x4e5   :  { %v4816_v13 = vsel %vm4779_vm0, %v17436_v29, 0.0 }
 0x4e6   :  { %4817 = vadd.xlane.f32.xlu0 %v4816_v13 }
 0x4e7   :  { %v4523_v44 = vpop.f32.mrb[154].mxu1 }
 0x4e8   :  { %v17441_v2 = vadd.f32 %v17310_v6, %v4523_v44  ;;  %v4525_v63 = vpop.f32.mrb[155].mxu1 }
 0x4ea   :  { %v4819_v31 = vsel %vm4779_vm0, %v17441_v2, 0.0 }
 0x4eb   :  { %v4528_v32 = vpop.f32.mrb[156].mxu1  ;;  %4820 = vadd.xlane.f32.xlu1 %v4819_v31 }
 0x4ec   :  { %v17446_v27 = vadd.f32 %v17310_v6, %v4528_v32  ;;  %v4530_v17 = vpop.f32.mrb[157].mxu1 }
 0x4ee   :  { %v4822_v42 = vsel %vm4779_vm0, %v17446_v27, 0.0 }
 0x4ef   :  { %4823 = vadd.xlane.f32.xlu0 %v4822_v42 }
 0x4f0   :  { %v4533_v40 = vpop.f32.mrb[158].mxu1 }
 0x4f1   :  { %v17451_v21 = vadd.f32 %v17310_v6, %v4533_v40  ;;  %v4535_v20 = vpop.f32.mrb[159].mxu1 }
 0x4f3   :  { %v4825_v46 = vsel %vm4779_vm0, %v17451_v21, 0.0 }
 0x4f4   :  { %v4538_v28 = vpop.f32.mrb[160].mxu1  ;;  %4826 = vadd.xlane.f32.xlu1 %v4825_v46 }
 0x4f5   :  { %v17456_v16 = vadd.f32 %v17310_v6, %v4538_v28  ;;  %v4540_v45 = vpop.f32.mrb[161].mxu1 }
 0x4f7   :  { %v4828_v4 = vsel %vm4779_vm0, %v17456_v16, 0.0 }
 0x4f8   :  { %4829 = vadd.xlane.f32.xlu0 %v4828_v4 }
 0x4f9   :  { %v4543_v58 = vpop.f32.mrb[162].mxu1 }
 0x4fa   :  { %v17461_v37 = vadd.f32 %v17310_v6, %v4543_v58  ;;  %v4545_v5 = vpop.f32.mrb[163].mxu1 }
 0x4fc   :  { %v4831_v14 = vsel %vm4779_vm0, %v17461_v37, 0.0 }
 0x4fd   :  { %v4548_v52 = vpop.f32.mrb[164].mxu1  ;;  %4832 = vadd.xlane.f32.xlu1 %v4831_v14 }
 0x4fe   :  { %v17466_v51 = vadd.f32 %v17310_v6, %v4548_v52  ;;  %v4550_v49 = vpop.f32.mrb[165].mxu1 }
 0x500   :  { %v4834_v34 = vsel %vm4779_vm0, %v17466_v51, 0.0 }
 0x501   :  { %4835 = vadd.xlane.f32.xlu0 %v4834_v34  ;;  %v4553_v18 = vpop.f32.mrb[166].mxu1 }
 0x502   :  { %v17471_v47 = vadd.f32 %v17310_v6, %v4553_v18  ;;  %v4555_v8 = vpop.f32.mrb[167].mxu1 }
 0x504   :  { %v4837_v43 = vsel %vm4779_vm0, %v17471_v47, 0.0 }
 0x505   :  { %v4558_v12 = vpop.f32.mrb[168].mxu1  ;;  %4838 = vadd.xlane.f32.xlu1 %v4837_v43 }
 0x506   :  { %v17476_v62 = vadd.f32 %v17310_v6, %v4558_v12  ;;  %v4560_v33 = vpop.f32.mrb[169].mxu1 }
 0x508   :  { %v4840_v54 = vsel %vm4779_vm0, %v17476_v62, 0.0 }
 0x509   :  { %v4563_v3 = vpop.f32.mrb[170].mxu1  ;;  %4841 = vadd.xlane.f32.xlu0 %v4840_v54 }
 0x50a   :  { %v17481_v48 = vadd.f32 %v17310_v6, %v4563_v3  ;;  %v4565_v36 = vpop.f32.mrb[171].mxu1 }
 0x50c   :  { %v4843_v11 = vsel %vm4779_vm0, %v17481_v48, 0.0 }
 0x50d   :  { %v4568_v59 = vpop.f32.mrb[172].mxu1  ;;  %4844 = vadd.xlane.f32.xlu1 %v4843_v11 }
 0x50e   :  { %v17486_v15 = vadd.f32 %v17310_v6, %v4568_v59  ;;  %v4570_v61 = vpop.f32.mrb[173].mxu1 }
 0x510   :  { %v4846_v25 = vsel %vm4779_vm0, %v17486_v15, 0.0 }
 0x511   :  { %v4573_v23 = vpop.f32.mrb[174].mxu1  ;;  %4847 = vadd.xlane.f32.xlu0 %v4846_v25 }
 0x512   :  { %v17491_v55 = vadd.f32 %v17310_v6, %v4573_v23  ;;  %v4575_v30 = vpop.f32.mrb[175].mxu1 }
 0x514   :  { %v4849_v7 = vsel %vm4779_vm0, %v17491_v55, 0.0 }
 0x515   :  { %v4578_v10 = vpop.f32.mrb[176].mxu1  ;;  %4850 = vadd.xlane.f32.xlu1 %v4849_v7 }
 0x516   :  { %v17496_v60 = vadd.f32 %v17310_v6, %v4578_v10  ;;  %v4580_v35 = vpop.f32.mrb[177].mxu1 }
 0x518   :  { %v4852_v0 = vsel %vm4779_vm0, %v17496_v60, 0.0 }
 0x519   :  { %v4583_v26 = vpop.f32.mrb[178].mxu1  ;;  %4853 = vadd.xlane.f32.xlu0 %v4852_v0 }
 0x51a   :  { %v17501_v13 = vadd.f32 %v17310_v6, %v4583_v26  ;;  %v4585_v44 = vpop.f32.mrb[179].mxu1 }
 0x51c   :  { %v4855_v63 = vsel %vm4779_vm0, %v17501_v13, 0.0 }
 0x51d   :  { %v4588_v31 = vpop.f32.mrb[180].mxu1  ;;  %4856 = vadd.xlane.f32.xlu1 %v4855_v63 }
 0x51e   :  { %v17506_v32 = vadd.f32 %v17310_v6, %v4588_v31  ;;  %v4590_v17 = vpop.f32.mrb[181].mxu1 }
 0x520   :  { %v4858_v42 = vsel %vm4779_vm0, %v17506_v32, 0.0 }
 0x521   :  { %v4593_v40 = vpop.f32.mrb[182].mxu1  ;;  %4859 = vadd.xlane.f32.xlu0 %v4858_v42 }
 0x522   :  { %v17511_v20 = vadd.f32 %v17310_v6, %v4593_v40  ;;  %v4595_v46 = vpop.f32.mrb[183].mxu1 }
 0x524   :  { %v4861_v28 = vsel %vm4779_vm0, %v17511_v20, 0.0 }
 0x525   :  { %v4598_v45 = vpop.f32.mrb[184].mxu1  ;;  %4862 = vadd.xlane.f32.xlu1 %v4861_v28 }
 0x526   :  { %v17516_v4 = vadd.f32 %v17310_v6, %v4598_v45  ;;  %v4600_v58 = vpop.f32.mrb[185].mxu1 }
 0x528   :  { %v4864_v5 = vsel %vm4779_vm0, %v17516_v4, 0.0 }
 0x529   :  { %v4603_v14 = vpop.f32.mrb[186].mxu1  ;;  %4865 = vadd.xlane.f32.xlu0 %v4864_v5 }
 0x52a   :  { %v17521_v52 = vadd.f32 %v17310_v6, %v4603_v14  ;;  %v4605_v49 = vpop.f32.mrb[187].mxu1 }
 0x52c   :  { %v4867_v34 = vsel %vm4779_vm0, %v17521_v52, 0.0 }
 0x52d   :  { %v4608_v18 = vpop.f32.mrb[188].mxu1  ;;  %4868 = vadd.xlane.f32.xlu1 %v4867_v34 }
 0x52e   :  { %v17526_v8 = vadd.f32 %v17310_v6, %v4608_v18  ;;  %v4610_v43 = vpop.f32.mrb[189].mxu1 }
 0x530   :  { %v4870_v12 = vsel %vm4779_vm0, %v17526_v8, 0.0 }
 0x531   :  { %v4613_v33 = vpop.f32.mrb[190].mxu1  ;;  %4871 = vadd.xlane.f32.xlu0 %v4870_v12 }
 0x532   :  { %v17531_v54 = vadd.f32 %v17310_v6, %v4613_v33  ;;  %v4615_v3 = vpop.f32.mrb[191].mxu1 }
 0x534   :  { %v4873_v36 = vsel %vm4779_vm0, %v17531_v54, 0.0 }
 0x535   :  { %v4618_v11 = vpop.f32.mrb[192].mxu1  ;;  %4874 = vadd.xlane.f32.xlu1 %v4873_v36 }
 0x536   :  { %v17536_v59 = vadd.f32 %v17310_v6, %v4618_v11  ;;  %v4620_v61 = vpop.f32.mrb[193].mxu1 }
 0x538   :  { %v4876_v25 = vsel %vm4779_vm0, %v17536_v59, 0.0 }
 0x539   :  { %v4623_v23 = vpop.f32.mrb[194].mxu1  ;;  %4877 = vadd.xlane.f32.xlu0 %v4876_v25 }
 0x53a   :  { %v17541_v30 = vadd.f32 %v17310_v6, %v4623_v23  ;;  %v4625_v7 = vpop.f32.mrb[195].mxu1 }
 0x53b   :  { %v4782_v10 = vpop.xlane.xlu0 %4781 }
 0x53c   :  { %v4879_v35 = vsel %vm4779_vm0, %v17541_v30, 0.0  ;;  %v4973_v63 = vmul.f32 0.0625, %v4782_v10 }
 0x53d   :  { %v4628_v0 = vpop.f32.mrb[196].mxu1  ;;  %4880 = vadd.xlane.f32.xlu1 %v4879_v35 }
 0x53e   :  { %v17546_v26 = vadd.f32 %v17310_v6, %v4628_v0  ;;  %v4630_v44 = vpop.f32.mrb[197].mxu1  ;;  %v17554_v46 = vsub.f32 %v17317_v1, %v4973_v63 }
 0x540   :  { %v4882_v31 = vsel %vm4779_vm0, %v17546_v26, 0.0  ;;  %v5101_v18 = vmul.f32 %v17554_v46, %v17554_v46 }
 0x541   :  { %v4633_v17 = vpop.f32.mrb[198].mxu1  ;;  %4883 = vadd.xlane.f32.xlu0 %v4882_v31 }
 0x542   :  { %v17551_v42 = vadd.f32 %v17310_v6, %v4633_v17  ;;  %v4635_v40 = vpop.f32.mrb[199].mxu1  ;;  %v4785_v28 = vpop.xlane.xlu1 %4784  ;;  %v5165_v11 = vsel %vm4779_vm0, %v5101_v18, 0.0 }
 0x543   :  { %v4974_v45 = vmul.f32 0.0625, %v4785_v28 }
 0x544   :  { %v4885_v58 = vsel %vm4779_vm0, %v17551_v42, 0.0 }
 0x545   :  { %v4638_v5 = vpop.f32.mrb[200].mxu1  ;;  %4886 = vadd.xlane.f32.xlu1 %v4885_v58  ;;  %v17562_v34 = vsub.f32 %v17331_v19, %v4974_v45 }
 0x546   :  { %v17559_v14 = vadd.f32 %v17310_v6, %v4638_v5  ;;  %v4640_v49 = vpop.f32.mrb[201].mxu1 }
 0x547   :  { %v4788_v43 = vpop.xlane.xlu0 %4787  ;;  %v5102_v19 = vmul.f32 %v17562_v34, %v17562_v34 }
 0x548   :  { %v4888_v1 = vsel %vm4779_vm0, %v17559_v14, 0.0  ;;  %v4975_v12 = vmul.f32 0.0625, %v4788_v43 }
 0x549   :  { %v4643_v33 = vpop.f32.mrb[202].mxu1  ;;  %4889 = vadd.xlane.f32.xlu0 %v4888_v1  ;;  %v5168_v44 = vsel %vm4779_vm0, %v5102_v19, 0.0 }
 0x54a   :  { %v17569_v3 = vadd.f32 %v17310_v6, %v4643_v33  ;;  %v4645_v36 = vpop.f32.mrb[203].mxu1  ;;  %v17573_v61 = vsub.f32 %v17345_v41, %v4975_v12 }
 0x54b   :  { %v4791_v25 = vpop.xlane.xlu1 %4790 }
 0x54c   :  { %v4891_v23 = vsel %vm4779_vm0, %v17569_v3, 0.0  ;;  %v4976_v7 = vmul.f32 0.0625, %v4791_v25  ;;  %v5103_v63 = vmul.f32 %v17573_v61, %v17573_v61 }
 0x54d   :  { %v4648_v10 = vpop.f32.mrb[204].mxu1  ;;  %4892 = vadd.xlane.f32.xlu1 %v4891_v23  ;;  %5166 = vadd.xlane.f32.xlu0 %v5165_v11 }
 0x54e   :  { %v17580_v35 = vadd.f32 %v17310_v6, %v4648_v10  ;;  %v4650_v0 = vpop.f32.mrb[205].mxu1  ;;  %v17584_v41 = vsub.f32 %v17356_v9, %v4976_v7  ;;  %v5171_v5 = vsel %vm4779_vm0, %v5103_v63, 0.0 }
 0x54f   :  { %v4794_v31 = vpop.xlane.xlu0 %4793 }
 0x550   :  { %v4894_v17 = vsel %vm4779_vm0, %v17580_v35, 0.0  ;;  %v4977_v40 = vmul.f32 0.0625, %v4794_v31  ;;  %v5104_v49 = vmul.f32 %v17584_v41, %v17584_v41 }
 0x551   :  { %v4653_v28 = vpop.f32.mrb[206].mxu1  ;;  %5169 = vadd.xlane.f32.xlu1 %v5168_v44  ;;  %4895 = vadd.xlane.f32.xlu0 %v4894_v17 }
 0x552   :  { %v17591_v45 = vadd.f32 %v17310_v6, %v4653_v28  ;;  %v4655_v58 = vpop.f32.mrb[207].mxu1  ;;  %v17595_v9 = vsub.f32 %v17366_v39, %v4977_v40  ;;  %v5174_v11 = vsel %vm4779_vm0, %v5104_v49, 0.0 }
 0x554   :  { %v4897_v18 = vsel %vm4779_vm0, %v17591_v45, 0.0  ;;  %v4797_v43 = vpop.xlane.xlu1 %4796  ;;  %v5105_v39 = vmul.f32 %v17595_v9, %v17595_v9 }
 0x555   :  { %v4658_v1 = vpop.f32.mrb[208].mxu1  ;;  %4898 = vadd.xlane.f32.xlu1 %v4897_v18  ;;  %5172 = vadd.xlane.f32.xlu0 %v5171_v5  ;;  %v4978_v12 = vmul.f32 0.0625, %v4797_v43 }
 0x556   :  { %v17602_v33 = vadd.f32 %v17310_v6, %v4658_v1  ;;  %v4660_v36 = vpop.f32.mrb[209].mxu1  ;;  %v5177_v63 = vsel %vm4779_vm0, %v5105_v39, 0.0 }
 0x557   :  { %v17608_v19 = vsub.f32 %v17376_v56, %v4978_v12 }
 0x558   :  { %v4900_v25 = vsel %vm4779_vm0, %v17602_v33, 0.0  ;;  %v4800_v23 = vpop.xlane.xlu0 %4799 }
 0x559   :  { %v4663_v7 = vpop.f32.mrb[210].mxu1  ;;  %5175 = vadd.xlane.f32.xlu1 %v5174_v11  ;;  %4901 = vadd.xlane.f32.xlu0 %v4900_v25  ;;  %v4979_v10 = vmul.f32 0.0625, %v4800_v23  ;;  %v5106_v31 = vmul.f32 %v17608_v19, %v17608_v19 }
 0x55a   :  { %v17613_v0 = vadd.f32 %v17310_v6, %v4663_v7  ;;  %v4665_v44 = vpop.f32.mrb[211].mxu1 }
 0x55b   :  { %v17619_v56 = vsub.f32 %v17388_v50, %v4979_v10  ;;  %v5180_v5 = vsel %vm4779_vm0, %v5106_v31, 0.0 }
 0x55c   :  { %v4903_v17 = vsel %vm4779_vm0, %v17613_v0, 0.0 }
 0x55d   :  { %v4668_v40 = vpop.f32.mrb[212].mxu1  ;;  %4904 = vadd.xlane.f32.xlu1 %v4903_v17  ;;  %5178 = vadd.xlane.f32.xlu0 %v5177_v63  ;;  %v5107_v18 = vmul.f32 %v17619_v56, %v17619_v56 }
 0x55e   :  { %v17624_v28 = vadd.f32 %v17310_v6, %v4668_v40  ;;  %v4670_v58 = vpop.f32.mrb[213].mxu1  ;;  %v4803_v49 = vpop.xlane.xlu1 %4802 }
 0x55f   :  { %v4980_v43 = vmul.f32 0.0625, %v4803_v49  ;;  %v5183_v39 = vsel %vm4779_vm0, %v5107_v18, 0.0 }
 0x560   :  { %v4906_v50 = vsel %vm4779_vm0, %v17624_v28, 0.0 }
 0x561   :  { %v4673_v1 = vpop.f32.mrb[214].mxu1  ;;  %5181 = vadd.xlane.f32.xlu1 %v5180_v5  ;;  %v17632_v12 = vsub.f32 %v17402_v24, %v4980_v43  ;;  %4907 = vadd.xlane.f32.xlu0 %v4906_v50 }
 0x562   :  { %v17635_v36 = vadd.f32 %v17310_v6, %v4673_v1  ;;  %v4675_v11 = vpop.f32.mrb[215].mxu1  ;;  %v4806_v25 = vpop.xlane.xlu0 %4805 }
 0x563   :  { %v4981_v23 = vmul.f32 0.0625, %v4806_v25  ;;  %v5108_v7 = vmul.f32 %v17632_v12, %v17632_v12 }
 0x564   :  { %v4909_v10 = vsel %vm4779_vm0, %v17635_v36, 0.0 }
 0x565   :  { %v4678_v44 = vpop.f32.mrb[216].mxu1  ;;  %4910 = vadd.xlane.f32.xlu1 %v4909_v10  ;;  %5184 = vadd.xlane.f32.xlu0 %v5183_v39  ;;  %v17643_v24 = vsub.f32 %v17412_v53, %v4981_v23  ;;  %v5186_v17 = vsel %vm4779_vm0, %v5108_v7, 0.0 }
 0x566   :  { %v17646_v63 = vadd.f32 %v17310_v6, %v4678_v44  ;;  %v4680_v31 = vpop.f32.mrb[217].mxu1 }
 0x567   :  { %v4809_v40 = vpop.xlane.xlu1 %4808  ;;  %v5109_v58 = vmul.f32 %v17643_v24, %v17643_v24 }
 0x568   :  { %v4982_v5 = vmul.f32 0.0625, %v4809_v40  ;;  %v4912_v49 = vsel %vm4779_vm0, %v17646_v63, 0.0 }
 0x569   :  { %v4683_v18 = vpop.f32.mrb[218].mxu1  ;;  %5187 = vadd.xlane.f32.xlu1 %v5186_v17  ;;  %4913 = vadd.xlane.f32.xlu0 %v4912_v49  ;;  %v5189_v1 = vsel %vm4779_vm0, %v5109_v58, 0.0 }
 0x56a   :  { %v17654_v53 = vadd.f32 %v17310_v6, %v4683_v18  ;;  %v17657_v43 = vsub.f32 %v17421_v38, %v4982_v5  ;;  %v4685_v50 = vpop.f32.mrb[219].mxu1 }
 0x56b   :  { %v4812_v11 = vpop.xlane.xlu0 %4811 }
 0x56c   :  { %v4915_v39 = vsel %vm4779_vm0, %v17654_v53, 0.0  ;;  %v4983_v25 = vmul.f32 0.0625, %v4812_v11  ;;  %v5110_v23 = vmul.f32 %v17657_v43, %v17657_v43 }
 0x56d   :  { %v4688_v7 = vpop.f32.mrb[220].mxu1  ;;  %4916 = vadd.xlane.f32.xlu1 %v4915_v39  ;;  %5190 = vadd.xlane.f32.xlu0 %v5189_v1 }
 0x56e   :  { %v17665_v10 = vadd.f32 %v17310_v6, %v4688_v7  ;;  %v4690_v44 = vpop.f32.mrb[221].mxu1  ;;  %v17668_v38 = vsub.f32 %v17426_v57, %v4983_v25  ;;  %v5192_v31 = vsel %vm4779_vm0, %v5110_v23, 0.0 }
 0x56f   :  { %v4815_v17 = vpop.xlane.xlu1 %4814 }
 0x570   :  { %v4984_v40 = vmul.f32 0.0625, %v4815_v17  ;;  %v4918_v58 = vsel %vm4779_vm0, %v17665_v10, 0.0  ;;  %v5111_v5 = vmul.f32 %v17668_v38, %v17668_v38 }
 0x571   :  { %v4693_v49 = vpop.f32.mrb[222].mxu1  ;;  %5193 = vadd.xlane.f32.xlu1 %v5192_v31  ;;  %4919 = vadd.xlane.f32.xlu0 %v4918_v58 }
 0x572   :  { %v17676_v18 = vadd.f32 %v17310_v6, %v4693_v49  ;;  %v17679_v50 = vsub.f32 %v17431_v22, %v4984_v40  ;;  %v4695_v57 = vpop.f32.mrb[223].mxu1  ;;  %v5195_v1 = vsel %vm4779_vm0, %v5111_v5, 0.0 }
 0x573   :  { %v4818_v11 = vpop.xlane.xlu0 %4817 }
 0x574   :  { %v4921_v39 = vsel %vm4779_vm0, %v17676_v18, 0.0  ;;  %v4985_v25 = vmul.f32 0.0625, %v4818_v11  ;;  %v5112_v23 = vmul.f32 %v17679_v50, %v17679_v50 }
 0x575   :  { %v4698_v7 = vpop.f32.mrb[224].mxu1  ;;  %4922 = vadd.xlane.f32.xlu1 %v4921_v39  ;;  %5196 = vadd.xlane.f32.xlu0 %v5195_v1 }
 0x576   :  { %v17687_v44 = vadd.f32 %v17310_v6, %v4698_v7  ;;  %v4700_v31 = vpop.f32.mrb[225].mxu1  ;;  %v17690_v22 = vsub.f32 %v17436_v29, %v4985_v25  ;;  %v5198_v17 = vsel %vm4779_vm0, %v5112_v23, 0.0 }
 0x578   :  { %v4821_v40 = vpop.xlane.xlu1 %4820  ;;  %v4924_v58 = vsel %vm4779_vm0, %v17687_v44, 0.0  ;;  %v5113_v5 = vmul.f32 %v17690_v22, %v17690_v22 }
 0x579   :  { %v4703_v49 = vpop.f32.mrb[226].mxu1  ;;  %v4986_v57 = vmul.f32 0.0625, %v4821_v40  ;;  %5199 = vadd.xlane.f32.xlu1 %v5198_v17  ;;  %4925 = vadd.xlane.f32.xlu0 %v4924_v58 }
 0x57a   :  { %v17698_v1 = vadd.f32 %v17310_v6, %v4703_v49  ;;  %v4705_v11 = vpop.f32.mrb[227].mxu1  ;;  %v5201_v29 = vsel %vm4779_vm0, %v5113_v5, 0.0 }
 0x57b   :  { %v17702_v39 = vsub.f32 %v17441_v2, %v4986_v57 }
 0x57c   :  { %v4927_v25 = vsel %vm4779_vm0, %v17698_v1, 0.0  ;;  %v4824_v23 = vpop.xlane.xlu0 %4823 }
 0x57d   :  { %21225 = vst [vmem:[#allocation57_spill] sm:$0xff] %v17702_v39  ;;  %v4708_v7 = vpop.f32.mrb[228].mxu1  ;;  %4928 = vadd.xlane.f32.xlu1 %v4927_v25  ;;  %5202 = vadd.xlane.f32.xlu0 %v5201_v29  ;;  %v4987_v31 = vmul.f32 0.0625, %v4824_v23  ;;  %v5114_v17 = vmul.f32 %v17702_v39, %v17702_v39 }
 0x57e   :  { %v17709_v40 = vadd.f32 %v17310_v6, %v4708_v7  ;;  %v4710_v58 = vpop.f32.mrb[229].mxu1 }
 0x57f   :  { %v17712_v5 = vsub.f32 %v17446_v27, %v4987_v31  ;;  %v5204_v2 = vsel %vm4779_vm0, %v5114_v17, 0.0 }
 0x580   :  { %v4930_v57 = vsel %vm4779_vm0, %v17709_v40, 0.0 }
 0x581   :  { %21226 = vst [vmem:[#allocation108_spill] sm:$0xff] %v17712_v5  ;;  %v4827_v49 = vpop.xlane.xlu1 %4826  ;;  %v4713_v11 = vpop.f32.mrb[230].mxu1  ;;  %5205 = vadd.xlane.f32.xlu1 %v5204_v2  ;;  %4931 = vadd.xlane.f32.xlu0 %v4930_v57  ;;  %v5115_v29 = vmul.f32 %v17712_v5, %v17712_v5 }
 0x582   :  { %v4988_v25 = vmul.f32 0.0625, %v4827_v49  ;;  %v17720_v23 = vadd.f32 %v17310_v6, %v4713_v11  ;;  %v4715_v7 = vpop.f32.mrb[231].mxu1 }
 0x583   :  { %v5207_v31 = vsel %vm4779_vm0, %v5115_v29, 0.0 }
 0x584   :  { %v17723_v27 = vsub.f32 %v17451_v21, %v4988_v25  ;;  %v4933_v17 = vsel %vm4779_vm0, %v17720_v23, 0.0 }
 0x585   :  { %v4830_v58 = vpop.xlane.xlu0 %4829  ;;  %v4718_v39 = vpop.f32.mrb[232].mxu1  ;;  %4934 = vadd.xlane.f32.xlu1 %v4933_v17  ;;  %5208 = vadd.xlane.f32.xlu0 %v5207_v31  ;;  %v17741_v17 = vld [vmem:[#allocation8] ss:$0 sm:$0xff] }
 0x586   :  { %v4989_v2 = vmul.f32 0.0625, %v4830_v58  ;;  %v5116_v49 = vmul.f32 %v17723_v27, %v17723_v27  ;;  %v17731_v57 = vadd.f32 %v17310_v6, %v4718_v39  ;;  %v4720_v11 = vpop.f32.mrb[233].mxu1 }
 0x588   :  { %v17734_v21 = vsub.f32 %v17456_v16, %v4989_v2  ;;  %v5210_v25 = vsel %vm4779_vm0, %v5116_v49, 0.0  ;;  %v4936_v29 = vsel %vm4779_vm0, %v17731_v57, 0.0 }
 0x589   :  { %v4723_v7 = vpop.f32.mrb[234].mxu1  ;;  %5211 = vadd.xlane.f32.xlu1 %v5210_v25  ;;  %4937 = vadd.xlane.f32.xlu0 %v4936_v29 }
 0x58a   :  { %21227 = vst [vmem:[#allocation109_spill] sm:$0xff] %v17734_v21  ;;  %v4833_v5 = vpop.xlane.xlu1 %4832  ;;  %v5117_v31 = vmul.f32 %v17734_v21, %v17734_v21  ;;  %v17744_v6 = vadd.f32 %v17741_v17, %v4723_v7  ;;  %v4725_v16 = vpop.f32.mrb[235].mxu1 }
 0x58b   :  { %v4990_v39 = vmul.f32 0.0625, %v4833_v5 }
 0x58c   :  { %v5213_v58 = vsel %vm4779_vm0, %v5117_v31, 0.0  ;;  %v4939_v49 = vsel %vm4779_vm0, %v17744_v6, 0.0 }
 0x58d   :  { %v17748_v2 = vsub.f32 %v17461_v37, %v4990_v39  ;;  %v4728_v11 = vpop.f32.mrb[236].mxu1  ;;  %4940 = vadd.xlane.f32.xlu1 %v4939_v49  ;;  %5214 = vadd.xlane.f32.xlu0 %v5213_v58 }
 0x58e   :  { %v4836_v25 = vpop.xlane.xlu0 %4835  ;;  %v17753_v29 = vadd.f32 %v17741_v17, %v4728_v11  ;;  %v4730_v21 = vpop.f32.mrb[237].mxu1 }
 0x58f   :  { %21228 = vst [vmem:[#allocation60_spill] sm:$0xff] %v17748_v2  ;;  %v4991_v7 = vmul.f32 0.0625, %v4836_v25  ;;  %v5118_v5 = vmul.f32 %v17748_v2, %v17748_v2 }
 0x590   :  { %v4942_v39 = vsel %vm4779_vm0, %v17753_v29, 0.0 }
 0x591   :  { %v17758_v31 = vsub.f32 %v17466_v51, %v4991_v7  ;;  %v5216_v37 = vsel %vm4779_vm0, %v5118_v5, 0.0  ;;  %v4733_v16 = vpop.f32.mrb[238].mxu1  ;;  %4943 = vadd.xlane.f32.xlu0 %v4942_v39 }
 0x592   :  { %5217 = vadd.xlane.f32.xlu1 %v5216_v37  ;;  %v17764_v58 = vadd.f32 %v17741_v17, %v4733_v16  ;;  %v4839_v49 = vpop.xlane.xlu1 %4838  ;;  %v4735_v21 = vpop.f32.mrb[239].mxu1 }
 0x593   :  { %21229 = vst [vmem:[#allocation86_spill] sm:$0xff] %v17758_v31  ;;  %v5119_v11 = vmul.f32 %v17758_v31, %v17758_v31  ;;  %v4992_v25 = vmul.f32 0.0625, %v4839_v49 }
 0x594   :  { %v4945_v51 = vsel %vm4779_vm0, %v17764_v58, 0.0 }
 0x595   :  { %v5219_v7 = vsel %vm4779_vm0, %v5119_v11, 0.0  ;;  %v17772_v5 = vsub.f32 %v17471_v47, %v4992_v25  ;;  %v4738_v2 = vpop.f32.mrb[240].mxu1 }
 0x596   :  { %4946 = vadd.xlane.f32.xlu1 %v4945_v51  ;;  %5220 = vadd.xlane.f32.xlu0 %v5219_v7  ;;  %v17775_v37 = vadd.f32 %v17741_v17, %v4738_v2  ;;  %v4740_v39 = vpop.f32.mrb[241].mxu1  ;;  %v4842_v16 = vpop.xlane.xlu0 %4841 }
 0x597   :  { %21230 = vst [vmem:[#allocation72_spill] sm:$0xff] %v17772_v5  ;;  %v4993_v21 = vmul.f32 0.0625, %v4842_v16  ;;  %v5120_v49 = vmul.f32 %v17772_v5, %v17772_v5 }
 0x598   :  { %v4948_v31 = vsel %vm4779_vm0, %v17775_v37, 0.0 }
 0x599   :  { %v17782_v11 = vsub.f32 %v17476_v62, %v4993_v21  ;;  %v4743_v47 = vpop.f32.mrb[242].mxu1  ;;  %v5222_v25 = vsel %vm4779_vm0, %v5120_v49, 0.0 }
 0x59a   :  { %4949 = vadd.xlane.f32.xlu0 %v4948_v31  ;;  %v17786_v51 = vadd.f32 %v17741_v17, %v4743_v47  ;;  %v4845_v2 = vpop.xlane.xlu1 %4844  ;;  %5223 = vadd.xlane.f32.xlu1 %v5222_v25  ;;  %v4745_v7 = vpop.f32.mrb[243].mxu1 }
 0x59b   :  { %21231 = vst [vmem:[#allocation59_spill] sm:$0xff] %v17782_v11  ;;  %v4994_v39 = vmul.f32 0.0625, %v4845_v2  ;;  %v5121_v16 = vmul.f32 %v17782_v11, %v17782_v11 }
 0x59c   :  { %v4951_v5 = vsel %vm4779_vm0, %v17786_v51, 0.0 }
 0x59d   :  { %v17793_v62 = vsub.f32 %v17481_v48, %v4994_v39  ;;  %v4748_v21 = vpop.f32.mrb[244].mxu1  ;;  %v5225_v49 = vsel %vm4779_vm0, %v5121_v16, 0.0 }
 0x59e   :  { %v17797_v31 = vadd.f32 %v17741_v17, %v4748_v21  ;;  %4952 = vadd.xlane.f32.xlu1 %v4951_v5  ;;  %v4750_v47 = vpop.f32.mrb[245].mxu1  ;;  %5226 = vadd.xlane.f32.xlu0 %v5225_v49  ;;  %v4848_v25 = vpop.xlane.xlu0 %4847 }
 0x59f   :  { %21232 = vst [vmem:[#allocation62_spill] sm:$0xff] %v17793_v62  ;;  %v4995_v2 = vmul.f32 0.0625, %v4848_v25  ;;  %v5122_v7 = vmul.f32 %v17793_v62, %v17793_v62 }
 0x5a0   :  { %v4954_v11 = vsel %vm4779_vm0, %v17797_v31, 0.0 }
 0x5a1   :  { %v17804_v48 = vsub.f32 %v17486_v15, %v4995_v2  ;;  %v4753_v39 = vpop.f32.mrb[246].mxu1  ;;  %v5228_v16 = vsel %vm4779_vm0, %v5122_v7, 0.0 }
 0x5a2   :  { %v17808_v21 = vadd.f32 %v17741_v17, %v4753_v39  ;;  %v4851_v5 = vpop.xlane.xlu1 %4850  ;;  %5229 = vadd.xlane.f32.xlu1 %v5228_v16  ;;  %v4755_v49 = vpop.f32.mrb[247].mxu1  ;;  %4955 = vadd.xlane.f32.xlu0 %v4954_v11 }
 0x5a3   :  { %21233 = vst [vmem:[#allocation61_spill] sm:$0xff] %v17804_v48  ;;  %v4996_v47 = vmul.f32 0.0625, %v4851_v5  ;;  %v5123_v25 = vmul.f32 %v17804_v48, %v17804_v48 }
 0x5a4   :  { %v4957_v62 = vsel %vm4779_vm0, %v17808_v21, 0.0 }
 0x5a5   :  { %v17815_v15 = vsub.f32 %v17491_v55, %v4996_v47  ;;  %v4758_v2 = vpop.f32.mrb[248].mxu1  ;;  %v5231_v7 = vsel %vm4779_vm0, %v5123_v25, 0.0 }
 0x5a6   :  { %v17819_v39 = vadd.f32 %v17741_v17, %v4758_v2  ;;  %4958 = vadd.xlane.f32.xlu1 %v4957_v62  ;;  %v4760_v16 = vpop.f32.mrb[249].mxu1  ;;  %5232 = vadd.xlane.f32.xlu0 %v5231_v7  ;;  %v4854_v11 = vpop.xlane.xlu0 %4853 }
 0x5a7   :  { %21234 = vst [vmem:[#allocation73_spill] sm:$0xff] %v17815_v15  ;;  %v4997_v5 = vmul.f32 0.0625, %v4854_v11  ;;  %v5124_v49 = vmul.f32 %v17815_v15, %v17815_v15 }
 0x5a8   :  { %v4960_v48 = vsel %vm4779_vm0, %v17819_v39, 0.0 }
 0x5a9   :  { %v17826_v55 = vsub.f32 %v17496_v60, %v4997_v5  ;;  %v4763_v47 = vpop.f32.mrb[250].mxu1  ;;  %v5234_v25 = vsel %vm4779_vm0, %v5124_v49, 0.0 }
 0x5aa   :  { %v17830_v2 = vadd.f32 %v17741_v17, %v4763_v47  ;;  %v4857_v62 = vpop.xlane.xlu1 %4856  ;;  %5235 = vadd.xlane.f32.xlu1 %v5234_v25  ;;  %v4765_v7 = vpop.f32.mrb[251].mxu1  ;;  %4961 = vadd.xlane.f32.xlu0 %v4960_v48 }
 0x5ab   :  { %21235 = vst [vmem:[#allocation110_spill] sm:$0xff] %v17826_v55  ;;  %v4998_v16 = vmul.f32 0.0625, %v4857_v62  ;;  %v5125_v11 = vmul.f32 %v17826_v55, %v17826_v55 }
 0x5ac   :  { %v4963_v15 = vsel %vm4779_vm0, %v17830_v2, 0.0 }
 0x5ad   :  { %v17837_v60 = vsub.f32 %v17501_v13, %v4998_v16  ;;  %v4768_v5 = vpop.f32.mrb[252].mxu1  ;;  %v5237_v49 = vsel %vm4779_vm0, %v5125_v11, 0.0 }
 0x5ae   :  { %v17841_v47 = vadd.f32 %v17741_v17, %v4768_v5  ;;  %4964 = vadd.xlane.f32.xlu1 %v4963_v15  ;;  %v4770_v25 = vpop.f32.mrb[253].mxu1  ;;  %5238 = vadd.xlane.f32.xlu0 %v5237_v49  ;;  %v4860_v48 = vpop.xlane.xlu0 %4859 }
 0x5af   :  { %21236 = vst [vmem:[#allocation64_spill] sm:$0xff] %v17837_v60  ;;  %v4999_v62 = vmul.f32 0.0625, %v4860_v48  ;;  %v5126_v7 = vmul.f32 %v17837_v60, %v17837_v60 }
 0x5b0   :  { %v4966_v55 = vsel %vm4779_vm0, %v17841_v47, 0.0 }
 0x5b1   :  { %v17848_v13 = vsub.f32 %v17506_v32, %v4999_v62  ;;  %v4773_v16 = vpop.f32.mrb[254].mxu1  ;;  %v5240_v11 = vsel %vm4779_vm0, %v5126_v7, 0.0 }
 0x5b2   :  { %v17852_v5 = vadd.f32 %v17741_v17, %v4773_v16  ;;  %v4863_v15 = vpop.xlane.xlu1 %4862  ;;  %5241 = vadd.xlane.f32.xlu1 %v5240_v11  ;;  %v4775_v49 = vpop.f32.mrb[255].mxu1  ;;  %4967 = vadd.xlane.f32.xlu0 %v4966_v55 }
 0x5b3   :  { %v5000_v25 = vmul.f32 0.0625, %v4863_v15  ;;  %v5127_v48 = vmul.f32 %v17848_v13, %v17848_v13 }
 0x5b4   :  { %v4969_v60 = vsel %vm4779_vm0, %v17852_v5, 0.0 }
 0x5b5   :  { %v17859_v32 = vsub.f32 %v17511_v20, %v5000_v25  ;;  %v5243_v62 = vsel %vm4779_vm0, %v5127_v48, 0.0 }
 0x5b6   :  { %4970 = vadd.xlane.f32.xlu1 %v4969_v60  ;;  %5244 = vadd.xlane.f32.xlu0 %v5243_v62  ;;  %v4866_v17 = vpop.xlane.xlu0 %4865 }
 0x5b7   :  { %v5001_v7 = vmul.f32 0.0625, %v4866_v17  ;;  %v5128_v16 = vmul.f32 %v17859_v32, %v17859_v32 }
 0x5b9   :  { %v17865_v55 = vsub.f32 %v17516_v4, %v5001_v7  ;;  %v5246_v11 = vsel %vm4779_vm0, %v5128_v16, 0.0 }
 0x5ba   :  { %v4869_v15 = vpop.xlane.xlu1 %4868  ;;  %5247 = vadd.xlane.f32.xlu1 %v5246_v11 }
 0x5bb   :  { %v5002_v49 = vmul.f32 0.0625, %v4869_v15  ;;  %v5129_v20 = vmul.f32 %v17865_v55, %v17865_v55 }
 0x5bd   :  { %v17871_v25 = vsub.f32 %v17521_v52, %v5002_v49  ;;  %v5249_v60 = vsel %vm4779_vm0, %v5129_v20, 0.0 }
 0x5be   :  { %5250 = vadd.xlane.f32.xlu0 %v5249_v60  ;;  %v4872_v48 = vpop.xlane.xlu0 %4871 }
 0x5bf   :  { %v5003_v62 = vmul.f32 0.0625, %v4872_v48  ;;  %v5130_v4 = vmul.f32 %v17871_v25, %v17871_v25 }
 0x5c1   :  { %v17877_v17 = vsub.f32 %v17526_v8, %v5003_v62  ;;  %v5252_v7 = vsel %vm4779_vm0, %v5130_v4, 0.0 }
 0x5c2   :  { %v4875_v16 = vpop.xlane.xlu1 %4874  ;;  %5253 = vadd.xlane.f32.xlu1 %v5252_v7 }
 0x5c3   :  { %v5004_v11 = vmul.f32 0.0625, %v4875_v16  ;;  %v5131_v52 = vmul.f32 %v17877_v17, %v17877_v17 }
 0x5c5   :  { %v17883_v15 = vsub.f32 %v17531_v54, %v5004_v11  ;;  %v5255_v49 = vsel %vm4779_vm0, %v5131_v52, 0.0 }
 0x5c6   :  { %5256 = vadd.xlane.f32.xlu0 %v5255_v49  ;;  %v4878_v20 = vpop.xlane.xlu0 %4877 }
 0x5c7   :  { %v5005_v60 = vmul.f32 0.0625, %v4878_v20  ;;  %v5132_v8 = vmul.f32 %v17883_v15, %v17883_v15 }
 0x5c9   :  { %v17889_v48 = vsub.f32 %v17536_v59, %v5005_v60  ;;  %v5258_v62 = vsel %vm4779_vm0, %v5132_v8, 0.0 }
 0x5ca   :  { %v4881_v4 = vpop.xlane.xlu1 %4880  ;;  %5259 = vadd.xlane.f32.xlu1 %v5258_v62 }
 0x5cb   :  { %v5006_v7 = vmul.f32 0.0625, %v4881_v4  ;;  %v5133_v54 = vmul.f32 %v17889_v48, %v17889_v48 }
 0x5cd   :  { %v17895_v16 = vsub.f32 %v17541_v30, %v5006_v7  ;;  %v5261_v11 = vsel %vm4779_vm0, %v5133_v54, 0.0 }
 0x5ce   :  { %5262 = vadd.xlane.f32.xlu0 %v5261_v11  ;;  %v4884_v52 = vpop.xlane.xlu0 %4883 }
 0x5cf   :  { %v5007_v49 = vmul.f32 0.0625, %v4884_v52  ;;  %v5134_v59 = vmul.f32 %v17895_v16, %v17895_v16 }
 0x5d1   :  { %v17901_v20 = vsub.f32 %v17546_v26, %v5007_v49  ;;  %v5264_v60 = vsel %vm4779_vm0, %v5134_v59, 0.0 }
 0x5d2   :  { %v4887_v8 = vpop.xlane.xlu1 %4886  ;;  %5265 = vadd.xlane.f32.xlu1 %v5264_v60 }
 0x5d3   :  { %21237 = vst [vmem:[#allocation63_spill] sm:$0xff] %v17901_v20  ;;  %v5008_v62 = vmul.f32 0.0625, %v4887_v8  ;;  %v5135_v30 = vmul.f32 %v17901_v20, %v17901_v20 }
 0x5d5   :  { %v17907_v4 = vsub.f32 %v17551_v42, %v5008_v62  ;;  %v5267_v7 = vsel %vm4779_vm0, %v5135_v30, 0.0 }
 0x5d6   :  { %5268 = vadd.xlane.f32.xlu0 %v5267_v7  ;;  %v4890_v54 = vpop.xlane.xlu0 %4889 }
 0x5d7   :  { %v5009_v11 = vmul.f32 0.0625, %v4890_v54  ;;  %v5136_v26 = vmul.f32 %v17907_v4, %v17907_v4 }
 0x5d9   :  { %v17913_v52 = vsub.f32 %v17559_v14, %v5009_v11  ;;  %v5270_v49 = vsel %vm4779_vm0, %v5136_v26, 0.0 }
 0x5da   :  { %v4893_v59 = vpop.xlane.xlu1 %4892  ;;  %5271 = vadd.xlane.f32.xlu1 %v5270_v49  ;;  %v5167_v60 = vpop.xlane.xlu0 %5166 }
 0x5db   :  { %21238 = vst [vmem:[#allocation66_spill] sm:$0xff] %v17913_v52  ;;  %v5010_v8 = vmul.f32 0.0625, %v4893_v59  ;;  %v5357_v20 = vmul.f32 0.0625, %v5167_v60  ;;  %v5137_v42 = vmul.f32 %v17913_v52, %v17913_v52 }
 0x5dd   :  { %v17919_v62 = vsub.f32 %v17569_v3, %v5010_v8  ;;  %v5421_v30 = vadd.f32 1e-05, %v5357_v20  ;;  %v5273_v7 = vsel %vm4779_vm0, %v5137_v42, 0.0 }
 0x5de   :  { %5274 = vadd.xlane.f32.xlu0 %v5273_v7  ;;  %v5170_v54 = vpop.xlane.xlu1 %5169  ;;  %v4896_v14 = vpop.xlane.xlu0 %4895 }
 0x5df   :  { %21239 = vst [vmem:[#allocation91_spill] sm:$0xff] %v17919_v62  ;;  %13724 = vrsqrt.f32 %v5421_v30  ;;  %v5358_v11 = vmul.f32 0.0625, %v5170_v54  ;;  %v5011_v26 = vmul.f32 0.0625, %v4896_v14  ;;  %v5138_v49 = vmul.f32 %v17919_v62, %v17919_v62 }
 0x5e1   :  { %v5422_v59 = vadd.f32 1e-05, %v5358_v11  ;;  %v17925_v60 = vsub.f32 %v17580_v35, %v5011_v26  ;;  %v5276_v52 = vsel %vm4779_vm0, %v5138_v49, 0.0 }
 0x5e2   :  { %5277 = vadd.xlane.f32.xlu1 %v5276_v52  ;;  %v4899_v3 = vpop.xlane.xlu1 %4898  ;;  %v5173_v20 = vpop.xlane.xlu0 %5172 }
 0x5e3   :  { %21240 = vst [vmem:[#allocation92_spill] sm:$0xff] %v17925_v60  ;;  %13726 = vrsqrt.f32 %v5422_v59  ;;  %v5012_v8 = vmul.f32 0.0625, %v4899_v3  ;;  %v5359_v42 = vmul.f32 0.0625, %v5173_v20  ;;  %v5139_v30 = vmul.f32 %v17925_v60, %v17925_v60 }
 0x5e5   :  { %v17931_v7 = vsub.f32 %v17591_v45, %v5012_v8  ;;  %v5423_v54 = vadd.f32 1e-05, %v5359_v42  ;;  %v5279_v14 = vsel %vm4779_vm0, %v5139_v30, 0.0  ;;  %v17940_v8 = vld [vmem:[#allocation10] ss:$0 sm:$0xff] }
 0x5e6   :  { %v5176_v11 = vpop.xlane.xlu1 %5175  ;;  %5280 = vadd.xlane.f32.xlu0 %v5279_v14  ;;  %v4902_v35 = vpop.xlane.xlu0 %4901 }
 0x5e7   :  { %21241 = vst [vmem:[#allocation65_spill] sm:$0xff] %v17931_v7  ;;  %13728 = vrsqrt.f32 %v5423_v54  ;;  %v5360_v26 = vmul.f32 0.0625, %v5176_v11  ;;  %v5013_v52 = vmul.f32 0.0625, %v4902_v35  ;;  %v5140_v49 = vmul.f32 %v17931_v7, %v17931_v7  ;;  %v17945_v7 = vld [vmem:[#allocation11] ss:$0 sm:$0xff] }
 0x5e9   :  { %v13725_v59 = vpop.eup %13724  ;;  %v5424_v3 = vadd.f32 1e-05, %v5360_v26  ;;  %v17937_v20 = vsub.f32 %v17602_v33, %v5013_v52  ;;  %v5282_v45 = vsel %vm4779_vm0, %v5140_v49, 0.0 }
 0x5ea   :  { %v4905_v42 = vpop.xlane.xlu1 %4904  ;;  %5283 = vadd.xlane.f32.xlu1 %v5282_v45  ;;  %v5179_v30 = vpop.xlane.xlu0 %5178  ;;  %v5549_v14 = vmul.f32 %v13725_v59, %v17554_v46 }
 0x5eb   :  { %21242 = vst [vmem:[#allocation76_spill] sm:$0xff] %v17937_v20  ;;  %13730 = vrsqrt.f32 %v5424_v3  ;;  %v5014_v54 = vmul.f32 0.0625, %v4905_v42  ;;  %v5361_v11 = vmul.f32 0.0625, %v5179_v30  ;;  %v5141_v35 = vmul.f32 %v17937_v20, %v17937_v20 }
 0x5ec   :  { %v5619_v33 = vmul.f32 %v17940_v8, %v5549_v14 }
 0x5ed   :  { %v13727_v26 = vpop.eup %13726  ;;  %v17949_v52 = vsub.f32 %v17613_v0, %v5014_v54  ;;  %v5425_v49 = vadd.f32 1e-05, %v5361_v11  ;;  %v5285_v45 = vsel %vm4779_vm0, %v5141_v35, 0.0 }
 0x5ee   :  { %v5182_v60 = vpop.xlane.xlu1 %5181  ;;  %5286 = vadd.xlane.f32.xlu0 %v5285_v45  ;;  %v4908_v46 = vpop.xlane.xlu0 %4907  ;;  %v5689_v59 = vadd.f32 %v17945_v7, %v5619_v33  ;;  %v5550_v3 = vmul.f32 %v13727_v26, %v17562_v34  ;;  %v17961_v34 = vld [vmem:[#allocation13] ss:$0 sm:$0xff] }
 0x5ef   :  { %21243 = vst [vmem:[#allocation77_spill] sm:$0xff] %v17949_v52  ;;  %13732 = vrsqrt.f32 %v5425_v49  ;;  %v5362_v42 = vmul.f32 0.0625, %v5182_v60  ;;  %v5015_v30 = vmul.f32 0.0625, %v4908_v46  ;;  %v5142_v14 = vmul.f32 %v17949_v52, %v17949_v52 }
 0x5f0   :  { %v5620_v20 = vmul.f32 %v17940_v8, %v5550_v3  ;;  %v5753_v45 = vmax.f32 %v5689_v59, 0.0 }
 0x5f1   :  { %v13729_v0 = vpop.eup %13728  ;;  %v5426_v54 = vadd.f32 1e-05, %v5362_v42  ;;  %v17958_v11 = vsub.f32 %v17624_v28, %v5015_v30  ;;  %v5288_v35 = vsel %vm4779_vm0, %v5142_v14, 0.0 }
 0x5f2   :  { %v4911_v62 = vpop.xlane.xlu1 %4910  ;;  %5289 = vadd.xlane.f32.xlu1 %v5288_v35  ;;  %v5185_v33 = vpop.xlane.xlu0 %5184  ;;  %v5690_v60 = vadd.f32 %v17945_v7, %v5620_v20  ;;  %v5551_v26 = vmul.f32 %v13729_v0, %v17573_v61  ;;  %v5824_v20 = vmul.f32 %v17961_v34, %v5753_v45 }
 0x5f3   :  { %13734 = vrsqrt.f32 %v5426_v54  ;;  %v5016_v49 = vmul.f32 0.0625, %v4911_v62  ;;  %v5363_v46 = vmul.f32 0.0625, %v5185_v33  ;;  %v5143_v3 = vmul.f32 %v17958_v11, %v17958_v11 }
 0x5f4   :  { %v5754_v28 = vmax.f32 %v5690_v60, 0.0  ;;  %v5621_v42 = vmul.f32 %v17940_v8, %v5551_v26 }
 0x5f5   :  { %v13731_v30 = vpop.eup %13730  ;;  %v17969_v59 = vsub.f32 %v17635_v36, %v5016_v49  ;;  %v5427_v14 = vadd.f32 1e-05, %v5363_v46  ;;  %v5291_v35 = vsel %vm4779_vm0, %v5143_v3, 0.0 }
 0x5f6   :  { %v5188_v52 = vpop.xlane.xlu1 %5187  ;;  %5292 = vadd.xlane.f32.xlu0 %v5291_v35  ;;  %v4914_v61 = vpop.xlane.xlu0 %4913  ;;  %v5691_v62 = vadd.f32 %v17945_v7, %v5621_v42  ;;  %v5552_v0 = vmul.f32 %v13731_v30, %v17584_v41  ;;  %v5825_v36 = vmul.f32 %v17961_v34, %v5754_v28  ;;  %v5888_v41 = vsel %vm4779_vm0, %v5824_v20, 0.0 }
 0x5f7   :  { %13736 = vrsqrt.f32 %v5427_v14  ;;  %v5364_v54 = vmul.f32 0.0625, %v5188_v52  ;;  %v5017_v33 = vmul.f32 0.0625, %v4914_v61  ;;  %v5144_v60 = vmul.f32 %v17969_v59, %v17969_v59 }
 0x5f8   :  { %v5755_v26 = vmax.f32 %v5691_v62, 0.0  ;;  %v5622_v49 = vmul.f32 %v17940_v8, %v5552_v0 }
 0x5f9   :  { %v13733_v46 = vpop.eup %13732  ;;  %v5428_v45 = vadd.f32 1e-05, %v5364_v54  ;;  %v17980_v3 = vsub.f32 %v17646_v63, %v5017_v33  ;;  %v5294_v42 = vsel %vm4779_vm0, %v5144_v60, 0.0  ;;  %v5891_v63 = vsel %vm4779_vm0, %v5825_v36, 0.0 }
 0x5fa   :  { %v4917_v30 = vpop.xlane.xlu1 %4916  ;;  %5295 = vadd.xlane.f32.xlu1 %v5294_v42  ;;  %5889 = vadd.xlane.f32.xlu0 %v5888_v41  ;;  %v5191_v52 = vpop.xlane.xlu0 %5190  ;;  %v5692_v14 = vadd.f32 %v17945_v7, %v5622_v49  ;;  %v5553_v28 = vmul.f32 %v13733_v46, %v17595_v9  ;;  %v5826_v0 = vmul.f32 %v17961_v34, %v5755_v26 }
 0x5fb   :  { %13738 = vrsqrt.f32 %v5428_v45  ;;  %v5018_v35 = vmul.f32 0.0625, %v4917_v30  ;;  %v5365_v61 = vmul.f32 0.0625, %v5191_v52  ;;  %v5145_v62 = vmul.f32 %v17980_v3, %v17980_v3 }
 0x5fc   :  { %v5623_v20 = vmul.f32 %v17940_v8, %v5553_v28  ;;  %v5756_v9 = vmax.f32 %v5692_v14, 0.0 }
 0x5fd   :  { %v13735_v54 = vpop.eup %13734  ;;  %v17992_v33 = vsub.f32 %v17654_v53, %v5018_v35  ;;  %v5429_v60 = vadd.f32 1e-05, %v5365_v61  ;;  %v5297_v49 = vsel %vm4779_vm0, %v5145_v62, 0.0  ;;  %v5894_v53 = vsel %vm4779_vm0, %v5826_v0, 0.0 }
 0x5fe   :  { %v5194_v46 = vpop.xlane.xlu1 %5193  ;;  %5892 = vadd.xlane.f32.xlu1 %v5891_v63  ;;  %5298 = vadd.xlane.f32.xlu0 %v5297_v49  ;;  %v4920_v45 = vpop.xlane.xlu0 %4919  ;;  %v5693_v42 = vadd.f32 %v17945_v7, %v5623_v20  ;;  %v5554_v36 = vmul.f32 %v13735_v54, %v17608_v19  ;;  %v5827_v19 = vmul.f32 %v17961_v34, %v5756_v9 }
 0x5ff   :  { %13740 = vrsqrt.f32 %v5429_v60  ;;  %v5366_v26 = vmul.f32 0.0625, %v5194_v46  ;;  %v5019_v41 = vmul.f32 0.0625, %v4920_v45  ;;  %v5146_v30 = vmul.f32 %v17992_v33, %v17992_v33 }
 0x600   :  { %v5757_v52 = vmax.f32 %v5693_v42, 0.0  ;;  %v5624_v28 = vmul.f32 %v17940_v8, %v5554_v36 }
 0x601   :  { %v13737_v14 = vpop.eup %13736  ;;  %v5430_v35 = vadd.f32 1e-05, %v5366_v26  ;;  %v18002_v61 = vsub.f32 %v17665_v10, %v5019_v41  ;;  %v5300_v62 = vsel %vm4779_vm0, %v5146_v30, 0.0  ;;  %v5897_v41 = vsel %vm4779_vm0, %v5827_v19, 0.0 }
 0x602   :  { %v4923_v63 = vpop.xlane.xlu1 %4922  ;;  %5301 = vadd.xlane.f32.xlu1 %v5300_v62  ;;  %5895 = vadd.xlane.f32.xlu0 %v5894_v53  ;;  %v5197_v20 = vpop.xlane.xlu0 %5196  ;;  %v5694_v54 = vadd.f32 %v17945_v7, %v5624_v28  ;;  %v5555_v0 = vmul.f32 %v13737_v14, %v17619_v56  ;;  %v5828_v10 = vmul.f32 %v17961_v34, %v5757_v52 }
 0x603   :  { %13742 = vrsqrt.f32 %v5430_v35  ;;  %v5020_v60 = vmul.f32 0.0625, %v4923_v63  ;;  %v5367_v49 = vmul.f32 0.0625, %v5197_v20  ;;  %v5147_v46 = vmul.f32 %v18002_v61, %v18002_v61 }
 0x604   :  { %v5758_v45 = vmax.f32 %v5694_v54, 0.0  ;;  %v5625_v42 = vmul.f32 %v17940_v8, %v5555_v0  ;;  %v5900_v62 = vsel %vm4779_vm0, %v5828_v10, 0.0 }
 0x605   :  { %v13739_v9 = vpop.eup %13738  ;;  %v18013_v36 = vsub.f32 %v17676_v18, %v5020_v60  ;;  %v5431_v26 = vadd.f32 1e-05, %v5367_v49  ;;  %v5303_v56 = vsel %vm4779_vm0, %v5147_v46, 0.0 }
 0x606   :  { %v5200_v30 = vpop.xlane.xlu1 %5199  ;;  %5898 = vadd.xlane.f32.xlu1 %v5897_v41  ;;  %5304 = vadd.xlane.f32.xlu0 %v5303_v56  ;;  %v4926_v53 = vpop.xlane.xlu0 %4925  ;;  %v5695_v28 = vadd.f32 %v17945_v7, %v5625_v42  ;;  %v5556_v52 = vmul.f32 %v13739_v9, %v17632_v12  ;;  %v5829_v19 = vmul.f32 %v17961_v34, %v5758_v45 }
 0x607   :  { %13744 = vrsqrt.f32 %v5431_v26  ;;  %v5368_v14 = vmul.f32 0.0625, %v5200_v30  ;;  %v5021_v35 = vmul.f32 0.0625, %v4926_v53  ;;  %v5148_v18 = vmul.f32 %v18013_v36, %v18013_v36 }
 0x608   :  { %v5626_v63 = vmul.f32 %v17940_v8, %v5556_v52  ;;  %v5759_v12 = vmax.f32 %v5695_v28, 0.0 }
 0x609   :  { %v13741_v20 = vpop.eup %13740  ;;  %v5432_v54 = vadd.f32 1e-05, %v5368_v14  ;;  %v18025_v0 = vsub.f32 %v17687_v44, %v5021_v35  ;;  %v5306_v60 = vsel %vm4779_vm0, %v5148_v18, 0.0  ;;  %v5903_v44 = vsel %vm4779_vm0, %v5829_v19, 0.0 }
 0x60a   :  { %v4929_v49 = vpop.xlane.xlu1 %4928  ;;  %5307 = vadd.xlane.f32.xlu1 %v5306_v60  ;;  %5901 = vadd.xlane.f32.xlu0 %v5900_v62  ;;  %v5203_v46 = vpop.xlane.xlu0 %5202  ;;  %v5696_v42 = vadd.f32 %v17945_v7, %v5626_v63  ;;  %v5557_v10 = vmul.f32 %v13741_v20, %v17643_v24  ;;  %v5830_v24 = vmul.f32 %v17961_v34, %v5759_v12 }
 0x60b   :  { %13746 = vrsqrt.f32 %v5432_v54  ;;  %v5022_v45 = vmul.f32 0.0625, %v4929_v49  ;;  %v5369_v9 = vmul.f32 0.0625, %v5203_v46  ;;  %v5149_v26 = vmul.f32 %v18025_v0, %v18025_v0 }
 0x60c   :  { %v5760_v41 = vmax.f32 %v5696_v42, 0.0  ;;  %v5627_v56 = vmul.f32 %v17940_v8, %v5557_v10 }
 0x60d   :  { %v13743_v30 = vpop.eup %13742  ;;  %v18035_v53 = vsub.f32 %v17698_v1, %v5022_v45  ;;  %v5433_v28 = vadd.f32 1e-05, %v5369_v9  ;;  %v5309_v52 = vsel %vm4779_vm0, %v5149_v26, 0.0 }
 0x60e   :  { %v5206_v14 = vpop.xlane.xlu1 %5205  ;;  %5904 = vadd.xlane.f32.xlu1 %v5903_v44  ;;  %5310 = vadd.xlane.f32.xlu0 %v5309_v52  ;;  %v4932_v35 = vpop.xlane.xlu0 %4931  ;;  %v5697_v18 = vadd.f32 %v17945_v7, %v5627_v56  ;;  %v5558_v62 = vmul.f32 %v13743_v30, %v17657_v43  ;;  %v5831_v20 = vmul.f32 %v17961_v34, %v5760_v41  ;;  %v5906_v43 = vsel %vm4779_vm0, %v5830_v24, 0.0 }
 0x60f   :  { %13748 = vrsqrt.f32 %v5433_v28  ;;  %v5370_v19 = vmul.f32 0.0625, %v5206_v14  ;;  %v5023_v63 = vmul.f32 0.0625, %v4932_v35  ;;  %v5150_v1 = vmul.f32 %v18035_v53, %v18035_v53 }
 0x610   :  { %v5761_v54 = vmax.f32 %v5697_v18, 0.0  ;;  %v5628_v60 = vmul.f32 %v17940_v8, %v5558_v62 }
 0x611   :  { %v13745_v12 = vpop.eup %13744  ;;  %v5434_v49 = vadd.f32 1e-05, %v5370_v19  ;;  %v18046_v46 = vsub.f32 %v17709_v40, %v5023_v63  ;;  %v5312_v42 = vsel %vm4779_vm0, %v5150_v1, 0.0  ;;  %v5909_v40 = vsel %vm4779_vm0, %v5831_v20, 0.0 }
 0x612   :  { %v4935_v10 = vpop.xlane.xlu1 %4934  ;;  %5313 = vadd.xlane.f32.xlu1 %v5312_v42  ;;  %5907 = vadd.xlane.f32.xlu0 %v5906_v43  ;;  %v5209_v45 = vpop.xlane.xlu0 %5208  ;;  %v5698_v9 = vadd.f32 %v17945_v7, %v5628_v60  ;;  %v5559_v26 = vmul.f32 %v13745_v12, %v17668_v38  ;;  %v5832_v30 = vmul.f32 %v17961_v34, %v5761_v54 }
 0x613   :  { %13750 = vrsqrt.f32 %v5434_v49  ;;  %v5024_v44 = vmul.f32 0.0625, %v4935_v10  ;;  %v5371_v41 = vmul.f32 0.0625, %v5209_v45  ;;  %v5151_v56 = vmul.f32 %v18046_v46, %v18046_v46 }
 0x614   :  { %v5629_v28 = vmul.f32 %v17940_v8, %v5559_v26  ;;  %v5762_v38 = vmax.f32 %v5698_v9, 0.0 }
 0x615   :  { %v13747_v52 = vpop.eup %13746  ;;  %v18058_v24 = vsub.f32 %v17720_v23, %v5024_v44  ;;  %v5435_v14 = vadd.f32 1e-05, %v5371_v41  ;;  %v5315_v35 = vsel %vm4779_vm0, %v5151_v56, 0.0  ;;  %v5912_v23 = vsel %vm4779_vm0, %v5832_v30, 0.0 }
 0x616   :  { %v5212_v18 = vpop.xlane.xlu1 %5211  ;;  %5910 = vadd.xlane.f32.xlu1 %v5909_v40  ;;  %5316 = vadd.xlane.f32.xlu0 %v5315_v35  ;;  %v4938_v62 = vpop.xlane.xlu0 %4937  ;;  %v5699_v19 = vadd.f32 %v17945_v7, %v5629_v28  ;;  %v5560_v63 = vmul.f32 %v13747_v52, %v17679_v50  ;;  %v5833_v50 = vmul.f32 %v17961_v34, %v5762_v38 }
 0x617   :  { %13752 = vrsqrt.f32 %v5435_v14  ;;  %v5372_v1 = vmul.f32 0.0625, %v5212_v18  ;;  %v5025_v20 = vmul.f32 0.0625, %v4938_v62  ;;  %v5152_v54 = vmul.f32 %v18058_v24, %v18058_v24 }
 0x618   :  { %v5763_v60 = vmax.f32 %v5699_v19, 0.0  ;;  %v5630_v12 = vmul.f32 %v17940_v8, %v5560_v63  ;;  %v5915_v38 = vsel %vm4779_vm0, %v5833_v50, 0.0  ;;  %v21244_v63 = vld [vmem:[#allocation57_spill] sm:$0xff] }
 0x619   :  { %v13749_v49 = vpop.eup %13748  ;;  %v5436_v42 = vadd.f32 1e-05, %v5372_v1  ;;  %v18068_v43 = vsub.f32 %v17731_v57, %v5025_v20  ;;  %v5318_v10 = vsel %vm4779_vm0, %v5152_v54, 0.0 }
 0x61a   :  { %v4941_v45 = vpop.xlane.xlu1 %4940  ;;  %5319 = vadd.xlane.f32.xlu1 %v5318_v10  ;;  %5913 = vadd.xlane.f32.xlu0 %v5912_v23  ;;  %v5215_v9 = vpop.xlane.xlu0 %5214  ;;  %v5700_v26 = vadd.f32 %v17945_v7, %v5630_v12  ;;  %v5561_v44 = vmul.f32 %v13749_v49, %v17690_v22  ;;  %v5834_v57 = vmul.f32 %v17961_v34, %v5763_v60 }
 0x61b   :  { %13754 = vrsqrt.f32 %v5436_v42  ;;  %v5026_v41 = vmul.f32 0.0625, %v4941_v45  ;;  %v5373_v56 = vmul.f32 0.0625, %v5215_v9  ;;  %v5153_v40 = vmul.f32 %v18068_v43, %v18068_v43 }
 0x61c   :  { %v5764_v30 = vmax.f32 %v5700_v26, 0.0  ;;  %v5631_v28 = vmul.f32 %v17940_v8, %v5561_v44  ;;  %v5918_v23 = vsel %vm4779_vm0, %v5834_v57, 0.0 }
 0x61d   :  { %v13751_v52 = vpop.eup %13750  ;;  %v18079_v14 = vsub.f32 %v17744_v6, %v5026_v41  ;;  %v5437_v35 = vadd.f32 1e-05, %v5373_v56  ;;  %v5321_v22 = vsel %vm4779_vm0, %v5153_v40, 0.0  ;;  %v21245_v41 = vld [vmem:[#allocation108_spill] sm:$0xff] }
 0x61e   :  { %5916 = vadd.xlane.f32.xlu1 %v5915_v38  ;;  %5322 = vadd.xlane.f32.xlu0 %v5321_v22  ;;  %v4944_v62 = vpop.xlane.xlu0 %4943  ;;  %v5701_v19 = vadd.f32 %v17945_v7, %v5631_v28  ;;  %v5562_v1 = vmul.f32 %v13751_v52, %v21244_v63  ;;  %v5835_v60 = vmul.f32 %v17961_v34, %v5764_v30 }
 0x61f   :  { %v5218_v18 = vpop.xlane.xlu1 %5217  ;;  %13756 = vrsqrt.f32 %v5437_v35  ;;  %v5027_v54 = vmul.f32 0.0625, %v4944_v62  ;;  %v5154_v6 = vmul.f32 %v18079_v14, %v18079_v14 }
 0x620   :  { %v5374_v20 = vmul.f32 0.0625, %v5218_v18  ;;  %v5632_v12 = vmul.f32 %v17940_v8, %v5562_v1  ;;  %v5765_v45 = vmax.f32 %v5701_v19, 0.0 }
 0x621   :  { %v13753_v49 = vpop.eup %13752  ;;  %v18091_v10 = vsub.f32 %v17753_v29, %v5027_v54  ;;  %v5324_v50 = vsel %vm4779_vm0, %v5154_v6, 0.0  ;;  %v5921_v29 = vsel %vm4779_vm0, %v5835_v60, 0.0 }
 0x622   :  { %v5438_v42 = vadd.f32 1e-05, %v5374_v20  ;;  %5325 = vadd.xlane.f32.xlu1 %v5324_v50  ;;  %5919 = vadd.xlane.f32.xlu0 %v5918_v23  ;;  %v5702_v44 = vadd.f32 %v17945_v7, %v5632_v12  ;;  %v5563_v56 = vmul.f32 %v13753_v49, %v21245_v41  ;;  %v5836_v62 = vmul.f32 %v17961_v34, %v5765_v45 }
 0x623   :  { %v4947_v9 = vpop.xlane.xlu1 %4946  ;;  %v5221_v26 = vpop.xlane.xlu0 %5220  ;;  %v5155_v30 = vmul.f32 %v18091_v10, %v18091_v10 }
 0x624   :  { %13758 = vrsqrt.f32 %v5438_v42  ;;  %v5028_v40 = vmul.f32 0.0625, %v4947_v9  ;;  %v5375_v57 = vmul.f32 0.0625, %v5221_v26  ;;  %v5766_v28 = vmax.f32 %v5702_v44, 0.0  ;;  %v21246_v26 = vld [vmem:[#allocation109_spill] sm:$0xff] }
 0x625   :  { %v5633_v52 = vmul.f32 %v17940_v8, %v5563_v56  ;;  %v13755_v35 = vpop.eup %13754  ;;  %v5327_v18 = vsel %vm4779_vm0, %v5155_v30, 0.0  ;;  %v5924_v50 = vsel %vm4779_vm0, %v5836_v62, 0.0 }
 0x626   :  { %v18101_v38 = vsub.f32 %v17764_v58, %v5028_v40  ;;  %v5439_v22 = vadd.f32 1e-05, %v5375_v57  ;;  %5922 = vadd.xlane.f32.xlu1 %v5921_v29  ;;  %5328 = vadd.xlane.f32.xlu0 %v5327_v18  ;;  %v5564_v1 = vmul.f32 %v13755_v35, %v17723_v27  ;;  %v5837_v23 = vmul.f32 %v17961_v34, %v5766_v28 }
 0x627   :  { %v4950_v19 = vpop.xlane.xlu0 %4949  ;;  %v5703_v63 = vadd.f32 %v17945_v7, %v5633_v52  ;;  %v5224_v20 = vpop.xlane.xlu1 %5223 }
 0x628   :  { %13760 = vrsqrt.f32 %v5439_v22  ;;  %v5029_v54 = vmul.f32 0.0625, %v4950_v19  ;;  %v5156_v6 = vmul.f32 %v18101_v38, %v18101_v38  ;;  %v5376_v58 = vmul.f32 0.0625, %v5224_v20  ;;  %v21248_v19 = vld [vmem:[#allocation60_spill] sm:$0xff] }
 0x629   :  { %v5634_v60 = vmul.f32 %v17940_v8, %v5564_v1  ;;  %v13757_v12 = vpop.eup %13756  ;;  %v5767_v27 = vmax.f32 %v5703_v63, 0.0  ;;  %v5927_v30 = vsel %vm4779_vm0, %v5837_v23, 0.0 }
 0x62a   :  { %v18112_v49 = vsub.f32 %v17775_v37, %v5029_v54  ;;  %v5330_v42 = vsel %vm4779_vm0, %v5156_v6, 0.0  ;;  %v5440_v45 = vadd.f32 1e-05, %v5376_v58  ;;  %5925 = vadd.xlane.f32.xlu0 %v5924_v50  ;;  %v5565_v44 = vmul.f32 %v13757_v12, %v21246_v26  ;;  %v21249_v26 = vld [vmem:[#allocation86_spill] sm:$0xff] }
 0x62b   :  { %5331 = vadd.xlane.f32.xlu1 %v5330_v42  ;;  %v5704_v9 = vadd.f32 %v17945_v7, %v5634_v60  ;;  %v4953_v41 = vpop.xlane.xlu1 %4952  ;;  %v5227_v56 = vpop.xlane.xlu0 %5226  ;;  %v5838_v52 = vmul.f32 %v17961_v34, %v5767_v27 }
 0x62c   :  { %v5157_v40 = vmul.f32 %v18112_v49, %v18112_v49  ;;  %13762 = vrsqrt.f32 %v5440_v45  ;;  %v5030_v37 = vmul.f32 0.0625, %v4953_v41  ;;  %v5377_v57 = vmul.f32 0.0625, %v5227_v56 }
 0x62d   :  { %v5768_v35 = vmax.f32 %v5704_v9, 0.0  ;;  %v5635_v22 = vmul.f32 %v17940_v8, %v5565_v44  ;;  %v5930_v12 = vsel %vm4779_vm0, %v5838_v52, 0.0 }
 0x62e   :  { %v13759_v29 = vpop.eup %13758  ;;  %v5333_v28 = vsel %vm4779_vm0, %v5157_v40, 0.0  ;;  %v18125_v18 = vsub.f32 %v17786_v51, %v5030_v37  ;;  %v5441_v62 = vadd.f32 1e-05, %v5377_v57 }
 0x62f   :  { %5928 = vadd.xlane.f32.xlu1 %v5927_v30  ;;  %5334 = vadd.xlane.f32.xlu0 %v5333_v28  ;;  %v5566_v63 = vmul.f32 %v13759_v29, %v21248_v19  ;;  %v5230_v1 = vpop.xlane.xlu1 %5229  ;;  %v4956_v20 = vpop.xlane.xlu0 %4955  ;;  %v5705_v54 = vadd.f32 %v17945_v7, %v5635_v22  ;;  %v5839_v51 = vmul.f32 %v17961_v34, %v5768_v35 }
 0x630   :  { %21247 = vst [vmem:[#allocation68_spill] sm:$0xff] %v18125_v18  ;;  %13764 = vrsqrt.f32 %v5441_v62  ;;  %v5378_v6 = vmul.f32 0.0625, %v5230_v1  ;;  %v5031_v58 = vmul.f32 0.0625, %v4956_v20  ;;  %v5158_v23 = vmul.f32 %v18125_v18, %v18125_v18 }
 0x631   :  { %v5769_v42 = vmax.f32 %v5705_v54, 0.0  ;;  %v5636_v50 = vmul.f32 %v17940_v8, %v5566_v63  ;;  %v5933_v62 = vsel %vm4779_vm0, %v5839_v51, 0.0  ;;  %v21251_v54 = vld [vmem:[#allocation72_spill] sm:$0xff] }
 0x632   :  { %v13761_v60 = vpop.eup %13760  ;;  %v5442_v27 = vadd.f32 1e-05, %v5378_v6  ;;  %v18135_v45 = vsub.f32 %v17797_v31, %v5031_v58  ;;  %v5336_v9 = vsel %vm4779_vm0, %v5158_v23, 0.0 }
 0x633   :  { %5931 = vadd.xlane.f32.xlu0 %v5930_v12  ;;  %v5567_v44 = vmul.f32 %v13761_v60, %v21249_v26  ;;  %v4959_v41 = vpop.xlane.xlu1 %4958  ;;  %5337 = vadd.xlane.f32.xlu1 %v5336_v9  ;;  %v5233_v56 = vpop.xlane.xlu0 %5232  ;;  %v5706_v40 = vadd.f32 %v17945_v7, %v5636_v50  ;;  %v5840_v29 = vmul.f32 %v17961_v34, %v5769_v42 }
 0x634   :  { %13766 = vrsqrt.f32 %v5442_v27  ;;  %v5032_v37 = vmul.f32 0.0625, %v4959_v41  ;;  %v5379_v57 = vmul.f32 0.0625, %v5233_v56  ;;  %v5159_v30 = vmul.f32 %v18135_v45, %v18135_v45 }
 0x635   :  { %v5770_v31 = vmax.f32 %v5706_v40, 0.0  ;;  %v5637_v28 = vmul.f32 %v17940_v8, %v5567_v44  ;;  %v5936_v60 = vsel %vm4779_vm0, %v5840_v29, 0.0  ;;  %v21252_v40 = vld [vmem:[#allocation59_spill] sm:$0xff] }
 0x636   :  { %v13763_v52 = vpop.eup %13762  ;;  %v18145_v35 = vsub.f32 %v17808_v21, %v5032_v37  ;;  %v5443_v22 = vadd.f32 1e-05, %v5379_v57  ;;  %v5339_v19 = vsel %vm4779_vm0, %v5159_v30, 0.0 }
 0x637   :  { %v5236_v63 = vpop.xlane.xlu1 %5235  ;;  %5934 = vadd.xlane.f32.xlu1 %v5933_v62  ;;  %5340 = vadd.xlane.f32.xlu0 %v5339_v19  ;;  %v4962_v1 = vpop.xlane.xlu0 %4961  ;;  %v5707_v20 = vadd.f32 %v17945_v7, %v5637_v28  ;;  %v5568_v6 = vmul.f32 %v13763_v52, %v21251_v54  ;;  %v5841_v12 = vmul.f32 %v17961_v34, %v5770_v31 }
 0x638   :  { %21250 = vst [vmem:[#allocation67_spill] sm:$0xff] %v18145_v35  ;;  %13768 = vrsqrt.f32 %v5443_v22  ;;  %v5380_v58 = vmul.f32 0.0625, %v5236_v63  ;;  %v5033_v23 = vmul.f32 0.0625, %v4962_v1  ;;  %v5160_v21 = vmul.f32 %v18145_v35, %v18145_v35 }
 0x639   :  { %v5638_v51 = vmul.f32 %v17940_v8, %v5568_v6  ;;  %v5771_v26 = vmax.f32 %v5707_v20, 0.0  ;;  %v21254_v6 = vld [vmem:[#allocation62_spill] sm:$0xff] }
 0x63a   :  { %v13765_v42 = vpop.eup %13764  ;;  %v5444_v50 = vadd.f32 1e-05, %v5380_v58  ;;  %v18157_v27 = vsub.f32 %v17819_v39, %v5033_v23  ;;  %v5342_v9 = vsel %vm4779_vm0, %v5160_v21, 0.0  ;;  %v5939_v39 = vsel %vm4779_vm0, %v5841_v12, 0.0 }
 0x63b   :  { %v4965_v44 = vpop.xlane.xlu1 %4964  ;;  %5343 = vadd.xlane.f32.xlu1 %v5342_v9  ;;  %5937 = vadd.xlane.f32.xlu0 %v5936_v60  ;;  %v5239_v41 = vpop.xlane.xlu0 %5238  ;;  %v5708_v56 = vadd.f32 %v17945_v7, %v5638_v51  ;;  %v5569_v37 = vmul.f32 %v13765_v42, %v21252_v40  ;;  %v5842_v63 = vmul.f32 %v17961_v34, %v5771_v26 }
 0x63c   :  { %13770 = vrsqrt.f32 %v5444_v50  ;;  %v5034_v57 = vmul.f32 0.0625, %v4965_v44  ;;  %v5381_v30 = vmul.f32 0.0625, %v5239_v41  ;;  %v5161_v29 = vmul.f32 %v18157_v27, %v18157_v27 }
 0x63d   :  { %v5772_v31 = vmax.f32 %v5708_v56, 0.0  ;;  %v5639_v28 = vmul.f32 %v17940_v8, %v5569_v37  ;;  %v5942_v44 = vsel %vm4779_vm0, %v5842_v63, 0.0  ;;  %v21256_v37 = vld [vmem:[#allocation61_spill] sm:$0xff] }
 0x63e   :  { %v13767_v52 = vpop.eup %13766  ;;  %v18167_v22 = vsub.f32 %v17830_v2, %v5034_v57  ;;  %v5445_v62 = vadd.f32 1e-05, %v5381_v30  ;;  %v5345_v19 = vsel %vm4779_vm0, %v5161_v29, 0.0 }
 0x63f   :  { %v5242_v1 = vpop.xlane.xlu1 %5241  ;;  %5940 = vadd.xlane.f32.xlu1 %v5939_v39  ;;  %5346 = vadd.xlane.f32.xlu0 %v5345_v19  ;;  %v4968_v20 = vpop.xlane.xlu0 %4967  ;;  %v5709_v54 = vadd.f32 %v17945_v7, %v5639_v28  ;;  %v5570_v58 = vmul.f32 %v13767_v52, %v21254_v6  ;;  %v5843_v60 = vmul.f32 %v17961_v34, %v5772_v31  ;;  %v21258_v6 = vld [vmem:[#allocation73_spill] sm:$0xff] }
 0x640   :  { %21253 = vst [vmem:[#allocation79_spill] sm:$0xff] %v18167_v22  ;;  %13772 = vrsqrt.f32 %v5445_v62  ;;  %v5382_v23 = vmul.f32 0.0625, %v5242_v1  ;;  %v5035_v21 = vmul.f32 0.0625, %v4968_v20  ;;  %v5162_v2 = vmul.f32 %v18167_v22, %v18167_v22 }
 0x641   :  { %v5773_v12 = vmax.f32 %v5709_v54, 0.0  ;;  %v5640_v51 = vmul.f32 %v17940_v8, %v5570_v58 }
 0x642   :  { %v13769_v42 = vpop.eup %13768  ;;  %v5446_v50 = vadd.f32 1e-05, %v5382_v23  ;;  %v18178_v9 = vsub.f32 %v17841_v47, %v5035_v21  ;;  %v5348_v26 = vsel %vm4779_vm0, %v5162_v2, 0.0  ;;  %v5945_v47 = vsel %vm4779_vm0, %v5843_v60, 0.0 }
 0x643   :  { %5349 = vadd.xlane.f32.xlu1 %v5348_v26  ;;  %v4971_v41 = vpop.xlane.xlu1 %4970  ;;  %5943 = vadd.xlane.f32.xlu0 %v5942_v44  ;;  %v5245_v56 = vpop.xlane.xlu0 %5244  ;;  %v5710_v40 = vadd.f32 %v17945_v7, %v5640_v51  ;;  %v5571_v57 = vmul.f32 %v13769_v42, %v21256_v37  ;;  %v5844_v31 = vmul.f32 %v17961_v34, %v5773_v12 }
 0x644   :  { %21255 = vst [vmem:[#allocation96_spill] sm:$0xff] %v18178_v9  ;;  %13774 = vrsqrt.f32 %v5446_v50  ;;  %v5036_v30 = vmul.f32 0.0625, %v4971_v41  ;;  %v5383_v29 = vmul.f32 0.0625, %v5245_v56  ;;  %v5163_v39 = vmul.f32 %v18178_v9, %v18178_v9  ;;  %v21259_v56 = vld [vmem:[#allocation110_spill] sm:$0xff] }
 0x645   :  { %v5641_v28 = vmul.f32 %v17940_v8, %v5571_v57  ;;  %v5774_v1 = vmax.f32 %v5710_v40, 0.0  ;;  %v5948_v42 = vsel %vm4779_vm0, %v5844_v31, 0.0 }
 0x646   :  { %v13771_v52 = vpop.eup %13770  ;;  %v18190_v62 = vsub.f32 %v17852_v5, %v5036_v30  ;;  %v5447_v19 = vadd.f32 1e-05, %v5383_v29  ;;  %v5351_v63 = vsel %vm4779_vm0, %v5163_v39, 0.0 }
 0x647   :  { %5946 = vadd.xlane.f32.xlu1 %v5945_v47  ;;  %v5248_v20 = vpop.xlane.xlu1 %5247  ;;  %5352 = vadd.xlane.f32.xlu0 %v5351_v63  ;;  %v5711_v54 = vadd.f32 %v17945_v7, %v5641_v28  ;;  %v5572_v58 = vmul.f32 %v13771_v52, %v21258_v6  ;;  %v5845_v50 = vmul.f32 %v17961_v34, %v5774_v1  ;;  %v21260_v63 = vld [vmem:[#allocation64_spill] sm:$0xff] }
 0x648   :  { %21257 = vst [vmem:[#allocation71_spill] sm:$0xff] %v18190_v62  ;;  %13776 = vrsqrt.f32 %v5447_v19  ;;  %v5384_v23 = vmul.f32 0.0625, %v5248_v20  ;;  %v5164_v21 = vmul.f32 %v18190_v62, %v18190_v62 }
 0x649   :  { %v5775_v2 = vmax.f32 %v5711_v54, 0.0  ;;  %v5642_v5 = vmul.f32 %v17940_v8, %v5572_v58  ;;  %v5951_v31 = vsel %vm4779_vm0, %v5845_v50, 0.0 }
 0x64a   :  { %v13773_v60 = vpop.eup %13772  ;;  %v5448_v12 = vadd.f32 1e-05, %v5384_v23  ;;  %v5354_v51 = vsel %vm4779_vm0, %v5164_v21, 0.0 }
 0x64b   :  { %5355 = vadd.xlane.f32.xlu1 %v5354_v51  ;;  %5949 = vadd.xlane.f32.xlu0 %v5948_v42  ;;  %v5251_v26 = vpop.xlane.xlu0 %5250  ;;  %v5846_v44 = vmul.f32 %v17961_v34, %v5775_v2  ;;  %v5712_v41 = vadd.f32 %v17945_v7, %v5642_v5  ;;  %v5573_v40 = vmul.f32 %v13773_v60, %v21259_v56 }
 0x64c   :  { %13778 = vrsqrt.f32 %v5448_v12  ;;  %v5385_v37 = vmul.f32 0.0625, %v5251_v26 }
 0x64d   :  { %v5954_v57 = vsel %vm4779_vm0, %v5846_v44, 0.0  ;;  %v5776_v30 = vmax.f32 %v5712_v41, 0.0  ;;  %v5643_v29 = vmul.f32 %v17940_v8, %v5573_v40 }
 0x64e   :  { %v13775_v39 = vpop.eup %13774  ;;  %v5449_v47 = vadd.f32 1e-05, %v5385_v37 }
 0x64f   :  { %5952 = vadd.xlane.f32.xlu1 %v5951_v31  ;;  %v5254_v28 = vpop.xlane.xlu1 %5253  ;;  %5955 = vadd.xlane.f32.xlu0 %v5954_v57  ;;  %v5847_v52 = vmul.f32 %v17961_v34, %v5776_v30  ;;  %v5713_v19 = vadd.f32 %v17945_v7, %v5643_v29  ;;  %v5574_v1 = vmul.f32 %v13775_v39, %v21260_v63 }
 0x650   :  { %13780 = vrsqrt.f32 %v5449_v47  ;;  %v5386_v20 = vmul.f32 0.0625, %v5254_v28 }
 0x651   :  { %v5957_v54 = vsel %vm4779_vm0, %v5847_v52, 0.0  ;;  %v5777_v6 = vmax.f32 %v5713_v19, 0.0  ;;  %v5644_v58 = vmul.f32 %v17940_v8, %v5574_v1 }
 0x652   :  { %v13777_v23 = vpop.eup %13776  ;;  %v5450_v21 = vadd.f32 1e-05, %v5386_v20 }
 0x653   :  { %5958 = vadd.xlane.f32.xlu1 %v5957_v54  ;;  %v5257_v2 = vpop.xlane.xlu0 %5256  ;;  %v5848_v5 = vmul.f32 %v17961_v34, %v5777_v6  ;;  %v5714_v60 = vadd.f32 %v17945_v7, %v5644_v58  ;;  %v5575_v12 = vmul.f32 %v13777_v23, %v17848_v13 }
 0x654   :  { %13782 = vrsqrt.f32 %v5450_v21  ;;  %v5387_v51 = vmul.f32 0.0625, %v5257_v2 }
 0x655   :  { %v5960_v42 = vsel %vm4779_vm0, %v5848_v5, 0.0  ;;  %v5778_v50 = vmax.f32 %v5714_v60, 0.0  ;;  %v5645_v26 = vmul.f32 %v17940_v8, %v5575_v12 }
 0x656   :  { %v13779_v44 = vpop.eup %13778  ;;  %v5451_v41 = vadd.f32 1e-05, %v5387_v51  ;;  %5961 = vadd.xlane.f32.xlu0 %v5960_v42 }
 0x657   :  { %v5260_v56 = vpop.xlane.xlu1 %5259  ;;  %v5849_v40 = vmul.f32 %v17961_v34, %v5778_v50  ;;  %v5715_v37 = vadd.f32 %v17945_v7, %v5645_v26  ;;  %v5576_v57 = vmul.f32 %v13779_v44, %v17859_v32 }
 0x658   :  { %13784 = vrsqrt.f32 %v5451_v41  ;;  %v5388_v30 = vmul.f32 0.0625, %v5260_v56 }
 0x659   :  { %v5963_v13 = vsel %vm4779_vm0, %v5849_v40, 0.0  ;;  %v5779_v29 = vmax.f32 %v5715_v37, 0.0  ;;  %v5646_v39 = vmul.f32 %v17940_v8, %v5576_v57 }
 0x65a   :  { %v13781_v47 = vpop.eup %13780  ;;  %v5452_v31 = vadd.f32 1e-05, %v5388_v30  ;;  %5964 = vadd.xlane.f32.xlu1 %v5963_v13 }
 0x65b   :  { %v5263_v28 = vpop.xlane.xlu0 %5262  ;;  %v5850_v52 = vmul.f32 %v17961_v34, %v5779_v29  ;;  %v5716_v19 = vadd.f32 %v17945_v7, %v5646_v39  ;;  %v5577_v63 = vmul.f32 %v13781_v47, %v17865_v55 }
 0x65c   :  { %13786 = vrsqrt.f32 %v5452_v31  ;;  %v5389_v1 = vmul.f32 0.0625, %v5263_v28 }
 0x65d   :  { %v5966_v32 = vsel %vm4779_vm0, %v5850_v52, 0.0  ;;  %v5780_v20 = vmax.f32 %v5716_v19, 0.0  ;;  %v5647_v54 = vmul.f32 %v17940_v8, %v5577_v63  ;;  %v18241_v19 = vld [vmem:[#allocation10] ss:$0 sm:$0xff] }
 0x65e   :  { %v13783_v6 = vpop.eup %13782  ;;  %v5453_v58 = vadd.f32 1e-05, %v5389_v1  ;;  %5967 = vadd.xlane.f32.xlu0 %v5966_v32 }
 0x65f   :  { %v5266_v23 = vpop.xlane.xlu1 %5265  ;;  %v5851_v21 = vmul.f32 %v17961_v34, %v5780_v20  ;;  %v5717_v2 = vadd.f32 %v17945_v7, %v5647_v54  ;;  %v5578_v5 = vmul.f32 %v13783_v6, %v17871_v25  ;;  %v18245_v54 = vld [vmem:[#allocation11] ss:$0 sm:$0xff] }
 0x660   :  { %13788 = vrsqrt.f32 %v5453_v58  ;;  %v5390_v60 = vmul.f32 0.0625, %v5266_v23 }
 0x661   :  { %v5969_v55 = vsel %vm4779_vm0, %v5851_v21, 0.0  ;;  %v5781_v12 = vmax.f32 %v5717_v2, 0.0  ;;  %v5648_v51 = vmul.f32 %v17940_v8, %v5578_v5 }
 0x662   :  { %v13785_v42 = vpop.eup %13784  ;;  %v5454_v50 = vadd.f32 1e-05, %v5390_v60  ;;  %5970 = vadd.xlane.f32.xlu1 %v5969_v55 }
 0x663   :  { %v5269_v26 = vpop.xlane.xlu0 %5268  ;;  %v5852_v44 = vmul.f32 %v17961_v34, %v5781_v12  ;;  %v5718_v41 = vadd.f32 %v17945_v7, %v5648_v51  ;;  %v5579_v56 = vmul.f32 %v13785_v42, %v17877_v17 }
 0x664   :  { %13790 = vrsqrt.f32 %v5454_v50  ;;  %v5391_v40 = vmul.f32 0.0625, %v5269_v26 }
 0x665   :  { %v5972_v25 = vsel %vm4779_vm0, %v5852_v44, 0.0  ;;  %v5782_v37 = vmax.f32 %v5718_v41, 0.0  ;;  %v5649_v57 = vmul.f32 %v17940_v8, %v5579_v56 }
 0x666   :  { %v13787_v30 = vpop.eup %13786  ;;  %v5455_v13 = vadd.f32 1e-05, %v5391_v40  ;;  %5973 = vadd.xlane.f32.xlu0 %v5972_v25  ;;  %v18256_v40 = vld [vmem:[#allocation13] ss:$0 sm:$0xff] }
 0x667   :  { %v5272_v29 = vpop.xlane.xlu1 %5271  ;;  %v5853_v39 = vmul.f32 %v17961_v34, %v5782_v37  ;;  %v5719_v47 = vadd.f32 %v17945_v7, %v5649_v57  ;;  %v5580_v31 = vmul.f32 %v13787_v30, %v17883_v15  ;;  %v21261_v37 = vld [vmem:[#allocation63_spill] sm:$0xff] }
 0x668   :  { %13792 = vrsqrt.f32 %v5455_v13  ;;  %v5392_v28 = vmul.f32 0.0625, %v5272_v29 }
 0x669   :  { %v5975_v17 = vsel %vm4779_vm0, %v5853_v39, 0.0  ;;  %v5783_v52 = vmax.f32 %v5719_v47, 0.0  ;;  %v5650_v63 = vmul.f32 %v18241_v19, %v5580_v31 }
 0x66a   :  { %v13789_v8 = vpop.eup %13788  ;;  %v5456_v1 = vadd.f32 1e-05, %v5392_v28  ;;  %5976 = vadd.xlane.f32.xlu1 %v5975_v17 }
 0x66b   :  { %v5275_v32 = vpop.xlane.xlu0 %5274  ;;  %v5854_v20 = vmul.f32 %v17961_v34, %v5783_v52  ;;  %v5720_v7 = vadd.f32 %v18245_v54, %v5650_v63  ;;  %v5581_v15 = vmul.f32 %v13789_v8, %v17889_v48 }
 0x66c   :  { %13794 = vrsqrt.f32 %v5456_v1  ;;  %v5393_v6 = vmul.f32 0.0625, %v5275_v32 }
 0x66d   :  { %v5978_v58 = vsel %vm4779_vm0, %v5854_v20, 0.0  ;;  %v5784_v23 = vmax.f32 %v5720_v7, 0.0  ;;  %v5651_v21 = vmul.f32 %v18241_v19, %v5581_v15 }
 0x66e   :  { %v13791_v2 = vpop.eup %13790  ;;  %v5457_v5 = vadd.f32 1e-05, %v5393_v6  ;;  %5979 = vadd.xlane.f32.xlu0 %v5978_v58 }
 0x66f   :  { %v5278_v60 = vpop.xlane.xlu1 %5277  ;;  %v5855_v55 = vmul.f32 %v17961_v34, %v5784_v23  ;;  %v5721_v12 = vadd.f32 %v18245_v54, %v5651_v21  ;;  %v5582_v51 = vmul.f32 %v13791_v2, %v17895_v16  ;;  %v21262_v23 = vld [vmem:[#allocation66_spill] sm:$0xff] }
 0x670   :  { %13796 = vrsqrt.f32 %v5457_v5  ;;  %v5394_v42 = vmul.f32 0.0625, %v5278_v60 }
 0x671   :  { %v5981_v48 = vsel %vm4779_vm0, %v5855_v55, 0.0  ;;  %v5785_v50 = vmax.f32 %v5721_v12, 0.0  ;;  %v5652_v26 = vmul.f32 %v18241_v19, %v5582_v51 }
 0x672   :  { %v13793_v44 = vpop.eup %13792  ;;  %v5458_v41 = vadd.f32 1e-05, %v5394_v42  ;;  %5982 = vadd.xlane.f32.xlu1 %v5981_v48 }
 0x673   :  { %v5281_v56 = vpop.xlane.xlu0 %5280  ;;  %v5856_v25 = vmul.f32 %v18256_v40, %v5785_v50  ;;  %v5722_v34 = vadd.f32 %v18245_v54, %v5652_v26  ;;  %v5583_v57 = vmul.f32 %v13793_v44, %v21261_v37  ;;  %v21263_v50 = vld [vmem:[#allocation91_spill] sm:$0xff] }
 0x674   :  { %13798 = vrsqrt.f32 %v5458_v41  ;;  %v5395_v16 = vmul.f32 0.0625, %v5281_v56 }
 0x675   :  { %v5984_v30 = vsel %vm4779_vm0, %v5856_v25, 0.0  ;;  %v5786_v13 = vmax.f32 %v5722_v34, 0.0  ;;  %v5653_v29 = vmul.f32 %v18241_v19, %v5583_v57 }
 0x676   :  { %v13795_v39 = vpop.eup %13794  ;;  %v5459_v47 = vadd.f32 1e-05, %v5395_v16  ;;  %5985 = vadd.xlane.f32.xlu0 %v5984_v30 }
 0x677   :  { %v5284_v31 = vpop.xlane.xlu1 %5283  ;;  %v5857_v28 = vmul.f32 %v18256_v40, %v5786_v13  ;;  %v5723_v17 = vadd.f32 %v18245_v54, %v5653_v29  ;;  %v5584_v52 = vmul.f32 %v13795_v39, %v17907_v4  ;;  %v21264_v13 = vld [vmem:[#allocation92_spill] sm:$0xff] }
 0x678   :  { %13800 = vrsqrt.f32 %v5459_v47  ;;  %v5396_v63 = vmul.f32 0.0625, %v5284_v31 }
 0x679   :  { %v5987_v8 = vsel %vm4779_vm0, %v5857_v28, 0.0  ;;  %v5787_v1 = vmax.f32 %v5723_v17, 0.0  ;;  %v5654_v32 = vmul.f32 %v18241_v19, %v5584_v52  ;;  %v21265_v52 = vld [vmem:[#allocation30_spill] sm:$0xff] }
 0x67a   :  { %v13797_v20 = vpop.eup %13796  ;;  %v5460_v7 = vadd.f32 1e-05, %v5396_v63  ;;  %5988 = vadd.xlane.f32.xlu1 %v5987_v8  ;;  %v21266_v63 = vld [vmem:[#allocation103_spill] sm:$0xff] }
 0x67b   :  { %v5287_v15 = vpop.xlane.xlu0 %5286  ;;  %v5858_v6 = vmul.f32 %v18256_v40, %v5787_v1  ;;  %v5724_v58 = vadd.f32 %v18245_v54, %v5654_v32  ;;  %v5585_v21 = vmul.f32 %v13797_v20, %v21262_v23  ;;  %v18285_v8 = vrot.slane %v21266_v63, %v21265_v52 }
 0x67c   :  { %13802 = vrsqrt.f32 %v5460_v7  ;;  %v5397_v2 = vmul.f32 0.0625, %v5287_v15 }
 0x67d   :  { %v5990_v4 = vsel %vm4779_vm0, %v5858_v6, 0.0  ;;  %v5788_v5 = vmax.f32 %v5724_v58, 0.0  ;;  %v5655_v60 = vmul.f32 %v18241_v19, %v5585_v21  ;;  %21267 = vst [vmem:[#allocation70_spill] sm:$0xff] %v18285_v8  ;;  %v21268_v6 = vld [vmem:[#allocation65_spill] sm:$0xff] }
 0x67e   :  { %v13799_v55 = vpop.eup %13798  ;;  %v5461_v12 = vadd.f32 1e-05, %v5397_v2  ;;  %5991 = vadd.xlane.f32.xlu0 %v5990_v4 }
 0x67f   :  { %v5290_v51 = vpop.xlane.xlu1 %5289  ;;  %v5859_v42 = vmul.f32 %v18256_v40, %v5788_v5  ;;  %v5725_v48 = vadd.f32 %v18245_v54, %v5655_v60  ;;  %v5586_v26 = vmul.f32 %v13799_v55, %v21263_v50 }
 0x680   :  { %13804 = vrsqrt.f32 %v5461_v12  ;;  %v5398_v44 = vmul.f32 0.0625, %v5290_v51 }
 0x681   :  { %v5993_v41 = vsel %vm4779_vm0, %v5859_v42, 0.0  ;;  %v5789_v56 = vmax.f32 %v5725_v48, 0.0  ;;  %v5656_v25 = vmul.f32 %v18241_v19, %v5586_v26  ;;  %v21269_v26 = vld [vmem:[#allocation76_spill] sm:$0xff] }
 0x682   :  { %v13801_v34 = vpop.eup %13800  ;;  %v5462_v37 = vadd.f32 1e-05, %v5398_v44  ;;  %5994 = vadd.xlane.f32.xlu1 %v5993_v41 }
 0x683   :  { %v5293_v57 = vpop.xlane.xlu0 %5292  ;;  %v5860_v16 = vmul.f32 %v18256_v40, %v5789_v56  ;;  %v5726_v30 = vadd.f32 %v18245_v54, %v5656_v25  ;;  %v5587_v29 = vmul.f32 %v13801_v34, %v21264_v13 }
 0x684   :  { %13806 = vrsqrt.f32 %v5462_v37  ;;  %v5399_v39 = vmul.f32 0.0625, %v5293_v57 }
 0x685   :  { %v5996_v47 = vsel %vm4779_vm0, %v5860_v16, 0.0  ;;  %v5790_v31 = vmax.f32 %v5726_v30, 0.0  ;;  %v5657_v28 = vmul.f32 %v18241_v19, %v5587_v29 }
 0x686   :  { %v13803_v17 = vpop.eup %13802  ;;  %v5463_v1 = vadd.f32 1e-05, %v5399_v39  ;;  %5997 = vadd.xlane.f32.xlu0 %v5996_v47  ;;  %v21270_v39 = vld [vmem:[#allocation77_spill] sm:$0xff] }
 0x687   :  { %v5296_v32 = vpop.xlane.xlu1 %5295  ;;  %v5890_v20 = vpop.xlane.xlu0 %5889  ;;  %v5861_v7 = vmul.f32 %v18256_v40, %v5790_v31  ;;  %v5727_v15 = vadd.f32 %v18245_v54, %v5657_v28  ;;  %v5588_v58 = vmul.f32 %v13803_v17, %v21268_v6 }
 0x688   :  { %13808 = vrsqrt.f32 %v5463_v1  ;;  %v5400_v23 = vmul.f32 0.0625, %v5296_v32  ;;  %v6090_v21 = vadd.f32 %v18285_v8, %v5890_v20 }
 0x689   :  { %v5999_v2 = vsel %vm4779_vm0, %v5861_v7, 0.0  ;;  %v5791_v4 = vmax.f32 %v5727_v15, 0.0  ;;  %v5658_v5 = vmul.f32 %v18241_v19, %v5588_v58 }
 0x68a   :  { %v13805_v60 = vpop.eup %13804  ;;  %v5464_v55 = vadd.f32 1e-05, %v5400_v23  ;;  %v12656_v12 = vmul.f32 -1.442695, %v6090_v21  ;;  %6000 = vadd.xlane.f32.xlu1 %v5999_v2 }
 0x68b   :  { %v5893_v51 = vpop.xlane.xlu1 %5892  ;;  %v5299_v42 = vpop.xlane.xlu0 %5298  ;;  %v5862_v48 = vmul.f32 %v18256_v40, %v5791_v4  ;;  %v5728_v50 = vadd.f32 %v18245_v54, %v5658_v5  ;;  %v5589_v44 = vmul.f32 %v13805_v60, %v21269_v26 }
 0x68c   :  { %13810 = vrsqrt.f32 %v5464_v55  ;;  %v5401_v41 = vmul.f32 0.0625, %v5299_v42  ;;  %v6091_v31 = vadd.f32 %v18285_v8, %v5893_v51 }
 0x68d   :  { %13812 = vpow2.f32 %v12656_v12  ;;  %v6002_v56 = vsel %vm4779_vm0, %v5862_v48, 0.0  ;;  %v5792_v25 = vmax.f32 %v5728_v50, 0.0  ;;  %v5659_v34 = vmul.f32 %v18241_v19, %v5589_v44 }
 0x68e   :  { %v13807_v37 = vpop.eup %13806  ;;  %v5465_v57 = vadd.f32 1e-05, %v5401_v41  ;;  %6003 = vadd.xlane.f32.xlu0 %v6002_v56  ;;  %v12657_v23 = vmul.f32 -1.442695, %v6091_v31 }
 0x68f   :  { %v5302_v16 = vpop.xlane.xlu1 %5301  ;;  %v18298_v30 = vpop.xlane.xlu0 %5895  ;;  %v5863_v13 = vmul.f32 %v18256_v40, %v5792_v25  ;;  %v5729_v29 = vadd.f32 %v18245_v54, %v5659_v34  ;;  %v5590_v47 = vmul.f32 %v13807_v37, %v21270_v39 }
 0x690   :  { %v5402_v28 = vmul.f32 0.0625, %v5302_v16  ;;  %13814 = vrsqrt.f32 %v5465_v57 }
 0x691   :  { %v6005_v17 = vsel %vm4779_vm0, %v5863_v13, 0.0  ;;  %v5793_v63 = vmax.f32 %v5729_v29, 0.0  ;;  %v5660_v1 = vmul.f32 %v18241_v19, %v5590_v47 }
 0x692   :  { %v13809_v32 = vpop.eup %13808  ;;  %v5466_v20 = vadd.f32 1e-05, %v5402_v28  ;;  %6006 = vadd.xlane.f32.xlu1 %v6005_v17 }
 0x693   :  { %v5305_v7 = vpop.xlane.xlu0 %5304  ;;  %v5864_v15 = vmul.f32 %v18256_v40, %v5793_v63  ;;  %v5730_v6 = vadd.f32 %v18245_v54, %v5660_v1  ;;  %v5591_v58 = vmul.f32 %v13809_v32, %v17958_v11  ;;  %v18323_v31 = vpop.xlane.xlu1 %5898 }
 0x694   :  { %13816 = vrsqrt.f32 %v5466_v20  ;;  %v5403_v21 = vmul.f32 0.0625, %v5305_v7 }
 0x695   :  { %v6008_v2 = vsel %vm4779_vm0, %v5864_v15, 0.0  ;;  %v5794_v4 = vmax.f32 %v5730_v6, 0.0  ;;  %v5661_v5 = vmul.f32 %v18241_v19, %v5591_v58  ;;  %13818 = vpow2.f32 %v12657_v23 }
 0x696   :  { %v13811_v60 = vpop.eup %13810  ;;  %v5467_v55 = vadd.f32 1e-05, %v5403_v21  ;;  %6009 = vadd.xlane.f32.xlu0 %v6008_v2  ;;  %v14292_v2 = vmov 1966171168  }
 0x697   :  { %v13813_v12 = vpop.eup %13812  ;;  %v18311_v51 = vpop.xlane.xlu0 %5901  ;;  %v5865_v42 = vmul.f32 %v18256_v40, %v5794_v4  ;;  %v5731_v48 = vadd.f32 %v18245_v54, %v5661_v5  ;;  %v5592_v11 = vmul.f32 %v13811_v60, %v17969_v59  ;;  %v8655_v4 = vunpack.c.l.s4 %v14292_v2 }
 0x698   :  { %v6346_v50 = vadd.f32 1.0, %v13813_v12  ;;  %13820 = vrsqrt.f32 %v5467_v55  ;;  %v21271_v55 = vld [vmem:[#allocation28_spill] sm:$0xff] }
 0x699   :  { %v6011_v26 = vsel %vm4779_vm0, %v5865_v42, 0.0  ;;  %v5795_v44 = vmax.f32 %v5731_v48, 0.0  ;;  %v5662_v41 = vmul.f32 %v18241_v19, %v5592_v11  ;;  %v18338_v12 = vsub.s32 2, %v21271_v55 }
 0x69a   :  { %6012 = vadd.xlane.f32.xlu1 %v6011_v26  ;;  %v13815_v56 = vpop.eup %13814  ;;  %13822 = vrcp.f32 %v6346_v50  ;;  %v18341_v42 = vsub.s32 3, %v21271_v55 }
 0x69b   :  { %v5311_v25 = vpop.xlane.xlu0 %5310  ;;  %v5866_v34 = vmul.f32 %v18256_v40, %v5795_v44  ;;  %v5732_v37 = vadd.f32 %v18245_v54, %v5662_v41  ;;  %v5593_v16 = vmul.f32 %v13815_v56, %v17980_v3 }
 0x69c   :  { %v5405_v57 = vmul.f32 0.0625, %v5311_v25  ;;  %v18350_v25 = vsub.s32 5, %v21271_v55 }
 0x69d   :  { %v6014_v59 = vsel %vm4779_vm0, %v5866_v34, 0.0  ;;  %v5796_v13 = vmax.f32 %v5732_v37, 0.0  ;;  %v5663_v47 = vmul.f32 %v18241_v19, %v5593_v16  ;;  %v18353_v34 = vsub.s32 6, %v21271_v55 }
 0x69e   :  { %v13817_v29 = vpop.eup %13816  ;;  %v5469_v39 = vadd.f32 1e-05, %v5405_v57  ;;  %6015 = vadd.xlane.f32.xlu0 %v6014_v59  ;;  %v18358_v16 = vsub.s32 7, %v21271_v55  ;;  %v8656_v59 = vunpack.c.0.s8 %v8655_v4 }
 0x69f   :  { %v18325_v28 = vpop.xlane.xlu0 %5907  ;;  %v5867_v17 = vmul.f32 %v18256_v40, %v5796_v13  ;;  %v5594_v63 = vmul.f32 %v13817_v29, %v17992_v33  ;;  %v5733_v3 = vadd.f32 %v18245_v54, %v5663_v47  ;;  %v13819_v20 = vpop.eup %13818 }
 0x6a0   :  { %13824 = vrsqrt.f32 %v5469_v39  ;;  %v18334_v33 = vpop.xlane.xlu1 %5307  ;;  %v6347_v11 = vadd.f32 1.0, %v13819_v20  ;;  %v21272_v39 = vld [vmem:[#allocation32_spill] sm:$0xff]  ;;  %v18372_v2 = vsub.s32 %v8656_v59, %v21271_v55 }
 0x6a1   :  { %v6017_v1 = vsel %vm4779_vm0, %v5867_v17, 0.0  ;;  %v5664_v32 = vmul.f32 %v18241_v19, %v5594_v63  ;;  %v5797_v6 = vmax.f32 %v5733_v3, 0.0 }
 0x6a2   :  { %6018 = vadd.xlane.f32.xlu1 %v6017_v1  ;;  %v13821_v7 = vpop.eup %13820 }
 0x6a3   :  { %v5317_v15 = vpop.xlane.xlu0 %5316  ;;  %v5734_v58 = vadd.f32 %v18245_v54, %v5664_v32  ;;  %v5595_v21 = vmul.f32 %v13821_v7, %v18002_v61  ;;  %v5868_v5 = vmul.f32 %v18256_v40, %v5797_v6  ;;  %v18345_v61 = vsub.s32 4, %v21271_v55 }
 0x6a4   :  { %v5407_v23 = vmul.f32 0.0625, %v5317_v15  ;;  %v13823_v48 = vpop.eup %13822  ;;  %v18364_v32 = vpop.xlane.xlu1 %5904 }
 0x6a5   :  { %v5798_v60 = vmax.f32 %v5734_v58, 0.0  ;;  %v5665_v26 = vmul.f32 %v18241_v19, %v5595_v21  ;;  %v6020_v44 = vsel %vm4779_vm0, %v5868_v5, 0.0  ;;  %v6605_v29 = vrot.slane %v13823_v48, %v21265_v52 }
 0x6a6   :  { %v5471_v50 = vadd.f32 1e-05, %v5407_v23  ;;  %6021 = vadd.xlane.f32.xlu0 %v6020_v44  ;;  %v6609_v47 = vrot.slane %v13823_v48, %v21272_v39  ;;  %v6613_v1 = vrot.slane %v13823_v48, %v18338_v12  ;;  %v6617_v7 = vrot.slane %v13823_v48, %v18341_v42 }
 0x6a7   :  { %v5914_v41 = vpop.xlane.xlu0 %5913  ;;  %v5869_v56 = vmul.f32 %v18256_v40, %v5798_v60  ;;  %v5735_v57 = vadd.f32 %v18245_v54, %v5665_v26  ;;  %v6621_v15 = vrot.slane %v13823_v48, %v18345_v61  ;;  %v6625_v6 = vrot.slane %v13823_v48, %v18350_v25 }
 0x6a8   :  { %v6098_v37 = vadd.f32 %v18285_v8, %v5914_v41  ;;  %13826 = vrsqrt.f32 %v5471_v50  ;;  %v6629_v58 = vrot.slane %v13823_v48, %v18353_v34  ;;  %v6633_v5 = vrot.slane %v13823_v48, %v18358_v16 }
 0x6a9   :  { %v6023_v13 = vsel %vm4779_vm0, %v5869_v56, 0.0  ;;  %13828 = vrcp.f32 %v6347_v11  ;;  %v5799_v63 = vmax.f32 %v5735_v57, 0.0  ;;  %v8650_v60 = vcombine.low %v6605_v29, %v6609_v47  ;;  %v18379_v57 = vpop.xlane.xlu1 %5313 }
 0x6aa   :  { %v12664_v17 = vmul.f32 -1.442695, %v6098_v37  ;;  %6024 = vadd.xlane.f32.xlu1 %v6023_v13  ;;  %v13825_v3 = vpop.eup %13824  ;;  %v8651_v44 = vcombine.low %v6613_v1, %v6617_v7  ;;  %v8652_v41 = vcombine.low %v6621_v15, %v6625_v6  ;;  %v8653_v56 = vcombine.low %v6629_v58, %v6633_v5 }
 0x6ab   :  { %v5323_v20 = vpop.xlane.xlu0 %5322  ;;  %v5870_v21 = vmul.f32 %v18256_v40, %v5799_v63  ;;  %v5597_v4 = vmul.f32 %v13825_v3, %v18025_v0  ;;  %v8660_v37 = vrot.slane %v8650_v60, %v18372_v2 }
 0x6ac   :  { %v5409_v23 = vmul.f32 0.0625, %v5323_v20  ;;  %13830 = vpow2.f32 %v12664_v17  ;;  %v8667_v0 = vrot.slane %v8651_v44, %v18372_v2  ;;  %v8674_v48 = vrot.slane %v8652_v41, %v18372_v2 }
 0x6ad   :  { %v6026_v50 = vsel %vm4779_vm0, %v5870_v21, 0.0  ;;  %v5667_v26 = vmul.f32 %v18241_v19, %v5597_v4  ;;  %v8681_v13 = vrot.slane %v8653_v56, %v18372_v2  ;;  %v18389_v6 = vpop.xlane.xlu1 %5910 }
 0x6ae   :  { %v5473_v11 = vadd.f32 1e-05, %v5409_v23  ;;  %6027 = vadd.xlane.f32.xlu0 %v6026_v50  ;;  %v8682_v17 = vcombine.low %v8660_v37, %v8667_v0 }
 0x6af   :  { %v5737_v59 = vadd.f32 %v18245_v54, %v5667_v26  ;;  %v8683_v1 = vcombine.low %v8674_v48, %v8681_v13 }
 0x6b0   :  { %13832 = vrsqrt.f32 %v5473_v11  ;;  %v8690_v20 = vrot.slane %v8682_v17, %v18372_v2 }
 0x6b1   :  { %v5801_v47 = vmax.f32 %v5737_v59, 0.0  ;;  %v8697_v15 = vrot.slane %v8683_v1, %v18372_v2  ;;  %v18401_v0 = vpop.xlane.xlu1 %5319 }
 0x6b2   :  { %v13827_v29 = vpop.eup %13826 }
 0x6b3   :  { %v13829_v63 = vpop.eup %13828  ;;  %v5872_v3 = vmul.f32 %v18256_v40, %v5801_v47  ;;  %v5599_v7 = vmul.f32 %v13827_v29, %v18046_v46  ;;  %v8698_v60 = vcombine.low %v8690_v20, %v8697_v15  ;;  %v6092_v47 = vadd.f32 %v18285_v8, %v18298_v30 }
 0x6b4   :  { %v6637_v4 = vrot.slane %v13829_v63, %v21265_v52  ;;  %v6641_v50 = vrot.slane %v13829_v63, %v21272_v39  ;;  %v6645_v46 = vrot.slane %v13829_v63, %v18338_v12  ;;  %v6649_v26 = vrot.slane %v13829_v63, %v18341_v42 }
 0x6b5   :  { %v6032_v58 = vsel %vm4779_vm0, %v5872_v3, 0.0  ;;  %v5669_v23 = vmul.f32 %v18241_v19, %v5599_v7  ;;  %v6653_v41 = vrot.slane %v13829_v63, %v18345_v61  ;;  %v6657_v56 = vrot.slane %v13829_v63, %v18350_v25 }
 0x6b6   :  { %v13831_v21 = vpop.eup %13830  ;;  %6033 = vadd.xlane.f32.xlu0 %v6032_v58  ;;  %v6661_v37 = vrot.slane %v13829_v63, %v18353_v34  ;;  %v6665_v13 = vrot.slane %v13829_v63, %v18358_v16  ;;  %v8699_v29 = vcombine.low %v6637_v4, %v6641_v50  ;;  %v8700_v17 = vcombine.low %v6645_v46, %v6649_v26 }
 0x6b7   :  { %v6354_v5 = vadd.f32 1.0, %v13831_v21  ;;  %v5739_v11 = vadd.f32 %v18245_v54, %v5669_v23  ;;  %v8701_v3 = vcombine.low %v6653_v41, %v6657_v56  ;;  %v6093_v15 = vadd.f32 %v18285_v8, %v18323_v31 }
 0x6b8   :  { %v8702_v20 = vcombine.low %v6661_v37, %v6665_v13  ;;  %v8709_v7 = vrot.slane %v8699_v29, %v18372_v2  ;;  %v8716_v58 = vrot.slane %v8700_v17, %v18372_v2  ;;  %v5404_v63 = vmul.f32 0.0625, %v18334_v33 }
 0x6b9   :  { %v5803_v44 = vmax.f32 %v5739_v11, 0.0  ;;  %13834 = vrcp.f32 %v6354_v5  ;;  %v8723_v21 = vrot.slane %v8701_v3, %v18372_v2  ;;  %v18417_v11 = vpop.xlane.xlu1 %5916  ;;  %v12659_v50 = vmul.f32 -1.442695, %v6093_v15  ;;  %v5920_v15 = vpop.xlane.xlu0 %5919 }
 0x6ba   :  { %v13833_v59 = vpop.eup %13832  ;;  %v8730_v30 = vrot.slane %v8702_v20, %v18372_v2  ;;  %v8731_v4 = vcombine.low %v8709_v7, %v8716_v58 }
 0x6bb   :  { %11787 = vperm.xlu1 %13163, %v8698_v60   ;;  %v5874_v48 = vmul.f32 %v18256_v40, %v5803_v44  ;;  %v5601_v23 = vmul.f32 %v13833_v59, %v18068_v43  ;;  %v12658_v60 = vmul.f32 -1.442695, %v6092_v47  ;;  %v5468_v44 = vadd.f32 1e-05, %v5404_v63 }
 0x6bc   :  { %v8732_v46 = vcombine.low %v8723_v21, %v8730_v30  ;;  %v8739_v31 = vrot.slane %v8731_v4, %v18372_v2 }
 0x6bd   :  { %v6038_v1 = vsel %vm4779_vm0, %v5874_v48, 0.0  ;;  %v5671_v5 = vmul.f32 %v18241_v19, %v5601_v23  ;;  %13836 = vpow2.f32 %v12658_v60  ;;  %v18423_v59 = vpop.xlane.xlu1 %5325 }
 0x6be   :  { %6039 = vadd.xlane.f32.xlu0 %v6038_v1  ;;  %v8746_v43 = vrot.slane %v8732_v46, %v18372_v2  ;;  %13838 = vpow2.f32 %v12659_v50  ;;  %v5329_v50 = vpop.xlane.xlu0 %5328 }
 0x6bf   :  { %v5741_v26 = vadd.f32 %v18245_v54, %v5671_v5  ;;  %13840 = vrsqrt.f32 %v5468_v44 }
 0x6c0   :  { %v8747_v56 = vcombine.low %v8739_v31, %v8746_v43 }
 0x6c1   :  { %v5805_v33 = vmax.f32 %v5741_v26, 0.0  ;;  %v18434_v58 = vpop.xlane.xlu1 %5922 }
 0x6c2   :  { %11790 = vperm.xlu1 %13163, %v8747_v56   ;;  %v5411_v56 = vmul.f32 0.0625, %v5329_v50 }
 0x6c3   :  { %v13835_v41 = vpop.eup %13834  ;;  %v5876_v37 = vmul.f32 %v18256_v40, %v5805_v33  ;;  %v6100_v33 = vadd.f32 %v18285_v8, %v5920_v15 }
 0x6c4   :  { %v6861_v13 = vrot.slane %v13835_v41, %v21265_v52  ;;  %v6865_v29 = vrot.slane %v13835_v41, %v21272_v39  ;;  %v6869_v47 = vrot.slane %v13835_v41, %v18338_v12  ;;  %v6873_v17 = vrot.slane %v13835_v41, %v18341_v42 }
 0x6c5   :  { %v6044_v48 = vsel %vm4779_vm0, %v5876_v37, 0.0  ;;  %v6877_v1 = vrot.slane %v13835_v41, %v18345_v61  ;;  %v6881_v3 = vrot.slane %v13835_v41, %v18350_v25  ;;  %v6885_v20 = vrot.slane %v13835_v41, %v18353_v34 }
 0x6c6   :  { %6045 = vadd.xlane.f32.xlu0 %v6044_v48  ;;  %v6889_v7 = vrot.slane %v13835_v41, %v18358_v16  ;;  %v9042_v23 = vcombine.low %v6861_v13, %v6865_v29  ;;  %v9043_v63 = vcombine.low %v6869_v47, %v6873_v17  ;;  %v18441_v41 = vpop.xlane.xlu1 %5331  ;;  %v12666_v47 = vmul.f32 -1.442695, %v6100_v33 }
 0x6c7   :  { %v9044_v21 = vcombine.low %v6877_v1, %v6881_v3  ;;  %v13837_v4 = vpop.eup %13836  ;;  %v5475_v17 = vadd.f32 1e-05, %v5411_v56 }
 0x6c8   :  { %v9045_v30 = vcombine.low %v6885_v20, %v6889_v7  ;;  %v13839_v5 = vpop.eup %13838  ;;  %v9052_v46 = vrot.slane %v9042_v23, %v18372_v2  ;;  %v9059_v31 = vrot.slane %v9043_v63, %v18372_v2  ;;  %v6348_v43 = vadd.f32 1.0, %v13837_v4 }
 0x6c9   :  { %v13841_v60 = vpop.eup %13840  ;;  %v9066_v26 = vrot.slane %v9044_v21, %v18372_v2  ;;  %v6349_v29 = vadd.f32 1.0, %v13839_v5 }
 0x6ca   :  { %v9073_v44 = vrot.slane %v9045_v30, %v18372_v2  ;;  %v5596_v37 = vmul.f32 %v13841_v60, %v18013_v36  ;;  %v9074_v48 = vcombine.low %v9052_v46, %v9059_v31  ;;  %13842 = vrcp.f32 %v6348_v43  ;;  %v18445_v3 = vpop.xlane.xlu1 %5928 }
 0x6cb   :  { %13844 = vrcp.f32 %v6349_v29 }
 0x6cc   :  { %v9075_v13 = vcombine.low %v9066_v26, %v9073_v44  ;;  %v5666_v1 = vmul.f32 %v18241_v19, %v5596_v37  ;;  %v9082_v20 = vrot.slane %v9074_v48, %v18372_v2  ;;  %13846 = vpow2.f32 %v12666_v47 }
 0x6cd   :  { %13848 = vrsqrt.f32 %v5475_v17 }
 0x6ce   :  { %v9089_v7 = vrot.slane %v9075_v13, %v18372_v2  ;;  %v5736_v15 = vadd.f32 %v18245_v54, %v5666_v1  ;;  %v18450_v23 = vpop.xlane.xlu1 %5337 }
 0x6d0   :  { %v9090_v36 = vcombine.low %v9082_v20, %v9089_v7  ;;  %v5800_v63 = vmax.f32 %v5736_v15, 0.0 }
 0x6d2   :  { %v5871_v4 = vmul.f32 %v18256_v40, %v5800_v63  ;;  %v18455_v46 = vpop.xlane.xlu1 %5934 }
 0x6d4   :  { %v13843_v21 = vpop.eup %13842  ;;  %v6029_v13 = vsel %vm4779_vm0, %v5871_v4, 0.0 }
 0x6d5   :  { %v13845_v30 = vpop.eup %13844  ;;  %v6669_v5 = vrot.slane %v13843_v21, %v21265_v52  ;;  %v6673_v60 = vrot.slane %v13843_v21, %v21272_v39  ;;  %v6677_v31 = vrot.slane %v13843_v21, %v18338_v12  ;;  %v6681_v26 = vrot.slane %v13843_v21, %v18341_v42 }
 0x6d6   :  { %v13847_v50 = vpop.eup %13846  ;;  %v6685_v44 = vrot.slane %v13843_v21, %v18345_v61  ;;  %v6689_v43 = vrot.slane %v13843_v21, %v18350_v25  ;;  %v6693_v56 = vrot.slane %v13843_v21, %v18353_v34  ;;  %v6697_v37 = vrot.slane %v13843_v21, %v18358_v16  ;;  %v18469_v62 = vpop.xlane.xlu1 %5343 }
 0x6d7   :  { %v13849_v33 = vpop.eup %13848  ;;  %v6356_v48 = vadd.f32 1.0, %v13847_v50  ;;  %v8748_v29 = vcombine.low %v6669_v5, %v6673_v60  ;;  %v8749_v47 = vcombine.low %v6677_v31, %v6681_v26  ;;  %v6701_v1 = vrot.slane %v13845_v30, %v21265_v52 }
 0x6d8   :  { %v8750_v17 = vcombine.low %v6685_v44, %v6689_v43  ;;  %v5603_v20 = vmul.f32 %v13849_v33, %v18091_v10  ;;  %v8751_v7 = vcombine.low %v6693_v56, %v6697_v37  ;;  %v6705_v15 = vrot.slane %v13845_v30, %v21272_v39 }
 0x6d9   :  { %v6713_v63 = vrot.slane %v13845_v30, %v18341_v42  ;;  %v6717_v21 = vrot.slane %v13845_v30, %v18345_v61  ;;  %v6721_v4 = vrot.slane %v13845_v30, %v18350_v25  ;;  %v6725_v5 = vrot.slane %v13845_v30, %v18353_v34 }
 0x6da   :  { %v6729_v60 = vrot.slane %v13845_v30, %v18358_v16  ;;  %13850 = vrcp.f32 %v6356_v48  ;;  %v5673_v10 = vmul.f32 %v18241_v19, %v5603_v20  ;;  %v8758_v50 = vrot.slane %v8748_v29, %v18372_v2  ;;  %v18480_v22 = vpop.xlane.xlu1 %5940 }
 0x6db   :  { %v8765_v31 = vrot.slane %v8749_v47, %v18372_v2  ;;  %v8772_v26 = vrot.slane %v8750_v17, %v18372_v2  ;;  %v8779_v44 = vrot.slane %v8751_v7, %v18372_v2  ;;  %v8797_v43 = vcombine.low %v6701_v1, %v6705_v15  ;;  %21273 = vst [vmem:[#allocation80_spill] sm:$0xff] %v18480_v22 }
 0x6dc   :  { %11811 = vperm.xlu0 %13162, %v9090_v36   ;;  %v6709_v36 = vrot.slane %v13845_v30, %v18338_v12  ;;  %v8799_v56 = vcombine.low %v6717_v21, %v6721_v4  ;;  %v8800_v37 = vcombine.low %v6725_v5, %v6729_v60  ;;  %v5743_v30 = vadd.f32 %v18245_v54, %v5673_v10 }
 0x6dd   :  { %v8781_v48 = vcombine.low %v8772_v26, %v8779_v44  ;;  %v8807_v20 = vrot.slane %v8797_v43, %v18372_v2  ;;  %v6094_v1 = vadd.f32 %v18285_v8, %v18311_v51  ;;  %v5406_v10 = vmul.f32 0.0625, %v18379_v57 }
 0x6de   :  { %v8798_v33 = vcombine.low %v6709_v36, %v6713_v63  ;;  %v8821_v47 = vrot.slane %v8799_v56, %v18372_v2  ;;  %v8828_v17 = vrot.slane %v8800_v37, %v18372_v2  ;;  %v5807_v7 = vmax.f32 %v5743_v30, 0.0  ;;  %v18489_v36 = vpop.xlane.xlu1 %5349 }
 0x6df   :  { %21274 = vst [vmem:[#allocation81_spill] sm:$0xff] %v18489_v36  ;;  %v8795_v21 = vrot.slane %v8781_v48, %v18372_v2  ;;  %v12660_v60 = vmul.f32 -1.442695, %v6094_v1  ;;  %v6095_v44 = vadd.f32 %v18285_v8, %v18364_v32  ;;  %v5470_v43 = vadd.f32 1e-05, %v5406_v10 }
 0x6e0   :  { %v8814_v29 = vrot.slane %v8798_v33, %v18372_v2  ;;  %v8830_v5 = vcombine.low %v8821_v47, %v8828_v17  ;;  %v5926_v47 = vpop.xlane.xlu0 %5925 }
 0x6e1   :  { %13852 = vpow2.f32 %v12660_v60  ;;  %v12661_v1 = vmul.f32 -1.442695, %v6095_v44 }
 0x6e2   :  { %v8829_v4 = vcombine.low %v8807_v20, %v8814_v29  ;;  %v8844_v51 = vrot.slane %v8830_v5, %v18372_v2  ;;  %v18500_v56 = vpop.xlane.xlu1 %5946  ;;  %13854 = vrsqrt.f32 %v5470_v43 }
 0x6e3   :  { %21275 = vst [vmem:[#allocation84_spill] sm:$0xff] %v18500_v56  ;;  %13856 = vpow2.f32 %v12661_v1 }
 0x6e4   :  { %v13851_v15 = vpop.eup %13850  ;;  %v8837_v26 = vrot.slane %v8829_v4, %v18372_v2  ;;  %v5335_v60 = vpop.xlane.xlu0 %5334 }
 0x6e5   :  { %v6925_v33 = vrot.slane %v13851_v15, %v21265_v52  ;;  %v6929_v57 = vrot.slane %v13851_v15, %v21272_v39  ;;  %v6933_v30 = vrot.slane %v13851_v15, %v18338_v12  ;;  %v6941_v48 = vrot.slane %v13851_v15, %v18345_v61 }
 0x6e6   :  { %6030 = vadd.xlane.f32.xlu1 %v6029_v13  ;;  %v8780_v13 = vcombine.low %v8758_v50, %v8765_v31  ;;  %v5878_v50 = vmul.f32 %v18256_v40, %v5807_v7  ;;  %v6945_v20 = vrot.slane %v13851_v15, %v18350_v25  ;;  %v6949_v32 = vrot.slane %v13851_v15, %v18353_v34  ;;  %v18510_v5 = vpop.xlane.xlu1 %5355 }
 0x6e7   :  { %v6953_v29 = vrot.slane %v13851_v15, %v18358_v16  ;;  %v8845_v17 = vcombine.low %v8837_v26, %v8844_v51  ;;  %v9140_v7 = vcombine.low %v6925_v33, %v6929_v57  ;;  %21276 = vst [vmem:[#allocation82_spill] sm:$0xff] %v18510_v5  ;;  %v5413_v51 = vmul.f32 0.0625, %v5335_v60 }
 0x6e8   :  { %v8788_v63 = vrot.slane %v8780_v13, %v18372_v2  ;;  %v6050_v37 = vsel %vm4779_vm0, %v5878_v50, 0.0  ;;  %v6937_v13 = vrot.slane %v13851_v15, %v18341_v42 }
 0x6e9   :  { %v9143_v4 = vcombine.low %v6949_v32, %v6953_v29  ;;  %v9150_v50 = vrot.slane %v9140_v7, %v18372_v2 }
 0x6ea   :  { %v8796_v31 = vcombine.low %v8788_v63, %v8795_v21  ;;  %v9141_v63 = vcombine.low %v6933_v30, %v6937_v13  ;;  %v9142_v21 = vcombine.low %v6941_v48, %v6945_v20  ;;  %v18516_v44 = vpop.xlane.xlu1 %5952  ;;  %v6102_v30 = vadd.f32 %v18285_v8, %v5926_v47 }
 0x6eb   :  { %v13853_v10 = vpop.eup %13852  ;;  %v9171_v26 = vrot.slane %v9143_v4, %v18372_v2  ;;  %21277 = vst [vmem:[#allocation74_spill] sm:$0xff] %v18516_v44  ;;  %v5477_v13 = vadd.f32 1e-05, %v5413_v51 }
 0x6ec   :  { %v9164_v15 = vrot.slane %v9142_v21, %v18372_v2  ;;  %v6350_v57 = vadd.f32 1.0, %v13853_v10  ;;  %v12668_v1 = vmul.f32 -1.442695, %v6102_v30 }
 0x6ee   :  { %v9173_v33 = vcombine.low %v9164_v15, %v9171_v26  ;;  %13858 = vrcp.f32 %v6350_v57  ;;  %v18521_v29 = vpop.xlane.xlu1 %5958 }
 0x6ef   :  { %21278 = vst [vmem:[#allocation18_spill] sm:$0xff] %v18521_v29  ;;  %13860 = vrsqrt.f32 %v5477_v13 }
 0x6f0   :  { %v9187_v32 = vrot.slane %v9173_v33, %v18372_v2  ;;  %13862 = vpow2.f32 %v12668_v1 }
 0x6f2   :  { %v18524_v21 = vpop.xlane.xlu1 %5964 }
 0x6f3   :  { %21279 = vst [vmem:[#allocation89_spill] sm:$0xff] %v18524_v21  ;;  %v18563_v21 = vpop.xlane.xlu0 %5931 }
 0x6f6   :  { %v18527_v47 = vpop.xlane.xlu1 %5970 }
 0x6f7   :  { %11793 = vperm.xlu1 %13163, %v8796_v31   ;;  %v9157_v31 = vrot.slane %v9141_v63, %v18372_v2  ;;  %21280 = vst [vmem:[#allocation75_spill] sm:$0xff] %v18527_v47 }
 0x6f9   :  { %v9172_v43 = vcombine.low %v9150_v50, %v9157_v31 }
 0x6fa   :  { %v18530_v31 = vpop.xlane.xlu1 %5976 }
 0x6fb   :  { %6051 = vadd.xlane.f32.xlu0 %v6050_v37  ;;  %11796 = vperm.xlu1 %13163, %v8845_v17   ;;  %v13855_v37 = vpop.eup %13854  ;;  %v9180_v20 = vrot.slane %v9172_v43, %v18372_v2  ;;  %21281 = vst [vmem:[#allocation78_spill] sm:$0xff] %v18530_v31 }
 0x6fc   :  { %v13857_v48 = vpop.eup %13856  ;;  %v5598_v17 = vmul.f32 %v13855_v37, %v18035_v53 }
 0x6fd   :  { %v6351_v7 = vadd.f32 1.0, %v13857_v48  ;;  %v9188_v63 = vcombine.low %v9180_v20, %v9187_v32  ;;  %v13859_v10 = vpop.eup %13858 }
 0x6fe   :  { %v5668_v4 = vmul.f32 %v18241_v19, %v5598_v17  ;;  %v13861_v50 = vpop.eup %13860  ;;  %v6733_v15 = vrot.slane %v13859_v10, %v21265_v52  ;;  %v6737_v26 = vrot.slane %v13859_v10, %v21272_v39  ;;  %v6741_v51 = vrot.slane %v13859_v10, %v18338_v12 }
 0x6ff   :  { %13864 = vrcp.f32 %v6351_v7  ;;  %v6745_v43 = vrot.slane %v13859_v10, %v18341_v42  ;;  %v5605_v33 = vmul.f32 %v13861_v50, %v18112_v49  ;;  %v13863_v37 = vpop.eup %13862  ;;  %v6749_v57 = vrot.slane %v13859_v10, %v18345_v61  ;;  %v18541_v32 = vpop.xlane.xlu1 %5982 }
 0x700   :  { %v5738_v60 = vadd.f32 %v18245_v54, %v5668_v4  ;;  %v6753_v30 = vrot.slane %v13859_v10, %v18350_v25  ;;  %v6757_v13 = vrot.slane %v13859_v10, %v18353_v34  ;;  %v6761_v48 = vrot.slane %v13859_v10, %v18358_v16  ;;  %21282 = vst [vmem:[#allocation20_spill] sm:$0xff] %v18541_v32 }
 0x701   :  { %v6358_v1 = vadd.f32 1.0, %v13863_v37  ;;  %v8846_v7 = vcombine.low %v6733_v15, %v6737_v26  ;;  %v8847_v4 = vcombine.low %v6741_v51, %v6745_v43 }
 0x702   :  { %v5802_v53 = vmax.f32 %v5738_v60, 0.0  ;;  %v8848_v49 = vcombine.low %v6749_v57, %v6753_v30  ;;  %v8849_v60 = vcombine.low %v6757_v13, %v6761_v48 }
 0x703   :  { %13866 = vrcp.f32 %v6358_v1  ;;  %v8863_v37 = vrot.slane %v8847_v4, %v18372_v2 }
 0x704   :  { %v5873_v17 = vmul.f32 %v18256_v40, %v5802_v53  ;;  %v8870_v57 = vrot.slane %v8848_v49, %v18372_v2  ;;  %v8877_v30 = vrot.slane %v8849_v60, %v18372_v2 }
 0x706   :  { %v6035_v31 = vsel %vm4779_vm0, %v5873_v17, 0.0  ;;  %v8879_v1 = vcombine.low %v8870_v57, %v8877_v30 }
 0x707   :  { %v18546_v5 = vpop.xlane.xlu1 %5988 }
 0x708   :  { %21283 = vst [vmem:[#allocation95_spill] sm:$0xff] %v18546_v5 }
 0x709   :  { %v13865_v20 = vpop.eup %13864 }
 0x70a   :  { %v6765_v50 = vrot.slane %v13865_v20, %v21265_v52  ;;  %v6769_v10 = vrot.slane %v13865_v20, %v21272_v39  ;;  %v6773_v47 = vrot.slane %v13865_v20, %v18338_v12  ;;  %v6777_v32 = vrot.slane %v13865_v20, %v18341_v42 }
 0x70b   :  { %v6781_v53 = vrot.slane %v13865_v20, %v18345_v61  ;;  %v6785_v15 = vrot.slane %v13865_v20, %v18350_v25  ;;  %v6793_v26 = vrot.slane %v13865_v20, %v18358_v16 }
 0x70c   :  { %v8895_v13 = vcombine.low %v6765_v50, %v6769_v10  ;;  %v8896_v48 = vcombine.low %v6773_v47, %v6777_v32  ;;  %v6096_v47 = vadd.f32 %v18285_v8, %v18325_v28  ;;  %v5341_v50 = vpop.xlane.xlu0 %5340 }
 0x70d   :  { %v8897_v17 = vcombine.low %v6781_v53, %v6785_v15  ;;  %v13867_v60 = vpop.eup %13866  ;;  %v8893_v15 = vrot.slane %v8879_v1, %v18372_v2 }
 0x70e   :  { %v6993_v28 = vrot.slane %v13867_v60, %v21272_v39  ;;  %v7001_v57 = vrot.slane %v13867_v60, %v18341_v42 }
 0x70f   :  { %v18557_v43 = vpop.xlane.xlu1 %5994  ;;  %v8919_v4 = vrot.slane %v8897_v17, %v18372_v2  ;;  %v7013_v17 = vrot.slane %v13867_v60, %v18353_v34 }
 0x710   :  { %21284 = vst [vmem:[#allocation21_spill] sm:$0xff] %v18557_v43 }
 0x711   :  { %11817 = vperm.xlu0 %13162, %v9188_v63   ;;  %v5675_v63 = vmul.f32 %v18241_v19, %v5605_v33  ;;  %v6789_v19 = vrot.slane %v13865_v20, %v18353_v34  ;;  %v8856_v33 = vrot.slane %v8846_v7, %v18372_v2  ;;  %v8912_v7 = vrot.slane %v8896_v48, %v18372_v2 }
 0x712   :  { %v7009_v48 = vrot.slane %v13867_v60, %v18350_v25 }
 0x713   :  { %v5745_v51 = vadd.f32 %v18245_v54, %v5675_v63  ;;  %v8898_v5 = vcombine.low %v6789_v19, %v6793_v26  ;;  %v8878_v54 = vcombine.low %v8856_v33, %v8863_v37  ;;  %v8905_v63 = vrot.slane %v8895_v13, %v18372_v2 }
 0x714   :  { %v5408_v33 = vmul.f32 0.0625, %v18401_v0  ;;  %v6989_v37 = vrot.slane %v13867_v60, %v21265_v52  ;;  %v7005_v13 = vrot.slane %v13867_v60, %v18345_v61  ;;  %v7017_v0 = vrot.slane %v13867_v60, %v18358_v16 }
 0x715   :  { %v5809_v20 = vmax.f32 %v5745_v51, 0.0  ;;  %v8926_v49 = vrot.slane %v8898_v5, %v18372_v2  ;;  %v8886_v53 = vrot.slane %v8878_v54, %v18372_v2  ;;  %v8927_v19 = vcombine.low %v8905_v63, %v8912_v7  ;;  %v18592_v7 = vpop.xlane.xlu0 %5937 }
 0x716   :  { %v12662_v51 = vmul.f32 -1.442695, %v6096_v47  ;;  %v5472_v63 = vadd.f32 1e-05, %v5408_v33  ;;  %v9238_v47 = vcombine.low %v6989_v37, %v6993_v28 }
 0x717   :  { %v5880_v32 = vmul.f32 %v18256_v40, %v5809_v20  ;;  %v8928_v26 = vcombine.low %v8919_v4, %v8926_v49  ;;  %v6997_v40 = vrot.slane %v13867_v60, %v18338_v12  ;;  %v8894_v20 = vcombine.low %v8886_v53, %v8893_v15 }
 0x718   :  { %v8935_v54 = vrot.slane %v8927_v19, %v18372_v2  ;;  %13868 = vpow2.f32 %v12662_v51  ;;  %v6097_v4 = vadd.f32 %v18285_v8, %v18389_v6  ;;  %v6099_v60 = vadd.f32 %v18285_v8, %v18417_v11 }
 0x719   :  { %v6056_v5 = vsel %vm4779_vm0, %v5880_v32, 0.0  ;;  %v8942_v1 = vrot.slane %v8928_v26, %v18372_v2  ;;  %v9239_v32 = vcombine.low %v6997_v40, %v7001_v57  ;;  %13870 = vrsqrt.f32 %v5472_v63  ;;  %v18602_v26 = vpop.xlane.xlu0 %5346 }
 0x71a   :  { %v12663_v15 = vmul.f32 -1.442695, %v6097_v4  ;;  %v6101_v19 = vadd.f32 %v18285_v8, %v18434_v58  ;;  %v9248_v51 = vrot.slane %v9238_v47, %v18372_v2  ;;  %v12665_v11 = vmul.f32 -1.442695, %v6099_v60 }
 0x71b   :  { %v8943_v53 = vcombine.low %v8935_v54, %v8942_v1  ;;  %v9255_v33 = vrot.slane %v9239_v32, %v18372_v2  ;;  %v5415_v40 = vmul.f32 0.0625, %v5341_v50 }
 0x71c   :  { %13872 = vpow2.f32 %v12663_v15  ;;  %v12667_v57 = vmul.f32 -1.442695, %v6101_v19 }
 0x71d   :  { %v9270_v58 = vcombine.low %v9248_v51, %v9255_v33  ;;  %13874 = vpow2.f32 %v12665_v11  ;;  %v5479_v54 = vadd.f32 1e-05, %v5415_v40  ;;  %v5944_v63 = vpop.xlane.xlu0 %5943 }
 0x71e   :  { %13876 = vpow2.f32 %v12667_v57 }
 0x71f   :  { %6036 = vadd.xlane.f32.xlu1 %v6035_v31  ;;  %v18565_v31 = vpop.xlane.xlu1 %6000  ;;  %v9278_v47 = vrot.slane %v9270_v58, %v18372_v2  ;;  %13878 = vrsqrt.f32 %v5479_v54 }
 0x720   :  { %21285 = vst [vmem:[#allocation24_spill] sm:$0xff] %v18565_v31 }
 0x721   :  { %v18627_v19 = vpop.xlane.xlu0 %5352 }
 0x723   :  { %v18574_v10 = vpop.xlane.xlu1 %6006 }
 0x724   :  { %21286 = vst [vmem:[#allocation85_spill] sm:$0xff] %v18574_v10 }
 0x727   :  { %v18584_v30 = vpop.xlane.xlu1 %6012 }
 0x728   :  { %21287 = vst [vmem:[#allocation83_spill] sm:$0xff] %v18584_v30  ;;  %v9241_v30 = vcombine.low %v7013_v17, %v7017_v0  ;;  %v13869_v0 = vpop.eup %13868 }
 0x729   :  { %v6352_v50 = vadd.f32 1.0, %v13869_v0 }
 0x72a   :  { %v9269_v28 = vrot.slane %v9241_v30, %v18372_v2  ;;  %v13871_v30 = vpop.eup %13870 }
 0x72b   :  { %v5600_v15 = vmul.f32 %v13871_v30, %v18058_v24  ;;  %13880 = vrcp.f32 %v6352_v50  ;;  %v6103_v24 = vadd.f32 %v18285_v8, %v18445_v3  ;;  %v5950_v30 = vpop.xlane.xlu0 %5949 }
 0x72f   :  { %v18596_v49 = vpop.xlane.xlu1 %6018 }
 0x730   :  { %6057 = vadd.xlane.f32.xlu0 %v6056_v5  ;;  %11799 = vperm.xlu1 %13163, %v8894_v20   ;;  %v9240_v5 = vcombine.low %v7005_v13, %v7009_v48  ;;  %v21288_v13 = vlaneseq  ;;  %v6104_v20 = vadd.f32 %v18285_v8, %v18563_v21 }
 0x732   :  { %v9262_v37 = vrot.slane %v9240_v5, %v18372_v2  ;;  %v18611_v48 = vand.u32 127, %v21288_v13  ;;  %v12670_v5 = vmul.f32 -1.442695, %v6104_v20 }
 0x734   :  { %11802 = vperm.xlu1 %13163, %v8943_v53   ;;  %21289 = vst [vmem:[#allocation25_spill] sm:$0xff] %v18611_v48  ;;  %v9271_v17 = vcombine.low %v9262_v37, %v9269_v28  ;;  %v11984_v1 = vadd.s32 4294967288, %v18611_v48  ;;  %v18620_v60 = vsub.s32 %v18611_v48, %v21271_v55  ;;  %v5410_v53 = vmul.f32 0.0625, %v18423_v59  ;;  %v13873_v37 = vpop.eup %13872 }
 0x735   :  { %v5412_v28 = vmul.f32 0.0625, %v18441_v41  ;;  %13882 = vpow2.f32 %v12670_v5  ;;  %v13875_v57 = vpop.eup %13874  ;;  %v6353_v20 = vadd.f32 1.0, %v13873_v37 }
 0x736   :  { %v9285_v32 = vrot.slane %v9271_v17, %v18372_v2  ;;  %21290 = vst [vmem:[#allocation99_spill] sm:$0xff] %v18620_v60  ;;  %v18623_v21 = vsub.s32 %v11984_v1, %v21271_v55  ;;  %v5474_v58 = vadd.f32 1e-05, %v5410_v53  ;;  %v18637_v17 = vld [vmem:[#allocation10] ss:$0 sm:$0xff]  ;;  %v13877_v41 = vpop.eup %13876  ;;  %v5414_v1 = vmul.f32 0.0625, %v18450_v23 }
 0x737   :  { %v18604_v6 = vpop.xlane.xlu1 %6024  ;;  %v5670_v0 = vmul.f32 %v18637_v17, %v5600_v15  ;;  %v5476_v54 = vadd.f32 1e-05, %v5412_v28  ;;  %v13879_v50 = vpop.eup %13878  ;;  %v6357_v5 = vadd.f32 1.0, %v13877_v41  ;;  %v6105_v15 = vadd.f32 %v18285_v8, %v18455_v46 }
 0x738   :  { %21291 = vst [vmem:[#allocation87_spill] sm:$0xff] %v18623_v21  ;;  %v9286_v33 = vcombine.low %v9278_v47, %v9285_v32  ;;  %13884 = vrsqrt.f32 %v5474_v58  ;;  %v12669_v47 = vmul.f32 -1.442695, %v6103_v24  ;;  %v18641_v32 = vld [vmem:[#allocation11] ss:$0 sm:$0xff]  ;;  %v5607_v23 = vmul.f32 %v13879_v50, %v18135_v45  ;;  %v5956_v28 = vpop.xlane.xlu0 %5955 }
 0x739   :  { %v5740_v3 = vadd.f32 %v18641_v32, %v5670_v0  ;;  %13886 = vrcp.f32 %v6353_v20  ;;  %v5478_v53 = vadd.f32 1e-05, %v5414_v1  ;;  %v6108_v58 = vadd.f32 %v18285_v8, %v5944_v63  ;;  %v18652_v0 = vld [vmem:[#allocation13] ss:$0 sm:$0xff] }
 0x73a   :  { %13888 = vrsqrt.f32 %v5476_v54  ;;  %v5677_v24 = vmul.f32 %v18637_v17, %v5607_v23  ;;  %v6110_v23 = vadd.f32 %v18285_v8, %v5950_v30 }
 0x73b   :  { %v11788_v4 = vpop.permute.xlu1 %11787  ;;  %v5804_v37 = vmax.f32 %v5740_v3, 0.0 }
 0x73c   :  { %v11983_v11 = vrot.slane %v11788_v4, %v18620_v60  ;;  %v6355_v4 = vadd.f32 1.0, %v13875_v57  ;;  %v5962_v1 = vpop.xlane.xlu0 %5961  ;;  %v5747_v13 = vadd.f32 %v18641_v32, %v5677_v24 }
 0x73d   :  { %v5875_v45 = vmul.f32 %v18652_v0, %v5804_v37 }
 0x73e   :  { %13890 = vrcp.f32 %v6355_v4 }
 0x73f   :  { %13892 = vpow2.f32 %v12669_v47  ;;  %v6041_v37 = vsel %vm4779_vm0, %v5875_v45, 0.0 }
 0x740   :  { %13894 = vrcp.f32 %v6357_v5 }
 0x741   :  { %v11791_v51 = vpop.permute.xlu1 %11790  ;;  %13896 = vrsqrt.f32 %v5478_v53  ;;  %v12674_v53 = vmul.f32 -1.442695, %v6108_v58 }
 0x742   :  { %v11988_v40 = vrot.slane %v11791_v51, %v18623_v21  ;;  %v13881_v51 = vpop.eup %13880 }
 0x743   :  { %v6797_v46 = vrot.slane %v13881_v51, %v21265_v52  ;;  %v6801_v20 = vrot.slane %v13881_v51, %v21272_v39  ;;  %v6805_v41 = vrot.slane %v13881_v51, %v18338_v12  ;;  %v6809_v54 = vrot.slane %v13881_v51, %v18341_v42 }
 0x744   :  { %v18635_v59 = vsel %vm11989_vm1, %v11988_v40, %v11983_v11  ;;  %v12671_v11 = vmul.f32 -1.442695, %v6105_v15  ;;  %v6106_v40 = vadd.f32 %v18285_v8, %v18592_v7  ;;  %v6813_v7 = vrot.slane %v13881_v51, %v18345_v61 }
 0x745   :  { %v6817_v4 = vrot.slane %v13881_v51, %v18350_v25  ;;  %v6821_v63 = vrot.slane %v13881_v51, %v18353_v34  ;;  %v6825_v50 = vrot.slane %v13881_v51, %v18358_v16  ;;  %v5968_v51 = vpop.xlane.xlu0 %5967  ;;  %v8944_v60 = vcombine.low %v6797_v46, %v6801_v20 }
 0x746   :  { %11823 = vperm.xlu0 %13162, %v9286_v33   ;;  %v13883_v33 = vpop.eup %13882  ;;  %13898 = vpow2.f32 %v12671_v11  ;;  %v12672_v5 = vmul.f32 -1.442695, %v6106_v40  ;;  %v8945_v10 = vcombine.low %v6805_v41, %v6809_v54  ;;  %v6114_v54 = vadd.f32 %v18285_v8, %v5962_v1 }
 0x747   :  { %v6360_v57 = vadd.f32 1.0, %v13883_v33  ;;  %v18662_v47 = vpop.eup %13884  ;;  %v6112_v33 = vadd.f32 %v18285_v8, %v5956_v28  ;;  %v8946_v11 = vcombine.low %v6813_v7, %v6817_v4  ;;  %v8947_v31 = vcombine.low %v6821_v63, %v6825_v50 }
 0x748   :  { %v13887_v3 = vpop.eup %13886  ;;  %v5811_v7 = vmax.f32 %v5747_v13, 0.0  ;;  %v12676_v4 = vmul.f32 -1.442695, %v6110_v23  ;;  %v8954_v29 = vrot.slane %v8944_v60, %v18372_v2  ;;  %v8961_v44 = vrot.slane %v8945_v10, %v18372_v2 }
 0x749   :  { %13900 = vrcp.f32 %v6360_v57  ;;  %v18664_v15 = vpop.eup %13888  ;;  %v6829_v40 = vrot.slane %v13887_v3, %v21265_v52  ;;  %v6833_v58 = vrot.slane %v13887_v3, %v21272_v39  ;;  %v6837_v30 = vrot.slane %v13887_v3, %v18338_v12  ;;  %v5974_v50 = vpop.xlane.xlu0 %5973 }
 0x74a   :  { %v18670_v21 = vpop.eup %13890  ;;  %v6841_v28 = vrot.slane %v13887_v3, %v18341_v42  ;;  %v6845_v24 = vrot.slane %v13887_v3, %v18345_v61  ;;  %v6849_v43 = vrot.slane %v13887_v3, %v18350_v25  ;;  %v6853_v46 = vrot.slane %v13887_v3, %v18353_v34 }
 0x74b   :  { %v18672_v57 = vpop.eup %13892  ;;  %v6857_v20 = vrot.slane %v13887_v3, %v18358_v16  ;;  %13902 = vpow2.f32 %v12672_v5  ;;  %v12678_v63 = vmul.f32 -1.442695, %v6112_v33  ;;  %v8968_v56 = vrot.slane %v8946_v11, %v18372_v2 }
 0x74c   :  { %v18678_v45 = vpop.eup %13894  ;;  %13904 = vpow2.f32 %v12674_v53  ;;  %v8975_v36 = vrot.slane %v8947_v31, %v18372_v2  ;;  %v8993_v3 = vcombine.low %v6829_v40, %v6833_v58  ;;  %v8994_v22 = vcombine.low %v6837_v30, %v6841_v28 }
 0x74d   :  { %21292 = vst [vmem:[#allocation100_spill] sm:$0xff] %v18678_v45  ;;  %v18684_v41 = vpop.eup %13896  ;;  %v8995_v35 = vcombine.low %v6845_v24, %v6849_v43  ;;  %v8996_v5 = vcombine.low %v6853_v46, %v6857_v20  ;;  %v12680_v1 = vmul.f32 -1.442695, %v6114_v54  ;;  %v6116_v13 = vadd.f32 %v18285_v8, %v5968_v51  ;;  %v5980_v31 = vpop.xlane.xlu0 %5979 }
 0x74e   :  { %21293 = vst [vmem:[#allocation29_spill] sm:$0xff] %v18684_v41  ;;  %v6118_v53 = vadd.f32 %v18285_v8, %v5974_v50  ;;  %v5882_v23 = vmul.f32 %v18652_v0, %v5811_v7  ;;  %v5416_v60 = vmul.f32 0.0625, %v18469_v62  ;;  %13906 = vpow2.f32 %v12676_v4 }
 0x74f   :  { %v5417_v10 = vmul.f32 0.0625, %v18602_v26  ;;  %13908 = vpow2.f32 %v12678_v63  ;;  %v8977_v11 = vcombine.low %v8968_v56, %v8975_v36  ;;  %v9003_v43 = vrot.slane %v8993_v3, %v18372_v2 }
 0x750   :  { %v13899_v41 = vpop.eup %13898  ;;  %v9010_v40 = vrot.slane %v8994_v22, %v18372_v2  ;;  %v9017_v51 = vrot.slane %v8995_v35, %v18372_v2  ;;  %v9024_v58 = vrot.slane %v8996_v5, %v18372_v2  ;;  %13910 = vpow2.f32 %v12680_v1 }
 0x751   :  { %v12682_v30 = vmul.f32 -1.442695, %v6116_v13  ;;  %v12684_v28 = vmul.f32 -1.442695, %v6118_v53  ;;  %v6062_v62 = vsel %vm4779_vm0, %v5882_v23, 0.0  ;;  %v8991_v4 = vrot.slane %v8977_v11, %v18372_v2 }
 0x752   :  { %v9025_v63 = vcombine.low %v9003_v43, %v9010_v40  ;;  %v9026_v50 = vcombine.low %v9017_v51, %v9024_v58  ;;  %v6359_v3 = vadd.f32 1.0, %v18672_v57  ;;  %v5480_v5 = vadd.f32 1e-05, %v5416_v60 }
 0x753   :  { %v13901_v33 = vpop.eup %13900  ;;  %13912 = vpow2.f32 %v12682_v30  ;;  %v5419_v1 = vmul.f32 0.0625, %v18627_v19  ;;  %v5481_v45 = vadd.f32 1e-05, %v5417_v10  ;;  %v6361_v57 = vadd.f32 1.0, %v13899_v41 }
 0x754   :  { %v7053_v24 = vrot.slane %v13901_v33, %v21265_v52  ;;  %v7057_v26 = vrot.slane %v13901_v33, %v21272_v39  ;;  %v7065_v36 = vrot.slane %v13901_v33, %v18341_v42  ;;  %v7069_v35 = vrot.slane %v13901_v33, %v18345_v61 }
 0x755   :  { %v13903_v56 = vpop.eup %13902  ;;  %v7073_v22 = vrot.slane %v13901_v33, %v18350_v25  ;;  %v7077_v46 = vrot.slane %v13901_v33, %v18353_v34  ;;  %v7081_v20 = vrot.slane %v13901_v33, %v18358_v16  ;;  %13914 = vpow2.f32 %v12684_v28 }
 0x756   :  { %v13905_v54 = vpop.eup %13904  ;;  %v9336_v53 = vcombine.low %v7053_v24, %v7057_v26  ;;  %v9040_v11 = vrot.slane %v9026_v50, %v18372_v2  ;;  %13916 = vrcp.f32 %v6359_v3  ;;  %v6362_v60 = vadd.f32 1.0, %v13903_v56 }
 0x757   :  { %v9339_v18 = vcombine.low %v7077_v46, %v7081_v20  ;;  %13918 = vrsqrt.f32 %v5480_v5  ;;  %v5483_v40 = vadd.f32 1e-05, %v5419_v1  ;;  %v6364_v24 = vadd.f32 1.0, %v13905_v54 }
 0x758   :  { %6042 = vadd.xlane.f32.xlu1 %v6041_v37  ;;  %v8976_v37 = vcombine.low %v8954_v29, %v8961_v44  ;;  %v7061_v44 = vrot.slane %v13901_v33, %v18338_v12  ;;  %v5986_v29 = vpop.xlane.xlu0 %5985  ;;  %v13907_v33 = vpop.eup %13906  ;;  %v9346_v58 = vrot.slane %v9336_v53, %v18372_v2  ;;  %13920 = vrsqrt.f32 %v5481_v45 }
 0x759   :  { %v13909_v43 = vpop.eup %13908  ;;  %v9367_v28 = vrot.slane %v9339_v18, %v18372_v2  ;;  %13922 = vrcp.f32 %v6361_v57  ;;  %v6120_v41 = vadd.f32 %v18285_v8, %v5980_v31  ;;  %v6122_v18 = vadd.f32 %v18285_v8, %v5986_v29 }
 0x75a   :  { %v8984_v7 = vrot.slane %v8976_v37, %v18372_v2  ;;  %v9337_v23 = vcombine.low %v7061_v44, %v7065_v36  ;;  %v9033_v37 = vrot.slane %v9025_v63, %v18372_v2  ;;  %v13911_v19 = vpop.eup %13910  ;;  %v6366_v44 = vadd.f32 1.0, %v13907_v33 }
 0x75b   :  { %13924 = vrsqrt.f32 %v5483_v40  ;;  %v6368_v36 = vadd.f32 1.0, %v13909_v43  ;;  %v6370_v20 = vadd.f32 1.0, %v13911_v19  ;;  %v12686_v45 = vmul.f32 -1.442695, %v6120_v41 }
 0x75c   :  { %v5992_v13 = vpop.xlane.xlu0 %5991  ;;  %v8992_v9 = vcombine.low %v8984_v7, %v8991_v4  ;;  %v9353_v30 = vrot.slane %v9337_v23, %v18372_v2  ;;  %v9041_v26 = vcombine.low %v9033_v37, %v9040_v11  ;;  %13926 = vrcp.f32 %v6362_v60 }
 0x75d   :  { %13928 = vrcp.f32 %v6364_v24  ;;  %v11991_v54 = vadd.s32 4294967280, %v18611_v48  ;;  %v6124_v31 = vadd.f32 %v18285_v8, %v5992_v13  ;;  %v12688_v29 = vmul.f32 -1.442695, %v6122_v18 }
 0x75e   :  { %13930 = vrcp.f32 %v6366_v44  ;;  %v11998_v33 = vadd.s32 4294967272, %v18611_v48 }
 0x75f   :  { %13932 = vrcp.f32 %v6368_v36  ;;  %v18734_v13 = vsub.s32 %v11991_v54, %v21271_v55  ;;  %v12690_v11 = vmul.f32 -1.442695, %v6124_v31 }
 0x760   :  { %v5998_v51 = vpop.xlane.xlu0 %5997  ;;  %13934 = vrcp.f32 %v6370_v20  ;;  %v18746_v24 = vsub.s32 %v11998_v33, %v21271_v55  ;;  %v6921_v33 = vrot.slane %v18670_v21, %v18358_v16 }
 0x761   :  { %v6126_v50 = vadd.f32 %v18285_v8, %v5998_v51  ;;  %13936 = vpow2.f32 %v12686_v45  ;;  %21296 = vst [vmem:[#allocation90_spill] sm:$0xff] %v18734_v13 }
 0x762   :  { %21298 = vst [vmem:[#allocation94_spill] sm:$0xff] %v18746_v24 }
 0x763   :  { %v12692_v57 = vmul.f32 -1.442695, %v6126_v50 }
 0x764   :  { %v6004_v56 = vpop.xlane.xlu0 %6003 }
 0x765   :  { %6063 = vadd.xlane.f32.xlu0 %v6062_v62  ;;  %v9338_v62 = vcombine.low %v7069_v35, %v7073_v22  ;;  %v9368_v35 = vcombine.low %v9346_v58, %v9353_v30  ;;  %v6128_v23 = vadd.f32 %v18285_v8, %v6004_v56 }
 0x767   :  { %v9360_v10 = vrot.slane %v9338_v62, %v18372_v2  ;;  %v9376_v5 = vrot.slane %v9368_v35, %v18372_v2  ;;  %v12694_v51 = vmul.f32 -1.442695, %v6128_v23  ;;  %v6917_v23 = vrot.slane %v18670_v21, %v18353_v34 }
 0x768   :  { %v6010_v3 = vpop.xlane.xlu0 %6009 }
 0x769   :  { %11805 = vperm.xlu1 %13163, %v8992_v9   ;;  %v13913_v9 = vpop.eup %13912  ;;  %v9369_v22 = vcombine.low %v9360_v10, %v9367_v28  ;;  %v6130_v10 = vadd.f32 %v18285_v8, %v6010_v3  ;;  %v6909_v3 = vrot.slane %v18670_v21, %v18345_v61 }
 0x76a   :  { %v13915_v46 = vpop.eup %13914  ;;  %v6372_v7 = vadd.f32 1.0, %v13913_v9  ;;  %v6133_v9 = vadd.f32 %v18285_v8, %v18596_v49  ;;  %v6893_v49 = vrot.slane %v18670_v21, %v21265_v52 }
 0x76b   :  { %v18723_v4 = vpop.eup %13916  ;;  %v6374_v63 = vadd.f32 1.0, %v13915_v46  ;;  %v9383_v1 = vrot.slane %v9369_v22, %v18372_v2 }
 0x76c   :  { %21294 = vst [vmem:[#allocation88_spill] sm:$0xff] %v18723_v4  ;;  %v18728_v53 = vpop.eup %13918  ;;  %13938 = vrcp.f32 %v6372_v7  ;;  %v6016_v60 = vpop.xlane.xlu0 %6015  ;;  %v6901_v7 = vrot.slane %v18670_v21, %v18338_v12 }
 0x76d   :  { %11808 = vperm.xlu1 %13163, %v9041_v26   ;;  %21295 = vst [vmem:[#allocation19_spill] sm:$0xff] %v18728_v53  ;;  %v13921_v37 = vpop.eup %13920  ;;  %13940 = vrcp.f32 %v6374_v63  ;;  %v9384_v40 = vcombine.low %v9376_v5, %v9383_v1  ;;  %v5602_v26 = vmul.f32 %v18662_v47, %v18079_v14  ;;  %v6132_v41 = vadd.f32 %v18285_v8, %v6016_v60 }
 0x76e   :  { %v18737_v43 = vpop.eup %13922  ;;  %13942 = vpow2.f32 %v12688_v29  ;;  %v12696_v14 = vmul.f32 -1.442695, %v6130_v10  ;;  %v5609_v18 = vmul.f32 %v13921_v37, %v18157_v27  ;;  %v12699_v63 = vmul.f32 -1.442695, %v6133_v9 }
 0x76f   :  { %21297 = vst [vmem:[#allocation93_spill] sm:$0xff] %v18737_v43  ;;  %v18739_v19 = vpop.eup %13924  ;;  %13944 = vpow2.f32 %v12690_v11  ;;  %v5672_v20 = vmul.f32 %v18637_v17, %v5602_v26  ;;  %v12698_v54 = vmul.f32 -1.442695, %v6132_v41  ;;  %v6905_v27 = vrot.slane %v18670_v21, %v18341_v42 }
 0x770   :  { %v18741_v30 = vpop.eup %13926  ;;  %13946 = vpow2.f32 %v12692_v57  ;;  %v6022_v47 = vpop.xlane.xlu0 %6021  ;;  %v6913_v29 = vrot.slane %v18670_v21, %v18350_v25  ;;  %v9094_v41 = vcombine.low %v6917_v23, %v6921_v33 }
 0x771   :  { %v18750_v44 = vpop.eup %13928  ;;  %13948 = vpow2.f32 %v12694_v51  ;;  %v6134_v1 = vadd.f32 %v18285_v8, %v6022_v47  ;;  %v5742_v60 = vadd.f32 %v18641_v32, %v5672_v20  ;;  %v7129_v47 = vrot.slane %v18741_v30, %v18341_v42 }
 0x772   :  { %v18753_v36 = vpop.eup %13930  ;;  %13950 = vpow2.f32 %v12696_v14  ;;  %v9093_v26 = vcombine.low %v6909_v3, %v6913_v29  ;;  %v7125_v14 = vrot.slane %v18741_v30, %v18338_v12  ;;  %v7133_v20 = vrot.slane %v18741_v30, %v18345_v61 }
 0x773   :  { %v18731_v62 = vpop.xlane.xlu1 %6030  ;;  %v18759_v35 = vpop.eup %13932  ;;  %13952 = vpow2.f32 %v12698_v54  ;;  %v7141_v54 = vrot.slane %v18741_v30, %v18353_v34 }
 0x774   :  { %v18764_v45 = vpop.eup %13934  ;;  %13954 = vpow2.f32 %v12699_v63  ;;  %v9115_v3 = vrot.slane %v9093_v26, %v18372_v2  ;;  %v9435_v23 = vcombine.low %v7125_v14, %v7129_v47  ;;  %v5604_v26 = vmul.f32 %v18664_v15, %v18101_v38 }
 0x775   :  { %v13937_v31 = vpop.eup %13936  ;;  %v12047_v38 = vadd.s32 4294967216, %v18611_v48  ;;  %v7313_v43 = vrot.slane %v18759_v35, %v21272_v39  ;;  %v7321_v53 = vrot.slane %v18759_v35, %v18341_v42 }
 0x776   :  { %v18779_v5 = vpop.eup %13938  ;;  %v6376_v57 = vadd.f32 1.0, %v13937_v31 }
 0x777   :  { %v11794_v58 = vpop.permute.xlu1 %11793  ;;  %v18788_v37 = vpop.eup %13940 }
 0x778   :  { %v11995_v28 = vrot.slane %v11794_v58, %v18734_v13  ;;  %v13943_v11 = vpop.eup %13942  ;;  %v9092_v58 = vcombine.low %v6901_v7, %v6905_v27  ;;  %13956 = vrcp.f32 %v6376_v57  ;;  %v6028_v13 = vpop.xlane.xlu0 %6027 }
 0x779   :  { %v13945_v10 = vpop.eup %13944 }
 0x77a   :  { %v11997_v56 = vsel %vm11996_vm2, %v11995_v28, %v18635_v59  ;;  %v6897_v59 = vrot.slane %v18670_v21, %v21272_v39  ;;  %v12700_v28 = vmul.f32 -1.442695, %v6134_v1  ;;  %v7117_v21 = vrot.slane %v18741_v30, %v21265_v52  ;;  %v13947_v9 = vpop.eup %13946 }
 0x77b   :  { %11829 = vperm.xlu0 %13162, %v9384_v40   ;;  %v11797_v22 = vpop.permute.xlu1 %11796  ;;  %v5679_v40 = vmul.f32 %v18637_v17, %v5609_v18  ;;  %v7137_v18 = vrot.slane %v18741_v30, %v18350_v25  ;;  %v9108_v63 = vrot.slane %v9092_v58, %v18372_v2  ;;  %v9122_v1 = vrot.slane %v9094_v41, %v18372_v2 }
 0x77c   :  { %v12002_v46 = vrot.slane %v11797_v22, %v18746_v24  ;;  %v9091_v51 = vcombine.low %v6893_v49, %v6897_v59  ;;  %v7121_v22 = vrot.slane %v18741_v30, %v21272_v39  ;;  %v6378_v49 = vadd.f32 1.0, %v13943_v11 }
 0x77d   :  { %v5806_v59 = vmax.f32 %v5742_v60, 0.0  ;;  %v5749_v7 = vadd.f32 %v18641_v32, %v5679_v40  ;;  %13958 = vpow2.f32 %v12700_v28  ;;  %v9436_v33 = vcombine.low %v7133_v20, %v7137_v18 }
 0x77e   :  { %v18773_v50 = vsel %vm12003_vm3, %v12002_v46, %v11997_v56  ;;  %v6135_v56 = vadd.f32 %v18285_v8, %v18604_v6  ;;  %v13949_v46 = vpop.eup %13948  ;;  %v7145_v6 = vrot.slane %v18741_v30, %v18358_v16  ;;  %v9101_v31 = vrot.slane %v9091_v51, %v18372_v2 }
 0x77f   :  { %v9434_v29 = vcombine.low %v7117_v21, %v7121_v22  ;;  %v13951_v30 = vpop.eup %13950  ;;  %13960 = vrcp.f32 %v6378_v49  ;;  %v6380_v11 = vadd.f32 1.0, %v13945_v10  ;;  %v6382_v57 = vadd.f32 1.0, %v13947_v9  ;;  %v21299_v22 = vld [vmem:[#allocation96_spill] sm:$0xff]  ;;  %v6034_v49 = vpop.xlane.xlu0 %6033 }
 0x780   :  { %v12701_v27 = vmul.f32 -1.442695, %v6135_v56  ;;  %v9437_v24 = vcombine.low %v7141_v54, %v7145_v6  ;;  %v12033_v60 = vadd.s32 4294967232, %v18611_v48  ;;  %v13953_v40 = vpop.eup %13952  ;;  %v6384_v51 = vadd.f32 1.0, %v13949_v46 }
 0x781   :  { %v5877_v58 = vmul.f32 %v18652_v0, %v5806_v59  ;;  %v5813_v28 = vmax.f32 %v5749_v7, 0.0  ;;  %v13955_v41 = vpop.eup %13954  ;;  %v9123_v21 = vcombine.low %v9101_v31, %v9108_v63  ;;  %v9124_v56 = vcombine.low %v9115_v3, %v9122_v1 }
 0x782   :  { %13962 = vpow2.f32 %v12701_v27  ;;  %v5611_v14 = vmul.f32 %v18739_v19, %v21299_v22  ;;  %v9444_v10 = vrot.slane %v9434_v29, %v18372_v2  ;;  %v9451_v9 = vrot.slane %v9435_v23, %v18372_v2  ;;  %v18829_v6 = vpop.eup %13956 }
 0x783   :  { %v9458_v47 = vrot.slane %v9436_v33, %v18372_v2  ;;  %v9465_v46 = vrot.slane %v9437_v24, %v18372_v2  ;;  %13964 = vrcp.f32 %v6380_v11  ;;  %v6386_v20 = vadd.f32 1.0, %v13951_v30 }
 0x784   :  { %v6136_v18 = vadd.f32 %v18285_v8, %v6028_v13  ;;  %13966 = vrcp.f32 %v6382_v57  ;;  %v6388_v15 = vadd.f32 1.0, %v13953_v40  ;;  %v5884_v54 = vmul.f32 %v18652_v0, %v5813_v28 }
 0x785   :  { %v5674_v19 = vmul.f32 %v18637_v17, %v5604_v26  ;;  %v6047_v59 = vsel %vm4779_vm0, %v5877_v58, 0.0  ;;  %v9131_v7 = vrot.slane %v9123_v21, %v18372_v2  ;;  %v9138_v24 = vrot.slane %v9124_v56, %v18372_v2  ;;  %v6040_v56 = vpop.xlane.xlu0 %6039 }
 0x786   :  { %v5681_v31 = vmul.f32 %v18637_v17, %v5611_v14  ;;  %13968 = vrcp.f32 %v6384_v51  ;;  %v6389_v13 = vadd.f32 1.0, %v13955_v41  ;;  %v9466_v63 = vcombine.low %v9444_v10, %v9451_v9  ;;  %v21302_v51 = vld [vmem:[#allocation100_spill] sm:$0xff] }
 0x787   :  { %v9467_v27 = vcombine.low %v9458_v47, %v9465_v46  ;;  %v13959_v3 = vpop.eup %13958  ;;  %13970 = vrcp.f32 %v6386_v20  ;;  %v12702_v1 = vmul.f32 -1.442695, %v6136_v18  ;;  %v18836_v29 = vsub.s32 %v12033_v60, %v21271_v55 }
 0x788   :  { %v18839_v23 = vsub.s32 %v12047_v38, %v21271_v55  ;;  %13972 = vrcp.f32 %v6388_v15  ;;  %v6138_v33 = vadd.f32 %v18285_v8, %v6034_v49  ;;  %v6068_v30 = vsel %vm4779_vm0, %v5884_v54, 0.0 }
 0x789   :  { %21300 = vst [vmem:[#allocation23_spill] sm:$0xff] %v18836_v29  ;;  %v5744_v17 = vadd.f32 %v18641_v32, %v5674_v19  ;;  %v18844_v11 = vpop.eup %13960  ;;  %v18846_v57 = vcombine.low %v9131_v7, %v9138_v24  ;;  %v5751_v40 = vadd.f32 %v18641_v32, %v5681_v31  ;;  %v6957_v60 = vrot.slane %v21302_v51, %v21265_v52 }
 0x78a   :  { %21301 = vst [vmem:[#allocation22_spill] sm:$0xff] %v18839_v23  ;;  %v6961_v58 = vrot.slane %v21302_v51, %v21272_v39  ;;  %13974 = vrcp.f32 %v6389_v13  ;;  %v6390_v28 = vadd.f32 1.0, %v13959_v3  ;;  %v9474_v26 = vrot.slane %v9466_v63, %v18372_v2 }
 0x78b   :  { %v9481_v41 = vrot.slane %v9467_v27, %v18372_v2  ;;  %13976 = vpow2.f32 %v12702_v1  ;;  %v6965_v22 = vrot.slane %v21302_v51, %v18338_v12  ;;  %v6969_v32 = vrot.slane %v21302_v51, %v18341_v42 }
 0x78c   :  { %v13963_v21 = vpop.eup %13962  ;;  %v6973_v14 = vrot.slane %v21302_v51, %v18345_v61  ;;  %v12704_v10 = vmul.f32 -1.442695, %v6138_v33  ;;  %v12005_v9 = vadd.s32 4294967264, %v18611_v48  ;;  %v5808_v47 = vmax.f32 %v5744_v17, 0.0 }
 0x78d   :  { %v6977_v46 = vrot.slane %v21302_v51, %v18350_v25  ;;  %v18864_v20 = vpop.eup %13964  ;;  %v5815_v18 = vmax.f32 %v5751_v40, 0.0  ;;  %v6981_v38 = vrot.slane %v21302_v51, %v18353_v34  ;;  %v6985_v15 = vrot.slane %v21302_v51, %v18358_v16 }
 0x78e   :  { %v9189_v54 = vcombine.low %v6957_v60, %v6961_v58  ;;  %v18870_v19 = vpop.eup %13966  ;;  %13978 = vrcp.f32 %v6390_v28  ;;  %v18872_v49 = vadd.f32 1.0, %v13963_v21  ;;  %v18875_v7 = vcombine.low %v9474_v26, %v9481_v41 }
 0x78f   :  { %21303 = vst [vmem:[#allocation98_spill] sm:$0xff] %v18870_v19  ;;  %v18878_v24 = vadd.s32 4294967256, %v18611_v48  ;;  %v9190_v31 = vcombine.low %v6965_v22, %v6969_v32  ;;  %v7181_v13 = vrot.slane %v18750_v44, %v21265_v52  ;;  %v7185_v63 = vrot.slane %v18750_v44, %v21272_v39 }
 0x790   :  { %v18884_v27 = vpop.eup %13968  ;;  %13980 = vpow2.f32 %v12704_v10  ;;  %v18887_v3 = vsub.s32 %v12005_v9, %v21271_v55  ;;  %v18890_v1 = vmul.f32 %v18652_v0, %v5808_v47  ;;  %v18892_v33 = vcombine.low %v6973_v14, %v6977_v46 }
 0x791   :  { %6048 = vadd.xlane.f32.xlu1 %v6047_v59  ;;  %v6140_v59 = vadd.f32 %v18285_v8, %v6040_v56  ;;  %21304 = vst [vmem:[#allocation97_spill] sm:$0xff] %v18884_v27  ;;  %v18897_v17 = vmul.f32 %v18652_v0, %v5815_v18  ;;  %v7189_v40 = vrot.slane %v18750_v44, %v18338_v12 }
 0x792   :  { %21305 = vst [vmem:[#allocation27_spill] sm:$0xff] %v18887_v3  ;;  %v7193_v51 = vrot.slane %v18750_v44, %v18341_v42  ;;  %v7197_v60 = vrot.slane %v18750_v44, %v18345_v61  ;;  %v7201_v26 = vrot.slane %v18750_v44, %v18350_v25  ;;  %v7205_v41 = vrot.slane %v18750_v44, %v18353_v34 }
 0x793   :  { %v12706_v28 = vmul.f32 -1.442695, %v6140_v59  ;;  %v7209_v0 = vrot.slane %v18750_v44, %v18358_v16  ;;  %v9192_v21 = vcombine.low %v6981_v38, %v6985_v15  ;;  %v9199_v56 = vrot.slane %v9189_v54, %v18372_v2 }
 0x794   :  { %v9206_v22 = vrot.slane %v9190_v31, %v18372_v2  ;;  %v9532_v32 = vcombine.low %v7181_v13, %v7185_v63  ;;  %v7245_v10 = vrot.slane %v18753_v36, %v21265_v52  ;;  %v7249_v9 = vrot.slane %v18753_v36, %v21272_v39 }
 0x795   :  { %v7253_v47 = vrot.slane %v18753_v36, %v18338_v12  ;;  %v7257_v44 = vrot.slane %v18753_v36, %v18341_v42  ;;  %v7261_v18 = vrot.slane %v18753_v36, %v18345_v61  ;;  %v7265_v38 = vrot.slane %v18753_v36, %v18350_v25 }
 0x796   :  { %v7269_v15 = vrot.slane %v18753_v36, %v18353_v34  ;;  %v7273_v54 = vrot.slane %v18753_v36, %v18358_v16  ;;  %13982 = vpow2.f32 %v12706_v28  ;;  %v9533_v59 = vcombine.low %v7189_v40, %v7193_v51 }
 0x797   :  { %v9534_v31 = vcombine.low %v7197_v60, %v7201_v26  ;;  %v9535_v13 = vcombine.low %v7205_v41, %v7209_v0  ;;  %v7309_v63 = vrot.slane %v18759_v35, %v21265_v52  ;;  %v7317_v23 = vrot.slane %v18759_v35, %v18338_v12 }
 0x798   :  { %v7325_v36 = vrot.slane %v18759_v35, %v18345_v61  ;;  %v7333_v40 = vrot.slane %v18759_v35, %v18353_v34  ;;  %v7337_v51 = vrot.slane %v18759_v35, %v18358_v16  ;;  %v9630_v60 = vcombine.low %v7245_v10, %v7249_v9  ;;  %v6046_v10 = vpop.xlane.xlu0 %6045 }
 0x799   :  { %v9631_v28 = vcombine.low %v7253_v47, %v7257_v44  ;;  %v9632_v26 = vcombine.low %v7261_v18, %v7265_v38  ;;  %v9633_v41 = vcombine.low %v7269_v15, %v7273_v54  ;;  %v9221_v27 = vcombine.low %v9199_v56, %v9206_v22 }
 0x79a   :  { %6069 = vadd.xlane.f32.xlu0 %v6068_v30  ;;  %v18894_v30 = vpop.eup %13970  ;;  %v9542_v19 = vrot.slane %v9532_v32, %v18372_v2  ;;  %v9549_v48 = vrot.slane %v9533_v59, %v18372_v2  ;;  %v9556_v4 = vrot.slane %v9534_v31, %v18372_v2  ;;  %v9728_v9 = vcombine.low %v7309_v63, %v7313_v43 }
 0x79b   :  { %21306 = vst [vmem:[#allocation26_spill] sm:$0xff] %v18894_v30  ;;  %v18905_v58 = vpop.eup %13972  ;;  %v9220_v30 = vrot.slane %v9192_v21, %v18372_v2  ;;  %v9729_v47 = vcombine.low %v7317_v23, %v7321_v53  ;;  %v9731_v18 = vcombine.low %v7333_v40, %v7337_v51  ;;  %v9654_v21 = vrot.slane %v9632_v26, %v18372_v2 }
 0x79c   :  { %21307 = vst [vmem:[#allocation102_spill] sm:$0xff] %v18905_v58  ;;  %v18915_v14 = vpop.eup %13974  ;;  %v9661_v56 = vrot.slane %v9633_v41, %v18372_v2  ;;  %13984 = vrcp.f32 %v18872_v49  ;;  %v18966_v22 = vsub.s32 %v18878_v24, %v21271_v55  ;;  %v18970_v53 = vsel %vm4779_vm0, %v18890_v1, 0.0 }
 0x79d   :  { %21308 = vst [vmem:[#allocation101_spill] sm:$0xff] %v18915_v14  ;;  %v13977_v46 = vpop.eup %13976  ;;  %v6142_v23 = vadd.f32 %v18285_v8, %v6046_v10  ;;  %v18975_v32 = vsel %vm4779_vm0, %v18897_v17, 0.0  ;;  %v9564_v38 = vcombine.low %v9542_v19, %v9549_v48  ;;  %v9738_v49 = vrot.slane %v9728_v9, %v18372_v2 }
 0x79e   :  { %v18942_v14 = vpop.eup %13978  ;;  %v6392_v58 = vadd.f32 1.0, %v13977_v46  ;;  %v9640_v46 = vrot.slane %v9630_v60, %v18372_v2  ;;  %21310 = vst [vmem:[#allocation31_spill] sm:$0xff] %v18966_v22  ;;  %v9745_v54 = vrot.slane %v9729_v47, %v18372_v2  ;;  %v9759_v59 = vrot.slane %v9731_v18, %v18372_v2 }
 0x79f   :  { %21309 = vst [vmem:[#allocation33_spill] sm:$0xff] %v18942_v14  ;;  %v13981_v0 = vpop.eup %13980  ;;  %v9213_v14 = vrot.slane %v18892_v33, %v18372_v2  ;;  %v9647_v33 = vrot.slane %v9631_v28, %v18372_v2  ;;  %v9663_v31 = vcombine.low %v9654_v21, %v9661_v56  ;;  %v7373_v19 = vrot.slane %v18764_v45, %v21265_v52 }
 0x7a0   :  { %13986 = vrcp.f32 %v6392_v58  ;;  %v13983_v15 = vpop.eup %13982  ;;  %v6394_v17 = vadd.f32 1.0, %v13981_v0  ;;  %v7381_v63 = vrot.slane %v18764_v45, %v18338_v12  ;;  %v9760_v40 = vcombine.low %v9738_v49, %v9745_v54 }
 0x7a1   :  { %v9222_v43 = vcombine.low %v9213_v14, %v9220_v30  ;;  %v9229_v30 = vrot.slane %v9221_v27, %v18372_v2  ;;  %v9662_v14 = vcombine.low %v9640_v46, %v9647_v33  ;;  %v7385_v27 = vrot.slane %v18764_v45, %v18341_v42 }
 0x7a2   :  { %11814 = vperm.xlu1 %13163, %v18846_v57   ;;  %v7329_v57 = vrot.slane %v18759_v35, %v18350_v25  ;;  %v9563_v35 = vrot.slane %v9535_v13, %v18372_v2  ;;  %v7377_v13 = vrot.slane %v18764_v45, %v21272_v39  ;;  %v6396_v60 = vadd.f32 1.0, %v13983_v15 }
 0x7a3   :  { %v9236_v48 = vrot.slane %v9222_v43, %v18372_v2  ;;  %v9670_v41 = vrot.slane %v9662_v14, %v18372_v2  ;;  %v9677_v0 = vrot.slane %v9663_v31, %v18372_v2  ;;  %v7397_v47 = vrot.slane %v18764_v45, %v18353_v34 }
 0x7a4   :  { %v9730_v44 = vcombine.low %v7325_v36, %v7329_v57  ;;  %v9565_v58 = vcombine.low %v9556_v4, %v9563_v35  ;;  %v7389_v4 = vrot.slane %v18764_v45, %v18345_v61  ;;  %v12708_v36 = vmul.f32 -1.442695, %v6142_v23  ;;  %v19002_v35 = vpop.permute.xlu0 %11811 }
 0x7a5   :  { %v9572_v57 = vrot.slane %v9564_v38, %v18372_v2  ;;  %v19005_v9 = vcombine.low %v9229_v30, %v9236_v48  ;;  %13988 = vrcp.f32 %v6394_v17  ;;  %v19011_v18 = vcombine.low %v7373_v19, %v7377_v13 }
 0x7a6   :  { %v9752_v24 = vrot.slane %v9730_v44, %v18372_v2  ;;  %v9579_v26 = vrot.slane %v9565_v58, %v18372_v2  ;;  %v7401_v44 = vrot.slane %v18764_v45, %v18358_v16  ;;  %v19013_v46 = vcombine.low %v7381_v63, %v7385_v27  ;;  %v19017_v21 = vpop.eup %13984 }
 0x7a7   :  { %21312 = vst [vmem:[#allocation34_spill] sm:$0xff] %v19017_v21  ;;  %13990 = vpow2.f32 %v12708_v36  ;;  %v9768_v43 = vrot.slane %v9760_v40, %v18372_v2  ;;  %v19029_v54 = vcombine.low %v9670_v41, %v9677_v0  ;;  %v7441_v30 = vrot.slane %v18779_v5, %v21272_v39  ;;  %v21314_v36 = vld [vmem:[#allocation68_spill] sm:$0xff] }
 0x7a8   :  { %v9761_v51 = vcombine.low %v9752_v24, %v9759_v59  ;;  %13992 = vrcp.f32 %v6396_v60  ;;  %v19027_v49 = vcombine.low %v9572_v57, %v9579_v26  ;;  %v9829_v59 = vcombine.low %v7397_v47, %v7401_v44  ;;  %v21315_v57 = vld [vmem:[#allocation29_spill] sm:$0xff] }
 0x7a9   :  { %v9836_v58 = vrot.slane %v19011_v18, %v18372_v2  ;;  %v9843_v14 = vrot.slane %v19013_v46, %v18372_v2  ;;  %v7445_v17 = vrot.slane %v18779_v5, %v18338_v12  ;;  %v7449_v13 = vrot.slane %v18779_v5, %v18341_v42 }
 0x7aa   :  { %v9775_v23 = vrot.slane %v9761_v51, %v18372_v2  ;;  %v19023_v38 = vpop.eup %13986  ;;  %v7453_v63 = vrot.slane %v18779_v5, %v18345_v61  ;;  %v7457_v27 = vrot.slane %v18779_v5, %v18350_v25  ;;  %v5606_v40 = vmul.f32 %v21315_v57, %v21314_v36  ;;  %v19088_v36 = vld [vmem:[#allocation10] ss:$0 sm:$0xff] }
 0x7ab   :  { %21313 = vst [vmem:[#allocation37_spill] sm:$0xff] %v19023_v38  ;;  %v7501_v51 = vrot.slane %v18788_v37, %v21265_v52  ;;  %v7505_v60 = vrot.slane %v18788_v37, %v21272_v39  ;;  %v7513_v26 = vrot.slane %v18788_v37, %v18341_v42  ;;  %v7517_v41 = vrot.slane %v18788_v37, %v18345_v61 }
 0x7ac   :  { %v18981_v1 = vpop.xlane.xlu1 %6036  ;;  %v19047_v19 = vcombine.low %v9768_v43, %v9775_v23  ;;  %v7525_v0 = vrot.slane %v18788_v37, %v18353_v34  ;;  %v7565_v47 = vrot.slane %v18829_v6, %v21265_v52  ;;  %v7569_v44 = vrot.slane %v18829_v6, %v21272_v39  ;;  %21317 = vst [vmem:[#allocation43_spill] sm:$0xff] %v19088_v36 }
 0x7ad   :  { %21311 = vst [vmem:[#allocation35_spill] sm:$0xff] %v18981_v1  ;;  %v7573_v18 = vrot.slane %v18829_v6, %v18338_v12  ;;  %v7577_v46 = vrot.slane %v18829_v6, %v18341_v42  ;;  %v9925_v23 = vcombine.low %v7445_v17, %v7449_v13  ;;  %v5676_v57 = vmul.f32 %v19088_v36, %v5606_v40 }
 0x7ae   :  { %v10120_v17 = vcombine.low %v7565_v47, %v7569_v44  ;;  %v7629_v44 = vrot.slane %v18844_v11, %v21265_v52 }
 0x7af   :  { %v10121_v13 = vcombine.low %v7573_v18, %v7577_v46  ;;  %v9941_v40 = vrot.slane %v9925_v23, %v18372_v2  ;;  %v7641_v18 = vrot.slane %v18844_v11, %v18341_v42 }
 0x7b0   :  { %11835 = vperm.xlu0 %13162, %v18875_v7   ;;  %v7393_v7 = vrot.slane %v18764_v45, %v18350_v25  ;;  %v11800_v28 = vpop.permute.xlu1 %11799  ;;  %v10022_v45 = vcombine.low %v7501_v51, %v7505_v60 }
 0x7b1   :  { %v12009_v10 = vrot.slane %v11800_v28, %v18887_v3  ;;  %v7509_v28 = vrot.slane %v18788_v37, %v18338_v12 }
 0x7b2   :  { %v19015_v33 = vcombine.low %v7389_v4, %v7393_v7  ;;  %v7461_v4 = vrot.slane %v18779_v5, %v18353_v34  ;;  %v7465_v7 = vrot.slane %v18779_v5, %v18358_v16 }
 0x7b3   :  { %v12011_v56 = vsel %vm12010_vm4, %v12009_v10, %v18773_v50  ;;  %v7437_v50 = vrot.slane %v18779_v5, %v21265_v52  ;;  %v7521_v5 = vrot.slane %v18788_v37, %v18350_v25  ;;  %v7529_v10 = vrot.slane %v18788_v37, %v18358_v16 }
 0x7b4   :  { %v11803_v15 = vpop.permute.xlu1 %11802  ;;  %v9850_v31 = vrot.slane %v19015_v33, %v18372_v2  ;;  %v19085_v33 = vpop.eup %13988 }
 0x7b5   :  { %v12016_v24 = vrot.slane %v11803_v15, %v18966_v22  ;;  %21316 = vst [vmem:[#allocation36_spill] sm:$0xff] %v19085_v33  ;;  %v9924_v43 = vcombine.low %v7437_v50, %v7441_v30  ;;  %v9926_v15 = vcombine.low %v7453_v63, %v7457_v27  ;;  %v13991_v37 = vpop.eup %13990  ;;  %v10023_v22 = vcombine.low %v7509_v28, %v7513_v26  ;;  %v19109_v28 = vld [vmem:[#allocation11] ss:$0 sm:$0xff] }
 0x7b6   :  { %v19091_v3 = vpop.eup %13992  ;;  %v10024_v1 = vcombine.low %v7517_v41, %v7521_v5  ;;  %v10025_v38 = vcombine.low %v7525_v0, %v7529_v10  ;;  %v7581_v33 = vrot.slane %v18829_v6, %v18345_v61  ;;  %v7589_v50 = vrot.slane %v18829_v6, %v18353_v34  ;;  %21319 = vst [vmem:[#allocation105_spill] sm:$0xff] %v19109_v28 }
 0x7b7   :  { %v19045_v48 = vsel %vm12017_vm5, %v12016_v24, %v12011_v56  ;;  %v9857_v56 = vrot.slane %v9829_v59, %v18372_v2  ;;  %v9927_v24 = vcombine.low %v7461_v4, %v7465_v7  ;;  %21318 = vst [vmem:[#allocation38_spill] sm:$0xff] %v19091_v3  ;;  %v7585_v59 = vrot.slane %v18829_v6, %v18350_v25 }
 0x7b8   :  { %v7593_v30 = vrot.slane %v18829_v6, %v18358_v16  ;;  %v6398_v63 = vadd.f32 1.0, %v13991_v37  ;;  %v19101_v27 = vcombine.low %v9836_v58, %v9843_v14  ;;  %v9934_v7 = vrot.slane %v9924_v43, %v18372_v2 }
 0x7b9   :  { %v19103_v4 = vcombine.low %v9850_v31, %v9857_v56  ;;  %v9948_v51 = vrot.slane %v9926_v15, %v18372_v2  ;;  %v9955_v60 = vrot.slane %v9927_v24, %v18372_v2  ;;  %v5746_v26 = vadd.f32 %v19109_v28, %v5676_v57 }
 0x7ba   :  { %v10032_v6 = vrot.slane %v10022_v45, %v18372_v2  ;;  %v10039_v41 = vrot.slane %v10023_v22, %v18372_v2  ;;  %v10046_v58 = vrot.slane %v10024_v1, %v18372_v2  ;;  %v10053_v14 = vrot.slane %v10025_v38, %v18372_v2 }
 0x7bb   :  { %v10122_v31 = vcombine.low %v7581_v33, %v7585_v59  ;;  %v10123_v5 = vcombine.low %v7589_v50, %v7593_v30  ;;  %v10130_v0 = vrot.slane %v10120_v17, %v18372_v2  ;;  %v10137_v10 = vrot.slane %v10121_v13, %v18372_v2 }
 0x7bc   :  { %13994 = vrcp.f32 %v6398_v63  ;;  %v9866_v47 = vrot.slane %v19101_v27, %v18372_v2  ;;  %v7633_v22 = vrot.slane %v18844_v11, %v21272_v39  ;;  %v9956_v45 = vcombine.low %v9934_v7, %v9941_v40 }
 0x7bd   :  { %v9957_v1 = vcombine.low %v9948_v51, %v9955_v60  ;;  %v7637_v38 = vrot.slane %v18844_v11, %v18338_v12  ;;  %v9873_v46 = vrot.slane %v19103_v4, %v18372_v2  ;;  %v5810_v33 = vmax.f32 %v5746_v26, 0.0  ;;  %v19153_v51 = vld [vmem:[#allocation13] ss:$0 sm:$0xff] }
 0x7be   :  { %v10054_v56 = vcombine.low %v10032_v6, %v10039_v41  ;;  %v10055_v43 = vcombine.low %v10046_v58, %v10053_v14  ;;  %v10144_v23 = vrot.slane %v10122_v31, %v18372_v2  ;;  %v10151_v15 = vrot.slane %v10123_v5, %v18372_v2  ;;  %21320 = vst [vmem:[#allocation104_spill] sm:$0xff] %v19153_v51 }
 0x7bf   :  { %v10152_v37 = vcombine.low %v10130_v0, %v10137_v10  ;;  %v7645_v24 = vrot.slane %v18844_v11, %v18345_v61  ;;  %v7649_v57 = vrot.slane %v18844_v11, %v18350_v25  ;;  %v7657_v59 = vrot.slane %v18844_v11, %v18358_v16 }
 0x7c0   :  { %v10218_v50 = vcombine.low %v7629_v44, %v7633_v22  ;;  %v6137_v30 = vadd.f32 %v18285_v8, %v18731_v62  ;;  %v9964_v17 = vrot.slane %v9956_v45, %v18372_v2  ;;  %v9971_v13 = vrot.slane %v9957_v1, %v18372_v2 }
 0x7c1   :  { %v10219_v63 = vcombine.low %v7637_v38, %v7641_v18  ;;  %v7693_v4 = vrot.slane %v18864_v20, %v21265_v52  ;;  %v7697_v7 = vrot.slane %v18864_v20, %v21272_v39  ;;  %v7701_v40 = vrot.slane %v18864_v20, %v18338_v12  ;;  %v21322_v18 = vld [vmem:[#allocation88_spill] sm:$0xff] }
 0x7c2   :  { %v5881_v62 = vmul.f32 %v19153_v51, %v5810_v33  ;;  %v10062_v60 = vrot.slane %v10054_v56, %v18372_v2  ;;  %v10069_v26 = vrot.slane %v10055_v43, %v18372_v2  ;;  %v10153_v6 = vcombine.low %v10144_v23, %v10151_v15 }
 0x7c3   :  { %v10160_v41 = vrot.slane %v10152_v37, %v18372_v2  ;;  %v10220_v58 = vcombine.low %v7645_v24, %v7649_v57  ;;  %v10228_v31 = vrot.slane %v10218_v50, %v18372_v2  ;;  %v12703_v5 = vmul.f32 -1.442695, %v6137_v30 }
 0x7c4   :  { %v10235_v0 = vrot.slane %v10219_v63, %v18372_v2  ;;  %v7709_v10 = vrot.slane %v18864_v20, %v18345_v61  ;;  %v7713_v44 = vrot.slane %v18864_v20, %v18350_v25  ;;  %v7721_v45 = vrot.slane %v18864_v20, %v18358_v16 }
 0x7c5   :  { %v10316_v1 = vcombine.low %v7693_v4, %v7697_v7  ;;  %v7021_v33 = vrot.slane %v21322_v18, %v21265_v52  ;;  %v7025_v56 = vrot.slane %v21322_v18, %v21272_v39  ;;  %v7029_v43 = vrot.slane %v21322_v18, %v18338_v12 }
 0x7c6   :  { %6054 = vadd.xlane.f32.xlu1 %v18970_v53  ;;  %v7653_v53 = vrot.slane %v18844_v11, %v18353_v34  ;;  %v7705_v11 = vrot.slane %v18864_v20, %v18341_v42  ;;  %v19166_v22 = vpop.eup %13994  ;;  %v7033_v23 = vrot.slane %v21322_v18, %v18341_v42  ;;  %v7037_v15 = vrot.slane %v21322_v18, %v18345_v61 }
 0x7c7   :  { %21321 = vst [vmem:[#allocation106_spill] sm:$0xff] %v19166_v22  ;;  %v7045_v37 = vrot.slane %v21322_v18, %v18353_v34  ;;  %v7049_v24 = vrot.slane %v21322_v18, %v18358_v16  ;;  %13996 = vpow2.f32 %v12703_v5  ;;  %v10167_v57 = vrot.slane %v10153_v6, %v18372_v2 }
 0x7c8   :  { %v10221_v14 = vcombine.low %v7653_v53, %v7657_v59  ;;  %v10317_v38 = vcombine.low %v7701_v40, %v7705_v11  ;;  %v10242_v53 = vrot.slane %v10220_v58, %v18372_v2  ;;  %v10318_v50 = vcombine.low %v7709_v10, %v7713_v44  ;;  %v21324_v44 = vld [vmem:[#allocation25_spill] sm:$0xff] }
 0x7c9   :  { %v10326_v63 = vrot.slane %v10316_v1, %v18372_v2  ;;  %v19196_v7 = vcombine.low %v9866_v47, %v9873_v46  ;;  %v19198_v40 = vcombine.low %v9964_v17, %v9971_v13  ;;  %v9287_v11 = vcombine.low %v7021_v33, %v7025_v56  ;;  %v6052_v33 = vpop.xlane.xlu0 %6051 }
 0x7ca   :  { %v10249_v59 = vrot.slane %v10221_v14, %v18372_v2  ;;  %v10333_v4 = vrot.slane %v10317_v38, %v18372_v2  ;;  %v9288_v5 = vcombine.low %v7029_v43, %v7033_v23  ;;  %v19201_v6 = vsel %vm4779_vm0, %v5881_v62, 0.0 }
 0x7cb   :  { %21323 = vst [vmem:[#allocation107_spill] sm:$0xff] %v19201_v6  ;;  %v19203_v58 = vcombine.low %v10062_v60, %v10069_v26  ;;  %v9290_v10 = vcombine.low %v7045_v37, %v7049_v24  ;;  %v19209_v1 = vcombine.low %v10160_v41, %v10167_v57  ;;  %v19211_v27 = vcombine.low %v10228_v31, %v10235_v0  ;;  %v21326_v26 = vld [vmem:[#allocation98_spill] sm:$0xff] }
 0x7cc   :  { %v19213_v47 = vcombine.low %v10242_v53, %v10249_v59  ;;  %v10340_v46 = vrot.slane %v10318_v50, %v18372_v2  ;;  %v10348_v13 = vcombine.low %v10326_v63, %v10333_v4  ;;  %v9297_v62 = vrot.slane %v9287_v11, %v18372_v2 }
 0x7cd   :  { %21325 = vst [vmem:[#allocation39_spill] sm:$0xff] %v19209_v1  ;;  %v9304_v60 = vrot.slane %v9288_v5, %v18372_v2  ;;  %v7757_v38 = vrot.slane %v21326_v26, %v21265_v52  ;;  %v7761_v41 = vrot.slane %v21326_v26, %v21272_v39  ;;  %v9318_v0 = vrot.slane %v9290_v10, %v18372_v2 }
 0x7ce   :  { %v7773_v56 = vrot.slane %v21326_v26, %v18345_v61  ;;  %v7777_v43 = vrot.slane %v21326_v26, %v18350_v25  ;;  %v7781_v23 = vrot.slane %v21326_v26, %v18353_v34  ;;  %v6144_v11 = vadd.f32 %v18285_v8, %v6052_v33 }
 0x7cf   :  { %6075 = vadd.xlane.f32.xlu0 %v18975_v32  ;;  %v7717_v32 = vrot.slane %v18864_v20, %v18353_v34  ;;  %v7041_v20 = vrot.slane %v21322_v18, %v18350_v25  ;;  %v7765_v18 = vrot.slane %v21326_v26, %v18338_v12  ;;  %v10258_v22 = vrot.slane %v19211_v27, %v18372_v2 }
 0x7d0   :  { %v10416_v28 = vcombine.low %v7773_v56, %v7777_v43  ;;  %v10265_v1 = vrot.slane %v19213_v47, %v18372_v2 }
 0x7d1   :  { %v10319_v30 = vcombine.low %v7717_v32, %v7721_v45  ;;  %v9289_v14 = vcombine.low %v7037_v15, %v7041_v20  ;;  %v12019_v32 = vadd.s32 4294967248, %v21324_v44  ;;  %v19207_v45 = vadd.s32 4294967240, %v21324_v44  ;;  %v21327_v20 = vld [vmem:[#allocation97_spill] sm:$0xff]  ;;  %v13997_v59 = vpop.eup %13996 }
 0x7d2   :  { %v7785_v15 = vrot.slane %v21326_v26, %v18358_v16  ;;  %v7821_v37 = vrot.slane %v21327_v20, %v21265_v52  ;;  %v7825_v24 = vrot.slane %v21327_v20, %v21272_v39  ;;  %v7829_v57 = vrot.slane %v21327_v20, %v18338_v12 }
 0x7d3   :  { %v10347_v17 = vrot.slane %v10319_v30, %v18372_v2  ;;  %v9311_v31 = vrot.slane %v9289_v14, %v18372_v2  ;;  %v7833_v53 = vrot.slane %v21327_v20, %v18341_v42  ;;  %v7837_v50 = vrot.slane %v21327_v20, %v18345_v61 }
 0x7d4   :  { %v7841_v30 = vrot.slane %v21327_v20, %v18350_v25  ;;  %v7845_v63 = vrot.slane %v21327_v20, %v18353_v34  ;;  %v7849_v4 = vrot.slane %v21327_v20, %v18358_v16  ;;  %v9319_v14 = vcombine.low %v9297_v62, %v9304_v60 }
 0x7d5   :  { %v10349_v5 = vcombine.low %v10340_v46, %v10347_v17  ;;  %v9320_v10 = vcombine.low %v9311_v31, %v9318_v0  ;;  %v10417_v36 = vcombine.low %v7781_v23, %v7785_v15  ;;  %v6393_v44 = vadd.f32 1.0, %v13997_v59 }
 0x7d6   :  { %v10512_v3 = vcombine.low %v7821_v37, %v7825_v24  ;;  %v10513_v6 = vcombine.low %v7829_v57, %v7833_v53  ;;  %v10356_v20 = vrot.slane %v10348_v13, %v18372_v2  ;;  %v10514_v21 = vcombine.low %v7837_v50, %v7841_v30  ;;  %v21332_v57 = vld [vmem:[#allocation102_spill] sm:$0xff] }
 0x7d7   :  { %11820 = vperm.xlu1 %13163, %v19005_v9   ;;  %v7769_v9 = vrot.slane %v21326_v26, %v18341_v42  ;;  %v10414_v26 = vcombine.low %v7757_v38, %v7761_v41  ;;  %v10515_v33 = vcombine.low %v7845_v63, %v7849_v4  ;;  %v12710_v46 = vmul.f32 -1.442695, %v6144_v11 }
 0x7d8   :  { %v10363_v17 = vrot.slane %v10349_v5, %v18372_v2  ;;  %v9327_v62 = vrot.slane %v9319_v14, %v18372_v2  ;;  %v9334_v60 = vrot.slane %v9320_v10, %v18372_v2  ;;  %v10438_v41 = vrot.slane %v10416_v28, %v18372_v2 }
 0x7d9   :  { %v10415_v51 = vcombine.low %v7765_v18, %v7769_v9  ;;  %v10424_v38 = vrot.slane %v10414_v26, %v18372_v2  ;;  %v10445_v47 = vrot.slane %v10417_v36, %v18372_v2  ;;  %13998 = vrcp.f32 %v6393_v44 }
 0x7da   :  { %v19269_v13 = vsub.s32 %v12019_v32, %v21271_v55  ;;  %v10522_v31 = vrot.slane %v10512_v3, %v18372_v2  ;;  %v10529_v0 = vrot.slane %v10513_v6, %v18372_v2  ;;  %v10536_v18 = vrot.slane %v10514_v21, %v18372_v2 }
 0x7db   :  { %v10431_v27 = vrot.slane %v10415_v51, %v18372_v2  ;;  %v10543_v9 = vrot.slane %v10515_v33, %v18372_v2  ;;  %v21329_v51 = vld [vmem:[#allocation26_spill] sm:$0xff]  ;;  %14000 = vpow2.f32 %v12710_v46  ;;  %v19283_v28 = vcombine.low %v10258_v22, %v10265_v1 }
 0x7dc   :  { %21328 = vst [vmem:[#allocation42_spill] sm:$0xff] %v19269_v13  ;;  %v7885_v56 = vrot.slane %v21329_v51, %v21265_v52  ;;  %v7889_v36 = vrot.slane %v21329_v51, %v21272_v39  ;;  %v19285_v3 = vcombine.low %v10356_v20, %v10363_v17  ;;  %v19289_v21 = vcombine.low %v9327_v62, %v9334_v60 }
 0x7dd   :  { %v19291_v44 = vcombine.low %v10424_v38, %v10431_v27  ;;  %v19293_v32 = vcombine.low %v10438_v41, %v10445_v47  ;;  %v7893_v43 = vrot.slane %v21329_v51, %v18338_v12  ;;  %v7897_v22 = vrot.slane %v21329_v51, %v18341_v42  ;;  %v21333_v41 = vld [vmem:[#allocation101_spill] sm:$0xff] }
 0x7de   :  { %v7901_v1 = vrot.slane %v21329_v51, %v18345_v61  ;;  %v7905_v23 = vrot.slane %v21329_v51, %v18350_v25  ;;  %v19306_v15 = vcombine.low %v10536_v18, %v10543_v9  ;;  %v7909_v37 = vrot.slane %v21329_v51, %v18353_v34 }
 0x7df   :  { %v7913_v24 = vrot.slane %v21329_v51, %v18358_v16  ;;  %v7949_v53 = vrot.slane %v21332_v57, %v21265_v52  ;;  %v7953_v59 = vrot.slane %v21332_v57, %v21272_v39  ;;  %v7957_v50 = vrot.slane %v21332_v57, %v18338_v12 }
 0x7e0   :  { %v7961_v30 = vrot.slane %v21332_v57, %v18341_v42  ;;  %v7965_v4 = vrot.slane %v21332_v57, %v18345_v61  ;;  %v7969_v11 = vrot.slane %v21332_v57, %v18350_v25  ;;  %v7973_v5 = vrot.slane %v21332_v57, %v18353_v34 }
 0x7e1   :  { %v7977_v14 = vrot.slane %v21332_v57, %v18358_v16  ;;  %v19336_v33 = vcombine.low %v7893_v43, %v7897_v22  ;;  %v19342_v62 = vcombine.low %v7901_v1, %v7905_v23  ;;  %v19344_v60 = vcombine.low %v7909_v37, %v7913_v24 }
 0x7e2   :  { %v7981_v47 = vrot.slane %v21333_v41, %v21265_v52  ;;  %v19356_v18 = vcombine.low %v7949_v53, %v7953_v59  ;;  %v19358_v9 = vcombine.low %v7957_v50, %v7961_v30  ;;  %v19360_v51 = vcombine.low %v7965_v4, %v7969_v11 }
 0x7e3   :  { %v19346_v38 = vpop.eup %13998  ;;  %v7989_v22 = vrot.slane %v21333_v41, %v18338_v12  ;;  %v7993_v1 = vrot.slane %v21333_v41, %v18341_v42  ;;  %v7997_v23 = vrot.slane %v21333_v41, %v18345_v61  ;;  %v8001_v37 = vrot.slane %v21333_v41, %v18350_v25 }
 0x7e4   :  { %v8005_v24 = vrot.slane %v21333_v41, %v18353_v34  ;;  %v8009_v57 = vrot.slane %v21333_v41, %v18358_v16  ;;  %v10627_v53 = vrot.slane %v19336_v33, %v18372_v2  ;;  %v10634_v59 = vrot.slane %v19342_v62, %v18372_v2 }
 0x7e5   :  { %11841 = vperm.xlu0 %13162, %v19027_v49   ;;  %v19281_v49 = vsub.s32 %v19207_v45, %v21271_v55  ;;  %v19287_v6 = vpop.xlane.xlu1 %6042  ;;  %v19298_v45 = vcombine.low %v10522_v31, %v10529_v0  ;;  %v7985_v31 = vrot.slane %v21333_v41, %v21272_v39  ;;  %v10718_v4 = vrot.slane %v19356_v18, %v18372_v2 }
 0x7e6   :  { %21331 = vst [vmem:[#allocation44_spill] sm:$0xff] %v19287_v6  ;;  %v21334_v11 = vrot.slane %v19002_v35, %v18836_v29  ;;  %v10732_v33 = vrot.slane %v19360_v51, %v18372_v2  ;;  %v10760_v41 = vcombine.low %v8005_v24, %v8009_v57  ;;  %v21336_v35 = vld [vmem:[#allocation33_spill] sm:$0xff]  ;;  %v21338_v29 = vld [vmem:[#allocation39_spill] sm:$0xff] }
 0x7e7   :  { %21330 = vst [vmem:[#allocation40_spill] sm:$0xff] %v19281_v49  ;;  %v10757_v50 = vcombine.low %v7981_v47, %v7985_v31  ;;  %v8013_v47 = vrot.slane %v21336_v35, %v21265_v52  ;;  %v8017_v31 = vrot.slane %v21336_v35, %v21272_v39  ;;  %v8025_v18 = vrot.slane %v21336_v35, %v18341_v42 }
 0x7e9   :  { %11847 = vperm.xlu0 %13162, %v19029_v54   ;;  %v19312_v54 = vcombine.low %v7885_v56, %v7889_v36  ;;  %v11806_v63 = vpop.permute.xlu1 %11805  ;;  %v19362_v56 = vcombine.low %v7973_v5, %v7977_v14  ;;  %v14001_v36 = vpop.eup %14000  ;;  %v10806_v46 = vcombine.low %v8013_v47, %v8017_v31 }
 0x7ea   :  { %v12023_v10 = vrot.slane %v11806_v63, %v19269_v13  ;;  %v6400_v30 = vadd.f32 1.0, %v14001_v36  ;;  %v10641_v63 = vrot.slane %v19344_v60, %v18372_v2  ;;  %v10758_v60 = vcombine.low %v7989_v22, %v7993_v1  ;;  %v21337_v22 = vld [vmem:[#allocation34_spill] sm:$0xff] }
 0x7eb   :  { %v10739_v62 = vrot.slane %v19362_v56, %v18372_v2  ;;  %v8033_v56 = vrot.slane %v21336_v35, %v18350_v25  ;;  %v8037_v36 = vrot.slane %v21336_v35, %v18353_v34  ;;  %v8045_v1 = vrot.slane %v21337_v22, %v21265_v52 }
 0x7ec   :  { %v8057_v24 = vrot.slane %v21337_v22, %v18341_v42  ;;  %v8061_v57 = vrot.slane %v21337_v22, %v18345_v61  ;;  %v10643_v6 = vcombine.low %v10634_v59, %v10641_v63  ;;  %14002 = vrcp.f32 %v6400_v30  ;;  %v21341_v30 = vld [vmem:[#allocation36_spill] sm:$0xff] }
 0x7ed   :  { %11853 = vperm.xlu0 %13162, %v19047_v19   ;;  %v12025_v19 = vsel %vm12024_vm6, %v12023_v10, %v19045_v48  ;;  %v11809_v0 = vpop.permute.xlu1 %11808  ;;  %v19364_v48 = vpop.permute.xlu0 %11817  ;;  %v10725_v10 = vrot.slane %v19358_v9, %v18372_v2  ;;  %v8029_v9 = vrot.slane %v21336_v35, %v18345_v61  ;;  %v10741_v47 = vcombine.low %v10732_v33, %v10739_v62 }
 0x7ee   :  { %v12030_v43 = vrot.slane %v11809_v0, %v19281_v49  ;;  %v8021_v0 = vrot.slane %v21336_v35, %v18338_v12  ;;  %v21339_v49 = vrot.slane %v19312_v54, %v18372_v2  ;;  %v8141_v63 = vrot.slane %v21341_v30, %v21265_v52 }
 0x7ef   :  { %v10808_v20 = vcombine.low %v8029_v9, %v8033_v56  ;;  %v21343_v33 = vrot.slane %v19291_v44, %v18372_v2  ;;  %v21345_v9 = vrot.slane %v19298_v45, %v18372_v2 }
 0x7f0   :  { %v10807_v26 = vcombine.low %v8021_v0, %v8025_v18  ;;  %v10642_v13 = vcombine.low %v21339_v49, %v10627_v53  ;;  %v10816_v18 = vrot.slane %v10806_v46, %v18372_v2 }
 0x7f1   :  { %11859 = vperm.xlu0 %13162, %v19196_v7   ;;  %v12032_v7 = vsel %vm12031_vm7, %v12030_v43, %v12025_v19  ;;  %v6058_v14 = vpop.xlane.xlu0 %6057  ;;  %v10759_v19 = vcombine.low %v7997_v23, %v8001_v37  ;;  %v8041_v43 = vrot.slane %v21336_v35, %v18358_v16  ;;  %v8049_v23 = vrot.slane %v21337_v22, %v21272_v39 }
 0x7f2   :  { %v19393_v5 = vsel %vm12038_vm8, %v21334_v11, %v12032_v7  ;;  %v6146_v51 = vadd.f32 %v18285_v8, %v6058_v14  ;;  %v8053_v37 = vrot.slane %v21337_v22, %v18338_v12  ;;  %v8065_v7 = vrot.slane %v21337_v22, %v18350_v25 }
 0x7f3   :  { %21335 = vst [vmem:[#allocation41_spill] sm:$0xff] %v19393_v5  ;;  %v10774_v11 = vrot.slane %v10758_v60, %v18372_v2  ;;  %v10781_v14 = vrot.slane %v10759_v19, %v18372_v2  ;;  %v10788_v35 = vrot.slane %v10760_v41, %v18372_v2  ;;  %v10809_v27 = vcombine.low %v8037_v36, %v8041_v43  ;;  %v21340_v60 = vld [vmem:[#allocation107_spill] sm:$0xff] }
 0x7f4   :  { %v12712_v17 = vmul.f32 -1.442695, %v6146_v51  ;;  %v10855_v8 = vcombine.low %v8045_v1, %v8049_v23  ;;  %v10740_v19 = vcombine.low %v10718_v4, %v10725_v10  ;;  %v10857_v5 = vcombine.low %v8061_v57, %v8065_v7  ;;  %v21346_v7 = vld [vmem:[#allocation38_spill] sm:$0xff] }
 0x7f5   :  { %11865 = vperm.xlu0 %13162, %v19198_v40   ;;  %v10767_v40 = vrot.slane %v10757_v50, %v18372_v2  ;;  %v8073_v50 = vrot.slane %v21337_v22, %v18358_v16  ;;  %v10790_v0 = vcombine.low %v10781_v14, %v10788_v35  ;;  %v10830_v54 = vrot.slane %v10808_v20, %v18372_v2 }
 0x7f6   :  { %14004 = vpow2.f32 %v12712_v17  ;;  %v10837_v49 = vrot.slane %v10809_v27, %v18372_v2  ;;  %v10865_v53 = vrot.slane %v10855_v8, %v18372_v2  ;;  %v8145_v4 = vrot.slane %v21341_v30, %v21272_v39  ;;  %v19497_v57 = vpop.eup %14002 }
 0x7f7   :  { %v10789_v31 = vcombine.low %v10767_v40, %v10774_v11  ;;  %v10879_v46 = vrot.slane %v10857_v5, %v18372_v2  ;;  %v8149_v20 = vrot.slane %v21341_v30, %v18338_v12  ;;  %v8157_v8 = vrot.slane %v21341_v30, %v18345_v61 }
 0x7f8   :  { %v8161_v17 = vrot.slane %v21341_v30, %v18350_v25  ;;  %v8165_v27 = vrot.slane %v21341_v30, %v18353_v34  ;;  %v8169_v5 = vrot.slane %v21341_v30, %v18358_v16  ;;  %v21342_v10 = vrot.slane %v19293_v32, %v18372_v2 }
 0x7f9   :  { %11871 = vperm.xlu0 %13162, %v19203_v58   ;;  %v8069_v58 = vrot.slane %v21337_v22, %v18353_v34  ;;  %v10856_v22 = vcombine.low %v8053_v37, %v8057_v24  ;;  %v21344_v40 = vrot.slane %v19306_v15, %v18372_v2  ;;  %v10650_v56 = vrot.slane %v10642_v13, %v18372_v2 }
 0x7fa   :  { %v10462_v62 = vcombine.low %v21343_v33, %v21342_v10  ;;  %v10657_v36 = vrot.slane %v10643_v6, %v18372_v2  ;;  %v10748_v43 = vrot.slane %v10740_v19, %v18372_v2  ;;  %v10755_v32 = vrot.slane %v10741_v47, %v18372_v2 }
 0x7fb   :  { %6060 = vadd.xlane.f32.xlu1 %v21340_v60  ;;  %v10858_v41 = vcombine.low %v8069_v58, %v8073_v50  ;;  %v10872_v59 = vrot.slane %v10856_v22, %v18372_v2  ;;  %v10560_v51 = vcombine.low %v21345_v9, %v21344_v40  ;;  %v10797_v44 = vrot.slane %v10789_v31, %v18372_v2 }
 0x7fc   :  { %v10804_v1 = vrot.slane %v10790_v0, %v18372_v2  ;;  %v19491_v15 = vcombine.low %v10830_v54, %v10837_v49  ;;  %v11002_v37 = vcombine.low %v8141_v63, %v8145_v4  ;;  %v11004_v24 = vcombine.low %v8157_v8, %v8161_v17  ;;  %v21347_v8 = vld [vmem:[#allocation106_spill] sm:$0xff] }
 0x7fd   :  { %11877 = vperm.xlu0 %13162, %v21338_v29   ;;  %v10823_v29 = vrot.slane %v10807_v26, %v18372_v2  ;;  %v10886_v26 = vrot.slane %v10858_v41, %v18372_v2  ;;  %v19493_v45 = vcombine.low %v10865_v53, %v10872_v59  ;;  %v8205_v58 = vrot.slane %v21346_v7, %v21265_v52 }
 0x7fe   :  { %v8209_v50 = vrot.slane %v21346_v7, %v21272_v39  ;;  %v8213_v11 = vrot.slane %v21346_v7, %v18338_v12  ;;  %v8217_v14 = vrot.slane %v21346_v7, %v18341_v42  ;;  %v8221_v35 = vrot.slane %v21346_v7, %v18345_v61 }
 0x7ff   :  { %v19489_v23 = vcombine.low %v10816_v18, %v10823_v29  ;;  %v19495_v13 = vcombine.low %v10879_v46, %v10886_v26  ;;  %v8225_v22 = vrot.slane %v21346_v7, %v18350_v25  ;;  %v8229_v60 = vrot.slane %v21346_v7, %v18353_v34 }
 0x800   :  { %v8233_v19 = vrot.slane %v21346_v7, %v18358_v16  ;;  %v14005_v41 = vpop.eup %14004  ;;  %v10658_v47 = vcombine.low %v10650_v56, %v10657_v36  ;;  %v10756_v31 = vcombine.low %v10748_v43, %v10755_v32  ;;  %v10805_v0 = vcombine.low %v10797_v44, %v10804_v1  ;;  %v21348_v36 = vld [vmem:[#allocation67_spill] sm:$0xff] }
 0x801   :  { %11883 = vperm.xlu0 %13162, %v19283_v28   ;;  %v8153_v28 = vrot.slane %v21341_v30, %v18341_v42  ;;  %v10846_v18 = vrot.slane %v19489_v23, %v18372_v2  ;;  %v10853_v29 = vrot.slane %v19491_v15, %v18372_v2  ;;  %v10895_v54 = vrot.slane %v19493_v45, %v18372_v2  ;;  %v21349_v43 = vld [vmem:[#allocation19_spill] sm:$0xff] }
 0x802   :  { %v10902_v49 = vrot.slane %v19495_v13, %v18372_v2  ;;  %v11012_v53 = vrot.slane %v11002_v37, %v18372_v2  ;;  %v11026_v30 = vrot.slane %v11004_v24, %v18372_v2  ;;  %v11100_v4 = vcombine.low %v8205_v58, %v8209_v50 }
 0x803   :  { %v11003_v6 = vcombine.low %v8149_v20, %v8153_v28  ;;  %v6402_v46 = vadd.f32 1.0, %v14005_v41  ;;  %v11101_v26 = vcombine.low %v8213_v11, %v8217_v14  ;;  %v11102_v20 = vcombine.low %v8221_v35, %v8225_v22  ;;  %v21350_v35 = vld [vmem:[#allocation25_spill] sm:$0xff] }
 0x804   :  { %v11103_v28 = vcombine.low %v8229_v60, %v8233_v19  ;;  %v8269_v17 = vrot.slane %v21347_v8, %v21265_v52  ;;  %v8281_v10 = vrot.slane %v21347_v8, %v18341_v42  ;;  %v8285_v33 = vrot.slane %v21347_v8, %v18345_v61 }
 0x805   :  { %11889 = vperm.xlu0 %13162, %v19285_v3   ;;  %v11005_v3 = vcombine.low %v8165_v27, %v8169_v5  ;;  %v11019_v59 = vrot.slane %v11003_v6, %v18372_v2  ;;  %v8273_v27 = vrot.slane %v21347_v8, %v21272_v39  ;;  %v8277_v5 = vrot.slane %v21347_v8, %v18338_v12 }
 0x806   :  { %v8293_v40 = vrot.slane %v21347_v8, %v18353_v34  ;;  %v8297_v9 = vrot.slane %v21347_v8, %v18358_v16  ;;  %v5608_v32 = vmul.f32 %v21349_v43, %v21348_v36  ;;  %14006 = vrcp.f32 %v6402_v46 }
 0x807   :  { %v11033_v63 = vrot.slane %v11005_v3, %v18372_v2  ;;  %v8337_v44 = vrot.slane %v19497_v57, %v21272_v39  ;;  %v8341_v1 = vrot.slane %v19497_v57, %v18338_v12  ;;  %v8345_v23 = vrot.slane %v19497_v57, %v18341_v42 }
 0x808   :  { %v11110_v15 = vrot.slane %v11100_v4, %v18372_v2  ;;  %v11117_v45 = vrot.slane %v11101_v26, %v18372_v2  ;;  %v11124_v37 = vrot.slane %v11102_v20, %v18372_v2  ;;  %v11131_v13 = vrot.slane %v11103_v28, %v18372_v2 }
 0x809   :  { %11895 = vperm.xlu0 %13162, %v10462_v62   ;;  %v8289_v62 = vrot.slane %v21347_v8, %v18350_v25  ;;  %v11035_v56 = vcombine.low %v11026_v30, %v11033_v63  ;;  %v11198_v6 = vcombine.low %v8269_v17, %v8273_v27  ;;  %v11199_v24 = vcombine.low %v8277_v5, %v8281_v10  ;;  %v21351_v30 = vld [vmem:[#allocation43_spill] sm:$0xff] }
 0x80a   :  { %v11201_v7 = vcombine.low %v8293_v40, %v8297_v9  ;;  %v8349_v58 = vrot.slane %v19497_v57, %v18345_v61  ;;  %v8353_v50 = vrot.slane %v19497_v57, %v18350_v25  ;;  %v8357_v11 = vrot.slane %v19497_v57, %v18353_v34  ;;  %v21354_v9 = vld [vmem:[#allocation105_spill] sm:$0xff] }
 0x80b   :  { %v11200_v3 = vcombine.low %v8285_v33, %v8289_v62  ;;  %v8361_v14 = vrot.slane %v19497_v57, %v18358_v16  ;;  %v12040_v22 = vadd.s32 4294967224, %v21350_v35  ;;  %v11297_v41 = vcombine.low %v8341_v1, %v8345_v23 }
 0x80c   :  { %11826 = vperm.xlu1 %13163, %v19289_v21   ;;  %v8333_v21 = vrot.slane %v19497_v57, %v21265_v52  ;;  %v5678_v63 = vmul.f32 %v21351_v30, %v5608_v32  ;;  %v11208_v4 = vrot.slane %v11198_v6, %v18372_v2  ;;  %v11215_v46 = vrot.slane %v11199_v24, %v18372_v2 }
 0x80d   :  { %11901 = vperm.xlu0 %13162, %v10560_v51   ;;  %v11034_v51 = vcombine.low %v11012_v53, %v11019_v59  ;;  %v11132_v53 = vcombine.low %v11110_v15, %v11117_v45  ;;  %v11133_v59 = vcombine.low %v11124_v37, %v11131_v13  ;;  %v11222_v26 = vrot.slane %v11200_v3, %v18372_v2 }
 0x80e   :  { %v11296_v19 = vcombine.low %v8333_v21, %v8337_v44  ;;  %v11229_v57 = vrot.slane %v11201_v7, %v18372_v2  ;;  %v10854_v28 = vcombine.low %v10846_v18, %v10853_v29  ;;  %v11298_v8 = vcombine.low %v8349_v58, %v8353_v50 }
 0x80f   :  { %v11042_v60 = vrot.slane %v11034_v51, %v18372_v2  ;;  %v11299_v17 = vcombine.low %v8357_v11, %v8361_v14  ;;  %v19577_v27 = vsub.s32 %v12040_v22, %v21271_v55  ;;  %v10903_v5 = vcombine.low %v10895_v54, %v10902_v49 }
 0x810   :  { %v11306_v10 = vrot.slane %v11296_v19, %v18372_v2  ;;  %v11313_v33 = vrot.slane %v11297_v41, %v18372_v2  ;;  %v11140_v40 = vrot.slane %v11132_v53, %v18372_v2  ;;  %v19583_v51 = vadd.f32 %v21354_v9, %v5678_v63  ;;  %v14007_v29 = vpop.eup %14006 }
 0x811   :  { %11907 = vperm.xlu0 %13162, %v10658_v47   ;;  %v11049_v47 = vrot.slane %v11035_v56, %v18372_v2  ;;  %21353 = vst [vmem:[#allocation46_spill] sm:$0xff] %v19577_v27  ;;  %v21355_v56 = vld [vmem:[#allocation37_spill] sm:$0xff]  ;;  %v19588_v36 = vcombine.low %v11208_v4, %v11215_v46  ;;  %v19590_v43 = vcombine.low %v11222_v26, %v11229_v57 }
 0x812   :  { %v8077_v18 = vrot.slane %v21355_v56, %v21265_v52  ;;  %v8081_v54 = vrot.slane %v21355_v56, %v21272_v39  ;;  %v11320_v49 = vrot.slane %v11298_v8, %v18372_v2  ;;  %v11327_v32 = vrot.slane %v11299_v17, %v18372_v2 }
 0x813   :  { %v11050_v62 = vcombine.low %v11042_v60, %v11049_v47  ;;  %v8085_v21 = vrot.slane %v21355_v56, %v18338_v12  ;;  %v8089_v44 = vrot.slane %v21355_v56, %v18341_v42  ;;  %v19600_v1 = vcombine.low %v11306_v10, %v11313_v33 }
 0x814   :  { %v8093_v23 = vrot.slane %v21355_v56, %v18345_v61  ;;  %v8097_v15 = vrot.slane %v21355_v56, %v18350_v25  ;;  %v8101_v45 = vrot.slane %v21355_v56, %v18353_v34  ;;  %v8397_v37 = vrot.slane %v14007_v29, %v21265_v52 }
 0x815   :  { %11913 = vperm.xlu0 %13162, %v10756_v31   ;;  %v21352_v31 = vld [vmem:[#allocation22_spill] sm:$0xff]  ;;  %v8401_v13 = vrot.slane %v14007_v29, %v21272_v39  ;;  %v8405_v6 = vrot.slane %v14007_v29, %v18338_v12  ;;  %v8409_v24 = vrot.slane %v14007_v29, %v18341_v42  ;;  %v8413_v3 = vrot.slane %v14007_v29, %v18345_v61 }
 0x816   :  { %v12051_v20 = vrot.slane %v19364_v48, %v21352_v31  ;;  %v8417_v7 = vrot.slane %v14007_v29, %v18350_v25  ;;  %v8421_v58 = vrot.slane %v14007_v29, %v18353_v34  ;;  %v8425_v50 = vrot.slane %v14007_v29, %v18358_v16 }
 0x817   :  { %v11329_v11 = vcombine.low %v11320_v49, %v11327_v32  ;;  %v8105_v14 = vrot.slane %v21355_v56, %v18358_v16  ;;  %v10904_v22 = vcombine.low %v8077_v18, %v8081_v54  ;;  %v10905_v60 = vcombine.low %v8085_v21, %v8089_v44  ;;  %v21356_v32 = vld [vmem:[#allocation41_spill] sm:$0xff] }
 0x818   :  { %v5812_v47 = vmax.f32 %v19583_v51, 0.0  ;;  %v11238_v53 = vrot.slane %v19588_v36, %v18372_v2  ;;  %v11336_v30 = vrot.slane %v19600_v1, %v18372_v2  ;;  %v10906_v63 = vcombine.low %v8093_v23, %v8097_v15 }
 0x819   :  { %11916 = vperm.xlu0 %13162, %v10805_v0   ;;  %v11147_v0 = vrot.slane %v11133_v59, %v18372_v2  ;;  %v11245_v59 = vrot.slane %v19590_v43, %v18372_v2  ;;  %v8109_v4 = vrot.slane %v19346_v38, %v21265_v52  ;;  %v8113_v46 = vrot.slane %v19346_v38, %v21272_v39 }
 0x81a   :  { %v11394_v26 = vcombine.low %v8397_v37, %v8401_v13  ;;  %v11395_v57 = vcombine.low %v8405_v6, %v8409_v24  ;;  %v11397_v8 = vcombine.low %v8421_v58, %v8425_v50  ;;  %v11343_v17 = vrot.slane %v11329_v11, %v18372_v2 }
 0x81b   :  { %v11148_v41 = vcombine.low %v11140_v40, %v11147_v0  ;;  %v10914_v10 = vrot.slane %v10904_v22, %v18372_v2  ;;  %v10921_v33 = vrot.slane %v10905_v60, %v18372_v2  ;;  %v8117_v9 = vrot.slane %v19346_v38, %v18338_v12  ;;  %v21358_v22 = vld [vmem:[#allocation93_spill] sm:$0xff] }
 0x81c   :  { %v8121_v51 = vrot.slane %v19346_v38, %v18341_v42  ;;  %v8125_v56 = vrot.slane %v19346_v38, %v18345_v61  ;;  %v8129_v18 = vrot.slane %v19346_v38, %v18350_v25  ;;  %v8133_v0 = vrot.slane %v19346_v38, %v18353_v34 }
 0x81d   :  { %11919 = vperm.xlu0 %13162, %v10854_v28   ;;  %v11396_v28 = vcombine.low %v8413_v3, %v8417_v7  ;;  %v11404_v36 = vrot.slane %v11394_v26, %v18372_v2  ;;  %v11411_v43 = vrot.slane %v11395_v57, %v18372_v2  ;;  %v11425_v49 = vrot.slane %v11397_v8, %v18372_v2 }
 0x81e   :  { %v19618_v19 = vpop.xlane.xlu1 %6048  ;;  %v10928_v44 = vrot.slane %v10906_v63, %v18372_v2  ;;  %v10953_v23 = vcombine.low %v8109_v4, %v8113_v46  ;;  %v10954_v15 = vcombine.low %v8117_v9, %v8121_v51  ;;  %v11246_v13 = vcombine.low %v11238_v53, %v11245_v59 }
 0x81f   :  { %v11418_v54 = vrot.slane %v11396_v28, %v18372_v2  ;;  %v10936_v6 = vcombine.low %v10914_v10, %v10921_v33  ;;  %v11426_v24 = vcombine.low %v11404_v36, %v11411_v43  ;;  %v10955_v7 = vcombine.low %v8125_v56, %v8129_v18 }
 0x820   :  { %v11344_v50 = vcombine.low %v11336_v30, %v11343_v17  ;;  %v7085_v60 = vrot.slane %v21358_v22, %v21265_v52  ;;  %v10970_v48 = vrot.slane %v10954_v15, %v18372_v2  ;;  %v7101_v53 = vrot.slane %v21358_v22, %v18345_v61  ;;  %v21361_v15 = vld [vmem:[#allocation81_spill] sm:$0xff] }
 0x821   :  { %11922 = vperm.xlu0 %13162, %v10903_v5   ;;  %v10907_v5 = vcombine.low %v8101_v45, %v8105_v14  ;;  %v21357_v45 = vld [vmem:[#allocation104_spill] sm:$0xff]  ;;  %v11427_v3 = vcombine.low %v11418_v54, %v11425_v49  ;;  %v10963_v14 = vrot.slane %v10953_v23, %v18372_v2  ;;  %v7105_v59 = vrot.slane %v21358_v22, %v18350_v25 }
 0x822   :  { %v11815_v40 = vpop.permute.xlu1 %11814  ;;  %v5883_v37 = vmul.f32 %v21357_v45, %v5812_v47  ;;  %v7097_v47 = vrot.slane %v21358_v22, %v18341_v42  ;;  %v7109_v30 = vrot.slane %v21358_v22, %v18353_v34  ;;  %v7113_v63 = vrot.slane %v21358_v22, %v18358_v16 }
 0x823   :  { %v12044_v29 = vrot.slane %v11815_v40, %v19577_v27  ;;  %v10935_v1 = vrot.slane %v10907_v5, %v18372_v2  ;;  %v11434_v4 = vrot.slane %v11426_v24, %v18372_v2  ;;  %v11441_v46 = vrot.slane %v11427_v3, %v18372_v2 }
 0x824   :  { %v10977_v26 = vrot.slane %v10955_v7, %v18372_v2  ;;  %v6065_v28 = vsel %vm4779_vm0, %v5883_v37, 0.0  ;;  %v10944_v8 = vrot.slane %v10936_v6, %v18372_v2  ;;  %v9387_v10 = vcombine.low %v7101_v53, %v7105_v59  ;;  %v21362_v7 = vld [vmem:[#allocation84_spill] sm:$0xff]  ;;  %v21366_v59 = vld [vmem:[#allocation75_spill] sm:$0xff] }
 0x825   :  { %11931 = vperm.xlu0 %13162, %v11050_v62   ;;  %v8137_v62 = vrot.slane %v19346_v38, %v18358_v16  ;;  %v12046_v21 = vsel %vm12045_vm9, %v12044_v29, %v21356_v32  ;;  %v10937_v11 = vcombine.low %v10928_v44, %v10935_v1  ;;  %v9388_v33 = vcombine.low %v7109_v30, %v7113_v63  ;;  %v21360_v44 = vld [vmem:[#allocation70_spill] sm:$0xff] }
 0x826   :  { %v19659_v38 = vsel %vm12052_vm10, %v12051_v20, %v12046_v21  ;;  %v7089_v20 = vrot.slane %v21358_v22, %v21272_v39  ;;  %v11442_v40 = vcombine.low %v11434_v4, %v11441_v46  ;;  %v10985_v51 = vcombine.low %v10963_v14, %v10970_v48  ;;  %v21359_v21 = vld [vmem:[#allocation80_spill] sm:$0xff]  ;;  %v21365_v48 = vld [vmem:[#allocation89_spill] sm:$0xff]  ;;  %v21367_v4 = vld [vmem:[#allocation78_spill] sm:$0xff] }
 0x827   :  { %v10956_v58 = vcombine.low %v8133_v0, %v8137_v62  ;;  %v10951_v9 = vrot.slane %v10937_v11, %v18372_v2  ;;  %v9409_v0 = vrot.slane %v9387_v10, %v18372_v2  ;;  %v9416_v62 = vrot.slane %v9388_v33, %v18372_v2  ;;  %v21363_v11 = vld [vmem:[#allocation74_spill] sm:$0xff] }
 0x828   :  { %v9385_v17 = vcombine.low %v7085_v60, %v7089_v20  ;;  %v10993_v43 = vrot.slane %v10985_v51, %v18372_v2  ;;  %v6107_v1 = vadd.f32 %v21360_v44, %v21359_v21  ;;  %v5418_v45 = vmul.f32 0.0625, %v21361_v15 }
 0x829   :  { %11937 = vperm.xlu0 %13162, %v11148_v41   ;;  %v7093_v41 = vrot.slane %v21358_v22, %v18338_v12  ;;  %v10984_v57 = vrot.slane %v10956_v58, %v18372_v2  ;;  %v10952_v36 = vcombine.low %v10944_v8, %v10951_v9  ;;  %v9418_v32 = vcombine.low %v9409_v0, %v9416_v62  ;;  %v21364_v22 = vld [vmem:[#allocation18_spill] sm:$0xff]  ;;  %v19721_v62 = vld [vmem:[#allocation10] ss:$0 sm:$0xff] }
 0x82a   :  { %v9395_v18 = vrot.slane %v9385_v17, %v18372_v2  ;;  %v12673_v6 = vmul.f32 -1.442695, %v6107_v1  ;;  %v5482_v24 = vadd.f32 1e-05, %v5418_v45  ;;  %v6109_v58 = vadd.f32 %v21360_v44, %v21362_v7  ;;  %v19728_v45 = vld [vmem:[#allocation11] ss:$0 sm:$0xff] }
 0x82b   :  { %v9386_v5 = vcombine.low %v7093_v41, %v7097_v47  ;;  %v10986_v56 = vcombine.low %v10977_v26, %v10984_v57  ;;  %v6111_v14 = vadd.f32 %v21360_v44, %v21363_v11  ;;  %v6113_v60 = vadd.f32 %v21360_v44, %v21364_v22 }
 0x82c   :  { %14008 = vpow2.f32 %v12673_v6  ;;  %v6115_v20 = vadd.f32 %v21360_v44, %v21365_v48  ;;  %v6117_v30 = vadd.f32 %v21360_v44, %v21366_v59  ;;  %v6119_v46 = vadd.f32 %v21360_v44, %v21367_v4  ;;  %v21373_v6 = vld [vmem:[#allocation95_spill] sm:$0xff]  ;;  %v21375_v59 = vld [vmem:[#allocation24_spill] sm:$0xff] }
 0x82d   :  { %11943 = vperm.xlu0 %13162, %v11246_v13   ;;  %v9402_v29 = vrot.slane %v9386_v5, %v18372_v2  ;;  %v11000_v54 = vrot.slane %v10986_v56, %v18372_v2  ;;  %v9432_v13 = vrot.slane %v9418_v32, %v18372_v2  ;;  %14010 = vrsqrt.f32 %v5482_v24  ;;  %v21368_v5 = vld [vmem:[#allocation79_spill] sm:$0xff] }
 0x82e   :  { %v12677_v47 = vmul.f32 -1.442695, %v6111_v14  ;;  %v12679_v53 = vmul.f32 -1.442695, %v6113_v60  ;;  %v12681_v63 = vmul.f32 -1.442695, %v6115_v20  ;;  %v6123_v24 = vadd.f32 %v21360_v44, %v21373_v6 }
 0x82f   :  { %v9417_v49 = vcombine.low %v9395_v18, %v9402_v29  ;;  %v11001_v23 = vcombine.low %v10993_v43, %v11000_v54  ;;  %v12685_v8 = vmul.f32 -1.442695, %v6119_v46  ;;  %v12054_v17 = vadd.s32 4294967208, %v21350_v35  ;;  %v21370_v18 = vld [vmem:[#allocation20_spill] sm:$0xff] }
 0x830   :  { %6066 = vadd.xlane.f32.xlu1 %v6065_v28  ;;  %v12683_v28 = vmul.f32 -1.442695, %v6117_v30  ;;  %v12061_v33 = vadd.s32 4294967200, %v21350_v35  ;;  %v6121_v29 = vadd.f32 %v21360_v44, %v21370_v18  ;;  %v6127_v30 = vadd.f32 %v21360_v44, %v21375_v59  ;;  %v21377_v18 = vld [vmem:[#allocation83_spill] sm:$0xff] }
 0x831   :  { %11949 = vperm.xlu0 %13162, %v11344_v50   ;;  %v9425_v37 = vrot.slane %v9417_v49, %v18372_v2  ;;  %v12675_v50 = vmul.f32 -1.442695, %v6109_v58  ;;  %v19719_v0 = vsub.s32 %v12054_v17, %v21271_v55  ;;  %v11824_v49 = vpop.permute.xlu0 %11823 }
 0x832   :  { %v19725_v43 = vsub.s32 %v12061_v33, %v21271_v55 }
 0x833   :  { %v9433_v3 = vcombine.low %v9425_v37, %v9432_v13  ;;  %14012 = vpow2.f32 %v12675_v50  ;;  %21371 = vst [vmem:[#allocation53_spill] sm:$0xff] %v19719_v0 }
 0x834   :  { %14014 = vpow2.f32 %v12677_v47  ;;  %21372 = vst [vmem:[#allocation48_spill] sm:$0xff] %v19725_v43  ;;  %v21374_v47 = vld [vmem:[#allocation21_spill] sm:$0xff] }
 0x835   :  { %11955 = vperm.xlu0 %13162, %v11442_v40   ;;  %14016 = vpow2.f32 %v12679_v53  ;;  %v21369_v40 = vld [vmem:[#allocation82_spill] sm:$0xff]  ;;  %v6125_v53 = vadd.f32 %v21360_v44, %v21374_v47  ;;  %v21379_v47 = vld [vmem:[#allocation71_spill] sm:$0xff] }
 0x836   :  { %v14009_v41 = vpop.eup %14008  ;;  %14018 = vpow2.f32 %v12681_v63  ;;  %v5420_v9 = vmul.f32 0.0625, %v21369_v40  ;;  %v19753_v40 = vld [vmem:[#allocation13] ss:$0 sm:$0xff] }
 0x837   :  { %v14011_v26 = vpop.eup %14010  ;;  %v6363_v57 = vadd.f32 1.0, %v14009_v41  ;;  %v12689_v41 = vmul.f32 -1.442695, %v6123_v24  ;;  %v21378_v24 = vld [vmem:[#allocation35_spill] sm:$0xff] }
 0x838   :  { %v5610_v10 = vmul.f32 %v14011_v26, %v21368_v5  ;;  %v5484_v54 = vadd.f32 1e-05, %v5420_v9 }
 0x839   :  { %11925 = vperm.xlu0 %13162, %v10952_v36   ;;  %14020 = vrcp.f32 %v6363_v57 }
 0x83a   :  { %14022 = vpow2.f32 %v12683_v28  ;;  %v5680_v36 = vmul.f32 %v19721_v62, %v5610_v10  ;;  %v21376_v10 = vld [vmem:[#allocation85_spill] sm:$0xff] }
 0x83b   :  { %14024 = vpow2.f32 %v12685_v8  ;;  %v6129_v33 = vadd.f32 %v21360_v44, %v21376_v10 }
 0x83c   :  { %v5750_v37 = vadd.f32 %v19728_v45, %v5680_v36  ;;  %14026 = vrsqrt.f32 %v5484_v54  ;;  %v12691_v36 = vmul.f32 -1.442695, %v6125_v53 }
 0x83d   :  { %11928 = vperm.xlu0 %13162, %v11001_v23   ;;  %v14013_v56 = vpop.eup %14012  ;;  %v12687_v23 = vmul.f32 -1.442695, %v6121_v29  ;;  %v6131_v29 = vadd.f32 %v21360_v44, %v21377_v18 }
 0x83e   :  { %v6365_v32 = vadd.f32 1.0, %v14013_v56  ;;  %v14015_v1 = vpop.eup %14014  ;;  %v5814_v60 = vmax.f32 %v5750_v37, 0.0 }
 0x83f   :  { %v14017_v13 = vpop.eup %14016  ;;  %v6367_v14 = vadd.f32 1.0, %v14015_v1  ;;  %v12697_v6 = vmul.f32 -1.442695, %v6131_v29 }
 0x840   :  { %v14019_v7 = vpop.eup %14018  ;;  %14028 = vrcp.f32 %v6365_v32  ;;  %v6369_v22 = vadd.f32 1.0, %v14017_v13  ;;  %v5885_v9 = vmul.f32 %v19753_v40, %v5814_v60  ;;  %v12693_v32 = vmul.f32 -1.442695, %v6127_v30 }
 0x841   :  { %11832 = vperm.xlu1 %13163, %v9433_v3   ;;  %v12065_v3 = vrot.slane %v11824_v49, %v19725_v43  ;;  %14030 = vpow2.f32 %v12687_v23  ;;  %v6371_v20 = vadd.f32 1.0, %v14019_v7 }
 0x842   :  { %14032 = vrcp.f32 %v6367_v14  ;;  %v6071_v37 = vsel %vm4779_vm0, %v5885_v9, 0.0 }
 0x843   :  { %v14021_v50 = vpop.eup %14020  ;;  %14034 = vpow2.f32 %v12689_v41 }
 0x844   :  { %v14023_v48 = vpop.eup %14022  ;;  %v7153_v4 = vrot.slane %v14021_v50, %v21272_v39  ;;  %v7157_v46 = vrot.slane %v14021_v50, %v18338_v12  ;;  %v7161_v26 = vrot.slane %v14021_v50, %v18341_v42  ;;  %v7165_v57 = vrot.slane %v14021_v50, %v18345_v61 }
 0x845   :  { %v14025_v63 = vpop.eup %14024  ;;  %v7169_v28 = vrot.slane %v14021_v50, %v18350_v25  ;;  %v7173_v8 = vrot.slane %v14021_v50, %v18353_v34  ;;  %v7177_v17 = vrot.slane %v14021_v50, %v18358_v16  ;;  %v6373_v5 = vadd.f32 1.0, %v14023_v48 }
 0x846   :  { %v6375_v56 = vadd.f32 1.0, %v14025_v63  ;;  %14036 = vrcp.f32 %v6369_v22  ;;  %v9484_v49 = vcombine.low %v7157_v46, %v7161_v26  ;;  %v14027_v23 = vpop.eup %14026 }
 0x847   :  { %14038 = vrcp.f32 %v6371_v20  ;;  %v9486_v1 = vcombine.low %v7173_v8, %v7177_v17  ;;  %v5612_v53 = vmul.f32 %v14027_v23, %v21379_v47 }
 0x848   :  { %14040 = vrcp.f32 %v6373_v5 }
 0x849   :  { %14042 = vrcp.f32 %v6375_v56  ;;  %v9514_v22 = vrot.slane %v9486_v1, %v18372_v2 }
 0x84a   :  { %v14029_v13 = vpop.eup %14028  ;;  %14044 = vpow2.f32 %v12691_v36 }
 0x84b   :  { %v14031_v7 = vpop.eup %14030  ;;  %14046 = vpow2.f32 %v12693_v32  ;;  %v7213_v59 = vrot.slane %v14029_v13, %v21265_v52  ;;  %v7217_v30 = vrot.slane %v14029_v13, %v21272_v39  ;;  %v7225_v46 = vrot.slane %v14029_v13, %v18341_v42 }
 0x84c   :  { %v6377_v60 = vadd.f32 1.0, %v14031_v7  ;;  %v14033_v20 = vpop.eup %14032  ;;  %v7229_v26 = vrot.slane %v14029_v13, %v18345_v61  ;;  %v7233_v17 = vrot.slane %v14029_v13, %v18350_v25  ;;  %v7237_v5 = vrot.slane %v14029_v13, %v18353_v34 }
 0x84d   :  { %v14035_v63 = vpop.eup %14034  ;;  %v7241_v10 = vrot.slane %v14029_v13, %v18358_v16 }
 0x84e   :  { %v6379_v56 = vadd.f32 1.0, %v14035_v63  ;;  %v9583_v23 = vcombine.low %v7229_v26, %v7233_v17 }
 0x853   :  { %v19714_v51 = vpop.xlane.xlu1 %6054 }
 0x857   :  { %v11821_v21 = vpop.permute.xlu1 %11820 }
 0x858   :  { %v12058_v15 = vrot.slane %v11821_v21, %v19719_v0  ;;  %v9485_v21 = vcombine.low %v7165_v57, %v7169_v28  ;;  %v19771_v57 = vpop.eup %14036  ;;  %v21380_v28 = vld [vmem:[#allocation44_spill] sm:$0xff] }
 0x859   :  { %v6141_v8 = vadd.f32 %v21360_v44, %v21380_v28  ;;  %v6064_v28 = vpop.xlane.xlu0 %6063 }
 0x85a   :  { %v12060_v58 = vsel %vm12059_vm11, %v12058_v15, %v19659_v38  ;;  %v7149_v38 = vrot.slane %v14021_v50, %v21265_v52  ;;  %v12695_v15 = vmul.f32 -1.442695, %v6129_v33  ;;  %v9500_v50 = vrot.slane %v9484_v49, %v18372_v2  ;;  %v19778_v33 = vpop.eup %14038 }
 0x85b   :  { %v19737_v11 = vsel %vm12066_vm12, %v12065_v3, %v12060_v58  ;;  %v6139_v3 = vadd.f32 %v21360_v44, %v21378_v24  ;;  %v9507_v14 = vrot.slane %v9485_v21, %v18372_v2  ;;  %v19780_v9 = vpop.eup %14040  ;;  %v9581_v49 = vcombine.low %v7213_v59, %v7217_v30 }
 0x85c   :  { %v9483_v54 = vcombine.low %v7149_v38, %v7153_v4  ;;  %14048 = vpow2.f32 %v12695_v15  ;;  %v7221_v4 = vrot.slane %v14029_v13, %v18338_v12  ;;  %v19782_v18 = vpop.eup %14042  ;;  %v12707_v21 = vmul.f32 -1.442695, %v6141_v8 }
 0x85d   :  { %14050 = vpow2.f32 %v12697_v6  ;;  %v12705_v48 = vmul.f32 -1.442695, %v6139_v3  ;;  %v9516_v38 = vcombine.low %v9507_v14, %v9514_v22  ;;  %v14045_v32 = vpop.eup %14044  ;;  %v9584_v15 = vcombine.low %v7237_v5, %v7241_v10 }
 0x85e   :  { %v9493_v58 = vrot.slane %v9483_v54, %v18372_v2  ;;  %14052 = vrcp.f32 %v6377_v60  ;;  %v5682_v54 = vmul.f32 %v19721_v62, %v5612_v53  ;;  %v9582_v1 = vcombine.low %v7221_v4, %v7225_v46 }
 0x85f   :  { %14054 = vpow2.f32 %v12705_v48  ;;  %v9530_v36 = vrot.slane %v9516_v38, %v18372_v2  ;;  %v7277_v13 = vrot.slane %v14033_v20, %v21265_v52  ;;  %v7281_v6 = vrot.slane %v14033_v20, %v21272_v39 }
 0x860   :  { %v9515_v41 = vcombine.low %v9493_v58, %v9500_v50  ;;  %v7285_v24 = vrot.slane %v14033_v20, %v18338_v12  ;;  %v7289_v3 = vrot.slane %v14033_v20, %v18341_v42  ;;  %v7293_v58 = vrot.slane %v14033_v20, %v18345_v61 }
 0x861   :  { %v7297_v62 = vrot.slane %v14033_v20, %v18350_v25  ;;  %v7301_v50 = vrot.slane %v14033_v20, %v18353_v34  ;;  %v7305_v14 = vrot.slane %v14033_v20, %v18358_v16  ;;  %14056 = vrcp.f32 %v6379_v56 }
 0x862   :  { %v9523_v29 = vrot.slane %v9515_v41, %v18372_v2  ;;  %v6381_v60 = vadd.f32 1.0, %v14045_v32  ;;  %v5752_v41 = vadd.f32 %v19728_v45, %v5682_v54  ;;  %v9591_v47 = vrot.slane %v9581_v49, %v18372_v2 }
 0x863   :  { %v9598_v53 = vrot.slane %v9582_v1, %v18372_v2  ;;  %v9605_v59 = vrot.slane %v9583_v23, %v18372_v2  ;;  %v9612_v30 = vrot.slane %v9584_v15, %v18372_v2  ;;  %v9679_v63 = vcombine.low %v7277_v13, %v7281_v6 }
 0x864   :  { %v9531_v48 = vcombine.low %v9523_v29, %v9530_v36  ;;  %v9680_v38 = vcombine.low %v7285_v24, %v7289_v3  ;;  %14058 = vpow2.f32 %v12707_v21  ;;  %v9681_v4 = vcombine.low %v7293_v58, %v7297_v62 }
 0x865   :  { %6072 = vadd.xlane.f32.xlu1 %v6071_v37  ;;  %v14047_v37 = vpop.eup %14046  ;;  %v9682_v20 = vcombine.low %v7301_v50, %v7305_v14  ;;  %14060 = vrcp.f32 %v6381_v60  ;;  %v5816_v5 = vmax.f32 %v5752_v41, 0.0  ;;  %v9613_v10 = vcombine.low %v9591_v47, %v9598_v53 }
 0x866   :  { %v14049_v7 = vpop.eup %14048  ;;  %v6383_v26 = vadd.f32 1.0, %v14047_v37  ;;  %v9614_v56 = vcombine.low %v9605_v59, %v9612_v30  ;;  %v9689_v29 = vrot.slane %v9679_v63, %v18372_v2  ;;  %v9696_v36 = vrot.slane %v9680_v38, %v18372_v2 }
 0x867   :  { %v14051_v22 = vpop.eup %14050  ;;  %v6385_v8 = vadd.f32 1.0, %v14049_v7  ;;  %v7341_v54 = vrot.slane %v19771_v57, %v21265_v52  ;;  %v6148_v49 = vadd.f32 %v21360_v44, %v6064_v28  ;;  %v9703_v32 = vrot.slane %v9681_v4, %v18372_v2 }
 0x868   :  { %v19800_v46 = vpop.eup %14052  ;;  %v6387_v17 = vadd.f32 1.0, %v14051_v22  ;;  %v9710_v21 = vrot.slane %v9682_v20, %v18372_v2  ;;  %v7345_v1 = vrot.slane %v19771_v57, %v21272_v39  ;;  %v7349_v23 = vrot.slane %v19771_v57, %v18338_v12 }
 0x869   :  { %v14055_v45 = vpop.eup %14054  ;;  %v7353_v15 = vrot.slane %v19771_v57, %v18341_v42  ;;  %v7357_v37 = vrot.slane %v19771_v57, %v18345_v61  ;;  %v7361_v13 = vrot.slane %v19771_v57, %v18350_v25  ;;  %v12075_v24 = vadd.s32 4294967184, %v21350_v35 }
 0x86a   :  { %v6395_v6 = vadd.f32 1.0, %v14055_v45  ;;  %v7365_v3 = vrot.slane %v19771_v57, %v18353_v34  ;;  %v7369_v7 = vrot.slane %v19771_v57, %v18358_v16  ;;  %v5887_v62 = vmul.f32 %v19753_v40, %v5816_v5 }
 0x86b   :  { %v19824_v58 = vpop.eup %14056  ;;  %v9621_v50 = vrot.slane %v9613_v10, %v18372_v2  ;;  %v9628_v14 = vrot.slane %v9614_v56, %v18372_v2  ;;  %v19829_v22 = vcombine.low %v9689_v29, %v9696_v36  ;;  %14062 = vrcp.f32 %v6383_v26 }
 0x86c   :  { %v12714_v60 = vmul.f32 -1.442695, %v6148_v49  ;;  %v9777_v41 = vcombine.low %v7341_v54, %v7345_v1  ;;  %14064 = vrcp.f32 %v6385_v8  ;;  %v9778_v47 = vcombine.low %v7349_v23, %v7353_v15  ;;  %v11830_v54 = vpop.permute.xlu0 %11829 }
 0x86d   :  { %v19833_v53 = vcombine.low %v7357_v37, %v7361_v13  ;;  %14066 = vrcp.f32 %v6387_v17  ;;  %v19836_v59 = vsub.s32 %v12075_v24, %v21271_v55  ;;  %v19838_v40 = vcombine.low %v7365_v3, %v7369_v7 }
 0x86e   :  { %v14059_v57 = vpop.eup %14058  ;;  %14068 = vrcp.f32 %v6395_v6  ;;  %v19843_v63 = vsel %vm4779_vm0, %v5887_v62, 0.0  ;;  %v19845_v38 = vcombine.low %v9621_v50, %v9628_v14  ;;  %v9787_v26 = vrot.slane %v9777_v41, %v18372_v2 }
 0x86f   :  { %21381 = vst [vmem:[#allocation45_spill] sm:$0xff] %v19836_v59  ;;  %v19840_v30 = vpop.eup %14060  ;;  %14070 = vpow2.f32 %v12714_v60  ;;  %v7405_v28 = vrot.slane %v19778_v33, %v21265_v52  ;;  %v19854_v45 = vadd.f32 1.0, %v14059_v57  ;;  %v9794_v8 = vrot.slane %v9778_v47, %v18372_v2 }
 0x870   :  { %v9801_v17 = vrot.slane %v19833_v53, %v18372_v2  ;;  %v7409_v5 = vrot.slane %v19778_v33, %v21272_v39  ;;  %v9808_v10 = vrot.slane %v19838_v40, %v18372_v2  ;;  %v7413_v56 = vrot.slane %v19778_v33, %v18338_v12 }
 0x871   :  { %v7417_v29 = vrot.slane %v19778_v33, %v18341_v42  ;;  %v7421_v36 = vrot.slane %v19778_v33, %v18345_v61  ;;  %v12068_v49 = vadd.s32 4294967192, %v21350_v35  ;;  %v7433_v1 = vrot.slane %v19778_v33, %v18358_v16 }
 0x872   :  { %v7469_v23 = vrot.slane %v19780_v9, %v21265_v52  ;;  %v7473_v15 = vrot.slane %v19780_v9, %v21272_v39  ;;  %v7477_v37 = vrot.slane %v19780_v9, %v18338_v12  ;;  %v7481_v13 = vrot.slane %v19780_v9, %v18341_v42 }
 0x873   :  { %v7485_v6 = vrot.slane %v19780_v9, %v18345_v61  ;;  %v7489_v24 = vrot.slane %v19780_v9, %v18350_v25  ;;  %v7497_v3 = vrot.slane %v19780_v9, %v18358_v16  ;;  %v12079_v62 = vrot.slane %v11830_v54, %v19836_v59 }
 0x874   :  { %v19897_v14 = vcombine.low %v9787_v26, %v9794_v8  ;;  %v9875_v60 = vcombine.low %v7405_v28, %v7409_v5  ;;  %v7533_v41 = vrot.slane %v19782_v18, %v21265_v52  ;;  %v19904_v53 = vsub.s32 %v12068_v49, %v21271_v55 }
 0x875   :  { %v19892_v7 = vpop.eup %14062  ;;  %v7541_v57 = vrot.slane %v19782_v18, %v18338_v12  ;;  %v7545_v40 = vrot.slane %v19782_v18, %v18341_v42  ;;  %v9876_v28 = vcombine.low %v7413_v56, %v7417_v29  ;;  %v9973_v54 = vcombine.low %v7469_v23, %v7473_v15 }
 0x876   :  { %11838 = vperm.xlu1 %13163, %v9531_v48   ;;  %v19831_v48 = vcombine.low %v9703_v32, %v9710_v21  ;;  %v7425_v32 = vrot.slane %v19778_v33, %v18350_v25  ;;  %v7429_v21 = vrot.slane %v19778_v33, %v18353_v34  ;;  %v7493_v33 = vrot.slane %v19780_v9, %v18353_v34  ;;  %v19901_v47 = vpop.eup %14064 }
 0x877   :  { %v7537_v9 = vrot.slane %v19782_v18, %v21272_v39  ;;  %v19912_v26 = vpop.eup %14066  ;;  %v9974_v20 = vcombine.low %v7477_v37, %v7481_v13  ;;  %v9975_v49 = vcombine.low %v7485_v6, %v7489_v24  ;;  %v7549_v43 = vrot.slane %v19782_v18, %v18345_v61 }
 0x878   :  { %v9877_v8 = vcombine.low %v7421_v36, %v7425_v32  ;;  %v9878_v5 = vcombine.low %v7429_v21, %v7433_v1  ;;  %v19914_v4 = vpop.eup %14068  ;;  %v9976_v59 = vcombine.low %v7493_v33, %v7497_v3  ;;  %v7553_v27 = vrot.slane %v19782_v18, %v18350_v25 }
 0x879   :  { %v14071_v0 = vpop.eup %14070  ;;  %v7557_v56 = vrot.slane %v19782_v18, %v18353_v34  ;;  %v7561_v29 = vrot.slane %v19782_v18, %v18358_v16  ;;  %v10071_v32 = vcombine.low %v7533_v41, %v7537_v9  ;;  %v10072_v21 = vcombine.low %v7541_v57, %v7545_v40 }
 0x87a   :  { %v19925_v1 = vcombine.low %v9801_v17, %v9808_v10  ;;  %v9885_v23 = vrot.slane %v9875_v60, %v18372_v2  ;;  %v9892_v15 = vrot.slane %v9876_v28, %v18372_v2  ;;  %v9899_v37 = vrot.slane %v9877_v8, %v18372_v2 }
 0x87b   :  { %v9906_v6 = vrot.slane %v9878_v5, %v18372_v2  ;;  %v9983_v18 = vrot.slane %v9973_v54, %v18372_v2  ;;  %v9997_v24 = vrot.slane %v9975_v49, %v18372_v2  ;;  %v10004_v17 = vrot.slane %v9976_v59, %v18372_v2 }
 0x87c   :  { %v10073_v10 = vcombine.low %v7549_v43, %v7553_v27  ;;  %14072 = vrcp.f32 %v19854_v45  ;;  %v10074_v3 = vcombine.low %v7557_v56, %v7561_v29  ;;  %v10081_v60 = vrot.slane %v10071_v32, %v18372_v2 }
 0x87d   :  { %v7597_v41 = vrot.slane %v19800_v46, %v21265_v52  ;;  %v7605_v59 = vrot.slane %v19800_v46, %v18338_v12  ;;  %v7609_v27 = vrot.slane %v19800_v46, %v18341_v42  ;;  %v9817_v43 = vrot.slane %v19897_v14, %v18372_v2 }
 0x87e   :  { %v9824_v45 = vrot.slane %v19925_v1, %v18372_v2  ;;  %v19957_v9 = vcombine.low %v9899_v37, %v9906_v6  ;;  %v6404_v57 = vadd.f32 1.0, %v14071_v0  ;;  %v10006_v28 = vcombine.low %v9997_v24, %v10004_v17 }
 0x87f   :  { %v10095_v8 = vrot.slane %v10073_v10, %v18372_v2  ;;  %v10102_v5 = vrot.slane %v10074_v3, %v18372_v2  ;;  %v7613_v49 = vrot.slane %v19800_v46, %v18345_v61  ;;  %v7617_v56 = vrot.slane %v19800_v46, %v18350_v25 }
 0x880   :  { %v7621_v29 = vrot.slane %v19800_v46, %v18353_v34  ;;  %v7625_v0 = vrot.slane %v19800_v46, %v18358_v16  ;;  %v10170_v32 = vcombine.low %v7605_v59, %v7609_v27  ;;  %v7665_v1 = vrot.slane %v19824_v58, %v21272_v39 }
 0x881   :  { %v7677_v37 = vrot.slane %v19824_v58, %v18345_v61  ;;  %v7689_v6 = vrot.slane %v19824_v58, %v18358_v16  ;;  %v10020_v17 = vrot.slane %v10006_v28, %v18372_v2  ;;  %v6143_v10 = vadd.f32 %v21360_v44, %v19618_v19 }
 0x882   :  { %v10104_v3 = vcombine.low %v10095_v8, %v10102_v5  ;;  %v10186_v59 = vrot.slane %v10170_v32, %v18372_v2  ;;  %v7725_v19 = vrot.slane %v19840_v30, %v21265_v52  ;;  %v7733_v28 = vrot.slane %v19840_v30, %v18338_v12 }
 0x883   :  { %v7737_v8 = vrot.slane %v19840_v30, %v18341_v42  ;;  %v7741_v5 = vrot.slane %v19840_v30, %v18345_v61  ;;  %14074 = vrcp.f32 %v6404_v57  ;;  %v7789_v14 = vrot.slane %v19892_v7, %v21265_v52 }
 0x888   :  { %v19895_v50 = vpop.xlane.xlu1 %6060 }
 0x88c   :  { %v11827_v31 = vpop.permute.xlu1 %11826 }
 0x88d   :  { %v12072_v36 = vrot.slane %v11827_v31, %v19904_v53  ;;  %v9990_v31 = vrot.slane %v9974_v20, %v18372_v2  ;;  %v7601_v20 = vrot.slane %v19800_v46, %v21272_v39  ;;  %v7681_v46 = vrot.slane %v19824_v58, %v18350_v25 }
 0x88f   :  { %v12074_v13 = vsel %vm12073_vm13, %v12072_v36, %v19737_v11  ;;  %v10088_v11 = vrot.slane %v10072_v21, %v18372_v2  ;;  %v19959_v40 = vcombine.low %v9983_v18, %v9990_v31  ;;  %v10169_v36 = vcombine.low %v7597_v41, %v7601_v20 }
 0x890   :  { %v19938_v33 = vsel %vm12080_vm14, %v12079_v62, %v12074_v13  ;;  %v19955_v62 = vcombine.low %v9885_v23, %v9892_v15  ;;  %v7661_v21 = vrot.slane %v19824_v58, %v21265_v52  ;;  %v7669_v23 = vrot.slane %v19824_v58, %v18338_v12 }
 0x891   :  { %v10103_v54 = vcombine.low %v10081_v60, %v10088_v11  ;;  %v7673_v15 = vrot.slane %v19824_v58, %v18341_v42  ;;  %v7685_v13 = vrot.slane %v19824_v58, %v18353_v34  ;;  %v9922_v31 = vrot.slane %v19957_v9, %v18372_v2  ;;  %v19998_v11 = vpop.eup %14072 }
 0x892   :  { %v9915_v18 = vrot.slane %v19955_v62, %v18372_v2  ;;  %v10013_v24 = vrot.slane %v19959_v40, %v18372_v2  ;;  %v10171_v58 = vcombine.low %v7613_v49, %v7617_v56  ;;  %v10172_v41 = vcombine.low %v7621_v29, %v7625_v0 }
 0x893   :  { %v10111_v60 = vrot.slane %v10103_v54, %v18372_v2  ;;  %v10179_v20 = vrot.slane %v10169_v36, %v18372_v2  ;;  %v10267_v27 = vcombine.low %v7661_v21, %v7665_v1  ;;  %v10268_v62 = vcombine.low %v7669_v23, %v7673_v15 }
 0x894   :  { %v10269_v9 = vcombine.low %v7677_v37, %v7681_v46  ;;  %v10270_v40 = vcombine.low %v7685_v13, %v7689_v6  ;;  %v12709_v54 = vmul.f32 -1.442695, %v6143_v10  ;;  %v7745_v49 = vrot.slane %v19840_v30, %v18350_v25 }
 0x895   :  { %v7749_v56 = vrot.slane %v19840_v30, %v18353_v34  ;;  %v7753_v29 = vrot.slane %v19840_v30, %v18358_v16  ;;  %v10118_v0 = vrot.slane %v10104_v3, %v18372_v2  ;;  %v10193_v36 = vrot.slane %v10171_v58, %v18372_v2 }
 0x896   :  { %v10200_v32 = vrot.slane %v10172_v41, %v18372_v2  ;;  %v20021_v21 = vcombine.low %v10179_v20, %v10186_v59  ;;  %v10277_v1 = vrot.slane %v10267_v27, %v18372_v2  ;;  %v10284_v23 = vrot.slane %v10268_v62, %v18372_v2 }
 0x897   :  { %v10291_v15 = vrot.slane %v10269_v9, %v18372_v2  ;;  %v10298_v37 = vrot.slane %v10270_v40, %v18372_v2  ;;  %v21383_v46 = vrot.slane %v19829_v22, %v18372_v2  ;;  %v10366_v10 = vcombine.low %v7733_v28, %v7737_v8 }
 0x898   :  { %14076 = vpow2.f32 %v12709_v54  ;;  %v20036_v3 = vcombine.low %v9817_v43, %v9824_v45  ;;  %v10367_v58 = vcombine.low %v7741_v5, %v7745_v49  ;;  %v10368_v41 = vcombine.low %v7749_v56, %v7753_v29 }
 0x899   :  { %v20038_v20 = vcombine.low %v9915_v18, %v9922_v31  ;;  %v20040_v57 = vcombine.low %v10013_v24, %v10020_v17  ;;  %v20042_v59 = vcombine.low %v10111_v60, %v10118_v0  ;;  %v10209_v22 = vrot.slane %v20021_v21, %v18372_v2 }
 0x89a   :  { %6078 = vadd.xlane.f32.xlu1 %v19843_v63  ;;  %v7729_v63 = vrot.slane %v19840_v30, %v21272_v39  ;;  %v21382_v30 = vrot.slane %v19831_v48, %v18372_v2  ;;  %v20044_v48 = vcombine.low %v10193_v36, %v10200_v32  ;;  %v20048_v27 = vcombine.low %v10277_v1, %v10284_v23  ;;  %v20092_v23 = vpop.eup %14074 }
 0x89b   :  { %v20050_v62 = vcombine.low %v10291_v15, %v10298_v37  ;;  %v6145_v43 = vadd.f32 %v21360_v44, %v19714_v51  ;;  %v10382_v18 = vrot.slane %v10366_v10, %v18372_v2  ;;  %v7793_v31 = vrot.slane %v19892_v7, %v21272_v39  ;;  %v6070_v15 = vpop.xlane.xlu0 %6069 }
 0x89c   :  { %v9727_v13 = vcombine.low %v21383_v46, %v21382_v30  ;;  %v10365_v6 = vcombine.low %v7725_v19, %v7729_v63  ;;  %v10389_v24 = vrot.slane %v10367_v58, %v18372_v2  ;;  %v10396_v17 = vrot.slane %v10368_v41, %v18372_v2 }
 0x89d   :  { %v7797_v60 = vrot.slane %v19892_v7, %v18338_v12  ;;  %v7801_v9 = vrot.slane %v19892_v7, %v18341_v42  ;;  %v7805_v51 = vrot.slane %v19892_v7, %v18345_v61  ;;  %v7809_v40 = vrot.slane %v19892_v7, %v18350_v25 }
 0x89e   :  { %v10375_v45 = vrot.slane %v10365_v6, %v18372_v2  ;;  %v7813_v19 = vrot.slane %v19892_v7, %v18353_v34  ;;  %v7817_v63 = vrot.slane %v19892_v7, %v18358_v16  ;;  %v10216_v28 = vrot.slane %v20044_v48, %v18372_v2 }
 0x89f   :  { %v7853_v5 = vrot.slane %v19901_v47, %v21265_v52  ;;  %v7857_v54 = vrot.slane %v19901_v47, %v21272_v39  ;;  %v12711_v49 = vmul.f32 -1.442695, %v6145_v43  ;;  %v10314_v56 = vrot.slane %v20050_v62, %v18372_v2 }
 0x8a0   :  { %v7861_v29 = vrot.slane %v19901_v47, %v18338_v12  ;;  %v7865_v7 = vrot.slane %v19901_v47, %v18341_v42  ;;  %v20088_v0 = vcombine.low %v10375_v45, %v10382_v18  ;;  %v20090_v36 = vcombine.low %v10389_v24, %v10396_v17 }
 0x8a1   :  { %v10463_v32 = vcombine.low %v7789_v14, %v7793_v31  ;;  %v10464_v1 = vcombine.low %v7797_v60, %v7801_v9  ;;  %v10465_v37 = vcombine.low %v7805_v51, %v7809_v40  ;;  %v10466_v30 = vcombine.low %v7813_v19, %v7817_v63 }
 0x8a2   :  { %v7869_v46 = vrot.slane %v19901_v47, %v18345_v61  ;;  %v7873_v6 = vrot.slane %v19901_v47, %v18350_v25  ;;  %v14077_v10 = vpop.eup %14076  ;;  %v6147_v58 = vadd.f32 %v21360_v44, %v19895_v50  ;;  %v7877_v41 = vrot.slane %v19901_v47, %v18353_v34 }
 0x8a3   :  { %v7881_v14 = vrot.slane %v19901_v47, %v18358_v16  ;;  %v10561_v43 = vcombine.low %v7853_v5, %v7857_v54  ;;  %14078 = vpow2.f32 %v12711_v49  ;;  %v7917_v45 = vrot.slane %v19912_v26, %v21265_v52 }
 0x8a4   :  { %v7921_v18 = vrot.slane %v19912_v26, %v21272_v39  ;;  %v6150_v31 = vadd.f32 %v21360_v44, %v6070_v15  ;;  %v7925_v50 = vrot.slane %v19912_v26, %v18338_v12  ;;  %v7929_v24 = vrot.slane %v19912_v26, %v18341_v42 }
 0x8a5   :  { %v7933_v47 = vrot.slane %v19912_v26, %v18345_v61  ;;  %v6399_v17 = vadd.f32 1.0, %v14077_v10  ;;  %v7937_v60 = vrot.slane %v19912_v26, %v18350_v25  ;;  %v7941_v9 = vrot.slane %v19912_v26, %v18353_v34 }
 0x8a6   :  { %v7945_v51 = vrot.slane %v19912_v26, %v18358_v16  ;;  %v12713_v40 = vmul.f32 -1.442695, %v6147_v58  ;;  %v10473_v19 = vrot.slane %v10463_v32, %v18372_v2  ;;  %v10480_v63 = vrot.slane %v10464_v1, %v18372_v2 }
 0x8a7   :  { %v10487_v5 = vrot.slane %v10465_v37, %v18372_v2  ;;  %v10494_v54 = vrot.slane %v10466_v30, %v18372_v2  ;;  %v10563_v49 = vcombine.low %v7869_v46, %v7873_v6  ;;  %v10659_v10 = vcombine.low %v7917_v45, %v7921_v18 }
 0x8a8   :  { %v10660_v8 = vcombine.low %v7925_v50, %v7929_v24  ;;  %14080 = vrcp.f32 %v6399_v17  ;;  %v10661_v26 = vcombine.low %v7933_v47, %v7937_v60  ;;  %v10662_v32 = vcombine.low %v7941_v9, %v7945_v51 }
 0x8a9   :  { %v8173_v1 = vrot.slane %v19914_v4, %v21265_v52  ;;  %14082 = vpow2.f32 %v12713_v40  ;;  %v8177_v37 = vrot.slane %v19914_v4, %v21272_v39  ;;  %v8181_v30 = vrot.slane %v19914_v4, %v18338_v12 }
 0x8aa   :  { %v8185_v46 = vrot.slane %v19914_v4, %v18341_v42  ;;  %v20137_v6 = vcombine.low %v10473_v19, %v10480_v63  ;;  %v20139_v58 = vcombine.low %v10487_v5, %v10494_v54  ;;  %v10683_v18 = vrot.slane %v10661_v26, %v18372_v2 }
 0x8ab   :  { %11844 = vperm.xlu1 %13163, %v19845_v38   ;;  %v10562_v38 = vcombine.low %v7861_v29, %v7865_v7  ;;  %v10571_v29 = vrot.slane %v10561_v43, %v18372_v2  ;;  %v12716_v7 = vmul.f32 -1.442695, %v6150_v31  ;;  %v10669_v43 = vrot.slane %v10659_v10, %v18372_v2 }
 0x8ac   :  { %v10690_v31 = vrot.slane %v10662_v32, %v18372_v2  ;;  %v8189_v50 = vrot.slane %v19914_v4, %v18345_v61  ;;  %v8193_v24 = vrot.slane %v19914_v4, %v18350_v25  ;;  %v8197_v47 = vrot.slane %v19914_v4, %v18353_v34 }
 0x8ad   :  { %v10578_v15 = vrot.slane %v10562_v38, %v18372_v2  ;;  %14084 = vpow2.f32 %v12716_v7  ;;  %v10676_v38 = vrot.slane %v10660_v8, %v18372_v2  ;;  %v14079_v45 = vpop.eup %14078  ;;  %v8201_v17 = vrot.slane %v19914_v4, %v18358_v16 }
 0x8ae   :  { %v20158_v8 = vcombine.low %v8173_v1, %v8177_v37  ;;  %v20160_v60 = vcombine.low %v8181_v30, %v8185_v46  ;;  %v10217_v9 = vcombine.low %v10209_v22, %v10216_v28  ;;  %v21384_v51 = vrot.slane %v20048_v27, %v18372_v2 }
 0x8af   :  { %11850 = vperm.xlu1 %13163, %v9727_v13   ;;  %v10564_v13 = vcombine.low %v7877_v41, %v7881_v14  ;;  %v20143_v14 = vcombine.low %v10571_v29, %v10578_v15  ;;  %v10405_v40 = vrot.slane %v20088_v0, %v18372_v2  ;;  %v6401_v19 = vadd.f32 1.0, %v14079_v45 }
 0x8b0   :  { %v10315_v4 = vcombine.low %v21384_v51, %v10314_v56  ;;  %v10503_v48 = vrot.slane %v20137_v6, %v18372_v2  ;;  %v10510_v21 = vrot.slane %v20139_v58, %v18372_v2  ;;  %v20188_v62 = vcombine.low %v10669_v43, %v10676_v38 }
 0x8b1   :  { %v10592_v41 = vrot.slane %v10564_v13, %v18372_v2  ;;  %v10601_v27 = vrot.slane %v20143_v14, %v18372_v2  ;;  %v20190_v28 = vcombine.low %v10683_v18, %v10690_v31  ;;  %v11053_v56 = vcombine.low %v8189_v50, %v8193_v24 }
 0x8b2   :  { %v11054_v63 = vcombine.low %v8197_v47, %v8201_v17  ;;  %v11061_v5 = vrot.slane %v20158_v8, %v18372_v2  ;;  %v11068_v54 = vrot.slane %v20160_v60, %v18372_v2  ;;  %v8237_v29 = vrot.slane %v19998_v11, %v21265_v52 }
 0x8b3   :  { %11856 = vperm.xlu1 %13163, %v20036_v3   ;;  %v10585_v3 = vrot.slane %v10563_v49, %v18372_v2  ;;  %v14081_v49 = vpop.eup %14080  ;;  %v8241_v7 = vrot.slane %v19998_v11, %v21272_v39  ;;  %14086 = vrcp.f32 %v6401_v19  ;;  %v8245_v26 = vrot.slane %v19998_v11, %v18338_v12 }
 0x8b4   :  { %v14083_v15 = vpop.eup %14082  ;;  %v8249_v32 = vrot.slane %v19998_v11, %v18341_v42  ;;  %v8257_v1 = vrot.slane %v19998_v11, %v18350_v25  ;;  %v8261_v37 = vrot.slane %v19998_v11, %v18353_v34  ;;  %v8265_v30 = vrot.slane %v19998_v11, %v18358_v16 }
 0x8b5   :  { %v20184_v22 = vcombine.low %v10585_v3, %v10592_v41  ;;  %v8301_v41 = vrot.slane %v14081_v49, %v21265_v52  ;;  %v8305_v14 = vrot.slane %v14081_v49, %v21272_v39  ;;  %v6403_v43 = vadd.f32 1.0, %v14083_v15 }
 0x8b6   :  { %v8313_v45 = vrot.slane %v14081_v49, %v18341_v42  ;;  %v8317_v18 = vrot.slane %v14081_v49, %v18345_v61  ;;  %v8321_v31 = vrot.slane %v14081_v49, %v18350_v25  ;;  %v8329_v24 = vrot.slane %v14081_v49, %v18358_v16 }
 0x8b7   :  { %11862 = vperm.xlu1 %13163, %v20038_v20   ;;  %v12082_v20 = vadd.s32 4294967176, %v21350_v35  ;;  %v10412_v35 = vrot.slane %v20090_v36, %v18372_v2  ;;  %v14085_v46 = vpop.eup %14084  ;;  %v11075_v47 = vrot.slane %v11053_v56, %v18372_v2  ;;  %v11082_v17 = vrot.slane %v11054_v63, %v18372_v2 }
 0x8b8   :  { %v11149_v8 = vcombine.low %v8237_v29, %v8241_v7  ;;  %v11150_v60 = vcombine.low %v8245_v26, %v8249_v32  ;;  %v10608_v51 = vrot.slane %v20184_v22, %v18372_v2  ;;  %v10699_v19 = vrot.slane %v20188_v62, %v18372_v2 }
 0x8b9   :  { %v11247_v63 = vcombine.low %v8301_v41, %v8305_v14  ;;  %v11249_v7 = vcombine.low %v8317_v18, %v8321_v31  ;;  %v8461_v18 = vrot.slane %v20092_v23, %v21265_v52 }
 0x8ba   :  { %v11159_v22 = vrot.slane %v11149_v8, %v18372_v2  ;;  %v11166_v62 = vrot.slane %v11150_v60, %v18372_v2  ;;  %v8485_v8 = vrot.slane %v20092_v23, %v18353_v34  ;;  %v8489_v60 = vrot.slane %v20092_v23, %v18358_v16 }
 0x8bb   :  { %11868 = vperm.xlu1 %13163, %v20040_v57   ;;  %v20197_v57 = vsub.s32 %v12082_v20, %v21271_v55  ;;  %v8253_v55 = vrot.slane %v19998_v11, %v18345_v61  ;;  %v8325_v11 = vrot.slane %v14081_v49, %v18353_v34  ;;  %v11257_v36 = vrot.slane %v11247_v63, %v18372_v2 }
 0x8bc   :  { %v11271_v0 = vrot.slane %v11249_v7, %v18372_v2 }
 0x8bd   :  { %v6067_v13 = vpop.xlane.xlu1 %6066  ;;  %v11151_v56 = vcombine.low %v8253_v55, %v8257_v1  ;;  %v11250_v15 = vcombine.low %v8325_v11, %v8329_v24  ;;  %v14087_v26 = vpop.eup %14086  ;;  %v8469_v11 = vrot.slane %v20092_v23, %v18338_v12  ;;  %v8473_v24 = vrot.slane %v20092_v23, %v18341_v42 }
 0x8be   :  { %v6149_v10 = vadd.f32 %v21360_v44, %v6067_v13  ;;  %v11152_v13 = vcombine.low %v8261_v37, %v8265_v30  ;;  %v8373_v37 = vrot.slane %v14087_v26, %v18338_v12  ;;  %v8377_v30 = vrot.slane %v14087_v26, %v18341_v42 }
 0x8bf   :  { %11874 = vperm.xlu1 %13163, %v20042_v59   ;;  %v8309_v59 = vrot.slane %v14081_v49, %v18338_v12  ;;  %v10706_v49 = vrot.slane %v20190_v28, %v18372_v2  ;;  %v10413_v28 = vcombine.low %v10405_v40, %v10412_v35  ;;  %v11173_v32 = vrot.slane %v11151_v56, %v18372_v2 }
 0x8c0   :  { %v12715_v3 = vmul.f32 -1.442695, %v6149_v10  ;;  %v20240_v10 = vcombine.low %v11075_v47, %v11082_v17  ;;  %v11180_v55 = vrot.slane %v11152_v13, %v18372_v2  ;;  %v11278_v40 = vrot.slane %v11250_v15, %v18372_v2 }
 0x8c1   :  { %v11833_v38 = vpop.permute.xlu1 %11832  ;;  %v11248_v29 = vcombine.low %v8309_v59, %v8313_v45  ;;  %v11181_v35 = vcombine.low %v11159_v22, %v11166_v62  ;;  %v8385_v41 = vrot.slane %v14087_v26, %v18350_v25  ;;  %v8389_v14 = vrot.slane %v14087_v26, %v18353_v34 }
 0x8c2   :  { %14088 = vpow2.f32 %v12715_v3  ;;  %v12086_v50 = vrot.slane %v11833_v38, %v20197_v57  ;;  %v11098_v58 = vrot.slane %v20240_v10, %v18372_v2  ;;  %v8393_v59 = vrot.slane %v14087_v26, %v18358_v16 }
 0x8c3   :  { %11880 = vperm.xlu1 %13163, %v10217_v9   ;;  %v6406_v9 = vadd.f32 1.0, %v14085_v46  ;;  %14090 = vrcp.f32 %v6403_v43  ;;  %v11264_v1 = vrot.slane %v11248_v29, %v18372_v2  ;;  %v8381_v46 = vrot.slane %v14087_v26, %v18345_v61 }
 0x8c4   :  { %v20230_v20 = vsel %vm12087_vm15, %v12086_v50, %v19938_v33  ;;  %v20238_v33 = vcombine.low %v11061_v5, %v11068_v54  ;;  %v10609_v5 = vcombine.low %v10601_v27, %v10608_v51  ;;  %v10707_v54 = vcombine.low %v10699_v19, %v10706_v49 }
 0x8c5   :  { %14092 = vrcp.f32 %v6406_v9  ;;  %v8369_v27 = vrot.slane %v14087_v26, %v21272_v39  ;;  %v11182_v43 = vcombine.low %v11173_v32, %v11180_v55  ;;  %v11279_v38 = vcombine.low %v11257_v36, %v11264_v1 }
 0x8c6   :  { %v11091_v6 = vrot.slane %v20238_v33, %v18372_v2  ;;  %v11280_v45 = vcombine.low %v11271_v0, %v11278_v40  ;;  %v8465_v50 = vrot.slane %v20092_v23, %v21272_v39  ;;  %v8477_v47 = vrot.slane %v20092_v23, %v18345_v61 }
 0x8c7   :  { %11886 = vperm.xlu1 %13163, %v10315_v4   ;;  %v10511_v4 = vcombine.low %v10503_v48, %v10510_v21  ;;  %v8365_v48 = vrot.slane %v14087_v26, %v21265_v52  ;;  %v8481_v17 = vrot.slane %v20092_v23, %v18350_v25  ;;  %v11346_v19 = vcombine.low %v8373_v37, %v8377_v30 }
 0x8c8   :  { %v11347_v49 = vcombine.low %v8381_v46, %v8385_v41  ;;  %v11348_v9 = vcombine.low %v8389_v14, %v8393_v59  ;;  %v11189_v22 = vrot.slane %v11181_v35, %v18372_v2  ;;  %v11196_v62 = vrot.slane %v11182_v43, %v18372_v2 }
 0x8c9   :  { %v11345_v51 = vcombine.low %v8365_v48, %v8369_v27  ;;  %v11287_v26 = vrot.slane %v11279_v38, %v18372_v2  ;;  %v11493_v32 = vcombine.low %v8469_v11, %v8473_v24  ;;  %v11494_v55 = vcombine.low %v8477_v47, %v8481_v17 }
 0x8ca   :  { %v11362_v1 = vrot.slane %v11346_v19, %v18372_v2  ;;  %v11369_v0 = vrot.slane %v11347_v49, %v18372_v2  ;;  %v11376_v40 = vrot.slane %v11348_v9, %v18372_v2  ;;  %v11099_v37 = vcombine.low %v11091_v6, %v11098_v58 }
 0x8cb   :  { %11892 = vperm.xlu1 %13163, %v10413_v28   ;;  %v11294_v28 = vrot.slane %v11280_v45, %v18372_v2  ;;  %v11355_v36 = vrot.slane %v11345_v51, %v18372_v2  ;;  %v11197_v46 = vcombine.low %v11189_v22, %v11196_v62  ;;  %v11509_v14 = vrot.slane %v11493_v32, %v18372_v2 }
 0x8cc   :  { %v14089_v21 = vpop.eup %14088  ;;  %v11378_v43 = vcombine.low %v11369_v0, %v11376_v40  ;;  %v11516_v38 = vrot.slane %v11494_v55, %v18372_v2 }
 0x8cd   :  { %v6405_v3 = vadd.f32 1.0, %v14089_v21  ;;  %v14091_v31 = vpop.eup %14090  ;;  %v11377_v59 = vcombine.low %v11355_v36, %v11362_v1 }
 0x8ce   :  { %v8429_v56 = vrot.slane %v14091_v31, %v21265_v52  ;;  %v8433_v13 = vrot.slane %v14091_v31, %v21272_v39  ;;  %v8437_v63 = vrot.slane %v14091_v31, %v18338_v12  ;;  %v8441_v29 = vrot.slane %v14091_v31, %v18341_v42 }
 0x8cf   :  { %14094 = vrcp.f32 %v6405_v3  ;;  %11898 = vperm.xlu1 %13163, %v10511_v4   ;;  %v20294_v7 = vpop.eup %14092  ;;  %v8445_v15 = vrot.slane %v14091_v31, %v18345_v61  ;;  %v8449_v33 = vrot.slane %v14091_v31, %v18350_v25  ;;  %v8453_v23 = vrot.slane %v14091_v31, %v18353_v34 }
 0x8d0   :  { %v8457_v10 = vrot.slane %v14091_v31, %v18358_v16  ;;  %v11492_v4 = vcombine.low %v8461_v18, %v8465_v50  ;;  %v11443_v35 = vcombine.low %v8429_v56, %v8433_v13  ;;  %v11444_v48 = vcombine.low %v8437_v63, %v8441_v29  ;;  %v20312_v18 = vpop.permute.xlu0 %11835 }
 0x8d1   :  { %v11445_v21 = vcombine.low %v8445_v15, %v8449_v33  ;;  %v11295_v3 = vcombine.low %v11287_v26, %v11294_v28  ;;  %v11385_v19 = vrot.slane %v11377_v59, %v18372_v2  ;;  %v11392_v49 = vrot.slane %v11378_v43, %v18372_v2 }
 0x8d2   :  { %v11446_v27 = vcombine.low %v8453_v23, %v8457_v10  ;;  %v11502_v41 = vrot.slane %v11492_v4, %v18372_v2  ;;  %v11460_v6 = vrot.slane %v11444_v48, %v18372_v2  ;;  %v8525_v9 = vrot.slane %v20294_v7, %v21265_v52 }
 0x8d3   :  { %11904 = vperm.xlu1 %13163, %v10609_v5   ;;  %v11495_v5 = vcombine.low %v8485_v8, %v8489_v60  ;;  %v11467_v58 = vrot.slane %v11445_v21, %v18372_v2  ;;  %v8529_v56 = vrot.slane %v20294_v7, %v21272_v39  ;;  %v8533_v63 = vrot.slane %v20294_v7, %v18338_v12 }
 0x8d4   :  { %v11474_v31 = vrot.slane %v11446_v27, %v18372_v2  ;;  %v6076_v13 = vpop.xlane.xlu0 %6075  ;;  %v8537_v29 = vrot.slane %v20294_v7, %v18341_v42  ;;  %v8541_v15 = vrot.slane %v20294_v7, %v18345_v61  ;;  %v8545_v33 = vrot.slane %v20294_v7, %v18350_v25 }
 0x8d5   :  { %v11523_v45 = vrot.slane %v11495_v5, %v18372_v2  ;;  %v8549_v22 = vrot.slane %v20294_v7, %v18353_v34  ;;  %v8553_v62 = vrot.slane %v20294_v7, %v18358_v16  ;;  %v6152_v55 = vadd.f32 %v21360_v44, %v6076_v13 }
 0x8d6   :  { %v11476_v10 = vcombine.low %v11467_v58, %v11474_v31  ;;  %v11524_v5 = vcombine.low %v11502_v41, %v11509_v14  ;;  %v11393_v36 = vcombine.low %v11385_v19, %v11392_v49  ;;  %v11590_v0 = vcombine.low %v8525_v9, %v8529_v56 }
 0x8d7   :  { %11910 = vperm.xlu1 %13163, %v10707_v54   ;;  %v11453_v54 = vrot.slane %v11443_v35, %v18372_v2  ;;  %v11525_v1 = vcombine.low %v11516_v38, %v11523_v45  ;;  %v11591_v40 = vcombine.low %v8533_v63, %v8537_v29  ;;  %v11592_v21 = vcombine.low %v8541_v15, %v8545_v33  ;;  %v21385_v29 = vld [vmem:[#allocation99_spill] sm:$0xff] }
 0x8d8   :  { %v11490_v48 = vrot.slane %v11476_v10, %v18372_v2  ;;  %v11593_v27 = vcombine.low %v8549_v22, %v8553_v62  ;;  %v12718_v41 = vmul.f32 -1.442695, %v6152_v55  ;;  %v11600_v59 = vrot.slane %v11590_v0, %v18372_v2  ;;  %v11842_v9 = vpop.permute.xlu0 %11841  ;;  %v21386_v33 = vld [vmem:[#allocation87_spill] sm:$0xff]  ;;  %v21387_v22 = vld [vmem:[#allocation90_spill] sm:$0xff] }
 0x8d9   :  { %v14095_v30 = vpop.eup %14094  ;;  %v11475_v23 = vcombine.low %v11453_v54, %v11460_v6  ;;  %v11539_v14 = vrot.slane %v11525_v1, %v18372_v2  ;;  %v11607_v43 = vrot.slane %v11591_v40, %v18372_v2  ;;  %v11614_v38 = vrot.slane %v11592_v21, %v18372_v2 }
 0x8da   :  { %v8493_v50 = vrot.slane %v14095_v30, %v21265_v52  ;;  %v8497_v11 = vrot.slane %v14095_v30, %v21272_v39  ;;  %v8501_v24 = vrot.slane %v14095_v30, %v18338_v12  ;;  %v8505_v47 = vrot.slane %v14095_v30, %v18341_v42 }
 0x8db   :  { %11934 = vperm.xlu1 %13163, %v11099_v37   ;;  %v8509_v17 = vrot.slane %v14095_v30, %v18345_v61  ;;  %v8513_v8 = vrot.slane %v14095_v30, %v18350_v25  ;;  %v8517_v60 = vrot.slane %v14095_v30, %v18353_v34  ;;  %v8521_v51 = vrot.slane %v14095_v30, %v18358_v16 }
 0x8dc   :  { %v11541_v26 = vcombine.low %v8493_v50, %v8497_v11  ;;  %v11542_v28 = vcombine.low %v8501_v24, %v8505_v47  ;;  %v11483_v35 = vrot.slane %v11475_v23, %v18372_v2  ;;  %v11621_v58 = vrot.slane %v11593_v27, %v18372_v2 }
 0x8dd   :  { %v11543_v4 = vcombine.low %v8509_v17, %v8513_v8  ;;  %v11544_v32 = vcombine.low %v8517_v60, %v8521_v51  ;;  %14096 = vpow2.f32 %v12718_v41  ;;  %v11622_v24 = vcombine.low %v11600_v59, %v11607_v43 }
 0x8de   :  { %v11551_v7 = vrot.slane %v11541_v26, %v18372_v2  ;;  %v11558_v37 = vrot.slane %v11542_v28, %v18372_v2  ;;  %v11491_v45 = vcombine.low %v11483_v35, %v11490_v48  ;;  %v11623_v47 = vcombine.low %v11614_v38, %v11621_v58 }
 0x8df   :  { %11940 = vperm.xlu1 %13163, %v11197_v46   ;;  %v11565_v30 = vrot.slane %v11543_v4, %v18372_v2  ;;  %v11572_v46 = vrot.slane %v11544_v32, %v18372_v2  ;;  %v11630_v8 = vrot.slane %v11622_v24, %v18372_v2  ;;  %v12092_v15 = vrot.slane %v20312_v18, %v21385_v29 }
 0x8e0   :  { %v11573_v54 = vcombine.low %v11551_v7, %v11558_v37  ;;  %v11637_v60 = vrot.slane %v11623_v47, %v18372_v2  ;;  %v12101_v62 = vrot.slane %v11842_v9, %v21387_v22 }
 0x8e1   :  { %v11574_v6 = vcombine.low %v11565_v30, %v11572_v46 }
 0x8e2   :  { %v11581_v50 = vrot.slane %v11573_v54, %v18372_v2  ;;  %v11638_v13 = vcombine.low %v11630_v8, %v11637_v60 }
 0x8e3   :  { %11946 = vperm.xlu1 %13163, %v11295_v3   ;;  %v11532_v3 = vrot.slane %v11524_v5, %v18372_v2  ;;  %v11588_v11 = vrot.slane %v11574_v6, %v18372_v2 }
 0x8e5   :  { %v11540_v31 = vcombine.low %v11532_v3, %v11539_v14  ;;  %v11589_v17 = vcombine.low %v11581_v50, %v11588_v11 }
 0x8e7   :  { %11952 = vperm.xlu1 %13163, %v11393_v36   ;;  %v14097_v49 = vpop.eup %14096 }
 0x8e8   :  { %v6408_v10 = vadd.f32 1.0, %v14097_v49 }
 0x8eb   :  { %11958 = vperm.xlu1 %13163, %v11491_v45  }
 0x8ef   :  { %11961 = vperm.xlu1 %13163, %v11540_v31  }
 0x8f2   :  { %v6073_v51 = vpop.xlane.xlu1 %6072 }
 0x8f3   :  { %v6151_v19 = vadd.f32 %v21360_v44, %v6073_v51  ;;  %11964 = vperm.xlu1 %13163, %v11589_v17  }
 0x8f5   :  { %v12717_v56 = vmul.f32 -1.442695, %v6151_v19 }
 0x8f6   :  { %v11839_v63 = vpop.permute.xlu1 %11838 }
 0x8f7   :  { %14098 = vpow2.f32 %v12717_v56  ;;  %v12096_v23 = vrot.slane %v11839_v63, %v21386_v33  ;;  %11967 = vperm.xlu1 %13163, %v11638_v13  }
 0x8f8   :  { %14100 = vrcp.f32 %v6408_v10 }
 0x8f9   :  { %v12097_v26 = vsel %vm11989_vm1, %v12096_v23, %v12092_v15 }
 0x8fa   :  { %v12102_v28 = vsel %vm11996_vm2, %v12101_v62, %v12097_v26  ;;  %v11848_v26 = vpop.permute.xlu0 %11847 }
 0x901   :  { %v14099_v4 = vpop.eup %14098 }
 0x902   :  { %v6407_v32 = vadd.f32 1.0, %v14099_v4  ;;  %v14101_v55 = vpop.eup %14100  ;;  %v11854_v4 = vpop.permute.xlu0 %11853 }
 0x903   :  { %v8589_v5 = vrot.slane %v14101_v55, %v21265_v52  ;;  %v8593_v18 = vrot.slane %v14101_v55, %v21272_v39  ;;  %v8597_v36 = vrot.slane %v14101_v55, %v18338_v12  ;;  %v8601_v1 = vrot.slane %v14101_v55, %v18341_v42 }
 0x904   :  { %14102 = vrcp.f32 %v6407_v32  ;;  %v8605_v0 = vrot.slane %v14101_v55, %v18345_v61  ;;  %v8609_v40 = vrot.slane %v14101_v55, %v18350_v25  ;;  %v8613_v35 = vrot.slane %v14101_v55, %v18353_v34 }
 0x905   :  { %v8617_v48 = vrot.slane %v14101_v55, %v18358_v16  ;;  %v11688_v21 = vcombine.low %v8589_v5, %v8593_v18  ;;  %v11689_v27 = vcombine.low %v8597_v36, %v8601_v1  ;;  %v21388_v1 = vld [vmem:[#allocation94_spill] sm:$0xff] }
 0x906   :  { %v11690_v37 = vcombine.low %v8605_v0, %v8609_v40  ;;  %v11860_v36 = vpop.permute.xlu0 %11859  ;;  %v21389_v40 = vld [vmem:[#allocation27_spill] sm:$0xff] }
 0x907   :  { %v11691_v30 = vcombine.low %v8613_v35, %v8617_v48  ;;  %v11698_v58 = vrot.slane %v11688_v21, %v18372_v2  ;;  %v11705_v31 = vrot.slane %v11689_v27, %v18372_v2  ;;  %v12111_v35 = vrot.slane %v11848_v26, %v21389_v40 }
 0x908   :  { %v11712_v24 = vrot.slane %v11690_v37, %v18372_v2 }
 0x909   :  { %v11719_v47 = vrot.slane %v11691_v30, %v18372_v2  ;;  %v11720_v9 = vcombine.low %v11698_v58, %v11705_v31  ;;  %v21391_v30 = vld [vmem:[#allocation42_spill] sm:$0xff] }
 0x90b   :  { %v11721_v56 = vcombine.low %v11712_v24, %v11719_v47  ;;  %v11728_v23 = vrot.slane %v11720_v9, %v18372_v2  ;;  %v21395_v47 = vld [vmem:[#allocation22_spill] sm:$0xff]  ;;  %v21397_v9 = vld [vmem:[#allocation48_spill] sm:$0xff] }
 0x90d   :  { %v11735_v10 = vrot.slane %v11721_v56, %v18372_v2 }
 0x90e   :  { %v14103_v7 = vpop.eup %14102 }
 0x90f   :  { %v8557_v46 = vrot.slane %v14103_v7, %v21265_v52  ;;  %v8561_v41 = vrot.slane %v14103_v7, %v21272_v39  ;;  %v8565_v3 = vrot.slane %v14103_v7, %v18338_v12  ;;  %v8569_v14 = vrot.slane %v14103_v7, %v18341_v42 }
 0x910   :  { %v8573_v59 = vrot.slane %v14103_v7, %v18345_v61  ;;  %v8577_v43 = vrot.slane %v14103_v7, %v18350_v25  ;;  %v8581_v38 = vrot.slane %v14103_v7, %v18353_v34  ;;  %v8585_v45 = vrot.slane %v14103_v7, %v18358_v16  ;;  %v21390_v7 = vld [vmem:[#allocation31_spill] sm:$0xff] }
 0x911   :  { %v11639_v54 = vcombine.low %v8557_v46, %v8561_v41  ;;  %v11640_v6 = vcombine.low %v8565_v3, %v8569_v14  ;;  %v11736_v62 = vcombine.low %v11728_v23, %v11735_v10  ;;  %v12121_v46 = vrot.slane %v11854_v4, %v21391_v30  ;;  %v11866_v41 = vpop.permute.xlu0 %11865 }
 0x912   :  { %v11641_v50 = vcombine.low %v8573_v59, %v8577_v43  ;;  %v11642_v11 = vcombine.low %v8581_v38, %v8585_v45  ;;  %v21392_v59 = vld [vmem:[#allocation40_spill] sm:$0xff]  ;;  %v21393_v38 = vld [vmem:[#allocation23_spill] sm:$0xff] }
 0x913   :  { %v11649_v17 = vrot.slane %v11639_v54, %v18372_v2  ;;  %v11656_v8 = vrot.slane %v11640_v6, %v18372_v2  ;;  %v12131_v45 = vrot.slane %v11860_v36, %v21393_v38 }
 0x914   :  { %v11663_v60 = vrot.slane %v11641_v50, %v18372_v2  ;;  %v11670_v51 = vrot.slane %v11642_v11, %v18372_v2  ;;  %v21394_v11 = vld [vmem:[#allocation46_spill] sm:$0xff] }
 0x915   :  { %v11671_v19 = vcombine.low %v11649_v17, %v11656_v8  ;;  %v11872_v50 = vpop.permute.xlu0 %11871  ;;  %v12141_v17 = vrot.slane %v11866_v41, %v21395_v47 }
 0x916   :  { %v11672_v49 = vcombine.low %v11663_v60, %v11670_v51  ;;  %v12151_v56 = vrot.slane %v11872_v50, %v21397_v9 }
 0x917   :  { %v11679_v13 = vrot.slane %v11671_v19, %v18372_v2  ;;  %v21396_v19 = vld [vmem:[#allocation53_spill] sm:$0xff] }
 0x918   :  { %v11686_v63 = vrot.slane %v11672_v49, %v18372_v2 }
 0x91a   :  { %v11687_v15 = vcombine.low %v11679_v13, %v11686_v63  ;;  %v11878_v13 = vpop.permute.xlu0 %11877 }
 0x91c   :  { %11970 = vperm.xlu1 %13163, %v11687_v15  }
 0x920   :  { %11973 = vperm.xlu1 %13163, %v11736_v62   ;;  %v21398_v62 = vld [vmem:[#allocation45_spill] sm:$0xff] }
 0x921   :  { %v12161_v26 = vrot.slane %v11878_v13, %v21398_v62 }
 0x927   :  { %v6079_v32 = vpop.xlane.xlu1 %6078 }
 0x928   :  { %v6153_v55 = vadd.f32 %v21360_v44, %v6079_v32 }
 0x92a   :  { %v12719_v5 = vmul.f32 -1.442695, %v6153_v55 }
 0x92b   :  { %v11845_v18 = vpop.permute.xlu1 %11844 }
 0x92c   :  { %14104 = vpow2.f32 %v12719_v5  ;;  %v12106_v0 = vrot.slane %v11845_v18, %v21388_v1 }
 0x92e   :  { %v12107_v48 = vsel %vm12003_vm3, %v12106_v0, %v12102_v28 }
 0x92f   :  { %v11851_v21 = vpop.permute.xlu1 %11850  ;;  %v12112_v27 = vsel %vm12010_vm4, %v12111_v35, %v12107_v48 }
 0x930   :  { %v12116_v37 = vrot.slane %v11851_v21, %v21390_v7 }
 0x932   :  { %v12117_v44 = vsel %vm12017_vm5, %v12116_v37, %v12112_v27 }
 0x933   :  { %v11857_v3 = vpop.permute.xlu1 %11856  ;;  %v12122_v14 = vsel %vm12024_vm6, %v12121_v46, %v12117_v44 }
 0x934   :  { %v12126_v43 = vrot.slane %v11857_v3, %v21392_v59 }
 0x936   :  { %v14105_v54 = vpop.eup %14104  ;;  %v12127_v28 = vsel %vm12031_vm7, %v12126_v43, %v12122_v14 }
 0x937   :  { %v6409_v6 = vadd.f32 1.0, %v14105_v54  ;;  %v11863_v58 = vpop.permute.xlu1 %11862  ;;  %v12132_v31 = vsel %vm12038_vm8, %v12131_v45, %v12127_v28  ;;  %v11884_v28 = vpop.permute.xlu0 %11883 }
 0x938   :  { %v12136_v24 = vrot.slane %v11863_v58, %v21394_v11 }
 0x939   :  { %14106 = vrcp.f32 %v6409_v6 }
 0x93a   :  { %v12137_v8 = vsel %vm12045_vm9, %v12136_v24, %v12132_v31 }
 0x93b   :  { %v11869_v60 = vpop.permute.xlu1 %11868  ;;  %v12142_v51 = vsel %vm12052_vm10, %v12141_v17, %v12137_v8  ;;  %v11890_v58 = vpop.permute.xlu0 %11889 }
 0x93c   :  { %v12146_v49 = vrot.slane %v11869_v60, %v21396_v19 }
 0x93e   :  { %v12147_v63 = vsel %vm12059_vm11, %v12146_v49, %v12142_v51 }
 0x93f   :  { %v11875_v15 = vpop.permute.xlu1 %11874  ;;  %v12152_v23 = vsel %vm12066_vm12, %v12151_v56, %v12147_v63  ;;  %v11896_v50 = vpop.permute.xlu0 %11895 }
 0x940   :  { %v12156_v10 = vrot.slane %v11875_v15, %v19904_v53 }
 0x942   :  { %v12157_v4 = vsel %vm12073_vm13, %v12156_v10, %v12152_v23 }
 0x943   :  { %v14107_v32 = vpop.eup %14106  ;;  %v11881_v55 = vpop.permute.xlu1 %11880  ;;  %v12162_v5 = vsel %vm12080_vm14, %v12161_v26, %v12157_v4 }
 0x944   :  { %v12166_v18 = vrot.slane %v11881_v55, %v20197_v57  ;;  %v8621_v36 = vrot.slane %v14107_v32, %v21265_v52  ;;  %v8625_v0 = vrot.slane %v14107_v32, %v21272_v39  ;;  %v8629_v35 = vrot.slane %v14107_v32, %v18338_v12  ;;  %v11902_v17 = vpop.permute.xlu0 %11901 }
 0x945   :  { %v8633_v48 = vrot.slane %v14107_v32, %v18341_v42  ;;  %v8637_v21 = vrot.slane %v14107_v32, %v18345_v61  ;;  %v8641_v27 = vrot.slane %v14107_v32, %v18350_v25  ;;  %v8645_v37 = vrot.slane %v14107_v32, %v18353_v34 }
 0x946   :  { %v20430_v46 = vsel %vm12087_vm15, %v12166_v18, %v12162_v5  ;;  %v8649_v41 = vrot.slane %v14107_v32, %v18358_v16  ;;  %v11737_v44 = vcombine.low %v8621_v36, %v8625_v0  ;;  %v12171_v55 = vrot.slane %v11884_v28, %v21385_v29 }
 0x947   :  { %v12326_v52 = vcombine.low %v20230_v20, %v20430_v46  ;;  %v11738_v39 = vcombine.low %v8629_v35, %v8633_v48  ;;  %v11739_v3 = vcombine.low %v8637_v21, %v8641_v27  ;;  %v11887_v6 = vpop.permute.xlu1 %11886  ;;  %v12180_v35 = vrot.slane %v11890_v58, %v21387_v22 }
 0x948   :  { %v11740_v12 = vcombine.low %v8645_v37, %v8649_v41  ;;  %v11747_v42 = vrot.slane %v11737_v44, %v18372_v2  ;;  %v11908_v60 = vpop.permute.xlu0 %11907  ;;  %v12175_v32 = vrot.slane %v11887_v6, %v21386_v33  ;;  %v12190_v41 = vrot.slane %v11896_v50, %v21389_v40 }
 0x949   :  { %v11754_v61 = vrot.slane %v11738_v39, %v18372_v2  ;;  %v11761_v25 = vrot.slane %v11739_v3, %v18372_v2  ;;  %v12210_v6 = vrot.slane %v11908_v60, %v21393_v38 }
 0x94a   :  { %v11768_v34 = vrot.slane %v11740_v12, %v18372_v2  ;;  %v12176_v36 = vsel %vm11989_vm1, %v12175_v32, %v12171_v55 }
 0x94b   :  { %v11769_v14 = vcombine.low %v11747_v42, %v11754_v61  ;;  %v11893_v31 = vpop.permute.xlu1 %11892  ;;  %v12181_v48 = vsel %vm11996_vm2, %v12180_v35, %v12176_v36  ;;  %v12200_v61 = vrot.slane %v11902_v17, %v21391_v30 }
 0x94c   :  { %v11770_v43 = vcombine.low %v11761_v25, %v11768_v34  ;;  %v11914_v49 = vpop.permute.xlu0 %11913  ;;  %v12185_v0 = vrot.slane %v11893_v31, %v21388_v1 }
 0x94d   :  { %v11777_v45 = vrot.slane %v11769_v14, %v18372_v2 }
 0x94e   :  { %v11784_v16 = vrot.slane %v11770_v43, %v18372_v2  ;;  %v12186_v21 = vsel %vm12003_vm3, %v12185_v0, %v12181_v48 }
 0x94f   :  { %v11899_v24 = vpop.permute.xlu1 %11898  ;;  %v12191_v39 = vsel %vm12010_vm4, %v12190_v41, %v12186_v21 }
 0x950   :  { %v11785_v54 = vcombine.low %v11777_v45, %v11784_v16  ;;  %v11917_v13 = vpop.permute.xlu0 %11916  ;;  %v12195_v27 = vrot.slane %v11899_v24, %v21390_v7 }
 0x952   :  { %11976 = vperm.xlu1 %13163, %v11785_v54   ;;  %v12196_v3 = vsel %vm12017_vm5, %v12195_v27, %v12191_v39 }
 0x953   :  { %v11905_v8 = vpop.permute.xlu1 %11904  ;;  %v12201_v43 = vsel %vm12024_vm6, %v12200_v61, %v12196_v3  ;;  %v12334_v61 = vrot.slane %v12326_v52, %v18372_v2 }
 0x954   :  { %v11920_v15 = vpop.permute.xlu0 %11919  ;;  %v12205_v12 = vrot.slane %v11905_v8, %v21392_v59  ;;  %v12220_v8 = vrot.slane %v11914_v49, %v21395_v47 }
 0x955   :  { %v12230_v49 = vrot.slane %v11920_v15, %v21397_v9 }
 0x956   :  { %v12206_v45 = vsel %vm12031_vm7, %v12205_v12, %v12201_v43 }
 0x957   :  { %v11911_v51 = vpop.permute.xlu1 %11910  ;;  %v12211_v58 = vsel %vm12038_vm8, %v12210_v6, %v12206_v45 }
 0x958   :  { %v20441_v10 = vpop.permute.xlu0 %11922  ;;  %v12215_v16 = vrot.slane %v11911_v51, %v21394_v11 }
 0x95a   :  { %v12216_v31 = vsel %vm12045_vm9, %v12215_v16, %v12211_v58 }
 0x95b   :  { %v11935_v56 = vpop.permute.xlu1 %11934  ;;  %v12221_v60 = vsel %vm12052_vm10, %v12220_v8, %v12216_v31 }
 0x95c   :  { %v11932_v4 = vpop.permute.xlu0 %11931  ;;  %v12254_v42 = vrot.slane %v11935_v56, %v21386_v33  ;;  %v12225_v56 = vrot.slane %v11917_v13, %v21396_v19 }
 0x95d   :  { %v12250_v25 = vrot.slane %v11932_v4, %v21385_v29 }
 0x95f   :  { %v11941_v63 = vpop.permute.xlu1 %11940  ;;  %v12255_v54 = vsel %vm11989_vm1, %v12254_v42, %v12250_v25 }
 0x960   :  { %v11938_v18 = vpop.permute.xlu0 %11937  ;;  %v12264_v28 = vrot.slane %v11941_v63, %v21388_v1 }
 0x961   :  { %v12259_v33 = vrot.slane %v11938_v18, %v21387_v22 }
 0x963   :  { %v11947_v23 = vpop.permute.xlu1 %11946  ;;  %v12260_v29 = vsel %vm11996_vm2, %v12259_v33, %v12255_v54 }
 0x964   :  { %v11944_v44 = vpop.permute.xlu0 %11943  ;;  %v12265_v50 = vsel %vm12003_vm3, %v12264_v28, %v12260_v29  ;;  %v12274_v24 = vrot.slane %v11947_v23, %v21390_v7  ;;  %v12226_v7 = vsel %vm12059_vm11, %v12225_v56, %v12221_v60 }
 0x965   :  { %v12269_v51 = vrot.slane %v11944_v44, %v21389_v40  ;;  %v12231_v0 = vsel %vm12066_vm12, %v12230_v49, %v12226_v7 }
 0x967   :  { %v11953_v26 = vpop.permute.xlu1 %11952  ;;  %v12270_v22 = vsel %vm12010_vm4, %v12269_v51, %v12265_v50 }
 0x968   :  { %v11950_v14 = vpop.permute.xlu0 %11949  ;;  %v12275_v63 = vsel %vm12017_vm5, %v12274_v24, %v12270_v22  ;;  %v12284_v4 = vrot.slane %v11953_v26, %v21392_v59 }
 0x969   :  { %v12279_v55 = vrot.slane %v11950_v14, %v21391_v30  ;;  %v12235_v30 = vrot.slane %v20441_v10, %v19904_v53  ;;  %v21399_v14 = vlaneseq }
 0x96b   :  { %v11959_v5 = vpop.permute.xlu1 %11958  ;;  %v12280_v40 = vsel %vm12024_vm6, %v12279_v55, %v12275_v63  ;;  %vm12353_vm0 = vcmp.lt.s32.totalorder %v21399_v14, 512 }
 0x96c   :  { %v11956_v1 = vpop.permute.xlu0 %11955  ;;  %v12285_v18 = vsel %vm12031_vm7, %v12284_v4, %v12280_v40  ;;  %v12294_v36 = vrot.slane %v11959_v5, %v21394_v11 }
 0x96d   :  { %v12289_v13 = vrot.slane %v11956_v1, %v21393_v38  ;;  %v12236_v38 = vsel %vm12073_vm13, %v12235_v30, %v12231_v0 }
 0x96f   :  { %v11962_v37 = vpop.permute.xlu1 %11961  ;;  %v12290_v15 = vsel %vm12038_vm8, %v12289_v13, %v12285_v18 }
 0x970   :  { %v11926_v23 = vpop.permute.xlu0 %11925  ;;  %v12299_v59 = vrot.slane %v11962_v37, %v21395_v47  ;;  %v12295_v21 = vsel %vm12045_vm9, %v12294_v36, %v12290_v15 }
 0x971   :  { %v12240_v5 = vrot.slane %v11926_v23, %v21398_v62 }
 0x972   :  { %v12300_v47 = vsel %vm12052_vm10, %v12299_v59, %v12295_v21 }
 0x973   :  { %v11965_v34 = vpop.permute.xlu1 %11964 }
 0x974   :  { %v12304_v26 = vrot.slane %v11965_v34, %v21396_v19  ;;  %v11929_v27 = vpop.permute.xlu0 %11928 }
 0x975   :  { %v12245_v44 = vrot.slane %v11929_v27, %v20197_v57 }
 0x976   :  { %v12305_v19 = vsel %vm12059_vm11, %v12304_v26, %v12300_v47 }
 0x977   :  { %v11968_v17 = vpop.permute.xlu1 %11967 }
 0x978   :  { %v12309_v48 = vrot.slane %v11968_v17, %v21397_v9  ;;  %v12241_v9 = vsel %vm12080_vm14, %v12240_v5, %v12236_v38 }
 0x979   :  { %v12246_v12 = vsel %vm12087_vm15, %v12245_v44, %v12241_v9 }
 0x97a   :  { %v12310_v37 = vsel %vm12066_vm12, %v12309_v48, %v12305_v19 }
 0x99b   :  { %v11971_v32 = vpop.permute.xlu1 %11970 }
 0x99c   :  { %v12314_v11 = vrot.slane %v11971_v32, %v19904_v53 }
 0x99e   :  { %v12315_v53 = vsel %vm12073_vm13, %v12314_v11, %v12310_v37 }
 0x99f   :  { %v11974_v35 = vpop.permute.xlu1 %11973 }
 0x9a0   :  { %v12319_v10 = vrot.slane %v11974_v35, %v21398_v62 }
 0x9a2   :  { %v12320_v3 = vsel %vm12080_vm14, %v12319_v10, %v12315_v53 }
 0x9d1   :  { %v11977_v41 = vpop.permute.xlu1 %11976 }
 0x9d2   :  { %v12324_v39 = vrot.slane %v11977_v41, %v20197_v57 }
 0x9d4   :  { %v12325_v42 = vsel %vm12087_vm15, %v12324_v39, %v12320_v3 }
 0x9d5   :  { %v12327_v62 = vcombine.low %v12246_v12, %v12325_v42 }
 0x9d7   :  { %v12341_v25 = vrot.slane %v12327_v62, %v18372_v2 }
 0x9d9   :  { %v12342_v34 = vcombine.low %v12334_v61, %v12341_v25 }
 0x9db   :  { %v12349_v43 = vrot.slane %v12342_v34, %v18372_v2 }
 0x9dd   :  { %12355 = vst.msk [vmem:[%s20527_s11] sm:$0xf] %vm12353_vm0, %v12349_v43 }
 0x9de   :  { %12360 = vsyncpa [#allocation4], 1 }
 0x9df   :  { %12361 = vsyncpa [#allocation6], 1 }
 0x9e0   :  { %12362 = vsyncpa [#allocation9], 1 }
 0x9e1   :  { %12363 = vsyncpa [#allocation12], 1 }

</bundles_post_ra>
